<compile_context>
chip_gen: v5e
topology: v5e:2x2
jax: 0.10.0
libtpu: 0.0.40
codegen_flags: <defaults>
</compile_context>

<pallas_src>
import jax
import jax.numpy as jnp
from jax.experimental import pallas as pl
from jax.experimental.pallas import tpu as pltpu

KSIZE = 7
PAD = (KSIZE - 1) // 2      # 3
TAPS = KSIZE * KSIZE        # 49


# ------------------------------ in-kernel helpers ------------------------------
def _zero_halo(zp_ref, rows, lanes):
    """Zero only the 3-wide halo strips of a (2, rows+6, lanes+6) pooled-map buffer.

    The interior [PAD:PAD+rows, PAD:PAD+lanes] is fully overwritten every grid step,
    so only the halo needs (re)zeroing.  Done every step (never program_id-gated:
    each TensorCore owns its own scratch under megacore sharding)."""
    n_lanes = lanes + 2 * PAD
    zp_ref[:, :PAD, :] = jnp.zeros((2, PAD, n_lanes), jnp.float32)
    zp_ref[:, PAD + rows:, :] = jnp.zeros((2, PAD, n_lanes), jnp.float32)
    zp_ref[:, PAD:PAD + rows, :PAD] = jnp.zeros((2, rows, PAD), jnp.float32)
    zp_ref[:, PAD:PAD + rows, PAD + lanes:] = jnp.zeros((2, rows, PAD), jnp.float32)


def _conv7x7_sigmoid(zp_ref, w_ref, b_ref, branch, rows, lanes, swap_rs=False):
    """7x7 'same' conv (2 in-ch -> 1 out-ch, zero pad 3) + bias + sigmoid over the
    pooled map stored in zp_ref (2, rows+6, lanes+6).  Returns (rows, lanes) f32.

    swap_rs=True for the hc branch, whose first kernel axis runs along the LANE (H)
    direction.  Four independent accumulators (input channel x row-tap parity) break
    the serial FP accumulation chain; the 7 lane-direction shifted loads are hoisted
    out of the inner loops.  out_channels=1 -> pure VPU work (MXU would be idle)."""
    base = branch * 2 * TAPS
    accs = [jnp.zeros((rows, lanes), jnp.float32) for _ in range(4)]
    for kj in range(KSIZE):                               # lane-direction tap (hoisted)
        zsh = zp_ref[:, :, kj:kj + lanes]                 # (2, rows+6, lanes)
        for ch in range(2):
            for ki in range(KSIZE):                       # sublane-direction tap
                widx = (kj * KSIZE + ki) if swap_rs else (ki * KSIZE + kj)
                a = 2 * ch + (ki & 1)
                accs[a] = accs[a] + w_ref[base + ch * TAPS + widx] * zsh[ch, ki:ki + rows, :]
    acc = (accs[0] + accs[1]) + (accs[2] + accs[3]) + b_ref[branch]
    return jax.nn.sigmoid(acc)


# --------------------------------- fused kernel ---------------------------------
def _triplet_kernel(x_ref, w_ref, b_ref, o_ref, zhw_ref, zcw_ref, zhc_ref):
    _, C, H, W = x_ref.shape

    # ---- ZPool for all three branches (x value live only in this phase) ----
    x = x_ref[0].astype(jnp.float32)                      # (C, H, W)
    _zero_halo(zhw_ref, H, W)
    zhw_ref[0, PAD:PAD + H, PAD:PAD + W] = jnp.max(x, axis=0)
    zhw_ref[1, PAD:PAD + H, PAD:PAD + W] = jnp.mean(x, axis=0)
    _zero_halo(zcw_ref, C, W)
    zcw_ref[0, PAD:PAD + C, PAD:PAD + W] = jnp.max(x, axis=1)
    zcw_ref[1, PAD:PAD + C, PAD:PAD + W] = jnp.mean(x, axis=1)
    _zero_halo(zhc_ref, C, H)
    zhc_ref[0, PAD:PAD + C, PAD:PAD + H] = jnp.max(x, axis=2)
    zhc_ref[1, PAD:PAD + C, PAD:PAD + H] = jnp.mean(x, axis=2)

    # ---- 7x7 conv + BN(folded) + sigmoid per branch ----
    s_hw = _conv7x7_sigmoid(zhw_ref, w_ref, b_ref, 0, H, W)                  # (H, W)
    s_cw = _conv7x7_sigmoid(zcw_ref, w_ref, b_ref, 1, C, W)                  # (C, W)
    s_hc = _conv7x7_sigmoid(zhc_ref, w_ref, b_ref, 2, C, H, swap_rs=True)    # (C, H)

    # ---- combine: out = (1/3) * x * (s_hw + s_cw + s_hc) ----
    gate = s_hw[None, :, :] + s_cw[:, None, :] + s_hc[:, :, None]            # (C, H, W)
    o_ref[0] = ((1.0 / 3.0) * x_ref[0].astype(jnp.float32) * gate).astype(o_ref.dtype)


def triplet_attention(x, w_all, b_all):
    """x: (B, C, H, W) float (NCHW); w_all: (294,) f32 [hw|cw|hc]; b_all: (3,) f32."""
    B, C, H, W = x.shape
    return pl.pallas_call(
        _triplet_kernel,
        out_shape=jax.ShapeDtypeStruct((B, C, H, W), x.dtype),
        grid=(B,),
        in_specs=[
            pl.BlockSpec((1, C, H, W), lambda b: (b, 0, 0, 0)),
            pl.BlockSpec(memory_space=pltpu.MemorySpace.SMEM),   # 294 folded conv weights
            pl.BlockSpec(memory_space=pltpu.MemorySpace.SMEM),   # 3 folded biases
        ],
        out_specs=pl.BlockSpec((1, C, H, W), lambda b: (b, 0, 0, 0)),
        scratch_shapes=[
            pltpu.VMEM((2, H + 2 * PAD, W + 2 * PAD), jnp.float32),   # hw pooled + halo
            pltpu.VMEM((2, C + 2 * PAD, W + 2 * PAD), jnp.float32),   # cw pooled + halo
            pltpu.VMEM((2, C + 2 * PAD, H + 2 * PAD), jnp.float32),   # hc pooled + halo (H on lanes)
        ],
        compiler_params=pltpu.CompilerParams(
            dimension_semantics=("parallel",),
            vmem_limit_bytes=32 * 1024 * 1024,
        ),
    )(x, w_all, b_all)


# --------------------------- parameter construction ---------------------------
def make_gate_params(key, eps=1e-5):
    """Deterministic synthetic parameters for one AttentionGate (BasicConv: conv+BN, eval mode)."""
    kw, kg, kb, km, kv = jax.random.split(key, 5)
    w = jax.random.normal(kw, (1, 2, KSIZE, KSIZE), jnp.float32) * 0.1     # Conv2d(2,1,7,bias=False)
    gamma = 1.0 + 0.1 * jax.random.normal(kg, (1,), jnp.float32)           # BN weight
    beta = 0.1 * jax.random.normal(kb, (1,), jnp.float32)                  # BN bias
    r_mean = 0.05 * jax.random.normal(km, (1,), jnp.float32)               # BN running_mean
    r_var = 1.0 + 0.1 * jnp.abs(jax.random.normal(kv, (1,), jnp.float32))  # BN running_var
    a = gamma / jnp.sqrt(r_var + eps)
    w_folded = (w[0] * a[0]).reshape(-1)                                   # (98,)
    b_folded = (beta - r_mean * a).reshape(1)                              # (1,)
    return w_folded, b_folded


# ---------------- pure-JAX reference (for correctness check) ----------------
def _gate_ref(x, w_folded, b_folded):
    zmax = jnp.max(x, axis=1, keepdims=True)
    zmean = jnp.mean(x, axis=1, keepdims=True)
    z = jnp.concatenate([zmax, zmean], axis=1)                             # (B,2,H,W)
    w = w_folded.reshape(1, 2, KSIZE, KSIZE)
    y = jax.lax.conv_general_dilated(
        z, w, window_strides=(1, 1), padding=[(PAD, PAD), (PAD, PAD)],
        dimension_numbers=("NCHW", "OIHW", "NCHW"),
        precision=jax.lax.Precision.HIGHEST) + b_folded[0]
    return x * jax.nn.sigmoid(y)


def _triplet_ref(x, params):
    cw_w, cw_b, hc_w, hc_b, hw_w, hw_b = params
    o11 = jnp.transpose(_gate_ref(jnp.transpose(x, (0, 2, 1, 3)), cw_w, cw_b), (0, 2, 1, 3))
    o21 = jnp.transpose(_gate_ref(jnp.transpose(x, (0, 3, 2, 1)), hc_w, hc_b), (0, 3, 2, 1))
    ohw = _gate_ref(x, hw_w, hw_b)
    return (1.0 / 3.0) * (ohw + o11 + o21)


if __name__ == "__main__":
    key = jax.random.PRNGKey(0)
    kx, kcw, khc, khw = jax.random.split(key, 4)

    B, C, H, W = 2, 4, 16, 16
    x = jax.random.normal(kx, (B, C, H, W), jnp.float32)

    cw_w, cw_b = make_gate_params(kcw)
    hc_w, hc_b = make_gate_params(khc)
    hw_w, hw_b = make_gate_params(khw)

    # Fused kernel branch order: 0 = hw, 1 = cw, 2 = hc.
    w_all = jnp.concatenate([hw_w, cw_w, hc_w])   # (294,)
    b_all = jnp.concatenate([hw_b, cw_b, hc_b])   # (3,)

    out = jax.jit(triplet_attention)(x, w_all, b_all)
    out = jax.block_until_ready(out)

    ref = _triplet_ref(x, (cw_w, cw_b, hc_w, hc_b, hw_w, hw_b))
    assert out.shape == (B, C, H, W)
    assert jnp.allclose(out, ref, rtol=1e-3, atol=1e-3), "mismatch vs reference"

    print("KERNEL_OK")
</pallas_src>

<mosaic_0001>
module attributes {stable_mosaic.version = 11 : i64} {
  func.func @_triplet_kernel(%arg0: i32, %arg1: memref<1x4x16x16xf32, #tpu.memory_space<vmem>>, %arg2: memref<294xf32, #tpu.memory_space<smem>>, %arg3: memref<3xf32, #tpu.memory_space<smem>>, %arg4: memref<1x4x16x16xf32, #tpu.memory_space<vmem>>, %arg5: memref<2x22x22xf32, #tpu.memory_space<vmem>>, %arg6: memref<2x10x22xf32, #tpu.memory_space<vmem>>, %arg7: memref<2x10x22xf32, #tpu.memory_space<vmem>>) attributes {dimension_semantics = [#tpu.dimension_semantics<parallel>], iteration_bounds = array<i64: 2>, scalar_prefetch = 0 : i64, scratch_operands = 3 : i64, tpu.core_type = #tpu.core_type<tc>, window_params = [{transform_indices = @transform_0, window_bounds = array<i64: 1, 4, 16, 16>}, {transform_indices = @transform_1, window_bounds = array<i64: 294>}, {transform_indices = @transform_2, window_bounds = array<i64: 3>}, {transform_indices = @transform_3, window_bounds = array<i64: 1, 4, 16, 16>}]} {
    %c0 = arith.constant 0 : index
    %c0_0 = arith.constant 0 : index
    %c0_1 = arith.constant 0 : index
    %c0_2 = arith.constant 0 : index
    %0 = vector.load %arg1[%c0, %c0_0, %c0_1, %c0_2] : memref<1x4x16x16xf32, #tpu.memory_space<vmem>>, vector<1x4x16x16xf32>
    %1 = vector.shape_cast %0 : vector<1x4x16x16xf32> to vector<4x16x16xf32>
    %cst = arith.constant 0.000000e+00 : f32
    %2 = vector.broadcast %cst : f32 to vector<2x3x22xf32>
    %c0_3 = arith.constant 0 : index
    %c0_4 = arith.constant 0 : index
    %c0_5 = arith.constant 0 : index
    %3 = vector.load %arg5[%c0_3, %c0_4, %c0_5] : memref<2x22x22xf32, #tpu.memory_space<vmem>>, vector<2x3x22xf32>
    tpu.vector_store %arg5[%c0_3, %c0_4, %c0_5], %2 {strides = array<i32>} : memref<2x22x22xf32, #tpu.memory_space<vmem>>, vector<2x3x22xf32>,
    %cst_6 = arith.constant 0.000000e+00 : f32
    %4 = vector.broadcast %cst_6 : f32 to vector<2x3x22xf32>
    %c0_7 = arith.constant 0 : index
    %c19 = arith.constant 19 : index
    %c0_8 = arith.constant 0 : index
    %5 = vector.load %arg5[%c0_7, %c19, %c0_8] : memref<2x22x22xf32, #tpu.memory_space<vmem>>, vector<2x3x22xf32>
    tpu.vector_store %arg5[%c0_7, %c19, %c0_8], %4 {strides = array<i32>} : memref<2x22x22xf32, #tpu.memory_space<vmem>>, vector<2x3x22xf32>,
    %cst_9 = arith.constant 0.000000e+00 : f32
    %6 = vector.broadcast %cst_9 : f32 to vector<2x16x3xf32>
    %c0_10 = arith.constant 0 : index
    %c3 = arith.constant 3 : index
    %c0_11 = arith.constant 0 : index
    %7 = vector.load %arg5[%c0_10, %c3, %c0_11] : memref<2x22x22xf32, #tpu.memory_space<vmem>>, vector<2x16x3xf32>
    tpu.vector_store %arg5[%c0_10, %c3, %c0_11], %6 {strides = array<i32>} : memref<2x22x22xf32, #tpu.memory_space<vmem>>, vector<2x16x3xf32>,
    %cst_12 = arith.constant 0.000000e+00 : f32
    %8 = vector.broadcast %cst_12 : f32 to vector<2x16x3xf32>
    %c0_13 = arith.constant 0 : index
    %c3_14 = arith.constant 3 : index
    %c19_15 = arith.constant 19 : index
    %9 = vector.load %arg5[%c0_13, %c3_14, %c19_15] : memref<2x22x22xf32, #tpu.memory_space<vmem>>, vector<2x16x3xf32>
    tpu.vector_store %arg5[%c0_13, %c3_14, %c19_15], %8 {strides = array<i32>} : memref<2x22x22xf32, #tpu.memory_space<vmem>>, vector<2x16x3xf32>,
    %cst_16 = arith.constant dense<0xFF800000> : vector<16x16xf32>
    %10 = vector.multi_reduction <maximumf>, %1, %cst_16 [0] : vector<4x16x16xf32> to vector<16x16xf32>
    %c0_17 = arith.constant 0 : index
    %c3_18 = arith.constant 3 : index
    %c3_19 = arith.constant 3 : index
    %11 = vector.load %arg5[%c0_17, %c3_18, %c3_19] : memref<2x22x22xf32, #tpu.memory_space<vmem>>, vector<1x16x16xf32>
    %12 = vector.shape_cast %11 : vector<1x16x16xf32> to vector<16x16xf32>
    %13 = vector.shape_cast %10 : vector<16x16xf32> to vector<1x16x16xf32>
    tpu.vector_store %arg5[%c0_17, %c3_18, %c3_19], %13 {strides = array<i32>} : memref<2x22x22xf32, #tpu.memory_space<vmem>>, vector<1x16x16xf32>,
    %cst_20 = arith.constant dense<0.000000e+00> : vector<16x16xf32>
    %14 = vector.multi_reduction <add>, %1, %cst_20 [0] : vector<4x16x16xf32> to vector<16x16xf32>
    %cst_21 = arith.constant 4.000000e+00 : f32
    %15 = vector.broadcast %cst_21 : f32 to vector<16x16xf32>
    %16 = arith.divf %14, %15 : vector<16x16xf32>
    %c1 = arith.constant 1 : index
    %c3_22 = arith.constant 3 : index
    %c3_23 = arith.constant 3 : index
    %17 = vector.load %arg5[%c1, %c3_22, %c3_23] : memref<2x22x22xf32, #tpu.memory_space<vmem>>, vector<1x16x16xf32>
    %18 = vector.shape_cast %17 : vector<1x16x16xf32> to vector<16x16xf32>
    %19 = vector.shape_cast %16 : vector<16x16xf32> to vector<1x16x16xf32>
    tpu.vector_store %arg5[%c1, %c3_22, %c3_23], %19 {strides = array<i32>} : memref<2x22x22xf32, #tpu.memory_space<vmem>>, vector<1x16x16xf32>,
    %cst_24 = arith.constant 0.000000e+00 : f32
    %20 = vector.broadcast %cst_24 : f32 to vector<2x3x22xf32>
    %c0_25 = arith.constant 0 : index
    %c0_26 = arith.constant 0 : index
    %c0_27 = arith.constant 0 : index
    %21 = vector.load %arg6[%c0_25, %c0_26, %c0_27] : memref<2x10x22xf32, #tpu.memory_space<vmem>>, vector<2x3x22xf32>
    tpu.vector_store %arg6[%c0_25, %c0_26, %c0_27], %20 {strides = array<i32>} : memref<2x10x22xf32, #tpu.memory_space<vmem>>, vector<2x3x22xf32>,
    %cst_28 = arith.constant 0.000000e+00 : f32
    %22 = vector.broadcast %cst_28 : f32 to vector<2x3x22xf32>
    %c0_29 = arith.constant 0 : index
    %c7 = arith.constant 7 : index
    %c0_30 = arith.constant 0 : index
    %23 = vector.load %arg6[%c0_29, %c7, %c0_30] : memref<2x10x22xf32, #tpu.memory_space<vmem>>, vector<2x3x22xf32>
    tpu.vector_store %arg6[%c0_29, %c7, %c0_30], %22 {strides = array<i32>} : memref<2x10x22xf32, #tpu.memory_space<vmem>>, vector<2x3x22xf32>,
    %cst_31 = arith.constant 0.000000e+00 : f32
    %24 = vector.broadcast %cst_31 : f32 to vector<2x4x3xf32>
    %c0_32 = arith.constant 0 : index
    %c3_33 = arith.constant 3 : index
    %c0_34 = arith.constant 0 : index
    %25 = vector.load %arg6[%c0_32, %c3_33, %c0_34] : memref<2x10x22xf32, #tpu.memory_space<vmem>>, vector<2x4x3xf32>
    tpu.vector_store %arg6[%c0_32, %c3_33, %c0_34], %24 {strides = array<i32>} : memref<2x10x22xf32, #tpu.memory_space<vmem>>, vector<2x4x3xf32>,
    %cst_35 = arith.constant 0.000000e+00 : f32
    %26 = vector.broadcast %cst_35 : f32 to vector<2x4x3xf32>
    %c0_36 = arith.constant 0 : index
    %c3_37 = arith.constant 3 : index
    %c19_38 = arith.constant 19 : index
    %27 = vector.load %arg6[%c0_36, %c3_37, %c19_38] : memref<2x10x22xf32, #tpu.memory_space<vmem>>, vector<2x4x3xf32>
    tpu.vector_store %arg6[%c0_36, %c3_37, %c19_38], %26 {strides = array<i32>} : memref<2x10x22xf32, #tpu.memory_space<vmem>>, vector<2x4x3xf32>,
    %cst_39 = arith.constant dense<0xFF800000> : vector<4x16xf32>
    %28 = vector.multi_reduction <maximumf>, %1, %cst_39 [1] : vector<4x16x16xf32> to vector<4x16xf32>
    %c0_40 = arith.constant 0 : index
    %c3_41 = arith.constant 3 : index
    %c3_42 = arith.constant 3 : index
    %29 = vector.load %arg6[%c0_40, %c3_41, %c3_42] : memref<2x10x22xf32, #tpu.memory_space<vmem>>, vector<1x4x16xf32>
    %30 = vector.shape_cast %29 : vector<1x4x16xf32> to vector<4x16xf32>
    %31 = vector.shape_cast %28 : vector<4x16xf32> to vector<1x4x16xf32>
    tpu.vector_store %arg6[%c0_40, %c3_41, %c3_42], %31 {strides = array<i32>} : memref<2x10x22xf32, #tpu.memory_space<vmem>>, vector<1x4x16xf32>,
    %cst_43 = arith.constant dense<0.000000e+00> : vector<4x16xf32>
    %32 = vector.multi_reduction <add>, %1, %cst_43 [1] : vector<4x16x16xf32> to vector<4x16xf32>
    %cst_44 = arith.constant 1.600000e+01 : f32
    %33 = vector.broadcast %cst_44 : f32 to vector<4x16xf32>
    %34 = arith.divf %32, %33 : vector<4x16xf32>
    %c1_45 = arith.constant 1 : index
    %c3_46 = arith.constant 3 : index
    %c3_47 = arith.constant 3 : index
    %35 = vector.load %arg6[%c1_45, %c3_46, %c3_47] : memref<2x10x22xf32, #tpu.memory_space<vmem>>, vector<1x4x16xf32>
    %36 = vector.shape_cast %35 : vector<1x4x16xf32> to vector<4x16xf32>
    %37 = vector.shape_cast %34 : vector<4x16xf32> to vector<1x4x16xf32>
    tpu.vector_store %arg6[%c1_45, %c3_46, %c3_47], %37 {strides = array<i32>} : memref<2x10x22xf32, #tpu.memory_space<vmem>>, vector<1x4x16xf32>,
    %cst_48 = arith.constant 0.000000e+00 : f32
    %38 = vector.broadcast %cst_48 : f32 to vector<2x3x22xf32>
    %c0_49 = arith.constant 0 : index
    %c0_50 = arith.constant 0 : index
    %c0_51 = arith.constant 0 : index
    %39 = vector.load %arg7[%c0_49, %c0_50, %c0_51] : memref<2x10x22xf32, #tpu.memory_space<vmem>>, vector<2x3x22xf32>
    tpu.vector_store %arg7[%c0_49, %c0_50, %c0_51], %38 {strides = array<i32>} : memref<2x10x22xf32, #tpu.memory_space<vmem>>, vector<2x3x22xf32>,
    %cst_52 = arith.constant 0.000000e+00 : f32
    %40 = vector.broadcast %cst_52 : f32 to vector<2x3x22xf32>
    %c0_53 = arith.constant 0 : index
    %c7_54 = arith.constant 7 : index
    %c0_55 = arith.constant 0 : index
    %41 = vector.load %arg7[%c0_53, %c7_54, %c0_55] : memref<2x10x22xf32, #tpu.memory_space<vmem>>, vector<2x3x22xf32>
    tpu.vector_store %arg7[%c0_53, %c7_54, %c0_55], %40 {strides = array<i32>} : memref<2x10x22xf32, #tpu.memory_space<vmem>>, vector<2x3x22xf32>,
    %cst_56 = arith.constant 0.000000e+00 : f32
    %42 = vector.broadcast %cst_56 : f32 to vector<2x4x3xf32>
    %c0_57 = arith.constant 0 : index
    %c3_58 = arith.constant 3 : index
    %c0_59 = arith.constant 0 : index
    %43 = vector.load %arg7[%c0_57, %c3_58, %c0_59] : memref<2x10x22xf32, #tpu.memory_space<vmem>>, vector<2x4x3xf32>
    tpu.vector_store %arg7[%c0_57, %c3_58, %c0_59], %42 {strides = array<i32>} : memref<2x10x22xf32, #tpu.memory_space<vmem>>, vector<2x4x3xf32>,
    %cst_60 = arith.constant 0.000000e+00 : f32
    %44 = vector.broadcast %cst_60 : f32 to vector<2x4x3xf32>
    %c0_61 = arith.constant 0 : index
    %c3_62 = arith.constant 3 : index
    %c19_63 = arith.constant 19 : index
    %45 = vector.load %arg7[%c0_61, %c3_62, %c19_63] : memref<2x10x22xf32, #tpu.memory_space<vmem>>, vector<2x4x3xf32>
    tpu.vector_store %arg7[%c0_61, %c3_62, %c19_63], %44 {strides = array<i32>} : memref<2x10x22xf32, #tpu.memory_space<vmem>>, vector<2x4x3xf32>,
    %cst_64 = arith.constant dense<0xFF800000> : vector<4x16xf32>
    %46 = vector.multi_reduction <maximumf>, %1, %cst_64 [2] : vector<4x16x16xf32> to vector<4x16xf32>
    %c0_65 = arith.constant 0 : index
    %c3_66 = arith.constant 3 : index
    %c3_67 = arith.constant 3 : index
    %47 = vector.load %arg7[%c0_65, %c3_66, %c3_67] : memref<2x10x22xf32, #tpu.memory_space<vmem>>, vector<1x4x16xf32>
    %48 = vector.shape_cast %47 : vector<1x4x16xf32> to vector<4x16xf32>
    %49 = vector.shape_cast %46 : vector<4x16xf32> to vector<1x4x16xf32>
    tpu.vector_store %arg7[%c0_65, %c3_66, %c3_67], %49 {strides = array<i32>} : memref<2x10x22xf32, #tpu.memory_space<vmem>>, vector<1x4x16xf32>,
    %cst_68 = arith.constant dense<0.000000e+00> : vector<4x16xf32>
    %50 = vector.multi_reduction <add>, %1, %cst_68 [2] : vector<4x16x16xf32> to vector<4x16xf32>
    %cst_69 = arith.constant 1.600000e+01 : f32
    %51 = vector.broadcast %cst_69 : f32 to vector<4x16xf32>
    %52 = arith.divf %50, %51 : vector<4x16xf32>
    %c1_70 = arith.constant 1 : index
    %c3_71 = arith.constant 3 : index
    %c3_72 = arith.constant 3 : index
    %53 = vector.load %arg7[%c1_70, %c3_71, %c3_72] : memref<2x10x22xf32, #tpu.memory_space<vmem>>, vector<1x4x16xf32>
    %54 = vector.shape_cast %53 : vector<1x4x16xf32> to vector<4x16xf32>
    %55 = vector.shape_cast %52 : vector<4x16xf32> to vector<1x4x16xf32>
    tpu.vector_store %arg7[%c1_70, %c3_71, %c3_72], %55 {strides = array<i32>} : memref<2x10x22xf32, #tpu.memory_space<vmem>>, vector<1x4x16xf32>,
    %cst_73 = arith.constant 0.000000e+00 : f32
    %56 = vector.broadcast %cst_73 : f32 to vector<16x16xf32>
    %cst_74 = arith.constant 0.000000e+00 : f32
    %57 = vector.broadcast %cst_74 : f32 to vector<16x16xf32>
    %cst_75 = arith.constant 0.000000e+00 : f32
    %58 = vector.broadcast %cst_75 : f32 to vector<16x16xf32>
    %cst_76 = arith.constant 0.000000e+00 : f32
    %59 = vector.broadcast %cst_76 : f32 to vector<16x16xf32>
    %c0_77 = arith.constant 0 : index
    %c0_78 = arith.constant 0 : index
    %c0_79 = arith.constant 0 : index
    %60 = vector.load %arg5[%c0_77, %c0_78, %c0_79] : memref<2x22x22xf32, #tpu.memory_space<vmem>>, vector<2x22x16xf32>
    %c0_80 = arith.constant 0 : index
    %61 = memref.load %arg2[%c0_80] : memref<294xf32, #tpu.memory_space<smem>>
    %62 = vector.extract_strided_slice %60 {offsets = [0, 0, 0], sizes = [1, 16, 16], strides = [1, 1, 1]} : vector<2x22x16xf32> to vector<1x16x16xf32>
    %63 = vector.shape_cast %62 : vector<1x16x16xf32> to vector<16x16xf32>
    %64 = vector.broadcast %61 : f32 to vector<16x16xf32>
    %65 = arith.mulf %64, %63 : vector<16x16xf32>
    %66 = arith.addf %56, %65 : vector<16x16xf32>
    %c7_81 = arith.constant 7 : index
    %67 = memref.load %arg2[%c7_81] : memref<294xf32, #tpu.memory_space<smem>>
    %68 = vector.extract_strided_slice %60 {offsets = [0, 1, 0], sizes = [1, 16, 16], strides = [1, 1, 1]} : vector<2x22x16xf32> to vector<1x16x16xf32>
    %69 = vector.shape_cast %68 : vector<1x16x16xf32> to vector<16x16xf32>
    %70 = vector.broadcast %67 : f32 to vector<16x16xf32>
    %71 = arith.mulf %70, %69 : vector<16x16xf32>
    %72 = arith.addf %57, %71 : vector<16x16xf32>
    %c14 = arith.constant 14 : index
    %73 = memref.load %arg2[%c14] : memref<294xf32, #tpu.memory_space<smem>>
    %74 = vector.extract_strided_slice %60 {offsets = [0, 2, 0], sizes = [1, 16, 16], strides = [1, 1, 1]} : vector<2x22x16xf32> to vector<1x16x16xf32>
    %75 = vector.shape_cast %74 : vector<1x16x16xf32> to vector<16x16xf32>
    %76 = vector.broadcast %73 : f32 to vector<16x16xf32>
    %77 = arith.mulf %76, %75 : vector<16x16xf32>
    %78 = arith.addf %66, %77 : vector<16x16xf32>
    %c21 = arith.constant 21 : index
    %79 = memref.load %arg2[%c21] : memref<294xf32, #tpu.memory_space<smem>>
    %80 = vector.extract_strided_slice %60 {offsets = [0, 3, 0], sizes = [1, 16, 16], strides = [1, 1, 1]} : vector<2x22x16xf32> to vector<1x16x16xf32>
    %81 = vector.shape_cast %80 : vector<1x16x16xf32> to vector<16x16xf32>
    %82 = vector.broadcast %79 : f32 to vector<16x16xf32>
    %83 = arith.mulf %82, %81 : vector<16x16xf32>
    %84 = arith.addf %72, %83 : vector<16x16xf32>
    %c28 = arith.constant 28 : index
    %85 = memref.load %arg2[%c28] : memref<294xf32, #tpu.memory_space<smem>>
    %86 = vector.extract_strided_slice %60 {offsets = [0, 4, 0], sizes = [1, 16, 16], strides = [1, 1, 1]} : vector<2x22x16xf32> to vector<1x16x16xf32>
    %87 = vector.shape_cast %86 : vector<1x16x16xf32> to vector<16x16xf32>
    %88 = vector.broadcast %85 : f32 to vector<16x16xf32>
    %89 = arith.mulf %88, %87 : vector<16x16xf32>
    %90 = arith.addf %78, %89 : vector<16x16xf32>
    %c35 = arith.constant 35 : index
    %91 = memref.load %arg2[%c35] : memref<294xf32, #tpu.memory_space<smem>>
    %92 = vector.extract_strided_slice %60 {offsets = [0, 5, 0], sizes = [1, 16, 16], strides = [1, 1, 1]} : vector<2x22x16xf32> to vector<1x16x16xf32>
    %93 = vector.shape_cast %92 : vector<1x16x16xf32> to vector<16x16xf32>
    %94 = vector.broadcast %91 : f32 to vector<16x16xf32>
    %95 = arith.mulf %94, %93 : vector<16x16xf32>
    %96 = arith.addf %84, %95 : vector<16x16xf32>
    %c42 = arith.constant 42 : index
    %97 = memref.load %arg2[%c42] : memref<294xf32, #tpu.memory_space<smem>>
    %98 = vector.extract_strided_slice %60 {offsets = [0, 6, 0], sizes = [1, 16, 16], strides = [1, 1, 1]} : vector<2x22x16xf32> to vector<1x16x16xf32>
    %99 = vector.shape_cast %98 : vector<1x16x16xf32> to vector<16x16xf32>
    %100 = vector.broadcast %97 : f32 to vector<16x16xf32>
    %101 = arith.mulf %100, %99 : vector<16x16xf32>
    %102 = arith.addf %90, %101 : vector<16x16xf32>
    %c49 = arith.constant 49 : index
    %103 = memref.load %arg2[%c49] : memref<294xf32, #tpu.memory_space<smem>>
    %104 = vector.extract_strided_slice %60 {offsets = [1, 0, 0], sizes = [1, 16, 16], strides = [1, 1, 1]} : vector<2x22x16xf32> to vector<1x16x16xf32>
    %105 = vector.shape_cast %104 : vector<1x16x16xf32> to vector<16x16xf32>
    %106 = vector.broadcast %103 : f32 to vector<16x16xf32>
    %107 = arith.mulf %106, %105 : vector<16x16xf32>
    %108 = arith.addf %58, %107 : vector<16x16xf32>
    %c56 = arith.constant 56 : index
    %109 = memref.load %arg2[%c56] : memref<294xf32, #tpu.memory_space<smem>>
    %110 = vector.extract_strided_slice %60 {offsets = [1, 1, 0], sizes = [1, 16, 16], strides = [1, 1, 1]} : vector<2x22x16xf32> to vector<1x16x16xf32>
    %111 = vector.shape_cast %110 : vector<1x16x16xf32> to vector<16x16xf32>
    %112 = vector.broadcast %109 : f32 to vector<16x16xf32>
    %113 = arith.mulf %112, %111 : vector<16x16xf32>
    %114 = arith.addf %59, %113 : vector<16x16xf32>
    %c63 = arith.constant 63 : index
    %115 = memref.load %arg2[%c63] : memref<294xf32, #tpu.memory_space<smem>>
    %116 = vector.extract_strided_slice %60 {offsets = [1, 2, 0], sizes = [1, 16, 16], strides = [1, 1, 1]} : vector<2x22x16xf32> to vector<1x16x16xf32>
    %117 = vector.shape_cast %116 : vector<1x16x16xf32> to vector<16x16xf32>
    %118 = vector.broadcast %115 : f32 to vector<16x16xf32>
    %119 = arith.mulf %118, %117 : vector<16x16xf32>
    %120 = arith.addf %108, %119 : vector<16x16xf32>
    %c70 = arith.constant 70 : index
    %121 = memref.load %arg2[%c70] : memref<294xf32, #tpu.memory_space<smem>>
    %122 = vector.extract_strided_slice %60 {offsets = [1, 3, 0], sizes = [1, 16, 16], strides = [1, 1, 1]} : vector<2x22x16xf32> to vector<1x16x16xf32>
    %123 = vector.shape_cast %122 : vector<1x16x16xf32> to vector<16x16xf32>
    %124 = vector.broadcast %121 : f32 to vector<16x16xf32>
    %125 = arith.mulf %124, %123 : vector<16x16xf32>
    %126 = arith.addf %114, %125 : vector<16x16xf32>
    %c77 = arith.constant 77 : index
    %127 = memref.load %arg2[%c77] : memref<294xf32, #tpu.memory_space<smem>>
    %128 = vector.extract_strided_slice %60 {offsets = [1, 4, 0], sizes = [1, 16, 16], strides = [1, 1, 1]} : vector<2x22x16xf32> to vector<1x16x16xf32>
    %129 = vector.shape_cast %128 : vector<1x16x16xf32> to vector<16x16xf32>
    %130 = vector.broadcast %127 : f32 to vector<16x16xf32>
    %131 = arith.mulf %130, %129 : vector<16x16xf32>
    %132 = arith.addf %120, %131 : vector<16x16xf32>
    %c84 = arith.constant 84 : index
    %133 = memref.load %arg2[%c84] : memref<294xf32, #tpu.memory_space<smem>>
    %134 = vector.extract_strided_slice %60 {offsets = [1, 5, 0], sizes = [1, 16, 16], strides = [1, 1, 1]} : vector<2x22x16xf32> to vector<1x16x16xf32>
    %135 = vector.shape_cast %134 : vector<1x16x16xf32> to vector<16x16xf32>
    %136 = vector.broadcast %133 : f32 to vector<16x16xf32>
    %137 = arith.mulf %136, %135 : vector<16x16xf32>
    %138 = arith.addf %126, %137 : vector<16x16xf32>
    %c91 = arith.constant 91 : index
    %139 = memref.load %arg2[%c91] : memref<294xf32, #tpu.memory_space<smem>>
    %140 = vector.extract_strided_slice %60 {offsets = [1, 6, 0], sizes = [1, 16, 16], strides = [1, 1, 1]} : vector<2x22x16xf32> to vector<1x16x16xf32>
    %141 = vector.shape_cast %140 : vector<1x16x16xf32> to vector<16x16xf32>
    %142 = vector.broadcast %139 : f32 to vector<16x16xf32>
    %143 = arith.mulf %142, %141 : vector<16x16xf32>
    %144 = arith.addf %132, %143 : vector<16x16xf32>
    %c0_82 = arith.constant 0 : index
    %c0_83 = arith.constant 0 : index
    %c1_84 = arith.constant 1 : index
    %145 = vector.load %arg5[%c0_82, %c0_83, %c1_84] : memref<2x22x22xf32, #tpu.memory_space<vmem>>, vector<2x22x16xf32>
    %c1_85 = arith.constant 1 : index
    %146 = memref.load %arg2[%c1_85] : memref<294xf32, #tpu.memory_space<smem>>
    %147 = vector.extract_strided_slice %145 {offsets = [0, 0, 0], sizes = [1, 16, 16], strides = [1, 1, 1]} : vector<2x22x16xf32> to vector<1x16x16xf32>
    %148 = vector.shape_cast %147 : vector<1x16x16xf32> to vector<16x16xf32>
    %149 = vector.broadcast %146 : f32 to vector<16x16xf32>
    %150 = arith.mulf %149, %148 : vector<16x16xf32>
    %151 = arith.addf %102, %150 : vector<16x16xf32>
    %c8 = arith.constant 8 : index
    %152 = memref.load %arg2[%c8] : memref<294xf32, #tpu.memory_space<smem>>
    %153 = vector.extract_strided_slice %145 {offsets = [0, 1, 0], sizes = [1, 16, 16], strides = [1, 1, 1]} : vector<2x22x16xf32> to vector<1x16x16xf32>
    %154 = vector.shape_cast %153 : vector<1x16x16xf32> to vector<16x16xf32>
    %155 = vector.broadcast %152 : f32 to vector<16x16xf32>
    %156 = arith.mulf %155, %154 : vector<16x16xf32>
    %157 = arith.addf %96, %156 : vector<16x16xf32>
    %c15 = arith.constant 15 : index
    %158 = memref.load %arg2[%c15] : memref<294xf32, #tpu.memory_space<smem>>
    %159 = vector.extract_strided_slice %145 {offsets = [0, 2, 0], sizes = [1, 16, 16], strides = [1, 1, 1]} : vector<2x22x16xf32> to vector<1x16x16xf32>
    %160 = vector.shape_cast %159 : vector<1x16x16xf32> to vector<16x16xf32>
    %161 = vector.broadcast %158 : f32 to vector<16x16xf32>
    %162 = arith.mulf %161, %160 : vector<16x16xf32>
    %163 = arith.addf %151, %162 : vector<16x16xf32>
    %c22 = arith.constant 22 : index
    %164 = memref.load %arg2[%c22] : memref<294xf32, #tpu.memory_space<smem>>
    %165 = vector.extract_strided_slice %145 {offsets = [0, 3, 0], sizes = [1, 16, 16], strides = [1, 1, 1]} : vector<2x22x16xf32> to vector<1x16x16xf32>
    %166 = vector.shape_cast %165 : vector<1x16x16xf32> to vector<16x16xf32>
    %167 = vector.broadcast %164 : f32 to vector<16x16xf32>
    %168 = arith.mulf %167, %166 : vector<16x16xf32>
    %169 = arith.addf %157, %168 : vector<16x16xf32>
    %c29 = arith.constant 29 : index
    %170 = memref.load %arg2[%c29] : memref<294xf32, #tpu.memory_space<smem>>
    %171 = vector.extract_strided_slice %145 {offsets = [0, 4, 0], sizes = [1, 16, 16], strides = [1, 1, 1]} : vector<2x22x16xf32> to vector<1x16x16xf32>
    %172 = vector.shape_cast %171 : vector<1x16x16xf32> to vector<16x16xf32>
    %173 = vector.broadcast %170 : f32 to vector<16x16xf32>
    %174 = arith.mulf %173, %172 : vector<16x16xf32>
    %175 = arith.addf %163, %174 : vector<16x16xf32>
    %c36 = arith.constant 36 : index
    %176 = memref.load %arg2[%c36] : memref<294xf32, #tpu.memory_space<smem>>
    %177 = vector.extract_strided_slice %145 {offsets = [0, 5, 0], sizes = [1, 16, 16], strides = [1, 1, 1]} : vector<2x22x16xf32> to vector<1x16x16xf32>
    %178 = vector.shape_cast %177 : vector<1x16x16xf32> to vector<16x16xf32>
    %179 = vector.broadcast %176 : f32 to vector<16x16xf32>
    %180 = arith.mulf %179, %178 : vector<16x16xf32>
    %181 = arith.addf %169, %180 : vector<16x16xf32>
    %c43 = arith.constant 43 : index
    %182 = memref.load %arg2[%c43] : memref<294xf32, #tpu.memory_space<smem>>
    %183 = vector.extract_strided_slice %145 {offsets = [0, 6, 0], sizes = [1, 16, 16], strides = [1, 1, 1]} : vector<2x22x16xf32> to vector<1x16x16xf32>
    %184 = vector.shape_cast %183 : vector<1x16x16xf32> to vector<16x16xf32>
    %185 = vector.broadcast %182 : f32 to vector<16x16xf32>
    %186 = arith.mulf %185, %184 : vector<16x16xf32>
    %187 = arith.addf %175, %186 : vector<16x16xf32>
    %c50 = arith.constant 50 : index
    %188 = memref.load %arg2[%c50] : memref<294xf32, #tpu.memory_space<smem>>
    %189 = vector.extract_strided_slice %145 {offsets = [1, 0, 0], sizes = [1, 16, 16], strides = [1, 1, 1]} : vector<2x22x16xf32> to vector<1x16x16xf32>
    %190 = vector.shape_cast %189 : vector<1x16x16xf32> to vector<16x16xf32>
    %191 = vector.broadcast %188 : f32 to vector<16x16xf32>
    %192 = arith.mulf %191, %190 : vector<16x16xf32>
    %193 = arith.addf %144, %192 : vector<16x16xf32>
    %c57 = arith.constant 57 : index
    %194 = memref.load %arg2[%c57] : memref<294xf32, #tpu.memory_space<smem>>
    %195 = vector.extract_strided_slice %145 {offsets = [1, 1, 0], sizes = [1, 16, 16], strides = [1, 1, 1]} : vector<2x22x16xf32> to vector<1x16x16xf32>
    %196 = vector.shape_cast %195 : vector<1x16x16xf32> to vector<16x16xf32>
    %197 = vector.broadcast %194 : f32 to vector<16x16xf32>
    %198 = arith.mulf %197, %196 : vector<16x16xf32>
    %199 = arith.addf %138, %198 : vector<16x16xf32>
    %c64 = arith.constant 64 : index
    %200 = memref.load %arg2[%c64] : memref<294xf32, #tpu.memory_space<smem>>
    %201 = vector.extract_strided_slice %145 {offsets = [1, 2, 0], sizes = [1, 16, 16], strides = [1, 1, 1]} : vector<2x22x16xf32> to vector<1x16x16xf32>
    %202 = vector.shape_cast %201 : vector<1x16x16xf32> to vector<16x16xf32>
    %203 = vector.broadcast %200 : f32 to vector<16x16xf32>
    %204 = arith.mulf %203, %202 : vector<16x16xf32>
    %205 = arith.addf %193, %204 : vector<16x16xf32>
    %c71 = arith.constant 71 : index
    %206 = memref.load %arg2[%c71] : memref<294xf32, #tpu.memory_space<smem>>
    %207 = vector.extract_strided_slice %145 {offsets = [1, 3, 0], sizes = [1, 16, 16], strides = [1, 1, 1]} : vector<2x22x16xf32> to vector<1x16x16xf32>
    %208 = vector.shape_cast %207 : vector<1x16x16xf32> to vector<16x16xf32>
    %209 = vector.broadcast %206 : f32 to vector<16x16xf32>
    %210 = arith.mulf %209, %208 : vector<16x16xf32>
    %211 = arith.addf %199, %210 : vector<16x16xf32>
    %c78 = arith.constant 78 : index
    %212 = memref.load %arg2[%c78] : memref<294xf32, #tpu.memory_space<smem>>
    %213 = vector.extract_strided_slice %145 {offsets = [1, 4, 0], sizes = [1, 16, 16], strides = [1, 1, 1]} : vector<2x22x16xf32> to vector<1x16x16xf32>
    %214 = vector.shape_cast %213 : vector<1x16x16xf32> to vector<16x16xf32>
    %215 = vector.broadcast %212 : f32 to vector<16x16xf32>
    %216 = arith.mulf %215, %214 : vector<16x16xf32>
    %217 = arith.addf %205, %216 : vector<16x16xf32>
    %c85 = arith.constant 85 : index
    %218 = memref.load %arg2[%c85] : memref<294xf32, #tpu.memory_space<smem>>
    %219 = vector.extract_strided_slice %145 {offsets = [1, 5, 0], sizes = [1, 16, 16], strides = [1, 1, 1]} : vector<2x22x16xf32> to vector<1x16x16xf32>
    %220 = vector.shape_cast %219 : vector<1x16x16xf32> to vector<16x16xf32>
    %221 = vector.broadcast %218 : f32 to vector<16x16xf32>
    %222 = arith.mulf %221, %220 : vector<16x16xf32>
    %223 = arith.addf %211, %222 : vector<16x16xf32>
    %c92 = arith.constant 92 : index
    %224 = memref.load %arg2[%c92] : memref<294xf32, #tpu.memory_space<smem>>
    %225 = vector.extract_strided_slice %145 {offsets = [1, 6, 0], sizes = [1, 16, 16], strides = [1, 1, 1]} : vector<2x22x16xf32> to vector<1x16x16xf32>
    %226 = vector.shape_cast %225 : vector<1x16x16xf32> to vector<16x16xf32>
    %227 = vector.broadcast %224 : f32 to vector<16x16xf32>
    %228 = arith.mulf %227, %226 : vector<16x16xf32>
    %229 = arith.addf %217, %228 : vector<16x16xf32>
    %c0_86 = arith.constant 0 : index
    %c0_87 = arith.constant 0 : index
    %c2 = arith.constant 2 : index
    %230 = vector.load %arg5[%c0_86, %c0_87, %c2] : memref<2x22x22xf32, #tpu.memory_space<vmem>>, vector<2x22x16xf32>
    %c2_88 = arith.constant 2 : index
    %231 = memref.load %arg2[%c2_88] : memref<294xf32, #tpu.memory_space<smem>>
    %232 = vector.extract_strided_slice %230 {offsets = [0, 0, 0], sizes = [1, 16, 16], strides = [1, 1, 1]} : vector<2x22x16xf32> to vector<1x16x16xf32>
    %233 = vector.shape_cast %232 : vector<1x16x16xf32> to vector<16x16xf32>
    %234 = vector.broadcast %231 : f32 to vector<16x16xf32>
    %235 = arith.mulf %234, %233 : vector<16x16xf32>
    %236 = arith.addf %187, %235 : vector<16x16xf32>
    %c9 = arith.constant 9 : index
    %237 = memref.load %arg2[%c9] : memref<294xf32, #tpu.memory_space<smem>>
    %238 = vector.extract_strided_slice %230 {offsets = [0, 1, 0], sizes = [1, 16, 16], strides = [1, 1, 1]} : vector<2x22x16xf32> to vector<1x16x16xf32>
    %239 = vector.shape_cast %238 : vector<1x16x16xf32> to vector<16x16xf32>
    %240 = vector.broadcast %237 : f32 to vector<16x16xf32>
    %241 = arith.mulf %240, %239 : vector<16x16xf32>
    %242 = arith.addf %181, %241 : vector<16x16xf32>
    %c16 = arith.constant 16 : index
    %243 = memref.load %arg2[%c16] : memref<294xf32, #tpu.memory_space<smem>>
    %244 = vector.extract_strided_slice %230 {offsets = [0, 2, 0], sizes = [1, 16, 16], strides = [1, 1, 1]} : vector<2x22x16xf32> to vector<1x16x16xf32>
    %245 = vector.shape_cast %244 : vector<1x16x16xf32> to vector<16x16xf32>
    %246 = vector.broadcast %243 : f32 to vector<16x16xf32>
    %247 = arith.mulf %246, %245 : vector<16x16xf32>
    %248 = arith.addf %236, %247 : vector<16x16xf32>
    %c23 = arith.constant 23 : index
    %249 = memref.load %arg2[%c23] : memref<294xf32, #tpu.memory_space<smem>>
    %250 = vector.extract_strided_slice %230 {offsets = [0, 3, 0], sizes = [1, 16, 16], strides = [1, 1, 1]} : vector<2x22x16xf32> to vector<1x16x16xf32>
    %251 = vector.shape_cast %250 : vector<1x16x16xf32> to vector<16x16xf32>
    %252 = vector.broadcast %249 : f32 to vector<16x16xf32>
    %253 = arith.mulf %252, %251 : vector<16x16xf32>
    %254 = arith.addf %242, %253 : vector<16x16xf32>
    %c30 = arith.constant 30 : index
    %255 = memref.load %arg2[%c30] : memref<294xf32, #tpu.memory_space<smem>>
    %256 = vector.extract_strided_slice %230 {offsets = [0, 4, 0], sizes = [1, 16, 16], strides = [1, 1, 1]} : vector<2x22x16xf32> to vector<1x16x16xf32>
    %257 = vector.shape_cast %256 : vector<1x16x16xf32> to vector<16x16xf32>
    %258 = vector.broadcast %255 : f32 to vector<16x16xf32>
    %259 = arith.mulf %258, %257 : vector<16x16xf32>
    %260 = arith.addf %248, %259 : vector<16x16xf32>
    %c37 = arith.constant 37 : index
    %261 = memref.load %arg2[%c37] : memref<294xf32, #tpu.memory_space<smem>>
    %262 = vector.extract_strided_slice %230 {offsets = [0, 5, 0], sizes = [1, 16, 16], strides = [1, 1, 1]} : vector<2x22x16xf32> to vector<1x16x16xf32>
    %263 = vector.shape_cast %262 : vector<1x16x16xf32> to vector<16x16xf32>
    %264 = vector.broadcast %261 : f32 to vector<16x16xf32>
    %265 = arith.mulf %264, %263 : vector<16x16xf32>
    %266 = arith.addf %254, %265 : vector<16x16xf32>
    %c44 = arith.constant 44 : index
    %267 = memref.load %arg2[%c44] : memref<294xf32, #tpu.memory_space<smem>>
    %268 = vector.extract_strided_slice %230 {offsets = [0, 6, 0], sizes = [1, 16, 16], strides = [1, 1, 1]} : vector<2x22x16xf32> to vector<1x16x16xf32>
    %269 = vector.shape_cast %268 : vector<1x16x16xf32> to vector<16x16xf32>
    %270 = vector.broadcast %267 : f32 to vector<16x16xf32>
    %271 = arith.mulf %270, %269 : vector<16x16xf32>
    %272 = arith.addf %260, %271 : vector<16x16xf32>
    %c51 = arith.constant 51 : index
    %273 = memref.load %arg2[%c51] : memref<294xf32, #tpu.memory_space<smem>>
    %274 = vector.extract_strided_slice %230 {offsets = [1, 0, 0], sizes = [1, 16, 16], strides = [1, 1, 1]} : vector<2x22x16xf32> to vector<1x16x16xf32>
    %275 = vector.shape_cast %274 : vector<1x16x16xf32> to vector<16x16xf32>
    %276 = vector.broadcast %273 : f32 to vector<16x16xf32>
    %277 = arith.mulf %276, %275 : vector<16x16xf32>
    %278 = arith.addf %229, %277 : vector<16x16xf32>
    %c58 = arith.constant 58 : index
    %279 = memref.load %arg2[%c58] : memref<294xf32, #tpu.memory_space<smem>>
    %280 = vector.extract_strided_slice %230 {offsets = [1, 1, 0], sizes = [1, 16, 16], strides = [1, 1, 1]} : vector<2x22x16xf32> to vector<1x16x16xf32>
    %281 = vector.shape_cast %280 : vector<1x16x16xf32> to vector<16x16xf32>
    %282 = vector.broadcast %279 : f32 to vector<16x16xf32>
    %283 = arith.mulf %282, %281 : vector<16x16xf32>
    %284 = arith.addf %223, %283 : vector<16x16xf32>
    %c65 = arith.constant 65 : index
    %285 = memref.load %arg2[%c65] : memref<294xf32, #tpu.memory_space<smem>>
    %286 = vector.extract_strided_slice %230 {offsets = [1, 2, 0], sizes = [1, 16, 16], strides = [1, 1, 1]} : vector<2x22x16xf32> to vector<1x16x16xf32>
    %287 = vector.shape_cast %286 : vector<1x16x16xf32> to vector<16x16xf32>
    %288 = vector.broadcast %285 : f32 to vector<16x16xf32>
    %289 = arith.mulf %288, %287 : vector<16x16xf32>
    %290 = arith.addf %278, %289 : vector<16x16xf32>
    %c72 = arith.constant 72 : index
    %291 = memref.load %arg2[%c72] : memref<294xf32, #tpu.memory_space<smem>>
    %292 = vector.extract_strided_slice %230 {offsets = [1, 3, 0], sizes = [1, 16, 16], strides = [1, 1, 1]} : vector<2x22x16xf32> to vector<1x16x16xf32>
    %293 = vector.shape_cast %292 : vector<1x16x16xf32> to vector<16x16xf32>
    %294 = vector.broadcast %291 : f32 to vector<16x16xf32>
    %295 = arith.mulf %294, %293 : vector<16x16xf32>
    %296 = arith.addf %284, %295 : vector<16x16xf32>
    %c79 = arith.constant 79 : index
    %297 = memref.load %arg2[%c79] : memref<294xf32, #tpu.memory_space<smem>>
    %298 = vector.extract_strided_slice %230 {offsets = [1, 4, 0], sizes = [1, 16, 16], strides = [1, 1, 1]} : vector<2x22x16xf32> to vector<1x16x16xf32>
    %299 = vector.shape_cast %298 : vector<1x16x16xf32> to vector<16x16xf32>
    %300 = vector.broadcast %297 : f32 to vector<16x16xf32>
    %301 = arith.mulf %300, %299 : vector<16x16xf32>
    %302 = arith.addf %290, %301 : vector<16x16xf32>
    %c86 = arith.constant 86 : index
    %303 = memref.load %arg2[%c86] : memref<294xf32, #tpu.memory_space<smem>>
    %304 = vector.extract_strided_slice %230 {offsets = [1, 5, 0], sizes = [1, 16, 16], strides = [1, 1, 1]} : vector<2x22x16xf32> to vector<1x16x16xf32>
    %305 = vector.shape_cast %304 : vector<1x16x16xf32> to vector<16x16xf32>
    %306 = vector.broadcast %303 : f32 to vector<16x16xf32>
    %307 = arith.mulf %306, %305 : vector<16x16xf32>
    %308 = arith.addf %296, %307 : vector<16x16xf32>
    %c93 = arith.constant 93 : index
    %309 = memref.load %arg2[%c93] : memref<294xf32, #tpu.memory_space<smem>>
    %310 = vector.extract_strided_slice %230 {offsets = [1, 6, 0], sizes = [1, 16, 16], strides = [1, 1, 1]} : vector<2x22x16xf32> to vector<1x16x16xf32>
    %311 = vector.shape_cast %310 : vector<1x16x16xf32> to vector<16x16xf32>
    %312 = vector.broadcast %309 : f32 to vector<16x16xf32>
    %313 = arith.mulf %312, %311 : vector<16x16xf32>
    %314 = arith.addf %302, %313 : vector<16x16xf32>
    %c0_89 = arith.constant 0 : index
    %c0_90 = arith.constant 0 : index
    %c3_91 = arith.constant 3 : index
    %315 = vector.load %arg5[%c0_89, %c0_90, %c3_91] : memref<2x22x22xf32, #tpu.memory_space<vmem>>, vector<2x22x16xf32>
    %c3_92 = arith.constant 3 : index
    %316 = memref.load %arg2[%c3_92] : memref<294xf32, #tpu.memory_space<smem>>
    %317 = vector.extract_strided_slice %315 {offsets = [0, 0, 0], sizes = [1, 16, 16], strides = [1, 1, 1]} : vector<2x22x16xf32> to vector<1x16x16xf32>
    %318 = vector.shape_cast %317 : vector<1x16x16xf32> to vector<16x16xf32>
    %319 = vector.broadcast %316 : f32 to vector<16x16xf32>
    %320 = arith.mulf %319, %318 : vector<16x16xf32>
    %321 = arith.addf %272, %320 : vector<16x16xf32>
    %c10 = arith.constant 10 : index
    %322 = memref.load %arg2[%c10] : memref<294xf32, #tpu.memory_space<smem>>
    %323 = vector.extract_strided_slice %315 {offsets = [0, 1, 0], sizes = [1, 16, 16], strides = [1, 1, 1]} : vector<2x22x16xf32> to vector<1x16x16xf32>
    %324 = vector.shape_cast %323 : vector<1x16x16xf32> to vector<16x16xf32>
    %325 = vector.broadcast %322 : f32 to vector<16x16xf32>
    %326 = arith.mulf %325, %324 : vector<16x16xf32>
    %327 = arith.addf %266, %326 : vector<16x16xf32>
    %c17 = arith.constant 17 : index
    %328 = memref.load %arg2[%c17] : memref<294xf32, #tpu.memory_space<smem>>
    %329 = vector.extract_strided_slice %315 {offsets = [0, 2, 0], sizes = [1, 16, 16], strides = [1, 1, 1]} : vector<2x22x16xf32> to vector<1x16x16xf32>
    %330 = vector.shape_cast %329 : vector<1x16x16xf32> to vector<16x16xf32>
    %331 = vector.broadcast %328 : f32 to vector<16x16xf32>
    %332 = arith.mulf %331, %330 : vector<16x16xf32>
    %333 = arith.addf %321, %332 : vector<16x16xf32>
    %c24 = arith.constant 24 : index
    %334 = memref.load %arg2[%c24] : memref<294xf32, #tpu.memory_space<smem>>
    %335 = vector.extract_strided_slice %315 {offsets = [0, 3, 0], sizes = [1, 16, 16], strides = [1, 1, 1]} : vector<2x22x16xf32> to vector<1x16x16xf32>
    %336 = vector.shape_cast %335 : vector<1x16x16xf32> to vector<16x16xf32>
    %337 = vector.broadcast %334 : f32 to vector<16x16xf32>
    %338 = arith.mulf %337, %336 : vector<16x16xf32>
    %339 = arith.addf %327, %338 : vector<16x16xf32>
    %c31 = arith.constant 31 : index
    %340 = memref.load %arg2[%c31] : memref<294xf32, #tpu.memory_space<smem>>
    %341 = vector.extract_strided_slice %315 {offsets = [0, 4, 0], sizes = [1, 16, 16], strides = [1, 1, 1]} : vector<2x22x16xf32> to vector<1x16x16xf32>
    %342 = vector.shape_cast %341 : vector<1x16x16xf32> to vector<16x16xf32>
    %343 = vector.broadcast %340 : f32 to vector<16x16xf32>
    %344 = arith.mulf %343, %342 : vector<16x16xf32>
    %345 = arith.addf %333, %344 : vector<16x16xf32>
    %c38 = arith.constant 38 : index
    %346 = memref.load %arg2[%c38] : memref<294xf32, #tpu.memory_space<smem>>
    %347 = vector.extract_strided_slice %315 {offsets = [0, 5, 0], sizes = [1, 16, 16], strides = [1, 1, 1]} : vector<2x22x16xf32> to vector<1x16x16xf32>
    %348 = vector.shape_cast %347 : vector<1x16x16xf32> to vector<16x16xf32>
    %349 = vector.broadcast %346 : f32 to vector<16x16xf32>
    %350 = arith.mulf %349, %348 : vector<16x16xf32>
    %351 = arith.addf %339, %350 : vector<16x16xf32>
    %c45 = arith.constant 45 : index
    %352 = memref.load %arg2[%c45] : memref<294xf32, #tpu.memory_space<smem>>
    %353 = vector.extract_strided_slice %315 {offsets = [0, 6, 0], sizes = [1, 16, 16], strides = [1, 1, 1]} : vector<2x22x16xf32> to vector<1x16x16xf32>
    %354 = vector.shape_cast %353 : vector<1x16x16xf32> to vector<16x16xf32>
    %355 = vector.broadcast %352 : f32 to vector<16x16xf32>
    %356 = arith.mulf %355, %354 : vector<16x16xf32>
    %357 = arith.addf %345, %356 : vector<16x16xf32>
    %c52 = arith.constant 52 : index
    %358 = memref.load %arg2[%c52] : memref<294xf32, #tpu.memory_space<smem>>
    %359 = vector.extract_strided_slice %315 {offsets = [1, 0, 0], sizes = [1, 16, 16], strides = [1, 1, 1]} : vector<2x22x16xf32> to vector<1x16x16xf32>
    %360 = vector.shape_cast %359 : vector<1x16x16xf32> to vector<16x16xf32>
    %361 = vector.broadcast %358 : f32 to vector<16x16xf32>
    %362 = arith.mulf %361, %360 : vector<16x16xf32>
    %363 = arith.addf %314, %362 : vector<16x16xf32>
    %c59 = arith.constant 59 : index
    %364 = memref.load %arg2[%c59] : memref<294xf32, #tpu.memory_space<smem>>
    %365 = vector.extract_strided_slice %315 {offsets = [1, 1, 0], sizes = [1, 16, 16], strides = [1, 1, 1]} : vector<2x22x16xf32> to vector<1x16x16xf32>
    %366 = vector.shape_cast %365 : vector<1x16x16xf32> to vector<16x16xf32>
    %367 = vector.broadcast %364 : f32 to vector<16x16xf32>
    %368 = arith.mulf %367, %366 : vector<16x16xf32>
    %369 = arith.addf %308, %368 : vector<16x16xf32>
    %c66 = arith.constant 66 : index
    %370 = memref.load %arg2[%c66] : memref<294xf32, #tpu.memory_space<smem>>
    %371 = vector.extract_strided_slice %315 {offsets = [1, 2, 0], sizes = [1, 16, 16], strides = [1, 1, 1]} : vector<2x22x16xf32> to vector<1x16x16xf32>
    %372 = vector.shape_cast %371 : vector<1x16x16xf32> to vector<16x16xf32>
    %373 = vector.broadcast %370 : f32 to vector<16x16xf32>
    %374 = arith.mulf %373, %372 : vector<16x16xf32>
    %375 = arith.addf %363, %374 : vector<16x16xf32>
    %c73 = arith.constant 73 : index
    %376 = memref.load %arg2[%c73] : memref<294xf32, #tpu.memory_space<smem>>
    %377 = vector.extract_strided_slice %315 {offsets = [1, 3, 0], sizes = [1, 16, 16], strides = [1, 1, 1]} : vector<2x22x16xf32> to vector<1x16x16xf32>
    %378 = vector.shape_cast %377 : vector<1x16x16xf32> to vector<16x16xf32>
    %379 = vector.broadcast %376 : f32 to vector<16x16xf32>
    %380 = arith.mulf %379, %378 : vector<16x16xf32>
    %381 = arith.addf %369, %380 : vector<16x16xf32>
    %c80 = arith.constant 80 : index
    %382 = memref.load %arg2[%c80] : memref<294xf32, #tpu.memory_space<smem>>
    %383 = vector.extract_strided_slice %315 {offsets = [1, 4, 0], sizes = [1, 16, 16], strides = [1, 1, 1]} : vector<2x22x16xf32> to vector<1x16x16xf32>
    %384 = vector.shape_cast %383 : vector<1x16x16xf32> to vector<16x16xf32>
    %385 = vector.broadcast %382 : f32 to vector<16x16xf32>
    %386 = arith.mulf %385, %384 : vector<16x16xf32>
    %387 = arith.addf %375, %386 : vector<16x16xf32>
    %c87 = arith.constant 87 : index
    %388 = memref.load %arg2[%c87] : memref<294xf32, #tpu.memory_space<smem>>
    %389 = vector.extract_strided_slice %315 {offsets = [1, 5, 0], sizes = [1, 16, 16], strides = [1, 1, 1]} : vector<2x22x16xf32> to vector<1x16x16xf32>
    %390 = vector.shape_cast %389 : vector<1x16x16xf32> to vector<16x16xf32>
    %391 = vector.broadcast %388 : f32 to vector<16x16xf32>
    %392 = arith.mulf %391, %390 : vector<16x16xf32>
    %393 = arith.addf %381, %392 : vector<16x16xf32>
    %c94 = arith.constant 94 : index
    %394 = memref.load %arg2[%c94] : memref<294xf32, #tpu.memory_space<smem>>
    %395 = vector.extract_strided_slice %315 {offsets = [1, 6, 0], sizes = [1, 16, 16], strides = [1, 1, 1]} : vector<2x22x16xf32> to vector<1x16x16xf32>
    %396 = vector.shape_cast %395 : vector<1x16x16xf32> to vector<16x16xf32>
    %397 = vector.broadcast %394 : f32 to vector<16x16xf32>
    %398 = arith.mulf %397, %396 : vector<16x16xf32>
    %399 = arith.addf %387, %398 : vector<16x16xf32>
    %c0_93 = arith.constant 0 : index
    %c0_94 = arith.constant 0 : index
    %c4 = arith.constant 4 : index
    %400 = vector.load %arg5[%c0_93, %c0_94, %c4] : memref<2x22x22xf32, #tpu.memory_space<vmem>>, vector<2x22x16xf32>
    %c4_95 = arith.constant 4 : index
    %401 = memref.load %arg2[%c4_95] : memref<294xf32, #tpu.memory_space<smem>>
    %402 = vector.extract_strided_slice %400 {offsets = [0, 0, 0], sizes = [1, 16, 16], strides = [1, 1, 1]} : vector<2x22x16xf32> to vector<1x16x16xf32>
    %403 = vector.shape_cast %402 : vector<1x16x16xf32> to vector<16x16xf32>
    %404 = vector.broadcast %401 : f32 to vector<16x16xf32>
    %405 = arith.mulf %404, %403 : vector<16x16xf32>
    %406 = arith.addf %357, %405 : vector<16x16xf32>
    %c11 = arith.constant 11 : index
    %407 = memref.load %arg2[%c11] : memref<294xf32, #tpu.memory_space<smem>>
    %408 = vector.extract_strided_slice %400 {offsets = [0, 1, 0], sizes = [1, 16, 16], strides = [1, 1, 1]} : vector<2x22x16xf32> to vector<1x16x16xf32>
    %409 = vector.shape_cast %408 : vector<1x16x16xf32> to vector<16x16xf32>
    %410 = vector.broadcast %407 : f32 to vector<16x16xf32>
    %411 = arith.mulf %410, %409 : vector<16x16xf32>
    %412 = arith.addf %351, %411 : vector<16x16xf32>
    %c18 = arith.constant 18 : index
    %413 = memref.load %arg2[%c18] : memref<294xf32, #tpu.memory_space<smem>>
    %414 = vector.extract_strided_slice %400 {offsets = [0, 2, 0], sizes = [1, 16, 16], strides = [1, 1, 1]} : vector<2x22x16xf32> to vector<1x16x16xf32>
    %415 = vector.shape_cast %414 : vector<1x16x16xf32> to vector<16x16xf32>
    %416 = vector.broadcast %413 : f32 to vector<16x16xf32>
    %417 = arith.mulf %416, %415 : vector<16x16xf32>
    %418 = arith.addf %406, %417 : vector<16x16xf32>
    %c25 = arith.constant 25 : index
    %419 = memref.load %arg2[%c25] : memref<294xf32, #tpu.memory_space<smem>>
    %420 = vector.extract_strided_slice %400 {offsets = [0, 3, 0], sizes = [1, 16, 16], strides = [1, 1, 1]} : vector<2x22x16xf32> to vector<1x16x16xf32>
    %421 = vector.shape_cast %420 : vector<1x16x16xf32> to vector<16x16xf32>
    %422 = vector.broadcast %419 : f32 to vector<16x16xf32>
    %423 = arith.mulf %422, %421 : vector<16x16xf32>
    %424 = arith.addf %412, %423 : vector<16x16xf32>
    %c32 = arith.constant 32 : index
    %425 = memref.load %arg2[%c32] : memref<294xf32, #tpu.memory_space<smem>>
    %426 = vector.extract_strided_slice %400 {offsets = [0, 4, 0], sizes = [1, 16, 16], strides = [1, 1, 1]} : vector<2x22x16xf32> to vector<1x16x16xf32>
    %427 = vector.shape_cast %426 : vector<1x16x16xf32> to vector<16x16xf32>
    %428 = vector.broadcast %425 : f32 to vector<16x16xf32>
    %429 = arith.mulf %428, %427 : vector<16x16xf32>
    %430 = arith.addf %418, %429 : vector<16x16xf32>
    %c39 = arith.constant 39 : index
    %431 = memref.load %arg2[%c39] : memref<294xf32, #tpu.memory_space<smem>>
    %432 = vector.extract_strided_slice %400 {offsets = [0, 5, 0], sizes = [1, 16, 16], strides = [1, 1, 1]} : vector<2x22x16xf32> to vector<1x16x16xf32>
    %433 = vector.shape_cast %432 : vector<1x16x16xf32> to vector<16x16xf32>
    %434 = vector.broadcast %431 : f32 to vector<16x16xf32>
    %435 = arith.mulf %434, %433 : vector<16x16xf32>
    %436 = arith.addf %424, %435 : vector<16x16xf32>
    %c46 = arith.constant 46 : index
    %437 = memref.load %arg2[%c46] : memref<294xf32, #tpu.memory_space<smem>>
    %438 = vector.extract_strided_slice %400 {offsets = [0, 6, 0], sizes = [1, 16, 16], strides = [1, 1, 1]} : vector<2x22x16xf32> to vector<1x16x16xf32>
    %439 = vector.shape_cast %438 : vector<1x16x16xf32> to vector<16x16xf32>
    %440 = vector.broadcast %437 : f32 to vector<16x16xf32>
    %441 = arith.mulf %440, %439 : vector<16x16xf32>
    %442 = arith.addf %430, %441 : vector<16x16xf32>
    %c53 = arith.constant 53 : index
    %443 = memref.load %arg2[%c53] : memref<294xf32, #tpu.memory_space<smem>>
    %444 = vector.extract_strided_slice %400 {offsets = [1, 0, 0], sizes = [1, 16, 16], strides = [1, 1, 1]} : vector<2x22x16xf32> to vector<1x16x16xf32>
    %445 = vector.shape_cast %444 : vector<1x16x16xf32> to vector<16x16xf32>
    %446 = vector.broadcast %443 : f32 to vector<16x16xf32>
    %447 = arith.mulf %446, %445 : vector<16x16xf32>
    %448 = arith.addf %399, %447 : vector<16x16xf32>
    %c60 = arith.constant 60 : index
    %449 = memref.load %arg2[%c60] : memref<294xf32, #tpu.memory_space<smem>>
    %450 = vector.extract_strided_slice %400 {offsets = [1, 1, 0], sizes = [1, 16, 16], strides = [1, 1, 1]} : vector<2x22x16xf32> to vector<1x16x16xf32>
    %451 = vector.shape_cast %450 : vector<1x16x16xf32> to vector<16x16xf32>
    %452 = vector.broadcast %449 : f32 to vector<16x16xf32>
    %453 = arith.mulf %452, %451 : vector<16x16xf32>
    %454 = arith.addf %393, %453 : vector<16x16xf32>
    %c67 = arith.constant 67 : index
    %455 = memref.load %arg2[%c67] : memref<294xf32, #tpu.memory_space<smem>>
    %456 = vector.extract_strided_slice %400 {offsets = [1, 2, 0], sizes = [1, 16, 16], strides = [1, 1, 1]} : vector<2x22x16xf32> to vector<1x16x16xf32>
    %457 = vector.shape_cast %456 : vector<1x16x16xf32> to vector<16x16xf32>
    %458 = vector.broadcast %455 : f32 to vector<16x16xf32>
    %459 = arith.mulf %458, %457 : vector<16x16xf32>
    %460 = arith.addf %448, %459 : vector<16x16xf32>
    %c74 = arith.constant 74 : index
    %461 = memref.load %arg2[%c74] : memref<294xf32, #tpu.memory_space<smem>>
    %462 = vector.extract_strided_slice %400 {offsets = [1, 3, 0], sizes = [1, 16, 16], strides = [1, 1, 1]} : vector<2x22x16xf32> to vector<1x16x16xf32>
    %463 = vector.shape_cast %462 : vector<1x16x16xf32> to vector<16x16xf32>
    %464 = vector.broadcast %461 : f32 to vector<16x16xf32>
    %465 = arith.mulf %464, %463 : vector<16x16xf32>
    %466 = arith.addf %454, %465 : vector<16x16xf32>
    %c81 = arith.constant 81 : index
    %467 = memref.load %arg2[%c81] : memref<294xf32, #tpu.memory_space<smem>>
    %468 = vector.extract_strided_slice %400 {offsets = [1, 4, 0], sizes = [1, 16, 16], strides = [1, 1, 1]} : vector<2x22x16xf32> to vector<1x16x16xf32>
    %469 = vector.shape_cast %468 : vector<1x16x16xf32> to vector<16x16xf32>
    %470 = vector.broadcast %467 : f32 to vector<16x16xf32>
    %471 = arith.mulf %470, %469 : vector<16x16xf32>
    %472 = arith.addf %460, %471 : vector<16x16xf32>
    %c88 = arith.constant 88 : index
    %473 = memref.load %arg2[%c88] : memref<294xf32, #tpu.memory_space<smem>>
    %474 = vector.extract_strided_slice %400 {offsets = [1, 5, 0], sizes = [1, 16, 16], strides = [1, 1, 1]} : vector<2x22x16xf32> to vector<1x16x16xf32>
    %475 = vector.shape_cast %474 : vector<1x16x16xf32> to vector<16x16xf32>
    %476 = vector.broadcast %473 : f32 to vector<16x16xf32>
    %477 = arith.mulf %476, %475 : vector<16x16xf32>
    %478 = arith.addf %466, %477 : vector<16x16xf32>
    %c95 = arith.constant 95 : index
    %479 = memref.load %arg2[%c95] : memref<294xf32, #tpu.memory_space<smem>>
    %480 = vector.extract_strided_slice %400 {offsets = [1, 6, 0], sizes = [1, 16, 16], strides = [1, 1, 1]} : vector<2x22x16xf32> to vector<1x16x16xf32>
    %481 = vector.shape_cast %480 : vector<1x16x16xf32> to vector<16x16xf32>
    %482 = vector.broadcast %479 : f32 to vector<16x16xf32>
    %483 = arith.mulf %482, %481 : vector<16x16xf32>
    %484 = arith.addf %472, %483 : vector<16x16xf32>
    %c0_96 = arith.constant 0 : index
    %c0_97 = arith.constant 0 : index
    %c5 = arith.constant 5 : index
    %485 = vector.load %arg5[%c0_96, %c0_97, %c5] : memref<2x22x22xf32, #tpu.memory_space<vmem>>, vector<2x22x16xf32>
    %c5_98 = arith.constant 5 : index
    %486 = memref.load %arg2[%c5_98] : memref<294xf32, #tpu.memory_space<smem>>
    %487 = vector.extract_strided_slice %485 {offsets = [0, 0, 0], sizes = [1, 16, 16], strides = [1, 1, 1]} : vector<2x22x16xf32> to vector<1x16x16xf32>
    %488 = vector.shape_cast %487 : vector<1x16x16xf32> to vector<16x16xf32>
    %489 = vector.broadcast %486 : f32 to vector<16x16xf32>
    %490 = arith.mulf %489, %488 : vector<16x16xf32>
    %491 = arith.addf %442, %490 : vector<16x16xf32>
    %c12 = arith.constant 12 : index
    %492 = memref.load %arg2[%c12] : memref<294xf32, #tpu.memory_space<smem>>
    %493 = vector.extract_strided_slice %485 {offsets = [0, 1, 0], sizes = [1, 16, 16], strides = [1, 1, 1]} : vector<2x22x16xf32> to vector<1x16x16xf32>
    %494 = vector.shape_cast %493 : vector<1x16x16xf32> to vector<16x16xf32>
    %495 = vector.broadcast %492 : f32 to vector<16x16xf32>
    %496 = arith.mulf %495, %494 : vector<16x16xf32>
    %497 = arith.addf %436, %496 : vector<16x16xf32>
    %c19_99 = arith.constant 19 : index
    %498 = memref.load %arg2[%c19_99] : memref<294xf32, #tpu.memory_space<smem>>
    %499 = vector.extract_strided_slice %485 {offsets = [0, 2, 0], sizes = [1, 16, 16], strides = [1, 1, 1]} : vector<2x22x16xf32> to vector<1x16x16xf32>
    %500 = vector.shape_cast %499 : vector<1x16x16xf32> to vector<16x16xf32>
    %501 = vector.broadcast %498 : f32 to vector<16x16xf32>
    %502 = arith.mulf %501, %500 : vector<16x16xf32>
    %503 = arith.addf %491, %502 : vector<16x16xf32>
    %c26 = arith.constant 26 : index
    %504 = memref.load %arg2[%c26] : memref<294xf32, #tpu.memory_space<smem>>
    %505 = vector.extract_strided_slice %485 {offsets = [0, 3, 0], sizes = [1, 16, 16], strides = [1, 1, 1]} : vector<2x22x16xf32> to vector<1x16x16xf32>
    %506 = vector.shape_cast %505 : vector<1x16x16xf32> to vector<16x16xf32>
    %507 = vector.broadcast %504 : f32 to vector<16x16xf32>
    %508 = arith.mulf %507, %506 : vector<16x16xf32>
    %509 = arith.addf %497, %508 : vector<16x16xf32>
    %c33 = arith.constant 33 : index
    %510 = memref.load %arg2[%c33] : memref<294xf32, #tpu.memory_space<smem>>
    %511 = vector.extract_strided_slice %485 {offsets = [0, 4, 0], sizes = [1, 16, 16], strides = [1, 1, 1]} : vector<2x22x16xf32> to vector<1x16x16xf32>
    %512 = vector.shape_cast %511 : vector<1x16x16xf32> to vector<16x16xf32>
    %513 = vector.broadcast %510 : f32 to vector<16x16xf32>
    %514 = arith.mulf %513, %512 : vector<16x16xf32>
    %515 = arith.addf %503, %514 : vector<16x16xf32>
    %c40 = arith.constant 40 : index
    %516 = memref.load %arg2[%c40] : memref<294xf32, #tpu.memory_space<smem>>
    %517 = vector.extract_strided_slice %485 {offsets = [0, 5, 0], sizes = [1, 16, 16], strides = [1, 1, 1]} : vector<2x22x16xf32> to vector<1x16x16xf32>
    %518 = vector.shape_cast %517 : vector<1x16x16xf32> to vector<16x16xf32>
    %519 = vector.broadcast %516 : f32 to vector<16x16xf32>
    %520 = arith.mulf %519, %518 : vector<16x16xf32>
    %521 = arith.addf %509, %520 : vector<16x16xf32>
    %c47 = arith.constant 47 : index
    %522 = memref.load %arg2[%c47] : memref<294xf32, #tpu.memory_space<smem>>
    %523 = vector.extract_strided_slice %485 {offsets = [0, 6, 0], sizes = [1, 16, 16], strides = [1, 1, 1]} : vector<2x22x16xf32> to vector<1x16x16xf32>
    %524 = vector.shape_cast %523 : vector<1x16x16xf32> to vector<16x16xf32>
    %525 = vector.broadcast %522 : f32 to vector<16x16xf32>
    %526 = arith.mulf %525, %524 : vector<16x16xf32>
    %527 = arith.addf %515, %526 : vector<16x16xf32>
    %c54 = arith.constant 54 : index
    %528 = memref.load %arg2[%c54] : memref<294xf32, #tpu.memory_space<smem>>
    %529 = vector.extract_strided_slice %485 {offsets = [1, 0, 0], sizes = [1, 16, 16], strides = [1, 1, 1]} : vector<2x22x16xf32> to vector<1x16x16xf32>
    %530 = vector.shape_cast %529 : vector<1x16x16xf32> to vector<16x16xf32>
    %531 = vector.broadcast %528 : f32 to vector<16x16xf32>
    %532 = arith.mulf %531, %530 : vector<16x16xf32>
    %533 = arith.addf %484, %532 : vector<16x16xf32>
    %c61 = arith.constant 61 : index
    %534 = memref.load %arg2[%c61] : memref<294xf32, #tpu.memory_space<smem>>
    %535 = vector.extract_strided_slice %485 {offsets = [1, 1, 0], sizes = [1, 16, 16], strides = [1, 1, 1]} : vector<2x22x16xf32> to vector<1x16x16xf32>
    %536 = vector.shape_cast %535 : vector<1x16x16xf32> to vector<16x16xf32>
    %537 = vector.broadcast %534 : f32 to vector<16x16xf32>
    %538 = arith.mulf %537, %536 : vector<16x16xf32>
    %539 = arith.addf %478, %538 : vector<16x16xf32>
    %c68 = arith.constant 68 : index
    %540 = memref.load %arg2[%c68] : memref<294xf32, #tpu.memory_space<smem>>
    %541 = vector.extract_strided_slice %485 {offsets = [1, 2, 0], sizes = [1, 16, 16], strides = [1, 1, 1]} : vector<2x22x16xf32> to vector<1x16x16xf32>
    %542 = vector.shape_cast %541 : vector<1x16x16xf32> to vector<16x16xf32>
    %543 = vector.broadcast %540 : f32 to vector<16x16xf32>
    %544 = arith.mulf %543, %542 : vector<16x16xf32>
    %545 = arith.addf %533, %544 : vector<16x16xf32>
    %c75 = arith.constant 75 : index
    %546 = memref.load %arg2[%c75] : memref<294xf32, #tpu.memory_space<smem>>
    %547 = vector.extract_strided_slice %485 {offsets = [1, 3, 0], sizes = [1, 16, 16], strides = [1, 1, 1]} : vector<2x22x16xf32> to vector<1x16x16xf32>
    %548 = vector.shape_cast %547 : vector<1x16x16xf32> to vector<16x16xf32>
    %549 = vector.broadcast %546 : f32 to vector<16x16xf32>
    %550 = arith.mulf %549, %548 : vector<16x16xf32>
    %551 = arith.addf %539, %550 : vector<16x16xf32>
    %c82 = arith.constant 82 : index
    %552 = memref.load %arg2[%c82] : memref<294xf32, #tpu.memory_space<smem>>
    %553 = vector.extract_strided_slice %485 {offsets = [1, 4, 0], sizes = [1, 16, 16], strides = [1, 1, 1]} : vector<2x22x16xf32> to vector<1x16x16xf32>
    %554 = vector.shape_cast %553 : vector<1x16x16xf32> to vector<16x16xf32>
    %555 = vector.broadcast %552 : f32 to vector<16x16xf32>
    %556 = arith.mulf %555, %554 : vector<16x16xf32>
    %557 = arith.addf %545, %556 : vector<16x16xf32>
    %c89 = arith.constant 89 : index
    %558 = memref.load %arg2[%c89] : memref<294xf32, #tpu.memory_space<smem>>
    %559 = vector.extract_strided_slice %485 {offsets = [1, 5, 0], sizes = [1, 16, 16], strides = [1, 1, 1]} : vector<2x22x16xf32> to vector<1x16x16xf32>
    %560 = vector.shape_cast %559 : vector<1x16x16xf32> to vector<16x16xf32>
    %561 = vector.broadcast %558 : f32 to vector<16x16xf32>
    %562 = arith.mulf %561, %560 : vector<16x16xf32>
    %563 = arith.addf %551, %562 : vector<16x16xf32>
    %c96 = arith.constant 96 : index
    %564 = memref.load %arg2[%c96] : memref<294xf32, #tpu.memory_space<smem>>
    %565 = vector.extract_strided_slice %485 {offsets = [1, 6, 0], sizes = [1, 16, 16], strides = [1, 1, 1]} : vector<2x22x16xf32> to vector<1x16x16xf32>
    %566 = vector.shape_cast %565 : vector<1x16x16xf32> to vector<16x16xf32>
    %567 = vector.broadcast %564 : f32 to vector<16x16xf32>
    %568 = arith.mulf %567, %566 : vector<16x16xf32>
    %569 = arith.addf %557, %568 : vector<16x16xf32>
    %c0_100 = arith.constant 0 : index
    %c0_101 = arith.constant 0 : index
    %c6 = arith.constant 6 : index
    %570 = vector.load %arg5[%c0_100, %c0_101, %c6] : memref<2x22x22xf32, #tpu.memory_space<vmem>>, vector<2x22x16xf32>
    %c6_102 = arith.constant 6 : index
    %571 = memref.load %arg2[%c6_102] : memref<294xf32, #tpu.memory_space<smem>>
    %572 = vector.extract_strided_slice %570 {offsets = [0, 0, 0], sizes = [1, 16, 16], strides = [1, 1, 1]} : vector<2x22x16xf32> to vector<1x16x16xf32>
    %573 = vector.shape_cast %572 : vector<1x16x16xf32> to vector<16x16xf32>
    %574 = vector.broadcast %571 : f32 to vector<16x16xf32>
    %575 = arith.mulf %574, %573 : vector<16x16xf32>
    %576 = arith.addf %527, %575 : vector<16x16xf32>
    %c13 = arith.constant 13 : index
    %577 = memref.load %arg2[%c13] : memref<294xf32, #tpu.memory_space<smem>>
    %578 = vector.extract_strided_slice %570 {offsets = [0, 1, 0], sizes = [1, 16, 16], strides = [1, 1, 1]} : vector<2x22x16xf32> to vector<1x16x16xf32>
    %579 = vector.shape_cast %578 : vector<1x16x16xf32> to vector<16x16xf32>
    %580 = vector.broadcast %577 : f32 to vector<16x16xf32>
    %581 = arith.mulf %580, %579 : vector<16x16xf32>
    %582 = arith.addf %521, %581 : vector<16x16xf32>
    %c20 = arith.constant 20 : index
    %583 = memref.load %arg2[%c20] : memref<294xf32, #tpu.memory_space<smem>>
    %584 = vector.extract_strided_slice %570 {offsets = [0, 2, 0], sizes = [1, 16, 16], strides = [1, 1, 1]} : vector<2x22x16xf32> to vector<1x16x16xf32>
    %585 = vector.shape_cast %584 : vector<1x16x16xf32> to vector<16x16xf32>
    %586 = vector.broadcast %583 : f32 to vector<16x16xf32>
    %587 = arith.mulf %586, %585 : vector<16x16xf32>
    %588 = arith.addf %576, %587 : vector<16x16xf32>
    %c27 = arith.constant 27 : index
    %589 = memref.load %arg2[%c27] : memref<294xf32, #tpu.memory_space<smem>>
    %590 = vector.extract_strided_slice %570 {offsets = [0, 3, 0], sizes = [1, 16, 16], strides = [1, 1, 1]} : vector<2x22x16xf32> to vector<1x16x16xf32>
    %591 = vector.shape_cast %590 : vector<1x16x16xf32> to vector<16x16xf32>
    %592 = vector.broadcast %589 : f32 to vector<16x16xf32>
    %593 = arith.mulf %592, %591 : vector<16x16xf32>
    %594 = arith.addf %582, %593 : vector<16x16xf32>
    %c34 = arith.constant 34 : index
    %595 = memref.load %arg2[%c34] : memref<294xf32, #tpu.memory_space<smem>>
    %596 = vector.extract_strided_slice %570 {offsets = [0, 4, 0], sizes = [1, 16, 16], strides = [1, 1, 1]} : vector<2x22x16xf32> to vector<1x16x16xf32>
    %597 = vector.shape_cast %596 : vector<1x16x16xf32> to vector<16x16xf32>
    %598 = vector.broadcast %595 : f32 to vector<16x16xf32>
    %599 = arith.mulf %598, %597 : vector<16x16xf32>
    %600 = arith.addf %588, %599 : vector<16x16xf32>
    %c41 = arith.constant 41 : index
    %601 = memref.load %arg2[%c41] : memref<294xf32, #tpu.memory_space<smem>>
    %602 = vector.extract_strided_slice %570 {offsets = [0, 5, 0], sizes = [1, 16, 16], strides = [1, 1, 1]} : vector<2x22x16xf32> to vector<1x16x16xf32>
    %603 = vector.shape_cast %602 : vector<1x16x16xf32> to vector<16x16xf32>
    %604 = vector.broadcast %601 : f32 to vector<16x16xf32>
    %605 = arith.mulf %604, %603 : vector<16x16xf32>
    %606 = arith.addf %594, %605 : vector<16x16xf32>
    %c48 = arith.constant 48 : index
    %607 = memref.load %arg2[%c48] : memref<294xf32, #tpu.memory_space<smem>>
    %608 = vector.extract_strided_slice %570 {offsets = [0, 6, 0], sizes = [1, 16, 16], strides = [1, 1, 1]} : vector<2x22x16xf32> to vector<1x16x16xf32>
    %609 = vector.shape_cast %608 : vector<1x16x16xf32> to vector<16x16xf32>
    %610 = vector.broadcast %607 : f32 to vector<16x16xf32>
    %611 = arith.mulf %610, %609 : vector<16x16xf32>
    %612 = arith.addf %600, %611 : vector<16x16xf32>
    %c55 = arith.constant 55 : index
    %613 = memref.load %arg2[%c55] : memref<294xf32, #tpu.memory_space<smem>>
    %614 = vector.extract_strided_slice %570 {offsets = [1, 0, 0], sizes = [1, 16, 16], strides = [1, 1, 1]} : vector<2x22x16xf32> to vector<1x16x16xf32>
    %615 = vector.shape_cast %614 : vector<1x16x16xf32> to vector<16x16xf32>
    %616 = vector.broadcast %613 : f32 to vector<16x16xf32>
    %617 = arith.mulf %616, %615 : vector<16x16xf32>
    %618 = arith.addf %569, %617 : vector<16x16xf32>
    %c62 = arith.constant 62 : index
    %619 = memref.load %arg2[%c62] : memref<294xf32, #tpu.memory_space<smem>>
    %620 = vector.extract_strided_slice %570 {offsets = [1, 1, 0], sizes = [1, 16, 16], strides = [1, 1, 1]} : vector<2x22x16xf32> to vector<1x16x16xf32>
    %621 = vector.shape_cast %620 : vector<1x16x16xf32> to vector<16x16xf32>
    %622 = vector.broadcast %619 : f32 to vector<16x16xf32>
    %623 = arith.mulf %622, %621 : vector<16x16xf32>
    %624 = arith.addf %563, %623 : vector<16x16xf32>
    %c69 = arith.constant 69 : index
    %625 = memref.load %arg2[%c69] : memref<294xf32, #tpu.memory_space<smem>>
    %626 = vector.extract_strided_slice %570 {offsets = [1, 2, 0], sizes = [1, 16, 16], strides = [1, 1, 1]} : vector<2x22x16xf32> to vector<1x16x16xf32>
    %627 = vector.shape_cast %626 : vector<1x16x16xf32> to vector<16x16xf32>
    %628 = vector.broadcast %625 : f32 to vector<16x16xf32>
    %629 = arith.mulf %628, %627 : vector<16x16xf32>
    %630 = arith.addf %618, %629 : vector<16x16xf32>
    %c76 = arith.constant 76 : index
    %631 = memref.load %arg2[%c76] : memref<294xf32, #tpu.memory_space<smem>>
    %632 = vector.extract_strided_slice %570 {offsets = [1, 3, 0], sizes = [1, 16, 16], strides = [1, 1, 1]} : vector<2x22x16xf32> to vector<1x16x16xf32>
    %633 = vector.shape_cast %632 : vector<1x16x16xf32> to vector<16x16xf32>
    %634 = vector.broadcast %631 : f32 to vector<16x16xf32>
    %635 = arith.mulf %634, %633 : vector<16x16xf32>
    %636 = arith.addf %624, %635 : vector<16x16xf32>
    %c83 = arith.constant 83 : index
    %637 = memref.load %arg2[%c83] : memref<294xf32, #tpu.memory_space<smem>>
    %638 = vector.extract_strided_slice %570 {offsets = [1, 4, 0], sizes = [1, 16, 16], strides = [1, 1, 1]} : vector<2x22x16xf32> to vector<1x16x16xf32>
    %639 = vector.shape_cast %638 : vector<1x16x16xf32> to vector<16x16xf32>
    %640 = vector.broadcast %637 : f32 to vector<16x16xf32>
    %641 = arith.mulf %640, %639 : vector<16x16xf32>
    %642 = arith.addf %630, %641 : vector<16x16xf32>
    %c90 = arith.constant 90 : index
    %643 = memref.load %arg2[%c90] : memref<294xf32, #tpu.memory_space<smem>>
    %644 = vector.extract_strided_slice %570 {offsets = [1, 5, 0], sizes = [1, 16, 16], strides = [1, 1, 1]} : vector<2x22x16xf32> to vector<1x16x16xf32>
    %645 = vector.shape_cast %644 : vector<1x16x16xf32> to vector<16x16xf32>
    %646 = vector.broadcast %643 : f32 to vector<16x16xf32>
    %647 = arith.mulf %646, %645 : vector<16x16xf32>
    %648 = arith.addf %636, %647 : vector<16x16xf32>
    %c97 = arith.constant 97 : index
    %649 = memref.load %arg2[%c97] : memref<294xf32, #tpu.memory_space<smem>>
    %650 = vector.extract_strided_slice %570 {offsets = [1, 6, 0], sizes = [1, 16, 16], strides = [1, 1, 1]} : vector<2x22x16xf32> to vector<1x16x16xf32>
    %651 = vector.shape_cast %650 : vector<1x16x16xf32> to vector<16x16xf32>
    %652 = vector.broadcast %649 : f32 to vector<16x16xf32>
    %653 = arith.mulf %652, %651 : vector<16x16xf32>
    %654 = arith.addf %642, %653 : vector<16x16xf32>
    %655 = arith.addf %612, %606 : vector<16x16xf32>
    %656 = arith.addf %654, %648 : vector<16x16xf32>
    %657 = arith.addf %655, %656 : vector<16x16xf32>
    %c0_103 = arith.constant 0 : index
    %658 = memref.load %arg3[%c0_103] : memref<3xf32, #tpu.memory_space<smem>>
    %659 = vector.broadcast %658 : f32 to vector<16x16xf32>
    %660 = arith.addf %657, %659 : vector<16x16xf32>
    %661 = arith.negf %660 : vector<16x16xf32>
    %662 = math.exp %661 : vector<16x16xf32>
    %cst_104 = arith.constant 1.000000e+00 : f32
    %663 = vector.broadcast %cst_104 : f32 to vector<16x16xf32>
    %664 = arith.addf %663, %662 : vector<16x16xf32>
    %665 = arith.divf %663, %664 : vector<16x16xf32>
    %cst_105 = arith.constant 0.000000e+00 : f32
    %666 = vector.broadcast %cst_105 : f32 to vector<4x16xf32>
    %cst_106 = arith.constant 0.000000e+00 : f32
    %667 = vector.broadcast %cst_106 : f32 to vector<4x16xf32>
    %cst_107 = arith.constant 0.000000e+00 : f32
    %668 = vector.broadcast %cst_107 : f32 to vector<4x16xf32>
    %cst_108 = arith.constant 0.000000e+00 : f32
    %669 = vector.broadcast %cst_108 : f32 to vector<4x16xf32>
    %c0_109 = arith.constant 0 : index
    %c0_110 = arith.constant 0 : index
    %c0_111 = arith.constant 0 : index
    %670 = vector.load %arg6[%c0_109, %c0_110, %c0_111] : memref<2x10x22xf32, #tpu.memory_space<vmem>>, vector<2x10x16xf32>
    %c98 = arith.constant 98 : index
    %671 = memref.load %arg2[%c98] : memref<294xf32, #tpu.memory_space<smem>>
    %672 = vector.extract_strided_slice %670 {offsets = [0, 0, 0], sizes = [1, 4, 16], strides = [1, 1, 1]} : vector<2x10x16xf32> to vector<1x4x16xf32>
    %673 = vector.shape_cast %672 : vector<1x4x16xf32> to vector<4x16xf32>
    %674 = vector.broadcast %671 : f32 to vector<4x16xf32>
    %675 = arith.mulf %674, %673 : vector<4x16xf32>
    %676 = arith.addf %666, %675 : vector<4x16xf32>
    %c105 = arith.constant 105 : index
    %677 = memref.load %arg2[%c105] : memref<294xf32, #tpu.memory_space<smem>>
    %678 = vector.extract_strided_slice %670 {offsets = [0, 1, 0], sizes = [1, 4, 16], strides = [1, 1, 1]} : vector<2x10x16xf32> to vector<1x4x16xf32>
    %679 = vector.shape_cast %678 : vector<1x4x16xf32> to vector<4x16xf32>
    %680 = vector.broadcast %677 : f32 to vector<4x16xf32>
    %681 = arith.mulf %680, %679 : vector<4x16xf32>
    %682 = arith.addf %667, %681 : vector<4x16xf32>
    %c112 = arith.constant 112 : index
    %683 = memref.load %arg2[%c112] : memref<294xf32, #tpu.memory_space<smem>>
    %684 = vector.extract_strided_slice %670 {offsets = [0, 2, 0], sizes = [1, 4, 16], strides = [1, 1, 1]} : vector<2x10x16xf32> to vector<1x4x16xf32>
    %685 = vector.shape_cast %684 : vector<1x4x16xf32> to vector<4x16xf32>
    %686 = vector.broadcast %683 : f32 to vector<4x16xf32>
    %687 = arith.mulf %686, %685 : vector<4x16xf32>
    %688 = arith.addf %676, %687 : vector<4x16xf32>
    %c119 = arith.constant 119 : index
    %689 = memref.load %arg2[%c119] : memref<294xf32, #tpu.memory_space<smem>>
    %690 = vector.extract_strided_slice %670 {offsets = [0, 3, 0], sizes = [1, 4, 16], strides = [1, 1, 1]} : vector<2x10x16xf32> to vector<1x4x16xf32>
    %691 = vector.shape_cast %690 : vector<1x4x16xf32> to vector<4x16xf32>
    %692 = vector.broadcast %689 : f32 to vector<4x16xf32>
    %693 = arith.mulf %692, %691 : vector<4x16xf32>
    %694 = arith.addf %682, %693 : vector<4x16xf32>
    %c126 = arith.constant 126 : index
    %695 = memref.load %arg2[%c126] : memref<294xf32, #tpu.memory_space<smem>>
    %696 = vector.extract_strided_slice %670 {offsets = [0, 4, 0], sizes = [1, 4, 16], strides = [1, 1, 1]} : vector<2x10x16xf32> to vector<1x4x16xf32>
    %697 = vector.shape_cast %696 : vector<1x4x16xf32> to vector<4x16xf32>
    %698 = vector.broadcast %695 : f32 to vector<4x16xf32>
    %699 = arith.mulf %698, %697 : vector<4x16xf32>
    %700 = arith.addf %688, %699 : vector<4x16xf32>
    %c133 = arith.constant 133 : index
    %701 = memref.load %arg2[%c133] : memref<294xf32, #tpu.memory_space<smem>>
    %702 = vector.extract_strided_slice %670 {offsets = [0, 5, 0], sizes = [1, 4, 16], strides = [1, 1, 1]} : vector<2x10x16xf32> to vector<1x4x16xf32>
    %703 = vector.shape_cast %702 : vector<1x4x16xf32> to vector<4x16xf32>
    %704 = vector.broadcast %701 : f32 to vector<4x16xf32>
    %705 = arith.mulf %704, %703 : vector<4x16xf32>
    %706 = arith.addf %694, %705 : vector<4x16xf32>
    %c140 = arith.constant 140 : index
    %707 = memref.load %arg2[%c140] : memref<294xf32, #tpu.memory_space<smem>>
    %708 = vector.extract_strided_slice %670 {offsets = [0, 6, 0], sizes = [1, 4, 16], strides = [1, 1, 1]} : vector<2x10x16xf32> to vector<1x4x16xf32>
    %709 = vector.shape_cast %708 : vector<1x4x16xf32> to vector<4x16xf32>
    %710 = vector.broadcast %707 : f32 to vector<4x16xf32>
    %711 = arith.mulf %710, %709 : vector<4x16xf32>
    %712 = arith.addf %700, %711 : vector<4x16xf32>
    %c147 = arith.constant 147 : index
    %713 = memref.load %arg2[%c147] : memref<294xf32, #tpu.memory_space<smem>>
    %714 = vector.extract_strided_slice %670 {offsets = [1, 0, 0], sizes = [1, 4, 16], strides = [1, 1, 1]} : vector<2x10x16xf32> to vector<1x4x16xf32>
    %715 = vector.shape_cast %714 : vector<1x4x16xf32> to vector<4x16xf32>
    %716 = vector.broadcast %713 : f32 to vector<4x16xf32>
    %717 = arith.mulf %716, %715 : vector<4x16xf32>
    %718 = arith.addf %668, %717 : vector<4x16xf32>
    %c154 = arith.constant 154 : index
    %719 = memref.load %arg2[%c154] : memref<294xf32, #tpu.memory_space<smem>>
    %720 = vector.extract_strided_slice %670 {offsets = [1, 1, 0], sizes = [1, 4, 16], strides = [1, 1, 1]} : vector<2x10x16xf32> to vector<1x4x16xf32>
    %721 = vector.shape_cast %720 : vector<1x4x16xf32> to vector<4x16xf32>
    %722 = vector.broadcast %719 : f32 to vector<4x16xf32>
    %723 = arith.mulf %722, %721 : vector<4x16xf32>
    %724 = arith.addf %669, %723 : vector<4x16xf32>
    %c161 = arith.constant 161 : index
    %725 = memref.load %arg2[%c161] : memref<294xf32, #tpu.memory_space<smem>>
    %726 = vector.extract_strided_slice %670 {offsets = [1, 2, 0], sizes = [1, 4, 16], strides = [1, 1, 1]} : vector<2x10x16xf32> to vector<1x4x16xf32>
    %727 = vector.shape_cast %726 : vector<1x4x16xf32> to vector<4x16xf32>
    %728 = vector.broadcast %725 : f32 to vector<4x16xf32>
    %729 = arith.mulf %728, %727 : vector<4x16xf32>
    %730 = arith.addf %718, %729 : vector<4x16xf32>
    %c168 = arith.constant 168 : index
    %731 = memref.load %arg2[%c168] : memref<294xf32, #tpu.memory_space<smem>>
    %732 = vector.extract_strided_slice %670 {offsets = [1, 3, 0], sizes = [1, 4, 16], strides = [1, 1, 1]} : vector<2x10x16xf32> to vector<1x4x16xf32>
    %733 = vector.shape_cast %732 : vector<1x4x16xf32> to vector<4x16xf32>
    %734 = vector.broadcast %731 : f32 to vector<4x16xf32>
    %735 = arith.mulf %734, %733 : vector<4x16xf32>
    %736 = arith.addf %724, %735 : vector<4x16xf32>
    %c175 = arith.constant 175 : index
    %737 = memref.load %arg2[%c175] : memref<294xf32, #tpu.memory_space<smem>>
    %738 = vector.extract_strided_slice %670 {offsets = [1, 4, 0], sizes = [1, 4, 16], strides = [1, 1, 1]} : vector<2x10x16xf32> to vector<1x4x16xf32>
    %739 = vector.shape_cast %738 : vector<1x4x16xf32> to vector<4x16xf32>
    %740 = vector.broadcast %737 : f32 to vector<4x16xf32>
    %741 = arith.mulf %740, %739 : vector<4x16xf32>
    %742 = arith.addf %730, %741 : vector<4x16xf32>
    %c182 = arith.constant 182 : index
    %743 = memref.load %arg2[%c182] : memref<294xf32, #tpu.memory_space<smem>>
    %744 = vector.extract_strided_slice %670 {offsets = [1, 5, 0], sizes = [1, 4, 16], strides = [1, 1, 1]} : vector<2x10x16xf32> to vector<1x4x16xf32>
    %745 = vector.shape_cast %744 : vector<1x4x16xf32> to vector<4x16xf32>
    %746 = vector.broadcast %743 : f32 to vector<4x16xf32>
    %747 = arith.mulf %746, %745 : vector<4x16xf32>
    %748 = arith.addf %736, %747 : vector<4x16xf32>
    %c189 = arith.constant 189 : index
    %749 = memref.load %arg2[%c189] : memref<294xf32, #tpu.memory_space<smem>>
    %750 = vector.extract_strided_slice %670 {offsets = [1, 6, 0], sizes = [1, 4, 16], strides = [1, 1, 1]} : vector<2x10x16xf32> to vector<1x4x16xf32>
    %751 = vector.shape_cast %750 : vector<1x4x16xf32> to vector<4x16xf32>
    %752 = vector.broadcast %749 : f32 to vector<4x16xf32>
    %753 = arith.mulf %752, %751 : vector<4x16xf32>
    %754 = arith.addf %742, %753 : vector<4x16xf32>
    %c0_112 = arith.constant 0 : index
    %c0_113 = arith.constant 0 : index
    %c1_114 = arith.constant 1 : index
    %755 = vector.load %arg6[%c0_112, %c0_113, %c1_114] : memref<2x10x22xf32, #tpu.memory_space<vmem>>, vector<2x10x16xf32>
    %c99 = arith.constant 99 : index
    %756 = memref.load %arg2[%c99] : memref<294xf32, #tpu.memory_space<smem>>
    %757 = vector.extract_strided_slice %755 {offsets = [0, 0, 0], sizes = [1, 4, 16], strides = [1, 1, 1]} : vector<2x10x16xf32> to vector<1x4x16xf32>
    %758 = vector.shape_cast %757 : vector<1x4x16xf32> to vector<4x16xf32>
    %759 = vector.broadcast %756 : f32 to vector<4x16xf32>
    %760 = arith.mulf %759, %758 : vector<4x16xf32>
    %761 = arith.addf %712, %760 : vector<4x16xf32>
    %c106 = arith.constant 106 : index
    %762 = memref.load %arg2[%c106] : memref<294xf32, #tpu.memory_space<smem>>
    %763 = vector.extract_strided_slice %755 {offsets = [0, 1, 0], sizes = [1, 4, 16], strides = [1, 1, 1]} : vector<2x10x16xf32> to vector<1x4x16xf32>
    %764 = vector.shape_cast %763 : vector<1x4x16xf32> to vector<4x16xf32>
    %765 = vector.broadcast %762 : f32 to vector<4x16xf32>
    %766 = arith.mulf %765, %764 : vector<4x16xf32>
    %767 = arith.addf %706, %766 : vector<4x16xf32>
    %c113 = arith.constant 113 : index
    %768 = memref.load %arg2[%c113] : memref<294xf32, #tpu.memory_space<smem>>
    %769 = vector.extract_strided_slice %755 {offsets = [0, 2, 0], sizes = [1, 4, 16], strides = [1, 1, 1]} : vector<2x10x16xf32> to vector<1x4x16xf32>
    %770 = vector.shape_cast %769 : vector<1x4x16xf32> to vector<4x16xf32>
    %771 = vector.broadcast %768 : f32 to vector<4x16xf32>
    %772 = arith.mulf %771, %770 : vector<4x16xf32>
    %773 = arith.addf %761, %772 : vector<4x16xf32>
    %c120 = arith.constant 120 : index
    %774 = memref.load %arg2[%c120] : memref<294xf32, #tpu.memory_space<smem>>
    %775 = vector.extract_strided_slice %755 {offsets = [0, 3, 0], sizes = [1, 4, 16], strides = [1, 1, 1]} : vector<2x10x16xf32> to vector<1x4x16xf32>
    %776 = vector.shape_cast %775 : vector<1x4x16xf32> to vector<4x16xf32>
    %777 = vector.broadcast %774 : f32 to vector<4x16xf32>
    %778 = arith.mulf %777, %776 : vector<4x16xf32>
    %779 = arith.addf %767, %778 : vector<4x16xf32>
    %c127 = arith.constant 127 : index
    %780 = memref.load %arg2[%c127] : memref<294xf32, #tpu.memory_space<smem>>
    %781 = vector.extract_strided_slice %755 {offsets = [0, 4, 0], sizes = [1, 4, 16], strides = [1, 1, 1]} : vector<2x10x16xf32> to vector<1x4x16xf32>
    %782 = vector.shape_cast %781 : vector<1x4x16xf32> to vector<4x16xf32>
    %783 = vector.broadcast %780 : f32 to vector<4x16xf32>
    %784 = arith.mulf %783, %782 : vector<4x16xf32>
    %785 = arith.addf %773, %784 : vector<4x16xf32>
    %c134 = arith.constant 134 : index
    %786 = memref.load %arg2[%c134] : memref<294xf32, #tpu.memory_space<smem>>
    %787 = vector.extract_strided_slice %755 {offsets = [0, 5, 0], sizes = [1, 4, 16], strides = [1, 1, 1]} : vector<2x10x16xf32> to vector<1x4x16xf32>
    %788 = vector.shape_cast %787 : vector<1x4x16xf32> to vector<4x16xf32>
    %789 = vector.broadcast %786 : f32 to vector<4x16xf32>
    %790 = arith.mulf %789, %788 : vector<4x16xf32>
    %791 = arith.addf %779, %790 : vector<4x16xf32>
    %c141 = arith.constant 141 : index
    %792 = memref.load %arg2[%c141] : memref<294xf32, #tpu.memory_space<smem>>
    %793 = vector.extract_strided_slice %755 {offsets = [0, 6, 0], sizes = [1, 4, 16], strides = [1, 1, 1]} : vector<2x10x16xf32> to vector<1x4x16xf32>
    %794 = vector.shape_cast %793 : vector<1x4x16xf32> to vector<4x16xf32>
    %795 = vector.broadcast %792 : f32 to vector<4x16xf32>
    %796 = arith.mulf %795, %794 : vector<4x16xf32>
    %797 = arith.addf %785, %796 : vector<4x16xf32>
    %c148 = arith.constant 148 : index
    %798 = memref.load %arg2[%c148] : memref<294xf32, #tpu.memory_space<smem>>
    %799 = vector.extract_strided_slice %755 {offsets = [1, 0, 0], sizes = [1, 4, 16], strides = [1, 1, 1]} : vector<2x10x16xf32> to vector<1x4x16xf32>
    %800 = vector.shape_cast %799 : vector<1x4x16xf32> to vector<4x16xf32>
    %801 = vector.broadcast %798 : f32 to vector<4x16xf32>
    %802 = arith.mulf %801, %800 : vector<4x16xf32>
    %803 = arith.addf %754, %802 : vector<4x16xf32>
    %c155 = arith.constant 155 : index
    %804 = memref.load %arg2[%c155] : memref<294xf32, #tpu.memory_space<smem>>
    %805 = vector.extract_strided_slice %755 {offsets = [1, 1, 0], sizes = [1, 4, 16], strides = [1, 1, 1]} : vector<2x10x16xf32> to vector<1x4x16xf32>
    %806 = vector.shape_cast %805 : vector<1x4x16xf32> to vector<4x16xf32>
    %807 = vector.broadcast %804 : f32 to vector<4x16xf32>
    %808 = arith.mulf %807, %806 : vector<4x16xf32>
    %809 = arith.addf %748, %808 : vector<4x16xf32>
    %c162 = arith.constant 162 : index
    %810 = memref.load %arg2[%c162] : memref<294xf32, #tpu.memory_space<smem>>
    %811 = vector.extract_strided_slice %755 {offsets = [1, 2, 0], sizes = [1, 4, 16], strides = [1, 1, 1]} : vector<2x10x16xf32> to vector<1x4x16xf32>
    %812 = vector.shape_cast %811 : vector<1x4x16xf32> to vector<4x16xf32>
    %813 = vector.broadcast %810 : f32 to vector<4x16xf32>
    %814 = arith.mulf %813, %812 : vector<4x16xf32>
    %815 = arith.addf %803, %814 : vector<4x16xf32>
    %c169 = arith.constant 169 : index
    %816 = memref.load %arg2[%c169] : memref<294xf32, #tpu.memory_space<smem>>
    %817 = vector.extract_strided_slice %755 {offsets = [1, 3, 0], sizes = [1, 4, 16], strides = [1, 1, 1]} : vector<2x10x16xf32> to vector<1x4x16xf32>
    %818 = vector.shape_cast %817 : vector<1x4x16xf32> to vector<4x16xf32>
    %819 = vector.broadcast %816 : f32 to vector<4x16xf32>
    %820 = arith.mulf %819, %818 : vector<4x16xf32>
    %821 = arith.addf %809, %820 : vector<4x16xf32>
    %c176 = arith.constant 176 : index
    %822 = memref.load %arg2[%c176] : memref<294xf32, #tpu.memory_space<smem>>
    %823 = vector.extract_strided_slice %755 {offsets = [1, 4, 0], sizes = [1, 4, 16], strides = [1, 1, 1]} : vector<2x10x16xf32> to vector<1x4x16xf32>
    %824 = vector.shape_cast %823 : vector<1x4x16xf32> to vector<4x16xf32>
    %825 = vector.broadcast %822 : f32 to vector<4x16xf32>
    %826 = arith.mulf %825, %824 : vector<4x16xf32>
    %827 = arith.addf %815, %826 : vector<4x16xf32>
    %c183 = arith.constant 183 : index
    %828 = memref.load %arg2[%c183] : memref<294xf32, #tpu.memory_space<smem>>
    %829 = vector.extract_strided_slice %755 {offsets = [1, 5, 0], sizes = [1, 4, 16], strides = [1, 1, 1]} : vector<2x10x16xf32> to vector<1x4x16xf32>
    %830 = vector.shape_cast %829 : vector<1x4x16xf32> to vector<4x16xf32>
    %831 = vector.broadcast %828 : f32 to vector<4x16xf32>
    %832 = arith.mulf %831, %830 : vector<4x16xf32>
    %833 = arith.addf %821, %832 : vector<4x16xf32>
    %c190 = arith.constant 190 : index
    %834 = memref.load %arg2[%c190] : memref<294xf32, #tpu.memory_space<smem>>
    %835 = vector.extract_strided_slice %755 {offsets = [1, 6, 0], sizes = [1, 4, 16], strides = [1, 1, 1]} : vector<2x10x16xf32> to vector<1x4x16xf32>
    %836 = vector.shape_cast %835 : vector<1x4x16xf32> to vector<4x16xf32>
    %837 = vector.broadcast %834 : f32 to vector<4x16xf32>
    %838 = arith.mulf %837, %836 : vector<4x16xf32>
    %839 = arith.addf %827, %838 : vector<4x16xf32>
    %c0_115 = arith.constant 0 : index
    %c0_116 = arith.constant 0 : index
    %c2_117 = arith.constant 2 : index
    %840 = vector.load %arg6[%c0_115, %c0_116, %c2_117] : memref<2x10x22xf32, #tpu.memory_space<vmem>>, vector<2x10x16xf32>
    %c100 = arith.constant 100 : index
    %841 = memref.load %arg2[%c100] : memref<294xf32, #tpu.memory_space<smem>>
    %842 = vector.extract_strided_slice %840 {offsets = [0, 0, 0], sizes = [1, 4, 16], strides = [1, 1, 1]} : vector<2x10x16xf32> to vector<1x4x16xf32>
    %843 = vector.shape_cast %842 : vector<1x4x16xf32> to vector<4x16xf32>
    %844 = vector.broadcast %841 : f32 to vector<4x16xf32>
    %845 = arith.mulf %844, %843 : vector<4x16xf32>
    %846 = arith.addf %797, %845 : vector<4x16xf32>
    %c107 = arith.constant 107 : index
    %847 = memref.load %arg2[%c107] : memref<294xf32, #tpu.memory_space<smem>>
    %848 = vector.extract_strided_slice %840 {offsets = [0, 1, 0], sizes = [1, 4, 16], strides = [1, 1, 1]} : vector<2x10x16xf32> to vector<1x4x16xf32>
    %849 = vector.shape_cast %848 : vector<1x4x16xf32> to vector<4x16xf32>
    %850 = vector.broadcast %847 : f32 to vector<4x16xf32>
    %851 = arith.mulf %850, %849 : vector<4x16xf32>
    %852 = arith.addf %791, %851 : vector<4x16xf32>
    %c114 = arith.constant 114 : index
    %853 = memref.load %arg2[%c114] : memref<294xf32, #tpu.memory_space<smem>>
    %854 = vector.extract_strided_slice %840 {offsets = [0, 2, 0], sizes = [1, 4, 16], strides = [1, 1, 1]} : vector<2x10x16xf32> to vector<1x4x16xf32>
    %855 = vector.shape_cast %854 : vector<1x4x16xf32> to vector<4x16xf32>
    %856 = vector.broadcast %853 : f32 to vector<4x16xf32>
    %857 = arith.mulf %856, %855 : vector<4x16xf32>
    %858 = arith.addf %846, %857 : vector<4x16xf32>
    %c121 = arith.constant 121 : index
    %859 = memref.load %arg2[%c121] : memref<294xf32, #tpu.memory_space<smem>>
    %860 = vector.extract_strided_slice %840 {offsets = [0, 3, 0], sizes = [1, 4, 16], strides = [1, 1, 1]} : vector<2x10x16xf32> to vector<1x4x16xf32>
    %861 = vector.shape_cast %860 : vector<1x4x16xf32> to vector<4x16xf32>
    %862 = vector.broadcast %859 : f32 to vector<4x16xf32>
    %863 = arith.mulf %862, %861 : vector<4x16xf32>
    %864 = arith.addf %852, %863 : vector<4x16xf32>
    %c128 = arith.constant 128 : index
    %865 = memref.load %arg2[%c128] : memref<294xf32, #tpu.memory_space<smem>>
    %866 = vector.extract_strided_slice %840 {offsets = [0, 4, 0], sizes = [1, 4, 16], strides = [1, 1, 1]} : vector<2x10x16xf32> to vector<1x4x16xf32>
    %867 = vector.shape_cast %866 : vector<1x4x16xf32> to vector<4x16xf32>
    %868 = vector.broadcast %865 : f32 to vector<4x16xf32>
    %869 = arith.mulf %868, %867 : vector<4x16xf32>
    %870 = arith.addf %858, %869 : vector<4x16xf32>
    %c135 = arith.constant 135 : index
    %871 = memref.load %arg2[%c135] : memref<294xf32, #tpu.memory_space<smem>>
    %872 = vector.extract_strided_slice %840 {offsets = [0, 5, 0], sizes = [1, 4, 16], strides = [1, 1, 1]} : vector<2x10x16xf32> to vector<1x4x16xf32>
    %873 = vector.shape_cast %872 : vector<1x4x16xf32> to vector<4x16xf32>
    %874 = vector.broadcast %871 : f32 to vector<4x16xf32>
    %875 = arith.mulf %874, %873 : vector<4x16xf32>
    %876 = arith.addf %864, %875 : vector<4x16xf32>
    %c142 = arith.constant 142 : index
    %877 = memref.load %arg2[%c142] : memref<294xf32, #tpu.memory_space<smem>>
    %878 = vector.extract_strided_slice %840 {offsets = [0, 6, 0], sizes = [1, 4, 16], strides = [1, 1, 1]} : vector<2x10x16xf32> to vector<1x4x16xf32>
    %879 = vector.shape_cast %878 : vector<1x4x16xf32> to vector<4x16xf32>
    %880 = vector.broadcast %877 : f32 to vector<4x16xf32>
    %881 = arith.mulf %880, %879 : vector<4x16xf32>
    %882 = arith.addf %870, %881 : vector<4x16xf32>
    %c149 = arith.constant 149 : index
    %883 = memref.load %arg2[%c149] : memref<294xf32, #tpu.memory_space<smem>>
    %884 = vector.extract_strided_slice %840 {offsets = [1, 0, 0], sizes = [1, 4, 16], strides = [1, 1, 1]} : vector<2x10x16xf32> to vector<1x4x16xf32>
    %885 = vector.shape_cast %884 : vector<1x4x16xf32> to vector<4x16xf32>
    %886 = vector.broadcast %883 : f32 to vector<4x16xf32>
    %887 = arith.mulf %886, %885 : vector<4x16xf32>
    %888 = arith.addf %839, %887 : vector<4x16xf32>
    %c156 = arith.constant 156 : index
    %889 = memref.load %arg2[%c156] : memref<294xf32, #tpu.memory_space<smem>>
    %890 = vector.extract_strided_slice %840 {offsets = [1, 1, 0], sizes = [1, 4, 16], strides = [1, 1, 1]} : vector<2x10x16xf32> to vector<1x4x16xf32>
    %891 = vector.shape_cast %890 : vector<1x4x16xf32> to vector<4x16xf32>
    %892 = vector.broadcast %889 : f32 to vector<4x16xf32>
    %893 = arith.mulf %892, %891 : vector<4x16xf32>
    %894 = arith.addf %833, %893 : vector<4x16xf32>
    %c163 = arith.constant 163 : index
    %895 = memref.load %arg2[%c163] : memref<294xf32, #tpu.memory_space<smem>>
    %896 = vector.extract_strided_slice %840 {offsets = [1, 2, 0], sizes = [1, 4, 16], strides = [1, 1, 1]} : vector<2x10x16xf32> to vector<1x4x16xf32>
    %897 = vector.shape_cast %896 : vector<1x4x16xf32> to vector<4x16xf32>
    %898 = vector.broadcast %895 : f32 to vector<4x16xf32>
    %899 = arith.mulf %898, %897 : vector<4x16xf32>
    %900 = arith.addf %888, %899 : vector<4x16xf32>
    %c170 = arith.constant 170 : index
    %901 = memref.load %arg2[%c170] : memref<294xf32, #tpu.memory_space<smem>>
    %902 = vector.extract_strided_slice %840 {offsets = [1, 3, 0], sizes = [1, 4, 16], strides = [1, 1, 1]} : vector<2x10x16xf32> to vector<1x4x16xf32>
    %903 = vector.shape_cast %902 : vector<1x4x16xf32> to vector<4x16xf32>
    %904 = vector.broadcast %901 : f32 to vector<4x16xf32>
    %905 = arith.mulf %904, %903 : vector<4x16xf32>
    %906 = arith.addf %894, %905 : vector<4x16xf32>
    %c177 = arith.constant 177 : index
    %907 = memref.load %arg2[%c177] : memref<294xf32, #tpu.memory_space<smem>>
    %908 = vector.extract_strided_slice %840 {offsets = [1, 4, 0], sizes = [1, 4, 16], strides = [1, 1, 1]} : vector<2x10x16xf32> to vector<1x4x16xf32>
    %909 = vector.shape_cast %908 : vector<1x4x16xf32> to vector<4x16xf32>
    %910 = vector.broadcast %907 : f32 to vector<4x16xf32>
    %911 = arith.mulf %910, %909 : vector<4x16xf32>
    %912 = arith.addf %900, %911 : vector<4x16xf32>
    %c184 = arith.constant 184 : index
    %913 = memref.load %arg2[%c184] : memref<294xf32, #tpu.memory_space<smem>>
    %914 = vector.extract_strided_slice %840 {offsets = [1, 5, 0], sizes = [1, 4, 16], strides = [1, 1, 1]} : vector<2x10x16xf32> to vector<1x4x16xf32>
    %915 = vector.shape_cast %914 : vector<1x4x16xf32> to vector<4x16xf32>
    %916 = vector.broadcast %913 : f32 to vector<4x16xf32>
    %917 = arith.mulf %916, %915 : vector<4x16xf32>
    %918 = arith.addf %906, %917 : vector<4x16xf32>
    %c191 = arith.constant 191 : index
    %919 = memref.load %arg2[%c191] : memref<294xf32, #tpu.memory_space<smem>>
    %920 = vector.extract_strided_slice %840 {offsets = [1, 6, 0], sizes = [1, 4, 16], strides = [1, 1, 1]} : vector<2x10x16xf32> to vector<1x4x16xf32>
    %921 = vector.shape_cast %920 : vector<1x4x16xf32> to vector<4x16xf32>
    %922 = vector.broadcast %919 : f32 to vector<4x16xf32>
    %923 = arith.mulf %922, %921 : vector<4x16xf32>
    %924 = arith.addf %912, %923 : vector<4x16xf32>
    %c0_118 = arith.constant 0 : index
    %c0_119 = arith.constant 0 : index
    %c3_120 = arith.constant 3 : index
    %925 = vector.load %arg6[%c0_118, %c0_119, %c3_120] : memref<2x10x22xf32, #tpu.memory_space<vmem>>, vector<2x10x16xf32>
    %c101 = arith.constant 101 : index
    %926 = memref.load %arg2[%c101] : memref<294xf32, #tpu.memory_space<smem>>
    %927 = vector.extract_strided_slice %925 {offsets = [0, 0, 0], sizes = [1, 4, 16], strides = [1, 1, 1]} : vector<2x10x16xf32> to vector<1x4x16xf32>
    %928 = vector.shape_cast %927 : vector<1x4x16xf32> to vector<4x16xf32>
    %929 = vector.broadcast %926 : f32 to vector<4x16xf32>
    %930 = arith.mulf %929, %928 : vector<4x16xf32>
    %931 = arith.addf %882, %930 : vector<4x16xf32>
    %c108 = arith.constant 108 : index
    %932 = memref.load %arg2[%c108] : memref<294xf32, #tpu.memory_space<smem>>
    %933 = vector.extract_strided_slice %925 {offsets = [0, 1, 0], sizes = [1, 4, 16], strides = [1, 1, 1]} : vector<2x10x16xf32> to vector<1x4x16xf32>
    %934 = vector.shape_cast %933 : vector<1x4x16xf32> to vector<4x16xf32>
    %935 = vector.broadcast %932 : f32 to vector<4x16xf32>
    %936 = arith.mulf %935, %934 : vector<4x16xf32>
    %937 = arith.addf %876, %936 : vector<4x16xf32>
    %c115 = arith.constant 115 : index
    %938 = memref.load %arg2[%c115] : memref<294xf32, #tpu.memory_space<smem>>
    %939 = vector.extract_strided_slice %925 {offsets = [0, 2, 0], sizes = [1, 4, 16], strides = [1, 1, 1]} : vector<2x10x16xf32> to vector<1x4x16xf32>
    %940 = vector.shape_cast %939 : vector<1x4x16xf32> to vector<4x16xf32>
    %941 = vector.broadcast %938 : f32 to vector<4x16xf32>
    %942 = arith.mulf %941, %940 : vector<4x16xf32>
    %943 = arith.addf %931, %942 : vector<4x16xf32>
    %c122 = arith.constant 122 : index
    %944 = memref.load %arg2[%c122] : memref<294xf32, #tpu.memory_space<smem>>
    %945 = vector.extract_strided_slice %925 {offsets = [0, 3, 0], sizes = [1, 4, 16], strides = [1, 1, 1]} : vector<2x10x16xf32> to vector<1x4x16xf32>
    %946 = vector.shape_cast %945 : vector<1x4x16xf32> to vector<4x16xf32>
    %947 = vector.broadcast %944 : f32 to vector<4x16xf32>
    %948 = arith.mulf %947, %946 : vector<4x16xf32>
    %949 = arith.addf %937, %948 : vector<4x16xf32>
    %c129 = arith.constant 129 : index
    %950 = memref.load %arg2[%c129] : memref<294xf32, #tpu.memory_space<smem>>
    %951 = vector.extract_strided_slice %925 {offsets = [0, 4, 0], sizes = [1, 4, 16], strides = [1, 1, 1]} : vector<2x10x16xf32> to vector<1x4x16xf32>
    %952 = vector.shape_cast %951 : vector<1x4x16xf32> to vector<4x16xf32>
    %953 = vector.broadcast %950 : f32 to vector<4x16xf32>
    %954 = arith.mulf %953, %952 : vector<4x16xf32>
    %955 = arith.addf %943, %954 : vector<4x16xf32>
    %c136 = arith.constant 136 : index
    %956 = memref.load %arg2[%c136] : memref<294xf32, #tpu.memory_space<smem>>
    %957 = vector.extract_strided_slice %925 {offsets = [0, 5, 0], sizes = [1, 4, 16], strides = [1, 1, 1]} : vector<2x10x16xf32> to vector<1x4x16xf32>
    %958 = vector.shape_cast %957 : vector<1x4x16xf32> to vector<4x16xf32>
    %959 = vector.broadcast %956 : f32 to vector<4x16xf32>
    %960 = arith.mulf %959, %958 : vector<4x16xf32>
    %961 = arith.addf %949, %960 : vector<4x16xf32>
    %c143 = arith.constant 143 : index
    %962 = memref.load %arg2[%c143] : memref<294xf32, #tpu.memory_space<smem>>
    %963 = vector.extract_strided_slice %925 {offsets = [0, 6, 0], sizes = [1, 4, 16], strides = [1, 1, 1]} : vector<2x10x16xf32> to vector<1x4x16xf32>
    %964 = vector.shape_cast %963 : vector<1x4x16xf32> to vector<4x16xf32>
    %965 = vector.broadcast %962 : f32 to vector<4x16xf32>
    %966 = arith.mulf %965, %964 : vector<4x16xf32>
    %967 = arith.addf %955, %966 : vector<4x16xf32>
    %c150 = arith.constant 150 : index
    %968 = memref.load %arg2[%c150] : memref<294xf32, #tpu.memory_space<smem>>
    %969 = vector.extract_strided_slice %925 {offsets = [1, 0, 0], sizes = [1, 4, 16], strides = [1, 1, 1]} : vector<2x10x16xf32> to vector<1x4x16xf32>
    %970 = vector.shape_cast %969 : vector<1x4x16xf32> to vector<4x16xf32>
    %971 = vector.broadcast %968 : f32 to vector<4x16xf32>
    %972 = arith.mulf %971, %970 : vector<4x16xf32>
    %973 = arith.addf %924, %972 : vector<4x16xf32>
    %c157 = arith.constant 157 : index
    %974 = memref.load %arg2[%c157] : memref<294xf32, #tpu.memory_space<smem>>
    %975 = vector.extract_strided_slice %925 {offsets = [1, 1, 0], sizes = [1, 4, 16], strides = [1, 1, 1]} : vector<2x10x16xf32> to vector<1x4x16xf32>
    %976 = vector.shape_cast %975 : vector<1x4x16xf32> to vector<4x16xf32>
    %977 = vector.broadcast %974 : f32 to vector<4x16xf32>
    %978 = arith.mulf %977, %976 : vector<4x16xf32>
    %979 = arith.addf %918, %978 : vector<4x16xf32>
    %c164 = arith.constant 164 : index
    %980 = memref.load %arg2[%c164] : memref<294xf32, #tpu.memory_space<smem>>
    %981 = vector.extract_strided_slice %925 {offsets = [1, 2, 0], sizes = [1, 4, 16], strides = [1, 1, 1]} : vector<2x10x16xf32> to vector<1x4x16xf32>
    %982 = vector.shape_cast %981 : vector<1x4x16xf32> to vector<4x16xf32>
    %983 = vector.broadcast %980 : f32 to vector<4x16xf32>
    %984 = arith.mulf %983, %982 : vector<4x16xf32>
    %985 = arith.addf %973, %984 : vector<4x16xf32>
    %c171 = arith.constant 171 : index
    %986 = memref.load %arg2[%c171] : memref<294xf32, #tpu.memory_space<smem>>
    %987 = vector.extract_strided_slice %925 {offsets = [1, 3, 0], sizes = [1, 4, 16], strides = [1, 1, 1]} : vector<2x10x16xf32> to vector<1x4x16xf32>
    %988 = vector.shape_cast %987 : vector<1x4x16xf32> to vector<4x16xf32>
    %989 = vector.broadcast %986 : f32 to vector<4x16xf32>
    %990 = arith.mulf %989, %988 : vector<4x16xf32>
    %991 = arith.addf %979, %990 : vector<4x16xf32>
    %c178 = arith.constant 178 : index
    %992 = memref.load %arg2[%c178] : memref<294xf32, #tpu.memory_space<smem>>
    %993 = vector.extract_strided_slice %925 {offsets = [1, 4, 0], sizes = [1, 4, 16], strides = [1, 1, 1]} : vector<2x10x16xf32> to vector<1x4x16xf32>
    %994 = vector.shape_cast %993 : vector<1x4x16xf32> to vector<4x16xf32>
    %995 = vector.broadcast %992 : f32 to vector<4x16xf32>
    %996 = arith.mulf %995, %994 : vector<4x16xf32>
    %997 = arith.addf %985, %996 : vector<4x16xf32>
    %c185 = arith.constant 185 : index
    %998 = memref.load %arg2[%c185] : memref<294xf32, #tpu.memory_space<smem>>
    %999 = vector.extract_strided_slice %925 {offsets = [1, 5, 0], sizes = [1, 4, 16], strides = [1, 1, 1]} : vector<2x10x16xf32> to vector<1x4x16xf32>
    %1000 = vector.shape_cast %999 : vector<1x4x16xf32> to vector<4x16xf32>
    %1001 = vector.broadcast %998 : f32 to vector<4x16xf32>
    %1002 = arith.mulf %1001, %1000 : vector<4x16xf32>
    %1003 = arith.addf %991, %1002 : vector<4x16xf32>
    %c192 = arith.constant 192 : index
    %1004 = memref.load %arg2[%c192] : memref<294xf32, #tpu.memory_space<smem>>
    %1005 = vector.extract_strided_slice %925 {offsets = [1, 6, 0], sizes = [1, 4, 16], strides = [1, 1, 1]} : vector<2x10x16xf32> to vector<1x4x16xf32>
    %1006 = vector.shape_cast %1005 : vector<1x4x16xf32> to vector<4x16xf32>
    %1007 = vector.broadcast %1004 : f32 to vector<4x16xf32>
    %1008 = arith.mulf %1007, %1006 : vector<4x16xf32>
    %1009 = arith.addf %997, %1008 : vector<4x16xf32>
    %c0_121 = arith.constant 0 : index
    %c0_122 = arith.constant 0 : index
    %c4_123 = arith.constant 4 : index
    %1010 = vector.load %arg6[%c0_121, %c0_122, %c4_123] : memref<2x10x22xf32, #tpu.memory_space<vmem>>, vector<2x10x16xf32>
    %c102 = arith.constant 102 : index
    %1011 = memref.load %arg2[%c102] : memref<294xf32, #tpu.memory_space<smem>>
    %1012 = vector.extract_strided_slice %1010 {offsets = [0, 0, 0], sizes = [1, 4, 16], strides = [1, 1, 1]} : vector<2x10x16xf32> to vector<1x4x16xf32>
    %1013 = vector.shape_cast %1012 : vector<1x4x16xf32> to vector<4x16xf32>
    %1014 = vector.broadcast %1011 : f32 to vector<4x16xf32>
    %1015 = arith.mulf %1014, %1013 : vector<4x16xf32>
    %1016 = arith.addf %967, %1015 : vector<4x16xf32>
    %c109 = arith.constant 109 : index
    %1017 = memref.load %arg2[%c109] : memref<294xf32, #tpu.memory_space<smem>>
    %1018 = vector.extract_strided_slice %1010 {offsets = [0, 1, 0], sizes = [1, 4, 16], strides = [1, 1, 1]} : vector<2x10x16xf32> to vector<1x4x16xf32>
    %1019 = vector.shape_cast %1018 : vector<1x4x16xf32> to vector<4x16xf32>
    %1020 = vector.broadcast %1017 : f32 to vector<4x16xf32>
    %1021 = arith.mulf %1020, %1019 : vector<4x16xf32>
    %1022 = arith.addf %961, %1021 : vector<4x16xf32>
    %c116 = arith.constant 116 : index
    %1023 = memref.load %arg2[%c116] : memref<294xf32, #tpu.memory_space<smem>>
    %1024 = vector.extract_strided_slice %1010 {offsets = [0, 2, 0], sizes = [1, 4, 16], strides = [1, 1, 1]} : vector<2x10x16xf32> to vector<1x4x16xf32>
    %1025 = vector.shape_cast %1024 : vector<1x4x16xf32> to vector<4x16xf32>
    %1026 = vector.broadcast %1023 : f32 to vector<4x16xf32>
    %1027 = arith.mulf %1026, %1025 : vector<4x16xf32>
    %1028 = arith.addf %1016, %1027 : vector<4x16xf32>
    %c123 = arith.constant 123 : index
    %1029 = memref.load %arg2[%c123] : memref<294xf32, #tpu.memory_space<smem>>
    %1030 = vector.extract_strided_slice %1010 {offsets = [0, 3, 0], sizes = [1, 4, 16], strides = [1, 1, 1]} : vector<2x10x16xf32> to vector<1x4x16xf32>
    %1031 = vector.shape_cast %1030 : vector<1x4x16xf32> to vector<4x16xf32>
    %1032 = vector.broadcast %1029 : f32 to vector<4x16xf32>
    %1033 = arith.mulf %1032, %1031 : vector<4x16xf32>
    %1034 = arith.addf %1022, %1033 : vector<4x16xf32>
    %c130 = arith.constant 130 : index
    %1035 = memref.load %arg2[%c130] : memref<294xf32, #tpu.memory_space<smem>>
    %1036 = vector.extract_strided_slice %1010 {offsets = [0, 4, 0], sizes = [1, 4, 16], strides = [1, 1, 1]} : vector<2x10x16xf32> to vector<1x4x16xf32>
    %1037 = vector.shape_cast %1036 : vector<1x4x16xf32> to vector<4x16xf32>
    %1038 = vector.broadcast %1035 : f32 to vector<4x16xf32>
    %1039 = arith.mulf %1038, %1037 : vector<4x16xf32>
    %1040 = arith.addf %1028, %1039 : vector<4x16xf32>
    %c137 = arith.constant 137 : index
    %1041 = memref.load %arg2[%c137] : memref<294xf32, #tpu.memory_space<smem>>
    %1042 = vector.extract_strided_slice %1010 {offsets = [0, 5, 0], sizes = [1, 4, 16], strides = [1, 1, 1]} : vector<2x10x16xf32> to vector<1x4x16xf32>
    %1043 = vector.shape_cast %1042 : vector<1x4x16xf32> to vector<4x16xf32>
    %1044 = vector.broadcast %1041 : f32 to vector<4x16xf32>
    %1045 = arith.mulf %1044, %1043 : vector<4x16xf32>
    %1046 = arith.addf %1034, %1045 : vector<4x16xf32>
    %c144 = arith.constant 144 : index
    %1047 = memref.load %arg2[%c144] : memref<294xf32, #tpu.memory_space<smem>>
    %1048 = vector.extract_strided_slice %1010 {offsets = [0, 6, 0], sizes = [1, 4, 16], strides = [1, 1, 1]} : vector<2x10x16xf32> to vector<1x4x16xf32>
    %1049 = vector.shape_cast %1048 : vector<1x4x16xf32> to vector<4x16xf32>
    %1050 = vector.broadcast %1047 : f32 to vector<4x16xf32>
    %1051 = arith.mulf %1050, %1049 : vector<4x16xf32>
    %1052 = arith.addf %1040, %1051 : vector<4x16xf32>
    %c151 = arith.constant 151 : index
    %1053 = memref.load %arg2[%c151] : memref<294xf32, #tpu.memory_space<smem>>
    %1054 = vector.extract_strided_slice %1010 {offsets = [1, 0, 0], sizes = [1, 4, 16], strides = [1, 1, 1]} : vector<2x10x16xf32> to vector<1x4x16xf32>
    %1055 = vector.shape_cast %1054 : vector<1x4x16xf32> to vector<4x16xf32>
    %1056 = vector.broadcast %1053 : f32 to vector<4x16xf32>
    %1057 = arith.mulf %1056, %1055 : vector<4x16xf32>
    %1058 = arith.addf %1009, %1057 : vector<4x16xf32>
    %c158 = arith.constant 158 : index
    %1059 = memref.load %arg2[%c158] : memref<294xf32, #tpu.memory_space<smem>>
    %1060 = vector.extract_strided_slice %1010 {offsets = [1, 1, 0], sizes = [1, 4, 16], strides = [1, 1, 1]} : vector<2x10x16xf32> to vector<1x4x16xf32>
    %1061 = vector.shape_cast %1060 : vector<1x4x16xf32> to vector<4x16xf32>
    %1062 = vector.broadcast %1059 : f32 to vector<4x16xf32>
    %1063 = arith.mulf %1062, %1061 : vector<4x16xf32>
    %1064 = arith.addf %1003, %1063 : vector<4x16xf32>
    %c165 = arith.constant 165 : index
    %1065 = memref.load %arg2[%c165] : memref<294xf32, #tpu.memory_space<smem>>
    %1066 = vector.extract_strided_slice %1010 {offsets = [1, 2, 0], sizes = [1, 4, 16], strides = [1, 1, 1]} : vector<2x10x16xf32> to vector<1x4x16xf32>
    %1067 = vector.shape_cast %1066 : vector<1x4x16xf32> to vector<4x16xf32>
    %1068 = vector.broadcast %1065 : f32 to vector<4x16xf32>
    %1069 = arith.mulf %1068, %1067 : vector<4x16xf32>
    %1070 = arith.addf %1058, %1069 : vector<4x16xf32>
    %c172 = arith.constant 172 : index
    %1071 = memref.load %arg2[%c172] : memref<294xf32, #tpu.memory_space<smem>>
    %1072 = vector.extract_strided_slice %1010 {offsets = [1, 3, 0], sizes = [1, 4, 16], strides = [1, 1, 1]} : vector<2x10x16xf32> to vector<1x4x16xf32>
    %1073 = vector.shape_cast %1072 : vector<1x4x16xf32> to vector<4x16xf32>
    %1074 = vector.broadcast %1071 : f32 to vector<4x16xf32>
    %1075 = arith.mulf %1074, %1073 : vector<4x16xf32>
    %1076 = arith.addf %1064, %1075 : vector<4x16xf32>
    %c179 = arith.constant 179 : index
    %1077 = memref.load %arg2[%c179] : memref<294xf32, #tpu.memory_space<smem>>
    %1078 = vector.extract_strided_slice %1010 {offsets = [1, 4, 0], sizes = [1, 4, 16], strides = [1, 1, 1]} : vector<2x10x16xf32> to vector<1x4x16xf32>
    %1079 = vector.shape_cast %1078 : vector<1x4x16xf32> to vector<4x16xf32>
    %1080 = vector.broadcast %1077 : f32 to vector<4x16xf32>
    %1081 = arith.mulf %1080, %1079 : vector<4x16xf32>
    %1082 = arith.addf %1070, %1081 : vector<4x16xf32>
    %c186 = arith.constant 186 : index
    %1083 = memref.load %arg2[%c186] : memref<294xf32, #tpu.memory_space<smem>>
    %1084 = vector.extract_strided_slice %1010 {offsets = [1, 5, 0], sizes = [1, 4, 16], strides = [1, 1, 1]} : vector<2x10x16xf32> to vector<1x4x16xf32>
    %1085 = vector.shape_cast %1084 : vector<1x4x16xf32> to vector<4x16xf32>
    %1086 = vector.broadcast %1083 : f32 to vector<4x16xf32>
    %1087 = arith.mulf %1086, %1085 : vector<4x16xf32>
    %1088 = arith.addf %1076, %1087 : vector<4x16xf32>
    %c193 = arith.constant 193 : index
    %1089 = memref.load %arg2[%c193] : memref<294xf32, #tpu.memory_space<smem>>
    %1090 = vector.extract_strided_slice %1010 {offsets = [1, 6, 0], sizes = [1, 4, 16], strides = [1, 1, 1]} : vector<2x10x16xf32> to vector<1x4x16xf32>
    %1091 = vector.shape_cast %1090 : vector<1x4x16xf32> to vector<4x16xf32>
    %1092 = vector.broadcast %1089 : f32 to vector<4x16xf32>
    %1093 = arith.mulf %1092, %1091 : vector<4x16xf32>
    %1094 = arith.addf %1082, %1093 : vector<4x16xf32>
    %c0_124 = arith.constant 0 : index
    %c0_125 = arith.constant 0 : index
    %c5_126 = arith.constant 5 : index
    %1095 = vector.load %arg6[%c0_124, %c0_125, %c5_126] : memref<2x10x22xf32, #tpu.memory_space<vmem>>, vector<2x10x16xf32>
    %c103 = arith.constant 103 : index
    %1096 = memref.load %arg2[%c103] : memref<294xf32, #tpu.memory_space<smem>>
    %1097 = vector.extract_strided_slice %1095 {offsets = [0, 0, 0], sizes = [1, 4, 16], strides = [1, 1, 1]} : vector<2x10x16xf32> to vector<1x4x16xf32>
    %1098 = vector.shape_cast %1097 : vector<1x4x16xf32> to vector<4x16xf32>
    %1099 = vector.broadcast %1096 : f32 to vector<4x16xf32>
    %1100 = arith.mulf %1099, %1098 : vector<4x16xf32>
    %1101 = arith.addf %1052, %1100 : vector<4x16xf32>
    %c110 = arith.constant 110 : index
    %1102 = memref.load %arg2[%c110] : memref<294xf32, #tpu.memory_space<smem>>
    %1103 = vector.extract_strided_slice %1095 {offsets = [0, 1, 0], sizes = [1, 4, 16], strides = [1, 1, 1]} : vector<2x10x16xf32> to vector<1x4x16xf32>
    %1104 = vector.shape_cast %1103 : vector<1x4x16xf32> to vector<4x16xf32>
    %1105 = vector.broadcast %1102 : f32 to vector<4x16xf32>
    %1106 = arith.mulf %1105, %1104 : vector<4x16xf32>
    %1107 = arith.addf %1046, %1106 : vector<4x16xf32>
    %c117 = arith.constant 117 : index
    %1108 = memref.load %arg2[%c117] : memref<294xf32, #tpu.memory_space<smem>>
    %1109 = vector.extract_strided_slice %1095 {offsets = [0, 2, 0], sizes = [1, 4, 16], strides = [1, 1, 1]} : vector<2x10x16xf32> to vector<1x4x16xf32>
    %1110 = vector.shape_cast %1109 : vector<1x4x16xf32> to vector<4x16xf32>
    %1111 = vector.broadcast %1108 : f32 to vector<4x16xf32>
    %1112 = arith.mulf %1111, %1110 : vector<4x16xf32>
    %1113 = arith.addf %1101, %1112 : vector<4x16xf32>
    %c124 = arith.constant 124 : index
    %1114 = memref.load %arg2[%c124] : memref<294xf32, #tpu.memory_space<smem>>
    %1115 = vector.extract_strided_slice %1095 {offsets = [0, 3, 0], sizes = [1, 4, 16], strides = [1, 1, 1]} : vector<2x10x16xf32> to vector<1x4x16xf32>
    %1116 = vector.shape_cast %1115 : vector<1x4x16xf32> to vector<4x16xf32>
    %1117 = vector.broadcast %1114 : f32 to vector<4x16xf32>
    %1118 = arith.mulf %1117, %1116 : vector<4x16xf32>
    %1119 = arith.addf %1107, %1118 : vector<4x16xf32>
    %c131 = arith.constant 131 : index
    %1120 = memref.load %arg2[%c131] : memref<294xf32, #tpu.memory_space<smem>>
    %1121 = vector.extract_strided_slice %1095 {offsets = [0, 4, 0], sizes = [1, 4, 16], strides = [1, 1, 1]} : vector<2x10x16xf32> to vector<1x4x16xf32>
    %1122 = vector.shape_cast %1121 : vector<1x4x16xf32> to vector<4x16xf32>
    %1123 = vector.broadcast %1120 : f32 to vector<4x16xf32>
    %1124 = arith.mulf %1123, %1122 : vector<4x16xf32>
    %1125 = arith.addf %1113, %1124 : vector<4x16xf32>
    %c138 = arith.constant 138 : index
    %1126 = memref.load %arg2[%c138] : memref<294xf32, #tpu.memory_space<smem>>
    %1127 = vector.extract_strided_slice %1095 {offsets = [0, 5, 0], sizes = [1, 4, 16], strides = [1, 1, 1]} : vector<2x10x16xf32> to vector<1x4x16xf32>
    %1128 = vector.shape_cast %1127 : vector<1x4x16xf32> to vector<4x16xf32>
    %1129 = vector.broadcast %1126 : f32 to vector<4x16xf32>
    %1130 = arith.mulf %1129, %1128 : vector<4x16xf32>
    %1131 = arith.addf %1119, %1130 : vector<4x16xf32>
    %c145 = arith.constant 145 : index
    %1132 = memref.load %arg2[%c145] : memref<294xf32, #tpu.memory_space<smem>>
    %1133 = vector.extract_strided_slice %1095 {offsets = [0, 6, 0], sizes = [1, 4, 16], strides = [1, 1, 1]} : vector<2x10x16xf32> to vector<1x4x16xf32>
    %1134 = vector.shape_cast %1133 : vector<1x4x16xf32> to vector<4x16xf32>
    %1135 = vector.broadcast %1132 : f32 to vector<4x16xf32>
    %1136 = arith.mulf %1135, %1134 : vector<4x16xf32>
    %1137 = arith.addf %1125, %1136 : vector<4x16xf32>
    %c152 = arith.constant 152 : index
    %1138 = memref.load %arg2[%c152] : memref<294xf32, #tpu.memory_space<smem>>
    %1139 = vector.extract_strided_slice %1095 {offsets = [1, 0, 0], sizes = [1, 4, 16], strides = [1, 1, 1]} : vector<2x10x16xf32> to vector<1x4x16xf32>
    %1140 = vector.shape_cast %1139 : vector<1x4x16xf32> to vector<4x16xf32>
    %1141 = vector.broadcast %1138 : f32 to vector<4x16xf32>
    %1142 = arith.mulf %1141, %1140 : vector<4x16xf32>
    %1143 = arith.addf %1094, %1142 : vector<4x16xf32>
    %c159 = arith.constant 159 : index
    %1144 = memref.load %arg2[%c159] : memref<294xf32, #tpu.memory_space<smem>>
    %1145 = vector.extract_strided_slice %1095 {offsets = [1, 1, 0], sizes = [1, 4, 16], strides = [1, 1, 1]} : vector<2x10x16xf32> to vector<1x4x16xf32>
    %1146 = vector.shape_cast %1145 : vector<1x4x16xf32> to vector<4x16xf32>
    %1147 = vector.broadcast %1144 : f32 to vector<4x16xf32>
    %1148 = arith.mulf %1147, %1146 : vector<4x16xf32>
    %1149 = arith.addf %1088, %1148 : vector<4x16xf32>
    %c166 = arith.constant 166 : index
    %1150 = memref.load %arg2[%c166] : memref<294xf32, #tpu.memory_space<smem>>
    %1151 = vector.extract_strided_slice %1095 {offsets = [1, 2, 0], sizes = [1, 4, 16], strides = [1, 1, 1]} : vector<2x10x16xf32> to vector<1x4x16xf32>
    %1152 = vector.shape_cast %1151 : vector<1x4x16xf32> to vector<4x16xf32>
    %1153 = vector.broadcast %1150 : f32 to vector<4x16xf32>
    %1154 = arith.mulf %1153, %1152 : vector<4x16xf32>
    %1155 = arith.addf %1143, %1154 : vector<4x16xf32>
    %c173 = arith.constant 173 : index
    %1156 = memref.load %arg2[%c173] : memref<294xf32, #tpu.memory_space<smem>>
    %1157 = vector.extract_strided_slice %1095 {offsets = [1, 3, 0], sizes = [1, 4, 16], strides = [1, 1, 1]} : vector<2x10x16xf32> to vector<1x4x16xf32>
    %1158 = vector.shape_cast %1157 : vector<1x4x16xf32> to vector<4x16xf32>
    %1159 = vector.broadcast %1156 : f32 to vector<4x16xf32>
    %1160 = arith.mulf %1159, %1158 : vector<4x16xf32>
    %1161 = arith.addf %1149, %1160 : vector<4x16xf32>
    %c180 = arith.constant 180 : index
    %1162 = memref.load %arg2[%c180] : memref<294xf32, #tpu.memory_space<smem>>
    %1163 = vector.extract_strided_slice %1095 {offsets = [1, 4, 0], sizes = [1, 4, 16], strides = [1, 1, 1]} : vector<2x10x16xf32> to vector<1x4x16xf32>
    %1164 = vector.shape_cast %1163 : vector<1x4x16xf32> to vector<4x16xf32>
    %1165 = vector.broadcast %1162 : f32 to vector<4x16xf32>
    %1166 = arith.mulf %1165, %1164 : vector<4x16xf32>
    %1167 = arith.addf %1155, %1166 : vector<4x16xf32>
    %c187 = arith.constant 187 : index
    %1168 = memref.load %arg2[%c187] : memref<294xf32, #tpu.memory_space<smem>>
    %1169 = vector.extract_strided_slice %1095 {offsets = [1, 5, 0], sizes = [1, 4, 16], strides = [1, 1, 1]} : vector<2x10x16xf32> to vector<1x4x16xf32>
    %1170 = vector.shape_cast %1169 : vector<1x4x16xf32> to vector<4x16xf32>
    %1171 = vector.broadcast %1168 : f32 to vector<4x16xf32>
    %1172 = arith.mulf %1171, %1170 : vector<4x16xf32>
    %1173 = arith.addf %1161, %1172 : vector<4x16xf32>
    %c194 = arith.constant 194 : index
    %1174 = memref.load %arg2[%c194] : memref<294xf32, #tpu.memory_space<smem>>
    %1175 = vector.extract_strided_slice %1095 {offsets = [1, 6, 0], sizes = [1, 4, 16], strides = [1, 1, 1]} : vector<2x10x16xf32> to vector<1x4x16xf32>
    %1176 = vector.shape_cast %1175 : vector<1x4x16xf32> to vector<4x16xf32>
    %1177 = vector.broadcast %1174 : f32 to vector<4x16xf32>
    %1178 = arith.mulf %1177, %1176 : vector<4x16xf32>
    %1179 = arith.addf %1167, %1178 : vector<4x16xf32>
    %c0_127 = arith.constant 0 : index
    %c0_128 = arith.constant 0 : index
    %c6_129 = arith.constant 6 : index
    %1180 = vector.load %arg6[%c0_127, %c0_128, %c6_129] : memref<2x10x22xf32, #tpu.memory_space<vmem>>, vector<2x10x16xf32>
    %c104 = arith.constant 104 : index
    %1181 = memref.load %arg2[%c104] : memref<294xf32, #tpu.memory_space<smem>>
    %1182 = vector.extract_strided_slice %1180 {offsets = [0, 0, 0], sizes = [1, 4, 16], strides = [1, 1, 1]} : vector<2x10x16xf32> to vector<1x4x16xf32>
    %1183 = vector.shape_cast %1182 : vector<1x4x16xf32> to vector<4x16xf32>
    %1184 = vector.broadcast %1181 : f32 to vector<4x16xf32>
    %1185 = arith.mulf %1184, %1183 : vector<4x16xf32>
    %1186 = arith.addf %1137, %1185 : vector<4x16xf32>
    %c111 = arith.constant 111 : index
    %1187 = memref.load %arg2[%c111] : memref<294xf32, #tpu.memory_space<smem>>
    %1188 = vector.extract_strided_slice %1180 {offsets = [0, 1, 0], sizes = [1, 4, 16], strides = [1, 1, 1]} : vector<2x10x16xf32> to vector<1x4x16xf32>
    %1189 = vector.shape_cast %1188 : vector<1x4x16xf32> to vector<4x16xf32>
    %1190 = vector.broadcast %1187 : f32 to vector<4x16xf32>
    %1191 = arith.mulf %1190, %1189 : vector<4x16xf32>
    %1192 = arith.addf %1131, %1191 : vector<4x16xf32>
    %c118 = arith.constant 118 : index
    %1193 = memref.load %arg2[%c118] : memref<294xf32, #tpu.memory_space<smem>>
    %1194 = vector.extract_strided_slice %1180 {offsets = [0, 2, 0], sizes = [1, 4, 16], strides = [1, 1, 1]} : vector<2x10x16xf32> to vector<1x4x16xf32>
    %1195 = vector.shape_cast %1194 : vector<1x4x16xf32> to vector<4x16xf32>
    %1196 = vector.broadcast %1193 : f32 to vector<4x16xf32>
    %1197 = arith.mulf %1196, %1195 : vector<4x16xf32>
    %1198 = arith.addf %1186, %1197 : vector<4x16xf32>
    %c125 = arith.constant 125 : index
    %1199 = memref.load %arg2[%c125] : memref<294xf32, #tpu.memory_space<smem>>
    %1200 = vector.extract_strided_slice %1180 {offsets = [0, 3, 0], sizes = [1, 4, 16], strides = [1, 1, 1]} : vector<2x10x16xf32> to vector<1x4x16xf32>
    %1201 = vector.shape_cast %1200 : vector<1x4x16xf32> to vector<4x16xf32>
    %1202 = vector.broadcast %1199 : f32 to vector<4x16xf32>
    %1203 = arith.mulf %1202, %1201 : vector<4x16xf32>
    %1204 = arith.addf %1192, %1203 : vector<4x16xf32>
    %c132 = arith.constant 132 : index
    %1205 = memref.load %arg2[%c132] : memref<294xf32, #tpu.memory_space<smem>>
    %1206 = vector.extract_strided_slice %1180 {offsets = [0, 4, 0], sizes = [1, 4, 16], strides = [1, 1, 1]} : vector<2x10x16xf32> to vector<1x4x16xf32>
    %1207 = vector.shape_cast %1206 : vector<1x4x16xf32> to vector<4x16xf32>
    %1208 = vector.broadcast %1205 : f32 to vector<4x16xf32>
    %1209 = arith.mulf %1208, %1207 : vector<4x16xf32>
    %1210 = arith.addf %1198, %1209 : vector<4x16xf32>
    %c139 = arith.constant 139 : index
    %1211 = memref.load %arg2[%c139] : memref<294xf32, #tpu.memory_space<smem>>
    %1212 = vector.extract_strided_slice %1180 {offsets = [0, 5, 0], sizes = [1, 4, 16], strides = [1, 1, 1]} : vector<2x10x16xf32> to vector<1x4x16xf32>
    %1213 = vector.shape_cast %1212 : vector<1x4x16xf32> to vector<4x16xf32>
    %1214 = vector.broadcast %1211 : f32 to vector<4x16xf32>
    %1215 = arith.mulf %1214, %1213 : vector<4x16xf32>
    %1216 = arith.addf %1204, %1215 : vector<4x16xf32>
    %c146 = arith.constant 146 : index
    %1217 = memref.load %arg2[%c146] : memref<294xf32, #tpu.memory_space<smem>>
    %1218 = vector.extract_strided_slice %1180 {offsets = [0, 6, 0], sizes = [1, 4, 16], strides = [1, 1, 1]} : vector<2x10x16xf32> to vector<1x4x16xf32>
    %1219 = vector.shape_cast %1218 : vector<1x4x16xf32> to vector<4x16xf32>
    %1220 = vector.broadcast %1217 : f32 to vector<4x16xf32>
    %1221 = arith.mulf %1220, %1219 : vector<4x16xf32>
    %1222 = arith.addf %1210, %1221 : vector<4x16xf32>
    %c153 = arith.constant 153 : index
    %1223 = memref.load %arg2[%c153] : memref<294xf32, #tpu.memory_space<smem>>
    %1224 = vector.extract_strided_slice %1180 {offsets = [1, 0, 0], sizes = [1, 4, 16], strides = [1, 1, 1]} : vector<2x10x16xf32> to vector<1x4x16xf32>
    %1225 = vector.shape_cast %1224 : vector<1x4x16xf32> to vector<4x16xf32>
    %1226 = vector.broadcast %1223 : f32 to vector<4x16xf32>
    %1227 = arith.mulf %1226, %1225 : vector<4x16xf32>
    %1228 = arith.addf %1179, %1227 : vector<4x16xf32>
    %c160 = arith.constant 160 : index
    %1229 = memref.load %arg2[%c160] : memref<294xf32, #tpu.memory_space<smem>>
    %1230 = vector.extract_strided_slice %1180 {offsets = [1, 1, 0], sizes = [1, 4, 16], strides = [1, 1, 1]} : vector<2x10x16xf32> to vector<1x4x16xf32>
    %1231 = vector.shape_cast %1230 : vector<1x4x16xf32> to vector<4x16xf32>
    %1232 = vector.broadcast %1229 : f32 to vector<4x16xf32>
    %1233 = arith.mulf %1232, %1231 : vector<4x16xf32>
    %1234 = arith.addf %1173, %1233 : vector<4x16xf32>
    %c167 = arith.constant 167 : index
    %1235 = memref.load %arg2[%c167] : memref<294xf32, #tpu.memory_space<smem>>
    %1236 = vector.extract_strided_slice %1180 {offsets = [1, 2, 0], sizes = [1, 4, 16], strides = [1, 1, 1]} : vector<2x10x16xf32> to vector<1x4x16xf32>
    %1237 = vector.shape_cast %1236 : vector<1x4x16xf32> to vector<4x16xf32>
    %1238 = vector.broadcast %1235 : f32 to vector<4x16xf32>
    %1239 = arith.mulf %1238, %1237 : vector<4x16xf32>
    %1240 = arith.addf %1228, %1239 : vector<4x16xf32>
    %c174 = arith.constant 174 : index
    %1241 = memref.load %arg2[%c174] : memref<294xf32, #tpu.memory_space<smem>>
    %1242 = vector.extract_strided_slice %1180 {offsets = [1, 3, 0], sizes = [1, 4, 16], strides = [1, 1, 1]} : vector<2x10x16xf32> to vector<1x4x16xf32>
    %1243 = vector.shape_cast %1242 : vector<1x4x16xf32> to vector<4x16xf32>
    %1244 = vector.broadcast %1241 : f32 to vector<4x16xf32>
    %1245 = arith.mulf %1244, %1243 : vector<4x16xf32>
    %1246 = arith.addf %1234, %1245 : vector<4x16xf32>
    %c181 = arith.constant 181 : index
    %1247 = memref.load %arg2[%c181] : memref<294xf32, #tpu.memory_space<smem>>
    %1248 = vector.extract_strided_slice %1180 {offsets = [1, 4, 0], sizes = [1, 4, 16], strides = [1, 1, 1]} : vector<2x10x16xf32> to vector<1x4x16xf32>
    %1249 = vector.shape_cast %1248 : vector<1x4x16xf32> to vector<4x16xf32>
    %1250 = vector.broadcast %1247 : f32 to vector<4x16xf32>
    %1251 = arith.mulf %1250, %1249 : vector<4x16xf32>
    %1252 = arith.addf %1240, %1251 : vector<4x16xf32>
    %c188 = arith.constant 188 : index
    %1253 = memref.load %arg2[%c188] : memref<294xf32, #tpu.memory_space<smem>>
    %1254 = vector.extract_strided_slice %1180 {offsets = [1, 5, 0], sizes = [1, 4, 16], strides = [1, 1, 1]} : vector<2x10x16xf32> to vector<1x4x16xf32>
    %1255 = vector.shape_cast %1254 : vector<1x4x16xf32> to vector<4x16xf32>
    %1256 = vector.broadcast %1253 : f32 to vector<4x16xf32>
    %1257 = arith.mulf %1256, %1255 : vector<4x16xf32>
    %1258 = arith.addf %1246, %1257 : vector<4x16xf32>
    %c195 = arith.constant 195 : index
    %1259 = memref.load %arg2[%c195] : memref<294xf32, #tpu.memory_space<smem>>
    %1260 = vector.extract_strided_slice %1180 {offsets = [1, 6, 0], sizes = [1, 4, 16], strides = [1, 1, 1]} : vector<2x10x16xf32> to vector<1x4x16xf32>
    %1261 = vector.shape_cast %1260 : vector<1x4x16xf32> to vector<4x16xf32>
    %1262 = vector.broadcast %1259 : f32 to vector<4x16xf32>
    %1263 = arith.mulf %1262, %1261 : vector<4x16xf32>
    %1264 = arith.addf %1252, %1263 : vector<4x16xf32>
    %1265 = arith.addf %1222, %1216 : vector<4x16xf32>
    %1266 = arith.addf %1264, %1258 : vector<4x16xf32>
    %1267 = arith.addf %1265, %1266 : vector<4x16xf32>
    %c1_130 = arith.constant 1 : index
    %1268 = memref.load %arg3[%c1_130] : memref<3xf32, #tpu.memory_space<smem>>
    %1269 = vector.broadcast %1268 : f32 to vector<4x16xf32>
    %1270 = arith.addf %1267, %1269 : vector<4x16xf32>
    %1271 = arith.negf %1270 : vector<4x16xf32>
    %1272 = math.exp %1271 : vector<4x16xf32>
    %cst_131 = arith.constant 1.000000e+00 : f32
    %1273 = vector.broadcast %cst_131 : f32 to vector<4x16xf32>
    %1274 = arith.addf %1273, %1272 : vector<4x16xf32>
    %1275 = arith.divf %1273, %1274 : vector<4x16xf32>
    %cst_132 = arith.constant 0.000000e+00 : f32
    %1276 = vector.broadcast %cst_132 : f32 to vector<4x16xf32>
    %cst_133 = arith.constant 0.000000e+00 : f32
    %1277 = vector.broadcast %cst_133 : f32 to vector<4x16xf32>
    %cst_134 = arith.constant 0.000000e+00 : f32
    %1278 = vector.broadcast %cst_134 : f32 to vector<4x16xf32>
    %cst_135 = arith.constant 0.000000e+00 : f32
    %1279 = vector.broadcast %cst_135 : f32 to vector<4x16xf32>
    %c0_136 = arith.constant 0 : index
    %c0_137 = arith.constant 0 : index
    %c0_138 = arith.constant 0 : index
    %1280 = vector.load %arg7[%c0_136, %c0_137, %c0_138] : memref<2x10x22xf32, #tpu.memory_space<vmem>>, vector<2x10x16xf32>
    %c196 = arith.constant 196 : index
    %1281 = memref.load %arg2[%c196] : memref<294xf32, #tpu.memory_space<smem>>
    %1282 = vector.extract_strided_slice %1280 {offsets = [0, 0, 0], sizes = [1, 4, 16], strides = [1, 1, 1]} : vector<2x10x16xf32> to vector<1x4x16xf32>
    %1283 = vector.shape_cast %1282 : vector<1x4x16xf32> to vector<4x16xf32>
    %1284 = vector.broadcast %1281 : f32 to vector<4x16xf32>
    %1285 = arith.mulf %1284, %1283 : vector<4x16xf32>
    %1286 = arith.addf %1276, %1285 : vector<4x16xf32>
    %c197 = arith.constant 197 : index
    %1287 = memref.load %arg2[%c197] : memref<294xf32, #tpu.memory_space<smem>>
    %1288 = vector.extract_strided_slice %1280 {offsets = [0, 1, 0], sizes = [1, 4, 16], strides = [1, 1, 1]} : vector<2x10x16xf32> to vector<1x4x16xf32>
    %1289 = vector.shape_cast %1288 : vector<1x4x16xf32> to vector<4x16xf32>
    %1290 = vector.broadcast %1287 : f32 to vector<4x16xf32>
    %1291 = arith.mulf %1290, %1289 : vector<4x16xf32>
    %1292 = arith.addf %1277, %1291 : vector<4x16xf32>
    %c198 = arith.constant 198 : index
    %1293 = memref.load %arg2[%c198] : memref<294xf32, #tpu.memory_space<smem>>
    %1294 = vector.extract_strided_slice %1280 {offsets = [0, 2, 0], sizes = [1, 4, 16], strides = [1, 1, 1]} : vector<2x10x16xf32> to vector<1x4x16xf32>
    %1295 = vector.shape_cast %1294 : vector<1x4x16xf32> to vector<4x16xf32>
    %1296 = vector.broadcast %1293 : f32 to vector<4x16xf32>
    %1297 = arith.mulf %1296, %1295 : vector<4x16xf32>
    %1298 = arith.addf %1286, %1297 : vector<4x16xf32>
    %c199 = arith.constant 199 : index
    %1299 = memref.load %arg2[%c199] : memref<294xf32, #tpu.memory_space<smem>>
    %1300 = vector.extract_strided_slice %1280 {offsets = [0, 3, 0], sizes = [1, 4, 16], strides = [1, 1, 1]} : vector<2x10x16xf32> to vector<1x4x16xf32>
    %1301 = vector.shape_cast %1300 : vector<1x4x16xf32> to vector<4x16xf32>
    %1302 = vector.broadcast %1299 : f32 to vector<4x16xf32>
    %1303 = arith.mulf %1302, %1301 : vector<4x16xf32>
    %1304 = arith.addf %1292, %1303 : vector<4x16xf32>
    %c200 = arith.constant 200 : index
    %1305 = memref.load %arg2[%c200] : memref<294xf32, #tpu.memory_space<smem>>
    %1306 = vector.extract_strided_slice %1280 {offsets = [0, 4, 0], sizes = [1, 4, 16], strides = [1, 1, 1]} : vector<2x10x16xf32> to vector<1x4x16xf32>
    %1307 = vector.shape_cast %1306 : vector<1x4x16xf32> to vector<4x16xf32>
    %1308 = vector.broadcast %1305 : f32 to vector<4x16xf32>
    %1309 = arith.mulf %1308, %1307 : vector<4x16xf32>
    %1310 = arith.addf %1298, %1309 : vector<4x16xf32>
    %c201 = arith.constant 201 : index
    %1311 = memref.load %arg2[%c201] : memref<294xf32, #tpu.memory_space<smem>>
    %1312 = vector.extract_strided_slice %1280 {offsets = [0, 5, 0], sizes = [1, 4, 16], strides = [1, 1, 1]} : vector<2x10x16xf32> to vector<1x4x16xf32>
    %1313 = vector.shape_cast %1312 : vector<1x4x16xf32> to vector<4x16xf32>
    %1314 = vector.broadcast %1311 : f32 to vector<4x16xf32>
    %1315 = arith.mulf %1314, %1313 : vector<4x16xf32>
    %1316 = arith.addf %1304, %1315 : vector<4x16xf32>
    %c202 = arith.constant 202 : index
    %1317 = memref.load %arg2[%c202] : memref<294xf32, #tpu.memory_space<smem>>
    %1318 = vector.extract_strided_slice %1280 {offsets = [0, 6, 0], sizes = [1, 4, 16], strides = [1, 1, 1]} : vector<2x10x16xf32> to vector<1x4x16xf32>
    %1319 = vector.shape_cast %1318 : vector<1x4x16xf32> to vector<4x16xf32>
    %1320 = vector.broadcast %1317 : f32 to vector<4x16xf32>
    %1321 = arith.mulf %1320, %1319 : vector<4x16xf32>
    %1322 = arith.addf %1310, %1321 : vector<4x16xf32>
    %c245 = arith.constant 245 : index
    %1323 = memref.load %arg2[%c245] : memref<294xf32, #tpu.memory_space<smem>>
    %1324 = vector.extract_strided_slice %1280 {offsets = [1, 0, 0], sizes = [1, 4, 16], strides = [1, 1, 1]} : vector<2x10x16xf32> to vector<1x4x16xf32>
    %1325 = vector.shape_cast %1324 : vector<1x4x16xf32> to vector<4x16xf32>
    %1326 = vector.broadcast %1323 : f32 to vector<4x16xf32>
    %1327 = arith.mulf %1326, %1325 : vector<4x16xf32>
    %1328 = arith.addf %1278, %1327 : vector<4x16xf32>
    %c246 = arith.constant 246 : index
    %1329 = memref.load %arg2[%c246] : memref<294xf32, #tpu.memory_space<smem>>
    %1330 = vector.extract_strided_slice %1280 {offsets = [1, 1, 0], sizes = [1, 4, 16], strides = [1, 1, 1]} : vector<2x10x16xf32> to vector<1x4x16xf32>
    %1331 = vector.shape_cast %1330 : vector<1x4x16xf32> to vector<4x16xf32>
    %1332 = vector.broadcast %1329 : f32 to vector<4x16xf32>
    %1333 = arith.mulf %1332, %1331 : vector<4x16xf32>
    %1334 = arith.addf %1279, %1333 : vector<4x16xf32>
    %c247 = arith.constant 247 : index
    %1335 = memref.load %arg2[%c247] : memref<294xf32, #tpu.memory_space<smem>>
    %1336 = vector.extract_strided_slice %1280 {offsets = [1, 2, 0], sizes = [1, 4, 16], strides = [1, 1, 1]} : vector<2x10x16xf32> to vector<1x4x16xf32>
    %1337 = vector.shape_cast %1336 : vector<1x4x16xf32> to vector<4x16xf32>
    %1338 = vector.broadcast %1335 : f32 to vector<4x16xf32>
    %1339 = arith.mulf %1338, %1337 : vector<4x16xf32>
    %1340 = arith.addf %1328, %1339 : vector<4x16xf32>
    %c248 = arith.constant 248 : index
    %1341 = memref.load %arg2[%c248] : memref<294xf32, #tpu.memory_space<smem>>
    %1342 = vector.extract_strided_slice %1280 {offsets = [1, 3, 0], sizes = [1, 4, 16], strides = [1, 1, 1]} : vector<2x10x16xf32> to vector<1x4x16xf32>
    %1343 = vector.shape_cast %1342 : vector<1x4x16xf32> to vector<4x16xf32>
    %1344 = vector.broadcast %1341 : f32 to vector<4x16xf32>
    %1345 = arith.mulf %1344, %1343 : vector<4x16xf32>
    %1346 = arith.addf %1334, %1345 : vector<4x16xf32>
    %c249 = arith.constant 249 : index
    %1347 = memref.load %arg2[%c249] : memref<294xf32, #tpu.memory_space<smem>>
    %1348 = vector.extract_strided_slice %1280 {offsets = [1, 4, 0], sizes = [1, 4, 16], strides = [1, 1, 1]} : vector<2x10x16xf32> to vector<1x4x16xf32>
    %1349 = vector.shape_cast %1348 : vector<1x4x16xf32> to vector<4x16xf32>
    %1350 = vector.broadcast %1347 : f32 to vector<4x16xf32>
    %1351 = arith.mulf %1350, %1349 : vector<4x16xf32>
    %1352 = arith.addf %1340, %1351 : vector<4x16xf32>
    %c250 = arith.constant 250 : index
    %1353 = memref.load %arg2[%c250] : memref<294xf32, #tpu.memory_space<smem>>
    %1354 = vector.extract_strided_slice %1280 {offsets = [1, 5, 0], sizes = [1, 4, 16], strides = [1, 1, 1]} : vector<2x10x16xf32> to vector<1x4x16xf32>
    %1355 = vector.shape_cast %1354 : vector<1x4x16xf32> to vector<4x16xf32>
    %1356 = vector.broadcast %1353 : f32 to vector<4x16xf32>
    %1357 = arith.mulf %1356, %1355 : vector<4x16xf32>
    %1358 = arith.addf %1346, %1357 : vector<4x16xf32>
    %c251 = arith.constant 251 : index
    %1359 = memref.load %arg2[%c251] : memref<294xf32, #tpu.memory_space<smem>>
    %1360 = vector.extract_strided_slice %1280 {offsets = [1, 6, 0], sizes = [1, 4, 16], strides = [1, 1, 1]} : vector<2x10x16xf32> to vector<1x4x16xf32>
    %1361 = vector.shape_cast %1360 : vector<1x4x16xf32> to vector<4x16xf32>
    %1362 = vector.broadcast %1359 : f32 to vector<4x16xf32>
    %1363 = arith.mulf %1362, %1361 : vector<4x16xf32>
    %1364 = arith.addf %1352, %1363 : vector<4x16xf32>
    %c0_139 = arith.constant 0 : index
    %c0_140 = arith.constant 0 : index
    %c1_141 = arith.constant 1 : index
    %1365 = vector.load %arg7[%c0_139, %c0_140, %c1_141] : memref<2x10x22xf32, #tpu.memory_space<vmem>>, vector<2x10x16xf32>
    %c203 = arith.constant 203 : index
    %1366 = memref.load %arg2[%c203] : memref<294xf32, #tpu.memory_space<smem>>
    %1367 = vector.extract_strided_slice %1365 {offsets = [0, 0, 0], sizes = [1, 4, 16], strides = [1, 1, 1]} : vector<2x10x16xf32> to vector<1x4x16xf32>
    %1368 = vector.shape_cast %1367 : vector<1x4x16xf32> to vector<4x16xf32>
    %1369 = vector.broadcast %1366 : f32 to vector<4x16xf32>
    %1370 = arith.mulf %1369, %1368 : vector<4x16xf32>
    %1371 = arith.addf %1322, %1370 : vector<4x16xf32>
    %c204 = arith.constant 204 : index
    %1372 = memref.load %arg2[%c204] : memref<294xf32, #tpu.memory_space<smem>>
    %1373 = vector.extract_strided_slice %1365 {offsets = [0, 1, 0], sizes = [1, 4, 16], strides = [1, 1, 1]} : vector<2x10x16xf32> to vector<1x4x16xf32>
    %1374 = vector.shape_cast %1373 : vector<1x4x16xf32> to vector<4x16xf32>
    %1375 = vector.broadcast %1372 : f32 to vector<4x16xf32>
    %1376 = arith.mulf %1375, %1374 : vector<4x16xf32>
    %1377 = arith.addf %1316, %1376 : vector<4x16xf32>
    %c205 = arith.constant 205 : index
    %1378 = memref.load %arg2[%c205] : memref<294xf32, #tpu.memory_space<smem>>
    %1379 = vector.extract_strided_slice %1365 {offsets = [0, 2, 0], sizes = [1, 4, 16], strides = [1, 1, 1]} : vector<2x10x16xf32> to vector<1x4x16xf32>
    %1380 = vector.shape_cast %1379 : vector<1x4x16xf32> to vector<4x16xf32>
    %1381 = vector.broadcast %1378 : f32 to vector<4x16xf32>
    %1382 = arith.mulf %1381, %1380 : vector<4x16xf32>
    %1383 = arith.addf %1371, %1382 : vector<4x16xf32>
    %c206 = arith.constant 206 : index
    %1384 = memref.load %arg2[%c206] : memref<294xf32, #tpu.memory_space<smem>>
    %1385 = vector.extract_strided_slice %1365 {offsets = [0, 3, 0], sizes = [1, 4, 16], strides = [1, 1, 1]} : vector<2x10x16xf32> to vector<1x4x16xf32>
    %1386 = vector.shape_cast %1385 : vector<1x4x16xf32> to vector<4x16xf32>
    %1387 = vector.broadcast %1384 : f32 to vector<4x16xf32>
    %1388 = arith.mulf %1387, %1386 : vector<4x16xf32>
    %1389 = arith.addf %1377, %1388 : vector<4x16xf32>
    %c207 = arith.constant 207 : index
    %1390 = memref.load %arg2[%c207] : memref<294xf32, #tpu.memory_space<smem>>
    %1391 = vector.extract_strided_slice %1365 {offsets = [0, 4, 0], sizes = [1, 4, 16], strides = [1, 1, 1]} : vector<2x10x16xf32> to vector<1x4x16xf32>
    %1392 = vector.shape_cast %1391 : vector<1x4x16xf32> to vector<4x16xf32>
    %1393 = vector.broadcast %1390 : f32 to vector<4x16xf32>
    %1394 = arith.mulf %1393, %1392 : vector<4x16xf32>
    %1395 = arith.addf %1383, %1394 : vector<4x16xf32>
    %c208 = arith.constant 208 : index
    %1396 = memref.load %arg2[%c208] : memref<294xf32, #tpu.memory_space<smem>>
    %1397 = vector.extract_strided_slice %1365 {offsets = [0, 5, 0], sizes = [1, 4, 16], strides = [1, 1, 1]} : vector<2x10x16xf32> to vector<1x4x16xf32>
    %1398 = vector.shape_cast %1397 : vector<1x4x16xf32> to vector<4x16xf32>
    %1399 = vector.broadcast %1396 : f32 to vector<4x16xf32>
    %1400 = arith.mulf %1399, %1398 : vector<4x16xf32>
    %1401 = arith.addf %1389, %1400 : vector<4x16xf32>
    %c209 = arith.constant 209 : index
    %1402 = memref.load %arg2[%c209] : memref<294xf32, #tpu.memory_space<smem>>
    %1403 = vector.extract_strided_slice %1365 {offsets = [0, 6, 0], sizes = [1, 4, 16], strides = [1, 1, 1]} : vector<2x10x16xf32> to vector<1x4x16xf32>
    %1404 = vector.shape_cast %1403 : vector<1x4x16xf32> to vector<4x16xf32>
    %1405 = vector.broadcast %1402 : f32 to vector<4x16xf32>
    %1406 = arith.mulf %1405, %1404 : vector<4x16xf32>
    %1407 = arith.addf %1395, %1406 : vector<4x16xf32>
    %c252 = arith.constant 252 : index
    %1408 = memref.load %arg2[%c252] : memref<294xf32, #tpu.memory_space<smem>>
    %1409 = vector.extract_strided_slice %1365 {offsets = [1, 0, 0], sizes = [1, 4, 16], strides = [1, 1, 1]} : vector<2x10x16xf32> to vector<1x4x16xf32>
    %1410 = vector.shape_cast %1409 : vector<1x4x16xf32> to vector<4x16xf32>
    %1411 = vector.broadcast %1408 : f32 to vector<4x16xf32>
    %1412 = arith.mulf %1411, %1410 : vector<4x16xf32>
    %1413 = arith.addf %1364, %1412 : vector<4x16xf32>
    %c253 = arith.constant 253 : index
    %1414 = memref.load %arg2[%c253] : memref<294xf32, #tpu.memory_space<smem>>
    %1415 = vector.extract_strided_slice %1365 {offsets = [1, 1, 0], sizes = [1, 4, 16], strides = [1, 1, 1]} : vector<2x10x16xf32> to vector<1x4x16xf32>
    %1416 = vector.shape_cast %1415 : vector<1x4x16xf32> to vector<4x16xf32>
    %1417 = vector.broadcast %1414 : f32 to vector<4x16xf32>
    %1418 = arith.mulf %1417, %1416 : vector<4x16xf32>
    %1419 = arith.addf %1358, %1418 : vector<4x16xf32>
    %c254 = arith.constant 254 : index
    %1420 = memref.load %arg2[%c254] : memref<294xf32, #tpu.memory_space<smem>>
    %1421 = vector.extract_strided_slice %1365 {offsets = [1, 2, 0], sizes = [1, 4, 16], strides = [1, 1, 1]} : vector<2x10x16xf32> to vector<1x4x16xf32>
    %1422 = vector.shape_cast %1421 : vector<1x4x16xf32> to vector<4x16xf32>
    %1423 = vector.broadcast %1420 : f32 to vector<4x16xf32>
    %1424 = arith.mulf %1423, %1422 : vector<4x16xf32>
    %1425 = arith.addf %1413, %1424 : vector<4x16xf32>
    %c255 = arith.constant 255 : index
    %1426 = memref.load %arg2[%c255] : memref<294xf32, #tpu.memory_space<smem>>
    %1427 = vector.extract_strided_slice %1365 {offsets = [1, 3, 0], sizes = [1, 4, 16], strides = [1, 1, 1]} : vector<2x10x16xf32> to vector<1x4x16xf32>
    %1428 = vector.shape_cast %1427 : vector<1x4x16xf32> to vector<4x16xf32>
    %1429 = vector.broadcast %1426 : f32 to vector<4x16xf32>
    %1430 = arith.mulf %1429, %1428 : vector<4x16xf32>
    %1431 = arith.addf %1419, %1430 : vector<4x16xf32>
    %c256 = arith.constant 256 : index
    %1432 = memref.load %arg2[%c256] : memref<294xf32, #tpu.memory_space<smem>>
    %1433 = vector.extract_strided_slice %1365 {offsets = [1, 4, 0], sizes = [1, 4, 16], strides = [1, 1, 1]} : vector<2x10x16xf32> to vector<1x4x16xf32>
    %1434 = vector.shape_cast %1433 : vector<1x4x16xf32> to vector<4x16xf32>
    %1435 = vector.broadcast %1432 : f32 to vector<4x16xf32>
    %1436 = arith.mulf %1435, %1434 : vector<4x16xf32>
    %1437 = arith.addf %1425, %1436 : vector<4x16xf32>
    %c257 = arith.constant 257 : index
    %1438 = memref.load %arg2[%c257] : memref<294xf32, #tpu.memory_space<smem>>
    %1439 = vector.extract_strided_slice %1365 {offsets = [1, 5, 0], sizes = [1, 4, 16], strides = [1, 1, 1]} : vector<2x10x16xf32> to vector<1x4x16xf32>
    %1440 = vector.shape_cast %1439 : vector<1x4x16xf32> to vector<4x16xf32>
    %1441 = vector.broadcast %1438 : f32 to vector<4x16xf32>
    %1442 = arith.mulf %1441, %1440 : vector<4x16xf32>
    %1443 = arith.addf %1431, %1442 : vector<4x16xf32>
    %c258 = arith.constant 258 : index
    %1444 = memref.load %arg2[%c258] : memref<294xf32, #tpu.memory_space<smem>>
    %1445 = vector.extract_strided_slice %1365 {offsets = [1, 6, 0], sizes = [1, 4, 16], strides = [1, 1, 1]} : vector<2x10x16xf32> to vector<1x4x16xf32>
    %1446 = vector.shape_cast %1445 : vector<1x4x16xf32> to vector<4x16xf32>
    %1447 = vector.broadcast %1444 : f32 to vector<4x16xf32>
    %1448 = arith.mulf %1447, %1446 : vector<4x16xf32>
    %1449 = arith.addf %1437, %1448 : vector<4x16xf32>
    %c0_142 = arith.constant 0 : index
    %c0_143 = arith.constant 0 : index
    %c2_144 = arith.constant 2 : index
    %1450 = vector.load %arg7[%c0_142, %c0_143, %c2_144] : memref<2x10x22xf32, #tpu.memory_space<vmem>>, vector<2x10x16xf32>
    %c210 = arith.constant 210 : index
    %1451 = memref.load %arg2[%c210] : memref<294xf32, #tpu.memory_space<smem>>
    %1452 = vector.extract_strided_slice %1450 {offsets = [0, 0, 0], sizes = [1, 4, 16], strides = [1, 1, 1]} : vector<2x10x16xf32> to vector<1x4x16xf32>
    %1453 = vector.shape_cast %1452 : vector<1x4x16xf32> to vector<4x16xf32>
    %1454 = vector.broadcast %1451 : f32 to vector<4x16xf32>
    %1455 = arith.mulf %1454, %1453 : vector<4x16xf32>
    %1456 = arith.addf %1407, %1455 : vector<4x16xf32>
    %c211 = arith.constant 211 : index
    %1457 = memref.load %arg2[%c211] : memref<294xf32, #tpu.memory_space<smem>>
    %1458 = vector.extract_strided_slice %1450 {offsets = [0, 1, 0], sizes = [1, 4, 16], strides = [1, 1, 1]} : vector<2x10x16xf32> to vector<1x4x16xf32>
    %1459 = vector.shape_cast %1458 : vector<1x4x16xf32> to vector<4x16xf32>
    %1460 = vector.broadcast %1457 : f32 to vector<4x16xf32>
    %1461 = arith.mulf %1460, %1459 : vector<4x16xf32>
    %1462 = arith.addf %1401, %1461 : vector<4x16xf32>
    %c212 = arith.constant 212 : index
    %1463 = memref.load %arg2[%c212] : memref<294xf32, #tpu.memory_space<smem>>
    %1464 = vector.extract_strided_slice %1450 {offsets = [0, 2, 0], sizes = [1, 4, 16], strides = [1, 1, 1]} : vector<2x10x16xf32> to vector<1x4x16xf32>
    %1465 = vector.shape_cast %1464 : vector<1x4x16xf32> to vector<4x16xf32>
    %1466 = vector.broadcast %1463 : f32 to vector<4x16xf32>
    %1467 = arith.mulf %1466, %1465 : vector<4x16xf32>
    %1468 = arith.addf %1456, %1467 : vector<4x16xf32>
    %c213 = arith.constant 213 : index
    %1469 = memref.load %arg2[%c213] : memref<294xf32, #tpu.memory_space<smem>>
    %1470 = vector.extract_strided_slice %1450 {offsets = [0, 3, 0], sizes = [1, 4, 16], strides = [1, 1, 1]} : vector<2x10x16xf32> to vector<1x4x16xf32>
    %1471 = vector.shape_cast %1470 : vector<1x4x16xf32> to vector<4x16xf32>
    %1472 = vector.broadcast %1469 : f32 to vector<4x16xf32>
    %1473 = arith.mulf %1472, %1471 : vector<4x16xf32>
    %1474 = arith.addf %1462, %1473 : vector<4x16xf32>
    %c214 = arith.constant 214 : index
    %1475 = memref.load %arg2[%c214] : memref<294xf32, #tpu.memory_space<smem>>
    %1476 = vector.extract_strided_slice %1450 {offsets = [0, 4, 0], sizes = [1, 4, 16], strides = [1, 1, 1]} : vector<2x10x16xf32> to vector<1x4x16xf32>
    %1477 = vector.shape_cast %1476 : vector<1x4x16xf32> to vector<4x16xf32>
    %1478 = vector.broadcast %1475 : f32 to vector<4x16xf32>
    %1479 = arith.mulf %1478, %1477 : vector<4x16xf32>
    %1480 = arith.addf %1468, %1479 : vector<4x16xf32>
    %c215 = arith.constant 215 : index
    %1481 = memref.load %arg2[%c215] : memref<294xf32, #tpu.memory_space<smem>>
    %1482 = vector.extract_strided_slice %1450 {offsets = [0, 5, 0], sizes = [1, 4, 16], strides = [1, 1, 1]} : vector<2x10x16xf32> to vector<1x4x16xf32>
    %1483 = vector.shape_cast %1482 : vector<1x4x16xf32> to vector<4x16xf32>
    %1484 = vector.broadcast %1481 : f32 to vector<4x16xf32>
    %1485 = arith.mulf %1484, %1483 : vector<4x16xf32>
    %1486 = arith.addf %1474, %1485 : vector<4x16xf32>
    %c216 = arith.constant 216 : index
    %1487 = memref.load %arg2[%c216] : memref<294xf32, #tpu.memory_space<smem>>
    %1488 = vector.extract_strided_slice %1450 {offsets = [0, 6, 0], sizes = [1, 4, 16], strides = [1, 1, 1]} : vector<2x10x16xf32> to vector<1x4x16xf32>
    %1489 = vector.shape_cast %1488 : vector<1x4x16xf32> to vector<4x16xf32>
    %1490 = vector.broadcast %1487 : f32 to vector<4x16xf32>
    %1491 = arith.mulf %1490, %1489 : vector<4x16xf32>
    %1492 = arith.addf %1480, %1491 : vector<4x16xf32>
    %c259 = arith.constant 259 : index
    %1493 = memref.load %arg2[%c259] : memref<294xf32, #tpu.memory_space<smem>>
    %1494 = vector.extract_strided_slice %1450 {offsets = [1, 0, 0], sizes = [1, 4, 16], strides = [1, 1, 1]} : vector<2x10x16xf32> to vector<1x4x16xf32>
    %1495 = vector.shape_cast %1494 : vector<1x4x16xf32> to vector<4x16xf32>
    %1496 = vector.broadcast %1493 : f32 to vector<4x16xf32>
    %1497 = arith.mulf %1496, %1495 : vector<4x16xf32>
    %1498 = arith.addf %1449, %1497 : vector<4x16xf32>
    %c260 = arith.constant 260 : index
    %1499 = memref.load %arg2[%c260] : memref<294xf32, #tpu.memory_space<smem>>
    %1500 = vector.extract_strided_slice %1450 {offsets = [1, 1, 0], sizes = [1, 4, 16], strides = [1, 1, 1]} : vector<2x10x16xf32> to vector<1x4x16xf32>
    %1501 = vector.shape_cast %1500 : vector<1x4x16xf32> to vector<4x16xf32>
    %1502 = vector.broadcast %1499 : f32 to vector<4x16xf32>
    %1503 = arith.mulf %1502, %1501 : vector<4x16xf32>
    %1504 = arith.addf %1443, %1503 : vector<4x16xf32>
    %c261 = arith.constant 261 : index
    %1505 = memref.load %arg2[%c261] : memref<294xf32, #tpu.memory_space<smem>>
    %1506 = vector.extract_strided_slice %1450 {offsets = [1, 2, 0], sizes = [1, 4, 16], strides = [1, 1, 1]} : vector<2x10x16xf32> to vector<1x4x16xf32>
    %1507 = vector.shape_cast %1506 : vector<1x4x16xf32> to vector<4x16xf32>
    %1508 = vector.broadcast %1505 : f32 to vector<4x16xf32>
    %1509 = arith.mulf %1508, %1507 : vector<4x16xf32>
    %1510 = arith.addf %1498, %1509 : vector<4x16xf32>
    %c262 = arith.constant 262 : index
    %1511 = memref.load %arg2[%c262] : memref<294xf32, #tpu.memory_space<smem>>
    %1512 = vector.extract_strided_slice %1450 {offsets = [1, 3, 0], sizes = [1, 4, 16], strides = [1, 1, 1]} : vector<2x10x16xf32> to vector<1x4x16xf32>
    %1513 = vector.shape_cast %1512 : vector<1x4x16xf32> to vector<4x16xf32>
    %1514 = vector.broadcast %1511 : f32 to vector<4x16xf32>
    %1515 = arith.mulf %1514, %1513 : vector<4x16xf32>
    %1516 = arith.addf %1504, %1515 : vector<4x16xf32>
    %c263 = arith.constant 263 : index
    %1517 = memref.load %arg2[%c263] : memref<294xf32, #tpu.memory_space<smem>>
    %1518 = vector.extract_strided_slice %1450 {offsets = [1, 4, 0], sizes = [1, 4, 16], strides = [1, 1, 1]} : vector<2x10x16xf32> to vector<1x4x16xf32>
    %1519 = vector.shape_cast %1518 : vector<1x4x16xf32> to vector<4x16xf32>
    %1520 = vector.broadcast %1517 : f32 to vector<4x16xf32>
    %1521 = arith.mulf %1520, %1519 : vector<4x16xf32>
    %1522 = arith.addf %1510, %1521 : vector<4x16xf32>
    %c264 = arith.constant 264 : index
    %1523 = memref.load %arg2[%c264] : memref<294xf32, #tpu.memory_space<smem>>
    %1524 = vector.extract_strided_slice %1450 {offsets = [1, 5, 0], sizes = [1, 4, 16], strides = [1, 1, 1]} : vector<2x10x16xf32> to vector<1x4x16xf32>
    %1525 = vector.shape_cast %1524 : vector<1x4x16xf32> to vector<4x16xf32>
    %1526 = vector.broadcast %1523 : f32 to vector<4x16xf32>
    %1527 = arith.mulf %1526, %1525 : vector<4x16xf32>
    %1528 = arith.addf %1516, %1527 : vector<4x16xf32>
    %c265 = arith.constant 265 : index
    %1529 = memref.load %arg2[%c265] : memref<294xf32, #tpu.memory_space<smem>>
    %1530 = vector.extract_strided_slice %1450 {offsets = [1, 6, 0], sizes = [1, 4, 16], strides = [1, 1, 1]} : vector<2x10x16xf32> to vector<1x4x16xf32>
    %1531 = vector.shape_cast %1530 : vector<1x4x16xf32> to vector<4x16xf32>
    %1532 = vector.broadcast %1529 : f32 to vector<4x16xf32>
    %1533 = arith.mulf %1532, %1531 : vector<4x16xf32>
    %1534 = arith.addf %1522, %1533 : vector<4x16xf32>
    %c0_145 = arith.constant 0 : index
    %c0_146 = arith.constant 0 : index
    %c3_147 = arith.constant 3 : index
    %1535 = vector.load %arg7[%c0_145, %c0_146, %c3_147] : memref<2x10x22xf32, #tpu.memory_space<vmem>>, vector<2x10x16xf32>
    %c217 = arith.constant 217 : index
    %1536 = memref.load %arg2[%c217] : memref<294xf32, #tpu.memory_space<smem>>
    %1537 = vector.extract_strided_slice %1535 {offsets = [0, 0, 0], sizes = [1, 4, 16], strides = [1, 1, 1]} : vector<2x10x16xf32> to vector<1x4x16xf32>
    %1538 = vector.shape_cast %1537 : vector<1x4x16xf32> to vector<4x16xf32>
    %1539 = vector.broadcast %1536 : f32 to vector<4x16xf32>
    %1540 = arith.mulf %1539, %1538 : vector<4x16xf32>
    %1541 = arith.addf %1492, %1540 : vector<4x16xf32>
    %c218 = arith.constant 218 : index
    %1542 = memref.load %arg2[%c218] : memref<294xf32, #tpu.memory_space<smem>>
    %1543 = vector.extract_strided_slice %1535 {offsets = [0, 1, 0], sizes = [1, 4, 16], strides = [1, 1, 1]} : vector<2x10x16xf32> to vector<1x4x16xf32>
    %1544 = vector.shape_cast %1543 : vector<1x4x16xf32> to vector<4x16xf32>
    %1545 = vector.broadcast %1542 : f32 to vector<4x16xf32>
    %1546 = arith.mulf %1545, %1544 : vector<4x16xf32>
    %1547 = arith.addf %1486, %1546 : vector<4x16xf32>
    %c219 = arith.constant 219 : index
    %1548 = memref.load %arg2[%c219] : memref<294xf32, #tpu.memory_space<smem>>
    %1549 = vector.extract_strided_slice %1535 {offsets = [0, 2, 0], sizes = [1, 4, 16], strides = [1, 1, 1]} : vector<2x10x16xf32> to vector<1x4x16xf32>
    %1550 = vector.shape_cast %1549 : vector<1x4x16xf32> to vector<4x16xf32>
    %1551 = vector.broadcast %1548 : f32 to vector<4x16xf32>
    %1552 = arith.mulf %1551, %1550 : vector<4x16xf32>
    %1553 = arith.addf %1541, %1552 : vector<4x16xf32>
    %c220 = arith.constant 220 : index
    %1554 = memref.load %arg2[%c220] : memref<294xf32, #tpu.memory_space<smem>>
    %1555 = vector.extract_strided_slice %1535 {offsets = [0, 3, 0], sizes = [1, 4, 16], strides = [1, 1, 1]} : vector<2x10x16xf32> to vector<1x4x16xf32>
    %1556 = vector.shape_cast %1555 : vector<1x4x16xf32> to vector<4x16xf32>
    %1557 = vector.broadcast %1554 : f32 to vector<4x16xf32>
    %1558 = arith.mulf %1557, %1556 : vector<4x16xf32>
    %1559 = arith.addf %1547, %1558 : vector<4x16xf32>
    %c221 = arith.constant 221 : index
    %1560 = memref.load %arg2[%c221] : memref<294xf32, #tpu.memory_space<smem>>
    %1561 = vector.extract_strided_slice %1535 {offsets = [0, 4, 0], sizes = [1, 4, 16], strides = [1, 1, 1]} : vector<2x10x16xf32> to vector<1x4x16xf32>
    %1562 = vector.shape_cast %1561 : vector<1x4x16xf32> to vector<4x16xf32>
    %1563 = vector.broadcast %1560 : f32 to vector<4x16xf32>
    %1564 = arith.mulf %1563, %1562 : vector<4x16xf32>
    %1565 = arith.addf %1553, %1564 : vector<4x16xf32>
    %c222 = arith.constant 222 : index
    %1566 = memref.load %arg2[%c222] : memref<294xf32, #tpu.memory_space<smem>>
    %1567 = vector.extract_strided_slice %1535 {offsets = [0, 5, 0], sizes = [1, 4, 16], strides = [1, 1, 1]} : vector<2x10x16xf32> to vector<1x4x16xf32>
    %1568 = vector.shape_cast %1567 : vector<1x4x16xf32> to vector<4x16xf32>
    %1569 = vector.broadcast %1566 : f32 to vector<4x16xf32>
    %1570 = arith.mulf %1569, %1568 : vector<4x16xf32>
    %1571 = arith.addf %1559, %1570 : vector<4x16xf32>
    %c223 = arith.constant 223 : index
    %1572 = memref.load %arg2[%c223] : memref<294xf32, #tpu.memory_space<smem>>
    %1573 = vector.extract_strided_slice %1535 {offsets = [0, 6, 0], sizes = [1, 4, 16], strides = [1, 1, 1]} : vector<2x10x16xf32> to vector<1x4x16xf32>
    %1574 = vector.shape_cast %1573 : vector<1x4x16xf32> to vector<4x16xf32>
    %1575 = vector.broadcast %1572 : f32 to vector<4x16xf32>
    %1576 = arith.mulf %1575, %1574 : vector<4x16xf32>
    %1577 = arith.addf %1565, %1576 : vector<4x16xf32>
    %c266 = arith.constant 266 : index
    %1578 = memref.load %arg2[%c266] : memref<294xf32, #tpu.memory_space<smem>>
    %1579 = vector.extract_strided_slice %1535 {offsets = [1, 0, 0], sizes = [1, 4, 16], strides = [1, 1, 1]} : vector<2x10x16xf32> to vector<1x4x16xf32>
    %1580 = vector.shape_cast %1579 : vector<1x4x16xf32> to vector<4x16xf32>
    %1581 = vector.broadcast %1578 : f32 to vector<4x16xf32>
    %1582 = arith.mulf %1581, %1580 : vector<4x16xf32>
    %1583 = arith.addf %1534, %1582 : vector<4x16xf32>
    %c267 = arith.constant 267 : index
    %1584 = memref.load %arg2[%c267] : memref<294xf32, #tpu.memory_space<smem>>
    %1585 = vector.extract_strided_slice %1535 {offsets = [1, 1, 0], sizes = [1, 4, 16], strides = [1, 1, 1]} : vector<2x10x16xf32> to vector<1x4x16xf32>
    %1586 = vector.shape_cast %1585 : vector<1x4x16xf32> to vector<4x16xf32>
    %1587 = vector.broadcast %1584 : f32 to vector<4x16xf32>
    %1588 = arith.mulf %1587, %1586 : vector<4x16xf32>
    %1589 = arith.addf %1528, %1588 : vector<4x16xf32>
    %c268 = arith.constant 268 : index
    %1590 = memref.load %arg2[%c268] : memref<294xf32, #tpu.memory_space<smem>>
    %1591 = vector.extract_strided_slice %1535 {offsets = [1, 2, 0], sizes = [1, 4, 16], strides = [1, 1, 1]} : vector<2x10x16xf32> to vector<1x4x16xf32>
    %1592 = vector.shape_cast %1591 : vector<1x4x16xf32> to vector<4x16xf32>
    %1593 = vector.broadcast %1590 : f32 to vector<4x16xf32>
    %1594 = arith.mulf %1593, %1592 : vector<4x16xf32>
    %1595 = arith.addf %1583, %1594 : vector<4x16xf32>
    %c269 = arith.constant 269 : index
    %1596 = memref.load %arg2[%c269] : memref<294xf32, #tpu.memory_space<smem>>
    %1597 = vector.extract_strided_slice %1535 {offsets = [1, 3, 0], sizes = [1, 4, 16], strides = [1, 1, 1]} : vector<2x10x16xf32> to vector<1x4x16xf32>
    %1598 = vector.shape_cast %1597 : vector<1x4x16xf32> to vector<4x16xf32>
    %1599 = vector.broadcast %1596 : f32 to vector<4x16xf32>
    %1600 = arith.mulf %1599, %1598 : vector<4x16xf32>
    %1601 = arith.addf %1589, %1600 : vector<4x16xf32>
    %c270 = arith.constant 270 : index
    %1602 = memref.load %arg2[%c270] : memref<294xf32, #tpu.memory_space<smem>>
    %1603 = vector.extract_strided_slice %1535 {offsets = [1, 4, 0], sizes = [1, 4, 16], strides = [1, 1, 1]} : vector<2x10x16xf32> to vector<1x4x16xf32>
    %1604 = vector.shape_cast %1603 : vector<1x4x16xf32> to vector<4x16xf32>
    %1605 = vector.broadcast %1602 : f32 to vector<4x16xf32>
    %1606 = arith.mulf %1605, %1604 : vector<4x16xf32>
    %1607 = arith.addf %1595, %1606 : vector<4x16xf32>
    %c271 = arith.constant 271 : index
    %1608 = memref.load %arg2[%c271] : memref<294xf32, #tpu.memory_space<smem>>
    %1609 = vector.extract_strided_slice %1535 {offsets = [1, 5, 0], sizes = [1, 4, 16], strides = [1, 1, 1]} : vector<2x10x16xf32> to vector<1x4x16xf32>
    %1610 = vector.shape_cast %1609 : vector<1x4x16xf32> to vector<4x16xf32>
    %1611 = vector.broadcast %1608 : f32 to vector<4x16xf32>
    %1612 = arith.mulf %1611, %1610 : vector<4x16xf32>
    %1613 = arith.addf %1601, %1612 : vector<4x16xf32>
    %c272 = arith.constant 272 : index
    %1614 = memref.load %arg2[%c272] : memref<294xf32, #tpu.memory_space<smem>>
    %1615 = vector.extract_strided_slice %1535 {offsets = [1, 6, 0], sizes = [1, 4, 16], strides = [1, 1, 1]} : vector<2x10x16xf32> to vector<1x4x16xf32>
    %1616 = vector.shape_cast %1615 : vector<1x4x16xf32> to vector<4x16xf32>
    %1617 = vector.broadcast %1614 : f32 to vector<4x16xf32>
    %1618 = arith.mulf %1617, %1616 : vector<4x16xf32>
    %1619 = arith.addf %1607, %1618 : vector<4x16xf32>
    %c0_148 = arith.constant 0 : index
    %c0_149 = arith.constant 0 : index
    %c4_150 = arith.constant 4 : index
    %1620 = vector.load %arg7[%c0_148, %c0_149, %c4_150] : memref<2x10x22xf32, #tpu.memory_space<vmem>>, vector<2x10x16xf32>
    %c224 = arith.constant 224 : index
    %1621 = memref.load %arg2[%c224] : memref<294xf32, #tpu.memory_space<smem>>
    %1622 = vector.extract_strided_slice %1620 {offsets = [0, 0, 0], sizes = [1, 4, 16], strides = [1, 1, 1]} : vector<2x10x16xf32> to vector<1x4x16xf32>
    %1623 = vector.shape_cast %1622 : vector<1x4x16xf32> to vector<4x16xf32>
    %1624 = vector.broadcast %1621 : f32 to vector<4x16xf32>
    %1625 = arith.mulf %1624, %1623 : vector<4x16xf32>
    %1626 = arith.addf %1577, %1625 : vector<4x16xf32>
    %c225 = arith.constant 225 : index
    %1627 = memref.load %arg2[%c225] : memref<294xf32, #tpu.memory_space<smem>>
    %1628 = vector.extract_strided_slice %1620 {offsets = [0, 1, 0], sizes = [1, 4, 16], strides = [1, 1, 1]} : vector<2x10x16xf32> to vector<1x4x16xf32>
    %1629 = vector.shape_cast %1628 : vector<1x4x16xf32> to vector<4x16xf32>
    %1630 = vector.broadcast %1627 : f32 to vector<4x16xf32>
    %1631 = arith.mulf %1630, %1629 : vector<4x16xf32>
    %1632 = arith.addf %1571, %1631 : vector<4x16xf32>
    %c226 = arith.constant 226 : index
    %1633 = memref.load %arg2[%c226] : memref<294xf32, #tpu.memory_space<smem>>
    %1634 = vector.extract_strided_slice %1620 {offsets = [0, 2, 0], sizes = [1, 4, 16], strides = [1, 1, 1]} : vector<2x10x16xf32> to vector<1x4x16xf32>
    %1635 = vector.shape_cast %1634 : vector<1x4x16xf32> to vector<4x16xf32>
    %1636 = vector.broadcast %1633 : f32 to vector<4x16xf32>
    %1637 = arith.mulf %1636, %1635 : vector<4x16xf32>
    %1638 = arith.addf %1626, %1637 : vector<4x16xf32>
    %c227 = arith.constant 227 : index
    %1639 = memref.load %arg2[%c227] : memref<294xf32, #tpu.memory_space<smem>>
    %1640 = vector.extract_strided_slice %1620 {offsets = [0, 3, 0], sizes = [1, 4, 16], strides = [1, 1, 1]} : vector<2x10x16xf32> to vector<1x4x16xf32>
    %1641 = vector.shape_cast %1640 : vector<1x4x16xf32> to vector<4x16xf32>
    %1642 = vector.broadcast %1639 : f32 to vector<4x16xf32>
    %1643 = arith.mulf %1642, %1641 : vector<4x16xf32>
    %1644 = arith.addf %1632, %1643 : vector<4x16xf32>
    %c228 = arith.constant 228 : index
    %1645 = memref.load %arg2[%c228] : memref<294xf32, #tpu.memory_space<smem>>
    %1646 = vector.extract_strided_slice %1620 {offsets = [0, 4, 0], sizes = [1, 4, 16], strides = [1, 1, 1]} : vector<2x10x16xf32> to vector<1x4x16xf32>
    %1647 = vector.shape_cast %1646 : vector<1x4x16xf32> to vector<4x16xf32>
    %1648 = vector.broadcast %1645 : f32 to vector<4x16xf32>
    %1649 = arith.mulf %1648, %1647 : vector<4x16xf32>
    %1650 = arith.addf %1638, %1649 : vector<4x16xf32>
    %c229 = arith.constant 229 : index
    %1651 = memref.load %arg2[%c229] : memref<294xf32, #tpu.memory_space<smem>>
    %1652 = vector.extract_strided_slice %1620 {offsets = [0, 5, 0], sizes = [1, 4, 16], strides = [1, 1, 1]} : vector<2x10x16xf32> to vector<1x4x16xf32>
    %1653 = vector.shape_cast %1652 : vector<1x4x16xf32> to vector<4x16xf32>
    %1654 = vector.broadcast %1651 : f32 to vector<4x16xf32>
    %1655 = arith.mulf %1654, %1653 : vector<4x16xf32>
    %1656 = arith.addf %1644, %1655 : vector<4x16xf32>
    %c230 = arith.constant 230 : index
    %1657 = memref.load %arg2[%c230] : memref<294xf32, #tpu.memory_space<smem>>
    %1658 = vector.extract_strided_slice %1620 {offsets = [0, 6, 0], sizes = [1, 4, 16], strides = [1, 1, 1]} : vector<2x10x16xf32> to vector<1x4x16xf32>
    %1659 = vector.shape_cast %1658 : vector<1x4x16xf32> to vector<4x16xf32>
    %1660 = vector.broadcast %1657 : f32 to vector<4x16xf32>
    %1661 = arith.mulf %1660, %1659 : vector<4x16xf32>
    %1662 = arith.addf %1650, %1661 : vector<4x16xf32>
    %c273 = arith.constant 273 : index
    %1663 = memref.load %arg2[%c273] : memref<294xf32, #tpu.memory_space<smem>>
    %1664 = vector.extract_strided_slice %1620 {offsets = [1, 0, 0], sizes = [1, 4, 16], strides = [1, 1, 1]} : vector<2x10x16xf32> to vector<1x4x16xf32>
    %1665 = vector.shape_cast %1664 : vector<1x4x16xf32> to vector<4x16xf32>
    %1666 = vector.broadcast %1663 : f32 to vector<4x16xf32>
    %1667 = arith.mulf %1666, %1665 : vector<4x16xf32>
    %1668 = arith.addf %1619, %1667 : vector<4x16xf32>
    %c274 = arith.constant 274 : index
    %1669 = memref.load %arg2[%c274] : memref<294xf32, #tpu.memory_space<smem>>
    %1670 = vector.extract_strided_slice %1620 {offsets = [1, 1, 0], sizes = [1, 4, 16], strides = [1, 1, 1]} : vector<2x10x16xf32> to vector<1x4x16xf32>
    %1671 = vector.shape_cast %1670 : vector<1x4x16xf32> to vector<4x16xf32>
    %1672 = vector.broadcast %1669 : f32 to vector<4x16xf32>
    %1673 = arith.mulf %1672, %1671 : vector<4x16xf32>
    %1674 = arith.addf %1613, %1673 : vector<4x16xf32>
    %c275 = arith.constant 275 : index
    %1675 = memref.load %arg2[%c275] : memref<294xf32, #tpu.memory_space<smem>>
    %1676 = vector.extract_strided_slice %1620 {offsets = [1, 2, 0], sizes = [1, 4, 16], strides = [1, 1, 1]} : vector<2x10x16xf32> to vector<1x4x16xf32>
    %1677 = vector.shape_cast %1676 : vector<1x4x16xf32> to vector<4x16xf32>
    %1678 = vector.broadcast %1675 : f32 to vector<4x16xf32>
    %1679 = arith.mulf %1678, %1677 : vector<4x16xf32>
    %1680 = arith.addf %1668, %1679 : vector<4x16xf32>
    %c276 = arith.constant 276 : index
    %1681 = memref.load %arg2[%c276] : memref<294xf32, #tpu.memory_space<smem>>
    %1682 = vector.extract_strided_slice %1620 {offsets = [1, 3, 0], sizes = [1, 4, 16], strides = [1, 1, 1]} : vector<2x10x16xf32> to vector<1x4x16xf32>
    %1683 = vector.shape_cast %1682 : vector<1x4x16xf32> to vector<4x16xf32>
    %1684 = vector.broadcast %1681 : f32 to vector<4x16xf32>
    %1685 = arith.mulf %1684, %1683 : vector<4x16xf32>
    %1686 = arith.addf %1674, %1685 : vector<4x16xf32>
    %c277 = arith.constant 277 : index
    %1687 = memref.load %arg2[%c277] : memref<294xf32, #tpu.memory_space<smem>>
    %1688 = vector.extract_strided_slice %1620 {offsets = [1, 4, 0], sizes = [1, 4, 16], strides = [1, 1, 1]} : vector<2x10x16xf32> to vector<1x4x16xf32>
    %1689 = vector.shape_cast %1688 : vector<1x4x16xf32> to vector<4x16xf32>
    %1690 = vector.broadcast %1687 : f32 to vector<4x16xf32>
    %1691 = arith.mulf %1690, %1689 : vector<4x16xf32>
    %1692 = arith.addf %1680, %1691 : vector<4x16xf32>
    %c278 = arith.constant 278 : index
    %1693 = memref.load %arg2[%c278] : memref<294xf32, #tpu.memory_space<smem>>
    %1694 = vector.extract_strided_slice %1620 {offsets = [1, 5, 0], sizes = [1, 4, 16], strides = [1, 1, 1]} : vector<2x10x16xf32> to vector<1x4x16xf32>
    %1695 = vector.shape_cast %1694 : vector<1x4x16xf32> to vector<4x16xf32>
    %1696 = vector.broadcast %1693 : f32 to vector<4x16xf32>
    %1697 = arith.mulf %1696, %1695 : vector<4x16xf32>
    %1698 = arith.addf %1686, %1697 : vector<4x16xf32>
    %c279 = arith.constant 279 : index
    %1699 = memref.load %arg2[%c279] : memref<294xf32, #tpu.memory_space<smem>>
    %1700 = vector.extract_strided_slice %1620 {offsets = [1, 6, 0], sizes = [1, 4, 16], strides = [1, 1, 1]} : vector<2x10x16xf32> to vector<1x4x16xf32>
    %1701 = vector.shape_cast %1700 : vector<1x4x16xf32> to vector<4x16xf32>
    %1702 = vector.broadcast %1699 : f32 to vector<4x16xf32>
    %1703 = arith.mulf %1702, %1701 : vector<4x16xf32>
    %1704 = arith.addf %1692, %1703 : vector<4x16xf32>
    %c0_151 = arith.constant 0 : index
    %c0_152 = arith.constant 0 : index
    %c5_153 = arith.constant 5 : index
    %1705 = vector.load %arg7[%c0_151, %c0_152, %c5_153] : memref<2x10x22xf32, #tpu.memory_space<vmem>>, vector<2x10x16xf32>
    %c231 = arith.constant 231 : index
    %1706 = memref.load %arg2[%c231] : memref<294xf32, #tpu.memory_space<smem>>
    %1707 = vector.extract_strided_slice %1705 {offsets = [0, 0, 0], sizes = [1, 4, 16], strides = [1, 1, 1]} : vector<2x10x16xf32> to vector<1x4x16xf32>
    %1708 = vector.shape_cast %1707 : vector<1x4x16xf32> to vector<4x16xf32>
    %1709 = vector.broadcast %1706 : f32 to vector<4x16xf32>
    %1710 = arith.mulf %1709, %1708 : vector<4x16xf32>
    %1711 = arith.addf %1662, %1710 : vector<4x16xf32>
    %c232 = arith.constant 232 : index
    %1712 = memref.load %arg2[%c232] : memref<294xf32, #tpu.memory_space<smem>>
    %1713 = vector.extract_strided_slice %1705 {offsets = [0, 1, 0], sizes = [1, 4, 16], strides = [1, 1, 1]} : vector<2x10x16xf32> to vector<1x4x16xf32>
    %1714 = vector.shape_cast %1713 : vector<1x4x16xf32> to vector<4x16xf32>
    %1715 = vector.broadcast %1712 : f32 to vector<4x16xf32>
    %1716 = arith.mulf %1715, %1714 : vector<4x16xf32>
    %1717 = arith.addf %1656, %1716 : vector<4x16xf32>
    %c233 = arith.constant 233 : index
    %1718 = memref.load %arg2[%c233] : memref<294xf32, #tpu.memory_space<smem>>
    %1719 = vector.extract_strided_slice %1705 {offsets = [0, 2, 0], sizes = [1, 4, 16], strides = [1, 1, 1]} : vector<2x10x16xf32> to vector<1x4x16xf32>
    %1720 = vector.shape_cast %1719 : vector<1x4x16xf32> to vector<4x16xf32>
    %1721 = vector.broadcast %1718 : f32 to vector<4x16xf32>
    %1722 = arith.mulf %1721, %1720 : vector<4x16xf32>
    %1723 = arith.addf %1711, %1722 : vector<4x16xf32>
    %c234 = arith.constant 234 : index
    %1724 = memref.load %arg2[%c234] : memref<294xf32, #tpu.memory_space<smem>>
    %1725 = vector.extract_strided_slice %1705 {offsets = [0, 3, 0], sizes = [1, 4, 16], strides = [1, 1, 1]} : vector<2x10x16xf32> to vector<1x4x16xf32>
    %1726 = vector.shape_cast %1725 : vector<1x4x16xf32> to vector<4x16xf32>
    %1727 = vector.broadcast %1724 : f32 to vector<4x16xf32>
    %1728 = arith.mulf %1727, %1726 : vector<4x16xf32>
    %1729 = arith.addf %1717, %1728 : vector<4x16xf32>
    %c235 = arith.constant 235 : index
    %1730 = memref.load %arg2[%c235] : memref<294xf32, #tpu.memory_space<smem>>
    %1731 = vector.extract_strided_slice %1705 {offsets = [0, 4, 0], sizes = [1, 4, 16], strides = [1, 1, 1]} : vector<2x10x16xf32> to vector<1x4x16xf32>
    %1732 = vector.shape_cast %1731 : vector<1x4x16xf32> to vector<4x16xf32>
    %1733 = vector.broadcast %1730 : f32 to vector<4x16xf32>
    %1734 = arith.mulf %1733, %1732 : vector<4x16xf32>
    %1735 = arith.addf %1723, %1734 : vector<4x16xf32>
    %c236 = arith.constant 236 : index
    %1736 = memref.load %arg2[%c236] : memref<294xf32, #tpu.memory_space<smem>>
    %1737 = vector.extract_strided_slice %1705 {offsets = [0, 5, 0], sizes = [1, 4, 16], strides = [1, 1, 1]} : vector<2x10x16xf32> to vector<1x4x16xf32>
    %1738 = vector.shape_cast %1737 : vector<1x4x16xf32> to vector<4x16xf32>
    %1739 = vector.broadcast %1736 : f32 to vector<4x16xf32>
    %1740 = arith.mulf %1739, %1738 : vector<4x16xf32>
    %1741 = arith.addf %1729, %1740 : vector<4x16xf32>
    %c237 = arith.constant 237 : index
    %1742 = memref.load %arg2[%c237] : memref<294xf32, #tpu.memory_space<smem>>
    %1743 = vector.extract_strided_slice %1705 {offsets = [0, 6, 0], sizes = [1, 4, 16], strides = [1, 1, 1]} : vector<2x10x16xf32> to vector<1x4x16xf32>
    %1744 = vector.shape_cast %1743 : vector<1x4x16xf32> to vector<4x16xf32>
    %1745 = vector.broadcast %1742 : f32 to vector<4x16xf32>
    %1746 = arith.mulf %1745, %1744 : vector<4x16xf32>
    %1747 = arith.addf %1735, %1746 : vector<4x16xf32>
    %c280 = arith.constant 280 : index
    %1748 = memref.load %arg2[%c280] : memref<294xf32, #tpu.memory_space<smem>>
    %1749 = vector.extract_strided_slice %1705 {offsets = [1, 0, 0], sizes = [1, 4, 16], strides = [1, 1, 1]} : vector<2x10x16xf32> to vector<1x4x16xf32>
    %1750 = vector.shape_cast %1749 : vector<1x4x16xf32> to vector<4x16xf32>
    %1751 = vector.broadcast %1748 : f32 to vector<4x16xf32>
    %1752 = arith.mulf %1751, %1750 : vector<4x16xf32>
    %1753 = arith.addf %1704, %1752 : vector<4x16xf32>
    %c281 = arith.constant 281 : index
    %1754 = memref.load %arg2[%c281] : memref<294xf32, #tpu.memory_space<smem>>
    %1755 = vector.extract_strided_slice %1705 {offsets = [1, 1, 0], sizes = [1, 4, 16], strides = [1, 1, 1]} : vector<2x10x16xf32> to vector<1x4x16xf32>
    %1756 = vector.shape_cast %1755 : vector<1x4x16xf32> to vector<4x16xf32>
    %1757 = vector.broadcast %1754 : f32 to vector<4x16xf32>
    %1758 = arith.mulf %1757, %1756 : vector<4x16xf32>
    %1759 = arith.addf %1698, %1758 : vector<4x16xf32>
    %c282 = arith.constant 282 : index
    %1760 = memref.load %arg2[%c282] : memref<294xf32, #tpu.memory_space<smem>>
    %1761 = vector.extract_strided_slice %1705 {offsets = [1, 2, 0], sizes = [1, 4, 16], strides = [1, 1, 1]} : vector<2x10x16xf32> to vector<1x4x16xf32>
    %1762 = vector.shape_cast %1761 : vector<1x4x16xf32> to vector<4x16xf32>
    %1763 = vector.broadcast %1760 : f32 to vector<4x16xf32>
    %1764 = arith.mulf %1763, %1762 : vector<4x16xf32>
    %1765 = arith.addf %1753, %1764 : vector<4x16xf32>
    %c283 = arith.constant 283 : index
    %1766 = memref.load %arg2[%c283] : memref<294xf32, #tpu.memory_space<smem>>
    %1767 = vector.extract_strided_slice %1705 {offsets = [1, 3, 0], sizes = [1, 4, 16], strides = [1, 1, 1]} : vector<2x10x16xf32> to vector<1x4x16xf32>
    %1768 = vector.shape_cast %1767 : vector<1x4x16xf32> to vector<4x16xf32>
    %1769 = vector.broadcast %1766 : f32 to vector<4x16xf32>
    %1770 = arith.mulf %1769, %1768 : vector<4x16xf32>
    %1771 = arith.addf %1759, %1770 : vector<4x16xf32>
    %c284 = arith.constant 284 : index
    %1772 = memref.load %arg2[%c284] : memref<294xf32, #tpu.memory_space<smem>>
    %1773 = vector.extract_strided_slice %1705 {offsets = [1, 4, 0], sizes = [1, 4, 16], strides = [1, 1, 1]} : vector<2x10x16xf32> to vector<1x4x16xf32>
    %1774 = vector.shape_cast %1773 : vector<1x4x16xf32> to vector<4x16xf32>
    %1775 = vector.broadcast %1772 : f32 to vector<4x16xf32>
    %1776 = arith.mulf %1775, %1774 : vector<4x16xf32>
    %1777 = arith.addf %1765, %1776 : vector<4x16xf32>
    %c285 = arith.constant 285 : index
    %1778 = memref.load %arg2[%c285] : memref<294xf32, #tpu.memory_space<smem>>
    %1779 = vector.extract_strided_slice %1705 {offsets = [1, 5, 0], sizes = [1, 4, 16], strides = [1, 1, 1]} : vector<2x10x16xf32> to vector<1x4x16xf32>
    %1780 = vector.shape_cast %1779 : vector<1x4x16xf32> to vector<4x16xf32>
    %1781 = vector.broadcast %1778 : f32 to vector<4x16xf32>
    %1782 = arith.mulf %1781, %1780 : vector<4x16xf32>
    %1783 = arith.addf %1771, %1782 : vector<4x16xf32>
    %c286 = arith.constant 286 : index
    %1784 = memref.load %arg2[%c286] : memref<294xf32, #tpu.memory_space<smem>>
    %1785 = vector.extract_strided_slice %1705 {offsets = [1, 6, 0], sizes = [1, 4, 16], strides = [1, 1, 1]} : vector<2x10x16xf32> to vector<1x4x16xf32>
    %1786 = vector.shape_cast %1785 : vector<1x4x16xf32> to vector<4x16xf32>
    %1787 = vector.broadcast %1784 : f32 to vector<4x16xf32>
    %1788 = arith.mulf %1787, %1786 : vector<4x16xf32>
    %1789 = arith.addf %1777, %1788 : vector<4x16xf32>
    %c0_154 = arith.constant 0 : index
    %c0_155 = arith.constant 0 : index
    %c6_156 = arith.constant 6 : index
    %1790 = vector.load %arg7[%c0_154, %c0_155, %c6_156] : memref<2x10x22xf32, #tpu.memory_space<vmem>>, vector<2x10x16xf32>
    %c238 = arith.constant 238 : index
    %1791 = memref.load %arg2[%c238] : memref<294xf32, #tpu.memory_space<smem>>
    %1792 = vector.extract_strided_slice %1790 {offsets = [0, 0, 0], sizes = [1, 4, 16], strides = [1, 1, 1]} : vector<2x10x16xf32> to vector<1x4x16xf32>
    %1793 = vector.shape_cast %1792 : vector<1x4x16xf32> to vector<4x16xf32>
    %1794 = vector.broadcast %1791 : f32 to vector<4x16xf32>
    %1795 = arith.mulf %1794, %1793 : vector<4x16xf32>
    %1796 = arith.addf %1747, %1795 : vector<4x16xf32>
    %c239 = arith.constant 239 : index
    %1797 = memref.load %arg2[%c239] : memref<294xf32, #tpu.memory_space<smem>>
    %1798 = vector.extract_strided_slice %1790 {offsets = [0, 1, 0], sizes = [1, 4, 16], strides = [1, 1, 1]} : vector<2x10x16xf32> to vector<1x4x16xf32>
    %1799 = vector.shape_cast %1798 : vector<1x4x16xf32> to vector<4x16xf32>
    %1800 = vector.broadcast %1797 : f32 to vector<4x16xf32>
    %1801 = arith.mulf %1800, %1799 : vector<4x16xf32>
    %1802 = arith.addf %1741, %1801 : vector<4x16xf32>
    %c240 = arith.constant 240 : index
    %1803 = memref.load %arg2[%c240] : memref<294xf32, #tpu.memory_space<smem>>
    %1804 = vector.extract_strided_slice %1790 {offsets = [0, 2, 0], sizes = [1, 4, 16], strides = [1, 1, 1]} : vector<2x10x16xf32> to vector<1x4x16xf32>
    %1805 = vector.shape_cast %1804 : vector<1x4x16xf32> to vector<4x16xf32>
    %1806 = vector.broadcast %1803 : f32 to vector<4x16xf32>
    %1807 = arith.mulf %1806, %1805 : vector<4x16xf32>
    %1808 = arith.addf %1796, %1807 : vector<4x16xf32>
    %c241 = arith.constant 241 : index
    %1809 = memref.load %arg2[%c241] : memref<294xf32, #tpu.memory_space<smem>>
    %1810 = vector.extract_strided_slice %1790 {offsets = [0, 3, 0], sizes = [1, 4, 16], strides = [1, 1, 1]} : vector<2x10x16xf32> to vector<1x4x16xf32>
    %1811 = vector.shape_cast %1810 : vector<1x4x16xf32> to vector<4x16xf32>
    %1812 = vector.broadcast %1809 : f32 to vector<4x16xf32>
    %1813 = arith.mulf %1812, %1811 : vector<4x16xf32>
    %1814 = arith.addf %1802, %1813 : vector<4x16xf32>
    %c242 = arith.constant 242 : index
    %1815 = memref.load %arg2[%c242] : memref<294xf32, #tpu.memory_space<smem>>
    %1816 = vector.extract_strided_slice %1790 {offsets = [0, 4, 0], sizes = [1, 4, 16], strides = [1, 1, 1]} : vector<2x10x16xf32> to vector<1x4x16xf32>
    %1817 = vector.shape_cast %1816 : vector<1x4x16xf32> to vector<4x16xf32>
    %1818 = vector.broadcast %1815 : f32 to vector<4x16xf32>
    %1819 = arith.mulf %1818, %1817 : vector<4x16xf32>
    %1820 = arith.addf %1808, %1819 : vector<4x16xf32>
    %c243 = arith.constant 243 : index
    %1821 = memref.load %arg2[%c243] : memref<294xf32, #tpu.memory_space<smem>>
    %1822 = vector.extract_strided_slice %1790 {offsets = [0, 5, 0], sizes = [1, 4, 16], strides = [1, 1, 1]} : vector<2x10x16xf32> to vector<1x4x16xf32>
    %1823 = vector.shape_cast %1822 : vector<1x4x16xf32> to vector<4x16xf32>
    %1824 = vector.broadcast %1821 : f32 to vector<4x16xf32>
    %1825 = arith.mulf %1824, %1823 : vector<4x16xf32>
    %1826 = arith.addf %1814, %1825 : vector<4x16xf32>
    %c244 = arith.constant 244 : index
    %1827 = memref.load %arg2[%c244] : memref<294xf32, #tpu.memory_space<smem>>
    %1828 = vector.extract_strided_slice %1790 {offsets = [0, 6, 0], sizes = [1, 4, 16], strides = [1, 1, 1]} : vector<2x10x16xf32> to vector<1x4x16xf32>
    %1829 = vector.shape_cast %1828 : vector<1x4x16xf32> to vector<4x16xf32>
    %1830 = vector.broadcast %1827 : f32 to vector<4x16xf32>
    %1831 = arith.mulf %1830, %1829 : vector<4x16xf32>
    %1832 = arith.addf %1820, %1831 : vector<4x16xf32>
    %c287 = arith.constant 287 : index
    %1833 = memref.load %arg2[%c287] : memref<294xf32, #tpu.memory_space<smem>>
    %1834 = vector.extract_strided_slice %1790 {offsets = [1, 0, 0], sizes = [1, 4, 16], strides = [1, 1, 1]} : vector<2x10x16xf32> to vector<1x4x16xf32>
    %1835 = vector.shape_cast %1834 : vector<1x4x16xf32> to vector<4x16xf32>
    %1836 = vector.broadcast %1833 : f32 to vector<4x16xf32>
    %1837 = arith.mulf %1836, %1835 : vector<4x16xf32>
    %1838 = arith.addf %1789, %1837 : vector<4x16xf32>
    %c288 = arith.constant 288 : index
    %1839 = memref.load %arg2[%c288] : memref<294xf32, #tpu.memory_space<smem>>
    %1840 = vector.extract_strided_slice %1790 {offsets = [1, 1, 0], sizes = [1, 4, 16], strides = [1, 1, 1]} : vector<2x10x16xf32> to vector<1x4x16xf32>
    %1841 = vector.shape_cast %1840 : vector<1x4x16xf32> to vector<4x16xf32>
    %1842 = vector.broadcast %1839 : f32 to vector<4x16xf32>
    %1843 = arith.mulf %1842, %1841 : vector<4x16xf32>
    %1844 = arith.addf %1783, %1843 : vector<4x16xf32>
    %c289 = arith.constant 289 : index
    %1845 = memref.load %arg2[%c289] : memref<294xf32, #tpu.memory_space<smem>>
    %1846 = vector.extract_strided_slice %1790 {offsets = [1, 2, 0], sizes = [1, 4, 16], strides = [1, 1, 1]} : vector<2x10x16xf32> to vector<1x4x16xf32>
    %1847 = vector.shape_cast %1846 : vector<1x4x16xf32> to vector<4x16xf32>
    %1848 = vector.broadcast %1845 : f32 to vector<4x16xf32>
    %1849 = arith.mulf %1848, %1847 : vector<4x16xf32>
    %1850 = arith.addf %1838, %1849 : vector<4x16xf32>
    %c290 = arith.constant 290 : index
    %1851 = memref.load %arg2[%c290] : memref<294xf32, #tpu.memory_space<smem>>
    %1852 = vector.extract_strided_slice %1790 {offsets = [1, 3, 0], sizes = [1, 4, 16], strides = [1, 1, 1]} : vector<2x10x16xf32> to vector<1x4x16xf32>
    %1853 = vector.shape_cast %1852 : vector<1x4x16xf32> to vector<4x16xf32>
    %1854 = vector.broadcast %1851 : f32 to vector<4x16xf32>
    %1855 = arith.mulf %1854, %1853 : vector<4x16xf32>
    %1856 = arith.addf %1844, %1855 : vector<4x16xf32>
    %c291 = arith.constant 291 : index
    %1857 = memref.load %arg2[%c291] : memref<294xf32, #tpu.memory_space<smem>>
    %1858 = vector.extract_strided_slice %1790 {offsets = [1, 4, 0], sizes = [1, 4, 16], strides = [1, 1, 1]} : vector<2x10x16xf32> to vector<1x4x16xf32>
    %1859 = vector.shape_cast %1858 : vector<1x4x16xf32> to vector<4x16xf32>
    %1860 = vector.broadcast %1857 : f32 to vector<4x16xf32>
    %1861 = arith.mulf %1860, %1859 : vector<4x16xf32>
    %1862 = arith.addf %1850, %1861 : vector<4x16xf32>
    %c292 = arith.constant 292 : index
    %1863 = memref.load %arg2[%c292] : memref<294xf32, #tpu.memory_space<smem>>
    %1864 = vector.extract_strided_slice %1790 {offsets = [1, 5, 0], sizes = [1, 4, 16], strides = [1, 1, 1]} : vector<2x10x16xf32> to vector<1x4x16xf32>
    %1865 = vector.shape_cast %1864 : vector<1x4x16xf32> to vector<4x16xf32>
    %1866 = vector.broadcast %1863 : f32 to vector<4x16xf32>
    %1867 = arith.mulf %1866, %1865 : vector<4x16xf32>
    %1868 = arith.addf %1856, %1867 : vector<4x16xf32>
    %c293 = arith.constant 293 : index
    %1869 = memref.load %arg2[%c293] : memref<294xf32, #tpu.memory_space<smem>>
    %1870 = vector.extract_strided_slice %1790 {offsets = [1, 6, 0], sizes = [1, 4, 16], strides = [1, 1, 1]} : vector<2x10x16xf32> to vector<1x4x16xf32>
    %1871 = vector.shape_cast %1870 : vector<1x4x16xf32> to vector<4x16xf32>
    %1872 = vector.broadcast %1869 : f32 to vector<4x16xf32>
    %1873 = arith.mulf %1872, %1871 : vector<4x16xf32>
    %1874 = arith.addf %1862, %1873 : vector<4x16xf32>
    %1875 = arith.addf %1832, %1826 : vector<4x16xf32>
    %1876 = arith.addf %1874, %1868 : vector<4x16xf32>
    %1877 = arith.addf %1875, %1876 : vector<4x16xf32>
    %c2_157 = arith.constant 2 : index
    %1878 = memref.load %arg3[%c2_157] : memref<3xf32, #tpu.memory_space<smem>>
    %1879 = vector.broadcast %1878 : f32 to vector<4x16xf32>
    %1880 = arith.addf %1877, %1879 : vector<4x16xf32>
    %1881 = arith.negf %1880 : vector<4x16xf32>
    %1882 = math.exp %1881 : vector<4x16xf32>
    %cst_158 = arith.constant 1.000000e+00 : f32
    %1883 = vector.broadcast %cst_158 : f32 to vector<4x16xf32>
    %1884 = arith.addf %1883, %1882 : vector<4x16xf32>
    %1885 = arith.divf %1883, %1884 : vector<4x16xf32>
    %1886 = vector.shape_cast %665 : vector<16x16xf32> to vector<1x16x16xf32>
    %1887 = vector.shape_cast %1275 : vector<4x16xf32> to vector<4x1x16xf32>
    %1888 = vector.broadcast %1886 : vector<1x16x16xf32> to vector<4x16x16xf32>
    %1889 = vector.broadcast %1887 : vector<4x1x16xf32> to vector<4x16x16xf32>
    %1890 = arith.addf %1888, %1889 : vector<4x16x16xf32>
    %1891 = vector.shape_cast %1885 : vector<4x16xf32> to vector<4x16x1xf32>
    %1892 = vector.broadcast %1891 : vector<4x16x1xf32> to vector<4x16x16xf32>
    %1893 = arith.addf %1890, %1892 : vector<4x16x16xf32>
    %c0_159 = arith.constant 0 : index
    %c0_160 = arith.constant 0 : index
    %c0_161 = arith.constant 0 : index
    %c0_162 = arith.constant 0 : index
    %1894 = vector.load %arg1[%c0_159, %c0_160, %c0_161, %c0_162] : memref<1x4x16x16xf32, #tpu.memory_space<vmem>>, vector<1x4x16x16xf32>
    %1895 = vector.shape_cast %1894 : vector<1x4x16x16xf32> to vector<4x16x16xf32>
    %cst_163 = arith.constant 0.333333343 : f32
    %1896 = vector.broadcast %cst_163 : f32 to vector<4x16x16xf32>
    %1897 = arith.mulf %1896, %1895 : vector<4x16x16xf32>
    %1898 = arith.mulf %1897, %1893 : vector<4x16x16xf32>
    %c0_164 = arith.constant 0 : index
    %c0_165 = arith.constant 0 : index
    %c0_166 = arith.constant 0 : index
    %c0_167 = arith.constant 0 : index
    %1899 = vector.load %arg4[%c0_164, %c0_165, %c0_166, %c0_167] : memref<1x4x16x16xf32, #tpu.memory_space<vmem>>, vector<1x4x16x16xf32>
    %1900 = vector.shape_cast %1899 : vector<1x4x16x16xf32> to vector<4x16x16xf32>
    %1901 = vector.shape_cast %1898 : vector<4x16x16xf32> to vector<1x4x16x16xf32>
    tpu.vector_store %arg4[%c0_164, %c0_165, %c0_166, %c0_167], %1901 {strides = array<i32>} : memref<1x4x16x16xf32, #tpu.memory_space<vmem>>, vector<1x4x16x16xf32>,
    return
  }
  func.func @transform_0(%arg0: i32) -> (i32, i32, i32, i32) {
    %c0_i32 = arith.constant 0 : i32
    %c0_i32_0 = arith.constant 0 : i32
    %c0_i32_1 = arith.constant 0 : i32
    %c0_i32_2 = arith.constant 0 : i32
    return %arg0, %c0_i32, %c0_i32_0, %c0_i32_1 : i32, i32, i32, i32
  }
  func.func @transform_1(%arg0: i32) -> i32 {
    %c0_i32 = arith.constant 0 : i32
    %c0_i32_0 = arith.constant 0 : i32
    return %c0_i32 : i32
  }
  func.func @transform_2(%arg0: i32) -> i32 {
    %c0_i32 = arith.constant 0 : i32
    %c0_i32_0 = arith.constant 0 : i32
    return %c0_i32 : i32
  }
  func.func @transform_3(%arg0: i32) -> (i32, i32, i32, i32) {
    %c0_i32 = arith.constant 0 : i32
    %c0_i32_0 = arith.constant 0 : i32
    %c0_i32_1 = arith.constant 0 : i32
    %c0_i32_2 = arith.constant 0 : i32
    return %arg0, %c0_i32, %c0_i32_0, %c0_i32_1 : i32, i32, i32, i32
  }
}

</mosaic_0001>

<bundles_post_ra>
// kernel: triplet_attention.1
= control target key start
LH: loop header
LB: loop body
LE: loop exit
PB: predicated region body
PF: predicated region fallthrough
CT: control target
= control target key end

     0   :  { %s8157_s0 = inlined_call_operand.hbm [shape: f32[2,4,16,16], index: 0, kind: input, shape index: {}]   ;;  %s8158_s1 = inlined_call_operand.hbm [shape: f32[294], index: 1, kind: input, shape index: {}]   ;;  %s8159_s2 = inlined_call_operand.vmem [shape: f32[3], index: 2, kind: input, shape index: {}]   ;;  %s8160_s3 = inlined_call_operand.hbm [shape: f32[2,4,16,16], index: 3, kind: output, shape index: {}]  }
   0x1   :  { %8163 = sst [smem:[#allocation215_spill]] %s8158_s1 }
   0x2   :  { %8 = vsyncpa [#allocation6], 0 }
   0x3   :  { %10 = vsyncpa [#allocation6 + $0x1], 0 }
   0x4   :  { %11 = vsyncpa [#allocation8], 0 }
   0x5   :  { %12 = vsyncpa [#allocation9], 0 }
   0x6   :  { %13 = vsyncpa [#allocation7], 0 }
   0x7   :  { %15 = vsyncpa [#allocation7 + $0x1], 0  ;;  %s5330_s12 = smov 0   ;;  %s5332_s13 = smov 0  }
   0x8   :  { %s5334_s14 = smov 0   ;;  %s5336_s15 = smov 0  }
   0x9 LB: > { %s5351_s16 = sadd.s32 4294967295, %s5292_s15   ;;  %s4712_s17 = sadd.s32 4294967294, %s5292_s15   ;;  %s5292_s15 = sphi %s5336_s15, %s8576_s15   ;;  %s5288_s14 = sphi %s5334_s14, %s8575_s14   ;;  %s5284_s13 = sphi %s5332_s13, %s8574_s13   ;;  %s5280_s12 = sphi %s5330_s12, %s8573_s12  }
   0xa   : > { %s5355_s18 = sadd.s32 1, %s5292_s15   ;;  %s28_s19 = sadd.s32 1, %s5288_s14 }
   0xb   : > { %s25_s20 = ssub.s32 %s5292_s15, %s5355_s18  ;;  %p35_p0 = scmp.ne.s32.totalorder %s5288_s14, %s5284_s13 }
   0xc   : > { %p26_p1 = scmp.eq.s32.totalorder %s25_s20, 0  ;;  %p36_p2 = scmp.eq.s32.totalorder %s5292_s15, 0 }
   0xd   : > { %p41_p3 = scmp.ne.s32.totalorder %s5284_s13, %s5280_s12  ;;  %p42_p4 = scmp.eq.s32.totalorder %s5351_s16, 0 }
   0xe   : > { %s5367_s21 = scalar_select %p26_p1, %s5288_s14, %s28_s19  }
   0xf   : > { %p5369_p5 = por %p36_p2, %p35_p0  ;;  %p5375_p6 = por %p42_p4, %p41_p3 }
  0x10   : > { %p107_p7 = scmp.eq.s32.totalorder %s5351_s16, 1  ;;  %p113_p8 = scmp.eq.s32.totalorder %s4712_s17, 1 }
  0x11   : > { %p4713_p9 = scmp.ge.s32.totalorder %s5292_s15, 1  ;;  %p120_p10 = scmp.lt.s32.totalorder %s5292_s15, 3 }
  0x12   : > { %p5382_p11 = por %p107_p7, %p35_p0  ;;  %p5386_p12 = por %p113_p8, %p41_p3 }
  0x13   : > { %p5390_p13 = pnand %p4713_p9, %p120_p10  ;;  %s8169_s1 = sld [smem:[#allocation215_spill]] }
  0x14   : > { %p5060_p2 = scmp.lt.s32.totalorder %s5292_s15, 2  ;;  %s142_s5 = sshll.u32 %s8159_s2, 4  ;;  %s143_s5 = int_to_ptr.vmem [resolvable:$true] %s142_s5 }
  0x15   : > { %p5043_p1 = pneg %p5390_p13  ;;  %s5294_s7 = smov [#allocation10]  }
  0x16   : > { %p5408_p7 = pnand %p5060_p2, %p5369_p5  ;;  %s153_s8 = sand.u32 1, %s5288_s14  }
  0x17   : > { %p5044_p3 = pnand %p5043_p1, %p42_p4  ;;  %s5295_s9 = smov [#allocation11]  }
  0x18   : > { %s4717_s10 = sshll.u32 %s153_s8, 6  ;;  %s5029_s11 = sshll.u32 %s5292_s15, 6 }
  0x19   : > { %s132_s29 = sshll.u32 %s8169_s1, 4  ;;  %s162_s20 = scalar_lea.hbm %s8157_s0, %s5029_s11  ;;  %s133_s29 = int_to_ptr.hbm [resolvable:$true] %s132_s29 }
  0x1a   : > { %5046 = dma.hbm_to_smem (!%p5044_p3), %s133_s29, 48, %s5294_s7, [#allocation8]  }
  0x1b   : > { %5049 = dma.vmem_to_smem (!%p5044_p3), %s143_s5, 16, %s5295_s9, [#allocation9]  }
  0x1c   : > { %s157_s27 = scalar_lea.vmem [#allocation5], %s4717_s10  ;;  %s163_s22 = sshll.u32 %s162_s20, 4  ;;  %s164_s22 = int_to_ptr.hbm [resolvable:$true] %s163_s22 }
  0x1d   : > { %s165_s28 = sshll.u32 %s157_s27, 4  ;;  %s154_s30 = scalar_lea.sflag [#allocation6], %s153_s8  ;;  %s166_s28 = int_to_ptr.vmem [resolvable:$true] %s165_s28 }
  0x1e   : > { %s5188_s4 = sshra.s32 %s164_s22, 4  ;;  %p5192_p8 = pneg %p5408_p7  ;;  %s5189_s4 = int_to_ptr.hbm [resolvable:$true] %s5188_s4 }
  0x1f   : > { %s5190_s1 = scalar_lea.hbm %s5189_s4, 64  ;;  %s5195_s7 = scalar_lea.hbm %s8157_s0, 128 }
  0x20   : > { %p5191_p5 = scmp.ne.s32.totalorder %s5189_s4, %s5190_s1  ;;  %p5196_p1 = scmp.lt.s32.totalorder %s5189_s4, %s8157_s0 }
  0x21   : > { %p5197_p2 = scmp.lt.s32.totalorder %s5195_s7, %s5190_s1 }
  0x22   : > { %p5193_p9 = pnand %p5192_p8, %p5191_p5 }
  0x23   : > { %p5198_p3 = por %p5197_p2, %p5196_p1 }
  0x24   : > { %p5194_p10 = pneg %p5193_p9 }
  0x26   : > { %p5199_p0 = pnand %p5198_p3, %p5194_p10 }
  0x28   : > { %5202 = shalt.err (!%p5199_p0)
}
  0x29   : > { %s5296_s8 = smov 128   ;;  %s5297_s10 = smov 8  }
  0x2a   : > { %5053 = dma.hbm_to_vmem [thread:$0]  (!%p5408_p7), %s164_s22, 1024, %s166_s28, %s154_s30, %s5296_s8, %s5296_s8, %s5297_s10  }
  0x2b   : > { %177 = sbr.rel (%p5390_p13) target bundleno = 1483 (0x5cb), region = 32 }
  0x30   : > { %s5430_s17 = sand.u32 1, %s5284_s13  }
  0x31   : > { %s8162_s19 = sshll.u32 %s5430_s17, 6  ;;  %s180_s1 = scalar_lea.sflag [#allocation6], %s5430_s17 }
  0x32   : > { %s5436_s20 = scalar_lea.vmem [#allocation5], %s8162_s19 }
  0x33   : > { %5263 = dma.done.wait (%p5375_p6), %s180_s1, 1024  }
  0x34   : > { %5265 = vsyncadd (%p5375_p6), %s180_s1, 4294966272 }
  0x35   : > { %5267 = dma.done.wait (%p42_p4), [#allocation8], 48  }
  0x36   : > { %5269 = vsyncadd (%p42_p4), [#allocation8], 4294967248 }
  0x37   : > { %5271 = dma.done.wait (%p42_p4), [#allocation9], 16  }
  0x38   : > { %5273 = vsyncadd (%p42_p4), [#allocation9], 4294967280 }
  0x39   : > { %199 = sfence }
  0x3a   : > { %v218_v0 = vld [vmem:[%s5436_s20] sm:$0xff]  ;;  %v219_v1 = vld [vmem:[%s5436_s20 + $0x8] sm:$0xff]  ;;  %v220_v2 = vld [vmem:[%s5436_s20 + $0x10] sm:$0xff]  ;;  %vm241_vm0 = vcmask 130048   ;;  %s5298_s23 = smov 3   ;;  %vm343_vm1 = vcmask 1041409  }
  0x3b   : > { %v221_v3 = vld [vmem:[%s5436_s20 + $0x18] sm:$0xff]  ;;  %v222_v4 = vld [vmem:[%s5436_s20 + $0x20] sm:$0xff]  ;;  %v223_v5 = vld [vmem:[%s5436_s20 + $0x28] sm:$0xff]  ;;  %v5457_v6 = vsel %vm241_vm0, %v218_v0, -inf  ;;  %v5460_v7 = vsel %vm241_vm0, %v220_v2, -inf  ;;  %v5463_v8 = vsel %vm241_vm0, %v219_v1, -inf }
  0x3c   : > { %v224_v9 = vld [vmem:[%s5436_s20 + $0x30] sm:$0xff]  ;;  %v225_v10 = vld [vmem:[%s5436_s20 + $0x38] sm:$0xff]  ;;  %v5468_v11 = vsel %vm241_vm0, %v222_v4, -inf  ;;  %v5471_v12 = vsel %vm241_vm0, %v221_v3, -inf  ;;  %v5474_v13 = vsel %vm241_vm0, %v223_v5, -inf  ;;  %v5487_v18 = vsel %vm241_vm0, %v218_v0, 0.0 }
  0x3d   : > { %v245_v14 = vmax.f32 %v5457_v6, %v5468_v11  ;;  %v5479_v15 = vsel %vm241_vm0, %v224_v9, -inf  ;;  %v5482_v16 = vsel %vm241_vm0, %v225_v10, -inf  ;;  %v311_v19 = vmax.f32 %v5457_v6, %v5463_v8  ;;  %s4738_s26 = sld [smem:[#allocation10 + $0x1]]  ;;  %s5302_s28 = smov 127  }
  0x3e   : > { %v247_v17 = vmax.f32 %v5460_v7, %v5479_v15  ;;  %v5492_v20 = vsel %vm241_vm0, %v219_v1, 0.0  ;;  %v318_v21 = vmax.f32 %v5460_v7, %v5471_v12  ;;  %v325_v22 = vmax.f32 %v5468_v11, %v5474_v13  ;;  %s4739_s6 = sld [smem:[#allocation10 + $0x8]] }
  0x3f   : > { %v332_v23 = vmax.f32 %v5479_v15, %v5482_v16  ;;  %v5501_v25 = vsel %vm241_vm0, %v220_v2, 0.0  ;;  %v5504_v26 = vsel %vm241_vm0, %v221_v3, 0.0  ;;  %v312_v27 = vrot.slane %v311_v19, 4  ;;  %s4740_s27 = sld [smem:[#allocation10 + $0xf]] }
  0x40   : > { %v248_v24 = vmax.f32 %v245_v14, %v247_v17  ;;  %v319_v28 = vrot.slane %v318_v21, 4  ;;  %v326_v29 = vrot.slane %v325_v22, 4  ;;  %v354_v32 = vadd.f32 %v5492_v20, %v5487_v18  ;;  %s4741_s22 = sld [smem:[#allocation10 + $0x16]] }
  0x41   : > { %v333_v30 = vrot.slane %v332_v23, 4  ;;  %v313_v31 = vmax.f32 %v311_v19, %v312_v27  ;;  %v252_v33 = vmax.f32 %v5463_v8, %v5474_v13  ;;  %v254_v34 = vmax.f32 %v5471_v12, %v5482_v16  ;;  %s4742_s30 = sld [smem:[#allocation10 + $0x1d]] }
  0x42   : > { %258 = vrot.lane.b32.xlu0 %v248_v24, %s5298_s23  ;;  %v320_v35 = vmax.f32 %v318_v21, %v319_v28  ;;  %v327_v36 = vmax.f32 %v325_v22, %v326_v29  ;;  %v361_v37 = vadd.f32 %v5504_v26, %v5501_v25  ;;  %v355_v43 = vrot.slane %v354_v32, 4  ;;  %s4743_s4 = sld [smem:[#allocation10 + $0x24]] }
  0x43   : > { %v334_v38 = vmax.f32 %v332_v23, %v333_v30  ;;  %v314_v39 = vrot.slane %v313_v31, 2  ;;  %v255_v44 = vmax.f32 %v252_v33, %v254_v34  ;;  %vm345_vm2 = vcmask 1042434   ;;  %s4744_s29 = sld [smem:[#allocation10 + $0x2b]] }
  0x44   : > { %v321_v40 = vrot.slane %v320_v35, 2  ;;  %v328_v41 = vrot.slane %v327_v36, 2  ;;  %v362_v46 = vrot.slane %v361_v37, 4  ;;  %v5516_v51 = vsel %vm241_vm0, %v222_v4, 0.0  ;;  %s5643_s5 = sld [smem:[#allocation10 + $0x32]] }
  0x45   : > { %v335_v42 = vrot.slane %v334_v38, 2  ;;  %v315_v45 = vmax.f32 %v313_v31, %v314_v39  ;;  %v5519_v55 = vsel %vm241_vm0, %v224_v9, 0.0  ;;  %v356_v56 = vadd.f32 %v355_v43, %v354_v32  ;;  %s4746_s7 = sld [smem:[#allocation10 + $0x39]] }
  0x46   : > { %v322_v47 = vmax.f32 %v320_v35, %v321_v40  ;;  %v329_v48 = vmax.f32 %v327_v36, %v328_v41  ;;  %v5523_v58 = vsel %vm241_vm0, %v223_v5, 0.0  ;;  %v5526_v59 = vsel %vm241_vm0, %v225_v10, 0.0  ;;  %s4747_s9 = sld [smem:[#allocation10 + $0x40]] }
  0x47   : > { %v336_v49 = vmax.f32 %v334_v38, %v335_v42  ;;  %v316_v50 = vrot.slane %v315_v45, 1  ;;  %v363_v60 = vadd.f32 %v362_v46, %v361_v37  ;;  %vm347_vm3 = vcmask 1043459   ;;  %s4748_s11 = sld [smem:[#allocation10 + $0x47]] }
  0x48   : > { %v323_v52 = vrot.slane %v322_v47, 1  ;;  %v330_v53 = vrot.slane %v329_v48, 1  ;;  %v368_v0 = vadd.f32 %v5523_v58, %v5516_v51  ;;  %v375_v1 = vadd.f32 %v5526_v59, %v5519_v55  ;;  %s4749_s8 = sld [smem:[#allocation10 + $0x4e]] }
  0x49   : > { %v337_v54 = vrot.slane %v336_v49, 1  ;;  %v317_v57 = vmax.f32 %v315_v45, %v316_v50  ;;  %v5299_v3 = vmov 4.0   ;;  %v357_v10 = vrot.slane %v356_v56, 2  ;;  %s4750_s10 = sld [smem:[#allocation10 + $0x55]] }
  0x4a   : > { %260 = vrot.lane.b32.xlu0 %v255_v44, %s5298_s23  ;;  %v324_v61 = vmax.f32 %v322_v47, %v323_v52  ;;  %v331_v62 = vmax.f32 %v329_v48, %v330_v53  ;;  %5118 = vrcp.f32 %v5299_v3  ;;  %v369_v5 = vrot.slane %v368_v0, 4  ;;  %s4751_s1 = sld [smem:[#allocation10 + $0x5c]] }
  0x4b   : > { %v338_v63 = vmax.f32 %v336_v49, %v337_v54  ;;  %v376_v9 = vrot.slane %v375_v1, 4  ;;  %v364_v14 = vrot.slane %v363_v60, 2  ;;  %v5300_v22 = vmov 16.0   ;;  %s6943_s19 = sld [smem:[#allocation10 + $0xb6]] }
  0x4c   : > { %v344_v2 = vsel %vm343_vm1, %v324_v61, %v317_v57  ;;  %v370_v19 = vadd.f32 %v369_v5, %v368_v0  ;;  %5120 = vrcp.f32 %v5300_v22  ;;  %v269_v23 = vadd.f32 %v5501_v25, %v5487_v18 }
  0x4d   : > { %v346_v4 = vsel %vm345_vm2, %v331_v62, %v344_v2  ;;  %v377_v21 = vadd.f32 %v376_v9, %v375_v1  ;;  %v358_v29 = vadd.f32 %v357_v10, %v356_v56  ;;  %v365_v30 = vadd.f32 %v364_v14, %v363_v60 }
  0x4e   : > { %v348_v17 = vsel %vm347_vm3, %v338_v63, %v346_v4  ;;  %v371_v24 = vrot.slane %v370_v19, 2  ;;  %v271_v34 = vadd.f32 %v5516_v51, %v269_v23  ;;  %v276_v37 = vadd.f32 %v5504_v26, %v5492_v20 }
  0x4f   : > { %349 = vrot.lane.b32.xlu2 %v348_v17, %s5298_s23  ;;  %v378_v27 = vrot.slane %v377_v21, 2  ;;  %v359_v38 = vrot.slane %v358_v29, 1  ;;  %v366_v39 = vrot.slane %v365_v30, 1  ;;  %vm226_vm6 = vcmask 174080  }
  0x50   : > { %v5119_v28 = vpop.eup %5118  ;;  %v372_v32 = vadd.f32 %v371_v24, %v370_v19  ;;  %v273_v44 = vadd.f32 %v5519_v55, %v271_v34  ;;  %v278_v47 = vadd.f32 %v5523_v58, %v276_v37  ;;  %vm231_vm7 = vcmask 23552  }
  0x51   : > { %v282_v31 = vmul.f32 4.0, %v5119_v28  ;;  %v379_v33 = vadd.f32 %v378_v27, %v377_v21  ;;  %vm286_vm4 = vweird.f32 %v5119_v28  ;;  %v360_v48 = vadd.f32 %v359_v38, %v358_v29 }
  0x52   : > { %v5121_v35 = vpop.eup %5120  ;;  %v373_v42 = vrot.slane %v372_v32, 1  ;;  %v367_v49 = vadd.f32 %v366_v39, %v365_v30  ;;  %v280_v60 = vadd.f32 %v5526_v59, %v278_v47  ;;  %vm236_vm8 = vcmask 179352  }
  0x53   : > { %v283_v36 = vsub.f32 1.0, %v282_v31  ;;  %v383_v40 = vmul.f32 16.0, %v5121_v35  ;;  %v380_v43 = vrot.slane %v379_v33, 1  ;;  %vm387_vm5 = vweird.f32 %v5121_v35 }
  0x54   : > { %v374_v53 = vadd.f32 %v373_v42, %v372_v32  ;;  %v5301_v9 = vmov 0.0   ;;  %vm305_vm9 = vcmask 19456   ;;  %vm308_vm10 = vcmask 175256  }
  0x55   : > { %v284_v41 = vmul.f32 %v5119_v28, %v283_v36  ;;  %v384_v45 = vsub.f32 1.0, %v383_v40  ;;  %v381_v54 = vadd.f32 %v380_v43, %v379_v33  ;;  %227 = vst.msk [vmem:[#allocation2] sm:$0x7] %vm226_vm6, %v5301_v9  ;;  %vm264_vm11 = vcmask 154648  }
  0x56   : > { %232 = vst.msk [vmem:[#allocation2 + $0x3] sm:$0xff] %vm231_vm7, %v5301_v9  ;;  %vm352_vm12 = vcmask 150552   ;;  %vm537_vm13 = vcmask 1045504   ;;  %v780_v17 = vstv %s4741_s22  ;;  %v805_v31 = vstv %s4742_s30  ;;  %s5303_s22 = smov 126   ;;  %s4756_s30 = sld [smem:[#allocation10 + $0x1e]] }
  0x57   : > { %v285_v46 = vadd.f32 %v5119_v28, %v284_v41  ;;  %v385_v50 = vmul.f32 %v5121_v35, %v384_v45  ;;  %237 = vst.msk [vmem:[#allocation2 + $0x3] sm:$0xff] %vm236_vm8, %v5301_v9  ;;  %vm574_vm14 = vcmask 1043456   ;;  %v826_v42 = vstv %s4743_s4  ;;  %s4757_s4 = sld [smem:[#allocation10 + $0x25]] }
  0x58   : > { %228 = vst.msk [vmem:[#allocation2 + $0x18] sm:$0x7] %vm226_vm6, %v5301_v9  ;;  %vm611_vm15 = vcmask 1041408  }
  0x59   : > { %v287_v52 = vsel %vm286_vm4, %v5119_v28, %v285_v46  ;;  %v386_v57 = vadd.f32 %v5121_v35, %v385_v50  ;;  %229 = vst.msk [vmem:[#allocation2 + $0x13] sm:$0x7] %vm226_vm6, %v5301_v9  ;;  %vm443_vm4 = vcmask 154712  }
  0x5a   : > { %v288_v56 = vmul.f32 %v287_v52, %v273_v44  ;;  %v289_v3 = vmul.f32 %v287_v52, %v280_v60  ;;  %230 = vst.msk [vmem:[#allocation2 + $0x2b] sm:$0x7] %vm226_vm6, %v5301_v9 }
  0x5b   : > { %v5545_v61 = vsel %vm387_vm5, %v5121_v35, %v386_v57  ;;  %233 = vst.msk [vmem:[#allocation2 + $0xb] sm:$0xff] %vm231_vm7, %v5301_v9 }
  0x5c   : > { %292 = vrot.lane.b32.xlu1 %v288_v56, %s5298_s23  ;;  %v389_v62 = vmul.f32 %v5545_v61, %v360_v48  ;;  %v390_v63 = vmul.f32 %v5545_v61, %v367_v49  ;;  %v391_v0 = vmul.f32 %v5545_v61, %v374_v53  ;;  %v392_v1 = vmul.f32 %v5545_v61, %v381_v54 }
  0x5d   : > { %234 = vst.msk [vmem:[#allocation2 + $0x1b] sm:$0xff] %vm231_vm7, %v5301_v9  ;;  %v851_v53 = vstv %s4744_s29  ;;  %s4758_s29 = sld [smem:[#allocation10 + $0x2c]] }
  0x5e   : > { %v397_v2 = vsel %vm343_vm1, %v390_v63, %v389_v62  ;;  %235 = vst.msk [vmem:[#allocation2 + $0x23] sm:$0xff] %vm231_vm7, %v5301_v9 }
  0x5f   : > { %v398_v4 = vsel %vm345_vm2, %v391_v0, %v397_v2  ;;  %301 = vst.msk [vmem:[#allocation3] sm:$0x7] %vm226_vm6, %v5301_v9 }
  0x60   : > { %v399_v5 = vsel %vm347_vm3, %v392_v1, %v398_v4  ;;  %302 = vst.msk [vmem:[#allocation3 + $0x10] sm:$0x7] %vm226_vm6, %v5301_v9  ;;  %v872_v1 = vstv %s5643_s5  ;;  %s4759_s5 = sld [smem:[#allocation10 + $0x33]] }
  0x61   : > { %400 = vrot.lane.b32.xlu2 %v399_v5, %s5298_s23  ;;  %303 = vst.msk [vmem:[#allocation3 + $0x7] sm:$0x7] %vm226_vm6, %v5301_v9 }
  0x62   : > { %304 = vst.msk [vmem:[#allocation3 + $0x17] sm:$0x7] %vm226_vm6, %v5301_v9 }
  0x63   : > { %405 = vst.msk [vmem:[#allocation4] sm:$0x7] %vm226_vm6, %v5301_v9 }
  0x64   : > { %294 = vrot.lane.b32.xlu1 %v289_v3, %s5298_s23  ;;  %406 = vst.msk [vmem:[#allocation4 + $0x10] sm:$0x7] %vm226_vm6, %v5301_v9  ;;  %s4752_s23 = sld [smem:[#allocation10 + $0x2]] }
  0x65   : > { %407 = vst.msk [vmem:[#allocation4 + $0x7] sm:$0x7] %vm226_vm6, %v5301_v9 }
  0x66   : > { %408 = vst.msk [vmem:[#allocation4 + $0x17] sm:$0x7] %vm226_vm6, %v5301_v9  ;;  %vm2491_vm6 = vcmask 1046528  }
  0x67   : > { %238 = vst.msk [vmem:[#allocation2 + $0xb] sm:$0xff] %vm236_vm8, %v5301_v9 }
  0x68   : > { %239 = vst.msk [vmem:[#allocation2 + $0x1b] sm:$0xff] %vm236_vm8, %v5301_v9 }
  0x69   : > { %240 = vst.msk [vmem:[#allocation2 + $0x23] sm:$0xff] %vm236_vm8, %v5301_v9 }
  0x6a   : > { %306 = vst.msk [vmem:[#allocation3 + $0x3] sm:$0xf] %vm305_vm9, %v5301_v9 }
  0x6b   : > { %309 = vst.msk [vmem:[#allocation3 + $0x3] sm:$0xf] %vm308_vm10, %v5301_v9 }
  0x6c   : > { %409 = vst.msk [vmem:[#allocation4 + $0x3] sm:$0xf] %vm305_vm9, %v5301_v9 }
  0x6d   : > { %410 = vst.msk [vmem:[#allocation4 + $0x13] sm:$0xf] %vm305_vm9, %v5301_v9 }
  0x6e   : > { %411 = vst.msk [vmem:[#allocation4 + $0x3] sm:$0xf] %vm308_vm10, %v5301_v9 }
  0x6f   : > { %412 = vst.msk [vmem:[#allocation4 + $0x13] sm:$0xf] %vm308_vm10, %v5301_v9 }
  0x70   : > { %307 = vst.msk [vmem:[#allocation3 + $0x13] sm:$0xf] %vm305_vm9, %v5301_v9 }
  0x71   : > { %310 = vst.msk [vmem:[#allocation3 + $0x13] sm:$0xf] %vm308_vm10, %v5301_v9 }
  0x74   : > { %413 = vmax.xlane.f32.xlu0 %v5457_v6 }
  0x7c   : > { %421 = vmax.xlane.f32.xlu0 %v5468_v11 }
  0x84   : > { %427 = vmax.xlane.f32.xlu0 %v5482_v16 }
  0x8a   : > { %417 = vmax.xlane.f32.xlu2 %v5460_v7 }
  0x8c   : > { %463 = vadd.xlane.f32.xlu0 %v5501_v25  ;;  %v759_v25 = vstv %s4740_s27  ;;  %s4755_s27 = sld [smem:[#allocation10 + $0x17]] }
  0x8e   : > { %415 = vmax.xlane.f32.xlu1 %v5463_v8  ;;  %v725_v8 = vstv %s4738_s26  ;;  %s4753_s26 = sld [smem:[#allocation10 + $0x9]] }
  0x92   : > { %419 = vmax.xlane.f32.xlu2 %v5471_v12 }
  0x94   : > { %469 = vadd.xlane.f32.xlu0 %v5523_v58 }
  0x96   : > { %423 = vmax.xlane.f32.xlu1 %v5474_v13 }
  0x9a   : > { %425 = vmax.xlane.f32.xlu2 %v5479_v15 }
  0x9e   : > { %459 = vadd.xlane.f32.xlu1 %v5487_v18  ;;  %v739_v18 = vstv %s4739_s6  ;;  %s4754_s6 = sld [smem:[#allocation10 + $0x10]] }
  0xa2   : > { %461 = vadd.xlane.f32.xlu2 %v5492_v20 }
  0xa6   : > { %465 = vadd.xlane.f32.xlu1 %v5504_v26 }
  0xa9   : > { %v350_v7 = vpop.permute.xlu2 %349 }
  0xaa   : > { %467 = vadd.xlane.f32.xlu2 %v5516_v51  ;;  %353 = vst.msk [vmem:[#allocation3 + $0x3] sm:$0xf] %vm352_vm12, %v350_v7  ;;  %v886_v7 = vstv %s4746_s7  ;;  %s4760_s7 = sld [smem:[#allocation10 + $0x3a]] }
  0xae   : > { %471 = vadd.xlane.f32.xlu1 %v5519_v55 }
  0xb2   : > { %473 = vadd.xlane.f32.xlu2 %v5526_v59 }
  0xb4   : > { %v259_v6 = vpop.permute.xlu0 %258 }
  0xb5   : > { %265 = vst.msk [vmem:[#allocation2 + $0x3] sm:$0xff] %vm264_vm11, %v259_v6 }
  0xbb   : > { %v401_v15 = vpop.permute.xlu2 %400 }
  0xbc   : > { %v5598_v11 = vld [vmem:[#allocation2] sm:$0xff]  ;;  %v261_v12 = vpop.permute.xlu0 %260  ;;  %404 = vst.msk [vmem:[#allocation3 + $0x13] sm:$0xf] %vm352_vm12, %v401_v15 }
  0xbd   : > { %266 = vst.msk [vmem:[#allocation2 + $0xb] sm:$0xff] %vm264_vm11, %v261_v12  ;;  %v726_v13 = vmul.f32 %v725_v8, %v5598_v11  ;;  %v760_v55 = vmul.f32 %v759_v25, %v5598_v11  ;;  %v740_v58 = vmul.f32 %v739_v18, %v5598_v11  ;;  %v781_v29 = vmul.f32 %v780_v17, %v5598_v11 }
  0xbe   : > { %v806_v41 = vmul.f32 %v805_v31, %v5598_v11  ;;  %v827_v46 = vmul.f32 %v826_v42, %v5598_v11  ;;  %v852_v60 = vmul.f32 %v851_v53, %v5598_v11  ;;  %v906_v12 = vstv %s4747_s9  ;;  %s4761_s9 = sld [smem:[#allocation10 + $0x41]] }
  0xbf   : > { %730 = vrot.lane.b32.xlu0 %v726_v13, %s5302_s28  ;;  %v766_v14 = vrot.slane %v760_v55, 2  ;;  %v787_v35 = vrot.slane %v781_v29, 2 }
  0xc0   : > { %v812_v47 = vrot.slane %v806_v41, 4  ;;  %v833_v52 = vrot.slane %v827_v46, 4  ;;  %v858_v2 = vrot.slane %v852_v60, 6 }
  0xc4   : > { %v5604_v16 = vld [vmem:[#allocation2 + $0x8] sm:$0xff]  ;;  %v5613_v10 = vld [vmem:[#allocation2 + $0x10] sm:$0x3f] }
  0xc5   : > { %v741_v20 = vmul.f32 %v739_v18, %v5604_v16  ;;  %v727_v26 = vmul.f32 %v725_v8, %v5604_v16  ;;  %v761_v51 = vmul.f32 %v759_v25, %v5604_v16  ;;  %v783_v19 = vmul.f32 %v780_v17, %v5613_v10 }
  0xc6   : > { %v782_v22 = vmul.f32 %v780_v17, %v5604_v16  ;;  %v742_v23 = vmul.f32 %v739_v18, %v5613_v10  ;;  %v762_v30 = vmul.f32 %v759_v25, %v5613_v10  ;;  %v807_v33 = vmul.f32 %v805_v31, %v5604_v16 }
  0xc7   : > { %748 = vrot.lane.b32.xlu0 %v741_v20, %s5302_s28  ;;  %732 = vrot.lane.b32.xlu1 %v727_v26, %s5302_s28  ;;  %v767_v59 = vrot.slane %v761_v51, 2  ;;  %v790_v27 = vrot.slane %v783_v19, 2  ;;  %v808_v34 = vmul.f32 %v805_v31, %v5613_v10  ;;  %v828_v44 = vmul.f32 %v826_v42, %v5604_v16 }
  0xc8   : > { %v788_v28 = vrot.slane %v782_v22, 2  ;;  %v769_v37 = vrot.slane %v762_v30, 2  ;;  %v813_v39 = vrot.slane %v807_v33, 4  ;;  %v829_v50 = vmul.f32 %v826_v42, %v5613_v10 }
  0xc9   : > { %v768_v21 = vsel %vm537_vm13, %v766_v14, %v767_v59  ;;  %v815_v40 = vrot.slane %v808_v34, 4  ;;  %v834_v48 = vrot.slane %v828_v44, 4  ;;  %v853_v56 = vmul.f32 %v851_v53, %v5604_v16 }
  0xca   : > { %746 = vrot.lane.b32.xlu2 %v740_v58, %s5302_s28  ;;  %v791_v32 = vsel %vm537_vm13, %v788_v28, %v790_v27  ;;  %v789_v38 = vsel %vm537_vm13, %v787_v35, %v788_v28  ;;  %v770_v43 = vsel %vm537_vm13, %v767_v59, %v769_v37  ;;  %v814_v49 = vsel %vm574_vm14, %v812_v47, %v813_v39 }
  0xcb   : > { %v816_v45 = vsel %vm574_vm14, %v813_v39, %v815_v40  ;;  %v835_v54 = vsel %vm574_vm14, %v833_v52, %v834_v48  ;;  %v836_v57 = vrot.slane %v829_v50, 4  ;;  %v859_v62 = vrot.slane %v853_v56, 6 }
  0xcc   : > { %v854_v0 = vmul.f32 %v851_v53, %v5613_v10  ;;  %v927_v58 = vstv %s4748_s11  ;;  %v973_v28 = vstv %s4750_s10  ;;  %v998_v47 = vstv %s4751_s1  ;;  %s4762_s11 = sld [smem:[#allocation10 + $0x48]] }
  0xcd   : > { %v837_v63 = vsel %vm574_vm14, %v834_v48, %v836_v57  ;;  %v860_v4 = vsel %vm611_vm15, %v858_v2, %v859_v62  ;;  %s4764_s10 = sld [smem:[#allocation10 + $0x56]] }
  0xce   : > { %v293_v24 = vpop.permute.xlu1 %292  ;;  %v861_v9 = vrot.slane %v854_v0, 6  ;;  %s4765_s1 = sld [smem:[#allocation10 + $0x5d]] }
  0xcf   : > { %771 = vrot.lane.b32.xlu0 %v768_v21, %s5302_s28  ;;  %299 = vst.msk [vmem:[#allocation2 + $0x1b] sm:$0xff] %vm264_vm11, %v293_v24  ;;  %750 = vrot.lane.b32.xlu1 %v742_v23, %s5302_s28  ;;  %v8161_v23 = vlaneseq }
  0xd0   : > { %v862_v6 = vsel %vm611_vm15, %v859_v62, %v861_v9 }
  0xd1   : > { %v438_v34 = vand.u32 127, %v8161_v23 }
  0xd2   : > { %796 = vrot.lane.b32.xlu2 %v790_v27, %s5302_s28  ;;  %v952_v27 = vstv %s4749_s8  ;;  %s4763_s8 = sld [smem:[#allocation10 + $0x4f]] }
  0xd3   : > { %v5692_v44 = vadd.s32 4294967285, %v438_v34 }
  0xd6   : > { %v295_v36 = vpop.permute.xlu1 %294  ;;  %v5654_v3 = vld [vmem:[#allocation2 + $0x18] sm:$0xff] }
  0xd7   : > { %794 = vrot.lane.b32.xlu0 %v791_v32, %s5302_s28  ;;  %300 = vst.msk [vmem:[#allocation2 + $0x23] sm:$0xff] %vm264_vm11, %v295_v36  ;;  %792 = vrot.lane.b32.xlu1 %v789_v38, %s5302_s28  ;;  %v873_v5 = vmul.f32 %v872_v1, %v5654_v3  ;;  %v887_v51 = vmul.f32 %v886_v7, %v5654_v3 }
  0xd8   : > { %v907_v55 = vmul.f32 %v906_v12, %v5654_v3  ;;  %v928_v19 = vmul.f32 %v927_v58, %v5654_v3  ;;  %v953_v37 = vmul.f32 %v952_v27, %v5654_v3  ;;  %v974_v38 = vmul.f32 %v973_v28, %v5654_v3 }
  0xda   : > { %773 = vrot.lane.b32.xlu2 %v770_v43, %s5302_s28  ;;  %v913_v22 = vrot.slane %v907_v55, 2  ;;  %v934_v30 = vrot.slane %v928_v19, 2  ;;  %v5690_v43 = vadd.s32 4294967293, %v438_v34  ;;  %v980_v46 = vrot.slane %v974_v38, 4 }
  0xde   : > { %v5662_v8 = vld [vmem:[#allocation2 + $0x20] sm:$0xff]  ;;  %v5665_v15 = vld [vmem:[#allocation2 + $0x28] sm:$0x3f] }
  0xdf   : > { %819 = vrot.lane.b32.xlu0 %v816_v45, %s5302_s28  ;;  %817 = vrot.lane.b32.xlu1 %v814_v49, %s5302_s28  ;;  %v874_v13 = vmul.f32 %v872_v1, %v5662_v8  ;;  %v888_v18 = vmul.f32 %v886_v7, %v5662_v8  ;;  %v908_v20 = vmul.f32 %v906_v12, %v5662_v8  ;;  %v959_v45 = vrot.slane %v953_v37, 4 }
  0xe0   : > { %v909_v25 = vmul.f32 %v906_v12, %v5665_v15  ;;  %v889_v17 = vmul.f32 %v886_v7, %v5665_v15  ;;  %v929_v21 = vmul.f32 %v927_v58, %v5662_v8  ;;  %v930_v33 = vmul.f32 %v927_v58, %v5665_v15 }
  0xe1   : > { %v914_v59 = vrot.slane %v908_v20, 2  ;;  %v954_v40 = vmul.f32 %v952_v27, %v5662_v8  ;;  %v975_v42 = vmul.f32 %v973_v28, %v5662_v8  ;;  %v955_v53 = vmul.f32 %v952_v27, %v5665_v15 }
  0xe2   : > { %838 = vrot.lane.b32.xlu2 %v835_v54, %s5302_s28  ;;  %v916_v14 = vrot.slane %v909_v25, 2  ;;  %v935_v31 = vrot.slane %v929_v21, 2  ;;  %v937_v41 = vrot.slane %v930_v33, 2  ;;  %v976_v0 = vmul.f32 %v973_v28, %v5665_v15 }
  0xe3   : > { %v915_v32 = vsel %vm537_vm13, %v913_v22, %v914_v59  ;;  %v960_v49 = vrot.slane %v954_v40, 4  ;;  %v981_v52 = vrot.slane %v975_v42, 4  ;;  %v999_v1 = vmul.f32 %v998_v47, %v5654_v3 }
  0xe4   : > { %v917_v24 = vsel %vm537_vm13, %v914_v59, %v916_v14  ;;  %v936_v39 = vsel %vm537_vm13, %v934_v30, %v935_v31  ;;  %v938_v50 = vsel %vm537_vm13, %v935_v31, %v937_v41  ;;  %v962_v9 = vrot.slane %v955_v53, 4 }
  0xe5   : > { %v982_v12 = vsel %vm574_vm14, %v980_v46, %v981_v52  ;;  %v1005_v14 = vrot.slane %v999_v1, 6  ;;  %v1001_v27 = vmul.f32 %v998_v47, %v5665_v15  ;;  %v1019_v33 = vstv %s4752_s23  ;;  %s4766_s23 = sld [smem:[#allocation10 + $0x3]] }
  0xe6   : > { %v963_v55 = vsel %vm574_vm14, %v960_v49, %v962_v9  ;;  %v1020_v37 = vmul.f32 %v1019_v33, %v5598_v11 }
  0xe7   : > { %842 = vrot.lane.b32.xlu0 %v836_v57, %s5302_s28  ;;  %840 = vrot.lane.b32.xlu1 %v837_v63, %s5302_s28  ;;  %v414_v26 = vpop.xlane.xlu0 %413  ;;  %v1008_v31 = vrot.slane %v1001_v27, 6 }
  0xe8   : > { %v440_v56 = vperm.slane %v414_v26, %v5690_v43 }
  0xea   : > { %863 = vrot.lane.b32.xlu2 %v860_v4, %s5302_s28 }
  0xef   : > { %877 = vrot.lane.b32.xlu0 %v873_v5, %s5302_s28  ;;  %865 = vrot.lane.b32.xlu1 %v862_v6, %s5302_s28  ;;  %v422_v35 = vpop.xlane.xlu0 %421  ;;  %v961_v5 = vsel %vm574_vm14, %v959_v45, %v960_v49  ;;  %v1053_v49 = vstv %s4754_s6  ;;  %s4768_s6 = sld [smem:[#allocation10 + $0x11]] }
  0xf0   : > { %v448_v2 = vperm.slane %v422_v35, %v5690_v43  ;;  %v1021_v35 = vmul.f32 %v1019_v33, %v5604_v16 }
  0xf2   : > { %879 = vrot.lane.b32.xlu2 %v874_v13, %s5302_s28  ;;  %v1000_v13 = vmul.f32 %v998_v47, %v5662_v8 }
  0xf4   : > { %v1006_v59 = vrot.slane %v1000_v13, 6 }
  0xf6   : > { %v1009_v34 = vsel %vm611_vm15, %v1006_v59, %v1008_v31 }
  0xf7   : > { %895 = vrot.lane.b32.xlu0 %v888_v18, %s5302_s28  ;;  %893 = vrot.lane.b32.xlu1 %v887_v51, %s5302_s28  ;;  %v428_v63 = vpop.xlane.xlu0 %427  ;;  %v983_v51 = vrot.slane %v976_v0, 4 }
  0xf8   : > { %v452_v18 = vperm.slane %v428_v63, %v5692_v44 }
  0xfa   : > { %897 = vrot.lane.b32.xlu2 %v889_v17, %s5302_s28 }
  0xfd   : > { %v418_v29 = vpop.xlane.xlu2 %417 }
  0xfe   : > { %v445_v54 = vperm.slane %v418_v29, %v5690_v43  ;;  %v1007_v29 = vsel %vm611_vm15, %v1005_v14, %v1006_v59 }
  0xff   : > { %920 = vrot.lane.b32.xlu0 %v917_v24, %s5302_s28  ;;  %918 = vrot.lane.b32.xlu1 %v915_v32, %s5302_s28  ;;  %v984_v24 = vsel %vm574_vm14, %v981_v52, %v983_v51  ;;  %v464_v28 = vpop.xlane.xlu0 %463 }
 0x100   : > { %v477_v40 = vmul.f32 %v464_v28, %v5545_v61 }
 0x101   : > { %v416_v36 = vpop.xlane.xlu1 %415 }
 0x102   : > { %939 = vrot.lane.b32.xlu2 %v936_v39, %s5302_s28  ;;  %v442_v57 = vperm.slane %v416_v36, %v5692_v44  ;;  %v1033_v36 = vstv %s4753_s26  ;;  %v494_v53 = vperm.slane %v477_v40, %v5690_v43  ;;  %s4767_s26 = sld [smem:[#allocation10 + $0xa]] }
 0x104   : > { %v444_v6 = vsel %vm443_vm4, %v442_v57, %v440_v56  ;;  %v1055_v57 = vmul.f32 %v1053_v49, %v5604_v16 }
 0x105   : > { %v420_v48 = vpop.xlane.xlu2 %419 }
 0x106   : > { %v446_v60 = vperm.slane %v420_v48, %v5692_v44  ;;  %v1034_v48 = vmul.f32 %v1033_v36, %v5598_v11  ;;  %v1061_v13 = vrot.slane %v1055_v57, 2 }
 0x107   : > { %943 = vrot.lane.b32.xlu0 %v937_v41, %s5302_s28  ;;  %941 = vrot.lane.b32.xlu1 %v938_v50, %s5302_s28  ;;  %v470_v42 = vpop.xlane.xlu0 %469 }
 0x108   : > { %v447_v7 = vsel %vm443_vm4, %v446_v60, %v445_v54  ;;  %v480_v47 = vmul.f32 %v470_v42, %v5545_v61  ;;  %v1036_v60 = vmul.f32 %v1033_v36, %v5613_v10 }
 0x109   : > { %v424_v62 = vpop.xlane.xlu1 %423  ;;  %v454_v20 = vsel %vm343_vm1, %v447_v7, %v444_v6  ;;  %v1035_v6 = vmul.f32 %v1033_v36, %v5604_v16 }
 0x10a   : > { %v449_v4 = vperm.slane %v424_v62, %v5692_v44  ;;  %964 = vrot.lane.b32.xlu2 %v961_v5, %s5302_s28  ;;  %v1074_v62 = vstv %s4755_s27  ;;  %s5304_s27 = smov 125  }
 0x10b   : > { %v1076_v0 = vmul.f32 %v1074_v62, %v5604_v16  ;;  %v1075_v7 = vmul.f32 %v1074_v62, %v5598_v11 }
 0x10c   : > { %v450_v25 = vsel %vm443_vm4, %v449_v4, %v448_v2  ;;  %v498_v2 = vperm.slane %v480_v47, %v5692_v44  ;;  %v1054_v4 = vmul.f32 %v1053_v49, %v5598_v11 }
 0x10d   : > { %v426_v26 = vpop.xlane.xlu2 %425  ;;  %v455_v17 = vsel %vm345_vm2, %v450_v25, %v454_v20  ;;  %v1081_v14 = vrot.slane %v1075_v7, 2  ;;  %v1166_v7 = vstv %s4759_s5  ;;  %s4772_s5 = sld [smem:[#allocation10 + $0x2d]] }
 0x10e   : > { %v451_v58 = vperm.slane %v426_v26, %v5690_v43  ;;  %v1082_v26 = vrot.slane %v1076_v0, 2 }
 0x10f   : > { %985 = vrot.lane.b32.xlu0 %v982_v12, %s5302_s28  ;;  %966 = vrot.lane.b32.xlu1 %v963_v55, %s5302_s28 }
 0x110   : > { %v453_v19 = vsel %vm443_vm4, %v452_v18, %v451_v58  ;;  %v1056_v18 = vmul.f32 %v1053_v49, %v5613_v10  ;;  %v1060_v58 = vrot.slane %v1054_v4, 2 }
 0x111   : > { %v460_v21 = vpop.xlane.xlu1 %459  ;;  %v456_v22 = vsel %vm347_vm3, %v453_v19, %v455_v17  ;;  %v1077_v19 = vmul.f32 %v1074_v62, %v5613_v10 }
 0x112   : > { %458 = vst.msk [vmem:[#allocation4 + $0x3] sm:$0xf] %vm352_vm12, %v456_v22  ;;  %987 = vrot.lane.b32.xlu2 %v984_v24, %s5302_s28  ;;  %v475_v38 = vmul.f32 %v460_v21, %v5545_v61  ;;  %v1062_v17 = vsel %vm537_vm13, %v1060_v58, %v1061_v13  ;;  %v1063_v21 = vrot.slane %v1056_v18, 2  ;;  %v1099_v22 = vstv %s4756_s30  ;;  %s4769_s30 = sld [smem:[#allocation10 + $0x18]] }
 0x113   : > { %v1083_v24 = vsel %vm537_vm13, %v1081_v14, %v1082_v26  ;;  %v1101_v27 = vmul.f32 %v1099_v22, %v5604_v16  ;;  %v1100_v28 = vmul.f32 %v1099_v22, %v5598_v11  ;;  %v1102_v36 = vmul.f32 %v1099_v22, %v5613_v10 }
 0x114   : > { %v491_v50 = vperm.slane %v475_v38, %v5690_v43  ;;  %v1064_v31 = vsel %vm537_vm13, %v1061_v13, %v1063_v21  ;;  %v1180_v18 = vstv %s4760_s7  ;;  %v1221_v22 = vstv %s4762_s11  ;;  %s4773_s7 = sld [smem:[#allocation10 + $0x34]] }
 0x115   : > { %v462_v30 = vpop.xlane.xlu2 %461  ;;  %v1107_v33 = vrot.slane %v1101_v27, 4  ;;  %v1109_v42 = vrot.slane %v1102_v36, 4  ;;  %s4775_s11 = sld [smem:[#allocation10 + $0x42]] }
 0x116   : > { %v476_v39 = vmul.f32 %v462_v30, %v5545_v61  ;;  %v1084_v30 = vrot.slane %v1077_v19, 2 }
 0x117   : > { %1010 = vrot.lane.b32.xlu0 %v1007_v29, %s5302_s28  ;;  %989 = vrot.lane.b32.xlu1 %v983_v51, %s5302_s28 }
 0x118   : > { %v492_v52 = vperm.slane %v476_v39, %v5692_v44 }
 0x119   : > { %v466_v32 = vpop.xlane.xlu1 %465 }
 0x11a   : > { %1012 = vrot.lane.b32.xlu2 %v1009_v34, %s5302_s28  ;;  %v478_v41 = vmul.f32 %v466_v32, %v5545_v61  ;;  %v493_v5 = vsel %vm443_vm4, %v492_v52, %v491_v50  ;;  %v1106_v34 = vrot.slane %v1100_v28, 4  ;;  %v1110_v50 = vsel %vm574_vm14, %v1107_v33, %v1109_v42 }
 0x11b   : > { %v1145_v52 = vstv %s4758_s29  ;;  %v1223_v28 = vmul.f32 %v1221_v22, %v5662_v8  ;;  %s4771_s29 = sld [smem:[#allocation10 + $0x26]] }
 0x11c   : > { %v495_v54 = vperm.slane %v478_v41, %v5692_v44  ;;  %v1108_v38 = vsel %vm574_vm14, %v1106_v34, %v1107_v33 }
 0x11d   : > { %v468_v45 = vpop.xlane.xlu2 %467 }
 0x11e   : > { %v479_v46 = vmul.f32 %v468_v45, %v5545_v61  ;;  %v496_v9 = vsel %vm443_vm4, %v495_v54, %v494_v53  ;;  %v1147_v54 = vmul.f32 %v1145_v52, %v5604_v16 }
 0x11f   : > { %1026 = vrot.lane.b32.xlu0 %v1021_v35, %s5303_s22  ;;  %1024 = vrot.lane.b32.xlu1 %v1020_v37, %s5303_s22  ;;  %v503_v51 = vsel %vm343_vm1, %v496_v9, %v493_v5  ;;  %v1085_v35 = vsel %vm537_vm13, %v1082_v26, %v1084_v30  ;;  %v1120_v37 = vstv %s4757_s4  ;;  %s4770_s4 = sld [smem:[#allocation10 + $0x1f]] }
 0x120   : > { %v497_v1 = vperm.slane %v479_v46, %v5690_v43  ;;  %v1123_v39 = vmul.f32 %v1120_v37, %v5613_v10  ;;  %v1122_v40 = vmul.f32 %v1120_v37, %v5604_v16  ;;  %v1153_v0 = vrot.slane %v1147_v54, 6 }
 0x121   : > { %v472_v56 = vpop.xlane.xlu1 %471 }
 0x122   : > { %1040 = vrot.lane.b32.xlu2 %v1034_v48, %s5303_s22  ;;  %v481_v63 = vmul.f32 %v472_v56, %v5545_v61  ;;  %v499_v55 = vsel %vm443_vm4, %v498_v2, %v497_v1  ;;  %v1130_v46 = vrot.slane %v1123_v39, 4  ;;  %v1128_v47 = vrot.slane %v1122_v40, 4 }
 0x123   : > { %v1121_v48 = vmul.f32 %v1120_v37, %v5598_v11  ;;  %v1148_v56 = vmul.f32 %v1145_v52, %v5613_v10  ;;  %v1146_v2 = vmul.f32 %v1145_v52, %v5598_v11  ;;  %v1229_v37 = vrot.slane %v1223_v28, 2 }
 0x124   : > { %v500_v20 = vperm.slane %v481_v63, %v5690_v43  ;;  %v1131_v53 = vsel %vm574_vm14, %v1128_v47, %v1130_v46 }
 0x125   : > { %v474_v12 = vpop.xlane.xlu2 %473  ;;  %v1127_v57 = vrot.slane %v1121_v48, 4  ;;  %v1155_v1 = vrot.slane %v1148_v56, 6  ;;  %v1152_v9 = vrot.slane %v1146_v2, 6  ;;  %v1267_v56 = vstv %s4764_s10  ;;  %s4777_s10 = sld [smem:[#allocation10 + $0x50]] }
 0x126   : > { %v482_v25 = vmul.f32 %v474_v12, %v5545_v61  ;;  %v504_v61 = vsel %vm345_vm2, %v499_v55, %v503_v51  ;;  %v1181_v51 = vmul.f32 %v1180_v18, %v5654_v3  ;;  %v1269_v2 = vmul.f32 %v1267_v56, %v5662_v8 }
 0x127   : > { %1044 = vrot.lane.b32.xlu0 %v1036_v60, %s5303_s22  ;;  %1042 = vrot.lane.b32.xlu1 %v1035_v6, %s5303_s22  ;;  %v1129_v62 = vsel %vm574_vm14, %v1127_v57, %v1128_v47  ;;  %v1156_v5 = vsel %vm611_vm15, %v1153_v0, %v1155_v1  ;;  %v1154_v12 = vsel %vm611_vm15, %v1152_v9, %v1153_v0 }
 0x128   : > { %v501_v59 = vperm.slane %v482_v25, %v5692_v44  ;;  %v1167_v25 = vmul.f32 %v1166_v7, %v5654_v3  ;;  %v1268_v1 = vmul.f32 %v1267_v56, %v5654_v3 }
 0x12a   : > { %v502_v43 = vsel %vm443_vm4, %v501_v59, %v500_v20  ;;  %1065 = vrot.lane.b32.xlu2 %v1062_v17, %s5303_s22  ;;  %v1200_v20 = vstv %s4761_s9  ;;  %v1168_v59 = vmul.f32 %v1166_v7, %v5662_v8  ;;  %s4774_s9 = sld [smem:[#allocation10 + $0x3b]] }
 0x12b   : > { %v505_v44 = vsel %vm347_vm3, %v502_v43, %v504_v61  ;;  %v1202_v55 = vmul.f32 %v1200_v20, %v5662_v8  ;;  %v1201_v58 = vmul.f32 %v1200_v20, %v5654_v3  ;;  %v1182_v61 = vmul.f32 %v1180_v18, %v5662_v8 }
 0x12c   : > { %508 = vst.msk [vmem:[#allocation4 + $0x13] sm:$0xf] %vm352_vm12, %v505_v44  ;;  %v1224_v44 = vmul.f32 %v1221_v22, %v5665_v15 }
 0x12d   : > { %v5778_v29 = vpop.permute.xlu2 %746  ;;  %v1208_v19 = vrot.slane %v1202_v55, 2  ;;  %v1207_v21 = vrot.slane %v1201_v58, 2  ;;  %v1292_v55 = vstv %s4765_s1  ;;  %s4778_s1 = sld [smem:[#allocation10 + $0x57]] }
 0x12e   : > { %8171 = vst [vmem:[#allocation17_spill] sm:$0xff] %v5778_v29  ;;  %v1231_v36 = vrot.slane %v1224_v44, 2 }
 0x12f   : > { %1086 = vrot.lane.b32.xlu0 %v1083_v24, %s5303_s22  ;;  %1067 = vrot.lane.b32.xlu1 %v1064_v31, %s5303_s22  ;;  %v1203_v24 = vmul.f32 %v1200_v20, %v5665_v15  ;;  %v1209_v27 = vsel %vm537_vm13, %v1207_v21, %v1208_v19  ;;  %v1294_v21 = vmul.f32 %v1292_v55, %v5662_v8 }
 0x131   : > { %v5781_v32 = vpop.permute.xlu0 %730  ;;  %v1210_v33 = vrot.slane %v1203_v24, 2 }
 0x132   : > { %1088 = vrot.lane.b32.xlu2 %v1085_v35, %s5303_s22  ;;  %v1222_v35 = vmul.f32 %v1221_v22, %v5654_v3 }
 0x133   : > { %v1211_v40 = vsel %vm537_vm13, %v1208_v19, %v1210_v33  ;;  %v1293_v19 = vmul.f32 %v1292_v55, %v5654_v3  ;;  %v1313_v33 = vstv %s4766_s23  ;;  %s4779_s23 = sld [smem:[#allocation10 + $0x5e]] }
 0x134   : > { %v1228_v42 = vrot.slane %v1222_v35, 2 }
 0x135   : > { %v5791_v41 = vpop.permute.xlu2 %796  ;;  %v1299_v24 = vrot.slane %v1293_v19, 6 }
 0x136   : > { %8172 = vst [vmem:[#allocation18_spill] sm:$0xff] %v5791_v41  ;;  %v1230_v52 = vsel %vm537_vm13, %v1228_v42, %v1229_v37 }
 0x137   : > { %1111 = vrot.lane.b32.xlu0 %v1108_v38, %s5303_s22  ;;  %1090 = vrot.lane.b32.xlu1 %v1084_v30, %s5303_s22  ;;  %v1183_v30 = vmul.f32 %v1180_v18, %v5665_v15  ;;  %v1246_v38 = vstv %s4763_s8  ;;  %v1275_v18 = vrot.slane %v1269_v2, 4  ;;  %s4776_s8 = sld [smem:[#allocation10 + $0x49]] }
 0x138   : > { %v1248_v47 = vmul.f32 %v1246_v38, %v5662_v8  ;;  %v1249_v48 = vmul.f32 %v1246_v38, %v5665_v15  ;;  %v1247_v54 = vmul.f32 %v1246_v38, %v5654_v3 }
 0x139   : > { %v5793_v45 = vpop.permute.xlu0 %748  ;;  %v5797_v49 = vpop.permute.xlu1 %732 }
 0x13a   : > { %8173 = vst [vmem:[#allocation19_spill] sm:$0xff] %v5793_v45  ;;  %1113 = vrot.lane.b32.xlu2 %v1110_v50, %s5303_s22  ;;  %v1254_v57 = vrot.slane %v1248_v47, 4  ;;  %v1315_v47 = vmul.f32 %v1313_v33, %v5604_v16 }
 0x13d   : > { %v5805_v60 = vpop.permute.xlu2 %773 }
 0x13e   : > { %8174 = vst [vmem:[#allocation20_spill] sm:$0xff] %v5805_v60 }
 0x13f   : > { %1134 = vrot.lane.b32.xlu0 %v1131_v53, %s5303_s22  ;;  %1132 = vrot.lane.b32.xlu1 %v1129_v62, %s5303_s22  ;;  %v1256_v62 = vrot.slane %v1249_v48, 4  ;;  %v1327_v48 = vstv %s4767_s26  ;;  %s6051_s26 = sld [smem:[#allocation10 + $0x4]] }
 0x141   : > { %v5808_v63 = vpop.permute.xlu0 %771  ;;  %v5812_v4 = vpop.permute.xlu1 %750  ;;  %v1257_v9 = vsel %vm574_vm14, %v1254_v57, %v1256_v62 }
 0x142   : > { %8175 = vst [vmem:[#allocation21_spill] sm:$0xff] %v5812_v4  ;;  %1136 = vrot.lane.b32.xlu2 %v1130_v46, %s5303_s22  ;;  %v1232_v46 = vsel %vm537_vm13, %v1229_v37, %v1231_v36  ;;  %v1314_v37 = vmul.f32 %v1313_v33, %v5598_v11 }
 0x145   : > { %v5817_v6 = vpop.permute.xlu2 %838 }
 0x146   : > { %8176 = vst [vmem:[#allocation22_spill] sm:$0xff] %v5817_v6 }
 0x147   : > { %1159 = vrot.lane.b32.xlu0 %v1156_v5, %s5303_s22  ;;  %1157 = vrot.lane.b32.xlu1 %v1154_v12, %s5303_s22  ;;  %v1253_v5 = vrot.slane %v1247_v54, 4  ;;  %v1274_v12 = vrot.slane %v1268_v1, 4  ;;  %v1329_v54 = vmul.f32 %v1327_v48, %v5604_v16  ;;  %v1328_v1 = vmul.f32 %v1327_v48, %v5598_v11 }
 0x149   : > { %v5820_v13 = vpop.permute.xlu0 %794  ;;  %v5824_v26 = vpop.permute.xlu1 %792  ;;  %v1255_v20 = vsel %vm574_vm14, %v1253_v5, %v1254_v57 }
 0x14a   : > { %8177 = vst [vmem:[#allocation23_spill] sm:$0xff] %v5820_v13  ;;  %1171 = vrot.lane.b32.xlu2 %v1167_v25, %s5303_s22 }
 0x14b   : > { %8178 = vst [vmem:[#allocation24_spill] sm:$0xff] %v5824_v26 }
 0x14d   : > { %v5832_v14 = vpop.permute.xlu2 %863 }
 0x14e   : > { %8179 = vst [vmem:[#allocation25_spill] sm:$0xff] %v5832_v14 }
 0x14f   : > { %1187 = vrot.lane.b32.xlu0 %v1181_v51, %s5303_s22  ;;  %1173 = vrot.lane.b32.xlu1 %v1168_v59, %s5303_s22  ;;  %v1270_v51 = vmul.f32 %v1267_v56, %v5665_v15  ;;  %v1276_v59 = vsel %vm574_vm14, %v1274_v12, %v1275_v18  ;;  %v1347_v56 = vstv %s4768_s6  ;;  %s4781_s6 = sld [smem:[#allocation10 + $0xb]] }
 0x150   : > { %v1349_v57 = vmul.f32 %v1347_v56, %v5604_v16  ;;  %v1350_v62 = vmul.f32 %v1347_v56, %v5613_v10 }
 0x151   : > { %v5834_v17 = vpop.permute.xlu0 %819  ;;  %v5838_v43 = vpop.permute.xlu1 %817  ;;  %v1277_v22 = vrot.slane %v1270_v51, 4  ;;  %v1368_v51 = vstv %s4769_s30  ;;  %s4782_s30 = sld [smem:[#allocation10 + $0x12]] }
 0x152   : > { %8180 = vst [vmem:[#allocation26_spill] sm:$0xff] %v5834_v17  ;;  %1189 = vrot.lane.b32.xlu2 %v1182_v61, %s5303_s22  ;;  %v1357_v12 = vrot.slane %v1350_v62, 2  ;;  %v1371_v33 = vmul.f32 %v1368_v51, %v5613_v10 }
 0x153   : > { %v1278_v44 = vsel %vm574_vm14, %v1275_v18, %v1277_v22  ;;  %v1348_v18 = vmul.f32 %v1347_v56, %v5598_v11 }
 0x155   : > { %v5847_v31 = vpop.permute.xlu2 %879 }
 0x156   : > { %8181 = vst [vmem:[#allocation27_spill] sm:$0xff] %v5847_v31 }
 0x157   : > { %1212 = vrot.lane.b32.xlu0 %v1209_v27, %s5303_s22  ;;  %1191 = vrot.lane.b32.xlu1 %v1183_v30, %s5303_s22  ;;  %v1300_v27 = vrot.slane %v1294_v21, 6  ;;  %v1295_v30 = vmul.f32 %v1292_v55, %v5665_v15  ;;  %v1369_v21 = vmul.f32 %v1368_v51, %v5598_v11 }
 0x159   : > { %v5849_v34 = vpop.permute.xlu0 %842  ;;  %v5853_v39 = vpop.permute.xlu1 %840  ;;  %v1302_v38 = vrot.slane %v1295_v30, 6 }
 0x15a   : > { %8182 = vst [vmem:[#allocation28_spill] sm:$0xff] %v5849_v34  ;;  %1214 = vrot.lane.b32.xlu2 %v1211_v40, %s5303_s22 }
 0x15b   : > { %8183 = vst [vmem:[#allocation29_spill] sm:$0xff] %v5853_v39  ;;  %v1303_v42 = vsel %vm611_vm15, %v1300_v27, %v1302_v38 }
 0x15d   : > { %v5861_v50 = vpop.permute.xlu2 %897 }
 0x15e   : > { %8184 = vst [vmem:[#allocation30_spill] sm:$0xff] %v5861_v50 }
 0x15f   : > { %1235 = vrot.lane.b32.xlu0 %v1232_v46, %s5303_s22  ;;  %1233 = vrot.lane.b32.xlu1 %v1230_v52, %s5303_s22 }
 0x161   : > { %v5864_v53 = vpop.permute.xlu0 %877  ;;  %v5868_v0 = vpop.permute.xlu1 %865 }
 0x162   : > { %8185 = vst [vmem:[#allocation31_spill] sm:$0xff] %v5868_v0  ;;  %1237 = vrot.lane.b32.xlu2 %v1231_v36, %s5303_s22  ;;  %v1301_v36 = vsel %vm611_vm15, %v1299_v24, %v1300_v27 }
 0x165   : > { %v5875_v7 = vpop.permute.xlu2 %939 }
 0x166   : > { %8186 = vst [vmem:[#allocation32_spill] sm:$0xff] %v5875_v7 }
 0x167   : > { %1260 = vrot.lane.b32.xlu0 %v1257_v9, %s5303_s22  ;;  %1258 = vrot.lane.b32.xlu1 %v1255_v20, %s5303_s22  ;;  %v1355_v9 = vrot.slane %v1349_v57, 2  ;;  %v1330_v20 = vmul.f32 %v1327_v48, %v5613_v10  ;;  %v1378_v48 = vrot.slane %v1371_v33, 2 }
 0x169   : > { %v5878_v25 = vpop.permute.xlu0 %895  ;;  %v5882_v58 = vpop.permute.xlu1 %893  ;;  %v1358_v19 = vsel %vm537_vm13, %v1355_v9, %v1357_v12 }
 0x16a   : > { %8187 = vst [vmem:[#allocation33_spill] sm:$0xff] %v5878_v25  ;;  %1279 = vrot.lane.b32.xlu2 %v1276_v59, %s5303_s22  ;;  %v1370_v59 = vmul.f32 %v1368_v51, %v5604_v16 }
 0x16b   : > { %8188 = vst [vmem:[#allocation34_spill] sm:$0xff] %v5882_v58 }
 0x16c   : > { %v1376_v27 = vrot.slane %v1370_v59, 2 }
 0x16d   : > { %v5889_v61 = vpop.permute.xlu2 %964 }
 0x16e   : > { %v1379_v12 = vsel %vm537_vm13, %v1376_v27, %v1378_v48 }
 0x16f   : > { %1283 = vrot.lane.b32.xlu0 %v1277_v22, %s5303_s22  ;;  %1281 = vrot.lane.b32.xlu1 %v1278_v44, %s5303_s22  ;;  %v1354_v22 = vrot.slane %v1348_v18, 2 }
 0x171   : > { %v5892_v28 = vpop.permute.xlu0 %920  ;;  %v5896_v35 = vpop.permute.xlu1 %918  ;;  %v1356_v44 = vsel %vm537_vm13, %v1354_v22, %v1355_v9 }
 0x172   : > { %8189 = vst [vmem:[#allocation35_spill] sm:$0xff] %v5892_v28  ;;  %1304 = vrot.lane.b32.xlu2 %v1301_v36, %s5303_s22  ;;  %v1375_v36 = vrot.slane %v1369_v21, 2 }
 0x175   : > { %v5902_v40 = vpop.permute.xlu2 %987 }
 0x176   : > { %8190 = vst [vmem:[#allocation36_spill] sm:$0xff] %v5902_v40 }
 0x177   : > { %1318 = vrot.lane.b32.xlu0 %v1314_v37, %s5304_s27  ;;  %1306 = vrot.lane.b32.xlu1 %v1303_v42, %s5303_s22  ;;  %v1393_v37 = vstv %s4770_s4  ;;  %v1377_v42 = vsel %vm537_vm13, %v1375_v36, %v1376_v27  ;;  %v1439_v36 = vstv %s4772_s5  ;;  %s4783_s4 = sld [smem:[#allocation10 + $0x19]] }
 0x178   : > { %v1394_v57 = vmul.f32 %v1393_v37, %v5598_v11  ;;  %s4784_s5 = sld [smem:[#allocation10 + $0x20]] }
 0x179   : > { %v5905_v46 = vpop.permute.xlu0 %943  ;;  %v5909_v52 = vpop.permute.xlu1 %941 }
 0x17a   : > { %8191 = vst [vmem:[#allocation37_spill] sm:$0xff] %v5905_v46  ;;  %1320 = vrot.lane.b32.xlu2 %v1315_v47, %s5304_s27  ;;  %v1395_v47 = vmul.f32 %v1393_v37, %v5604_v16  ;;  %v1400_v59 = vrot.slane %v1394_v57, 4 }
 0x17b   : > { %8192 = vst [vmem:[#allocation38_spill] sm:$0xff] %v5909_v52 }
 0x17c   : > { %v1401_v9 = vrot.slane %v1395_v47, 4 }
 0x17d   : > { %v5917_v2 = vpop.permute.xlu2 %1012 }
 0x17e   : > { %8193 = vst [vmem:[#allocation39_spill] sm:$0xff] %v5917_v2  ;;  %v1402_v22 = vsel %vm574_vm14, %v1400_v59, %v1401_v9 }
 0x17f   : > { %1336 = vrot.lane.b32.xlu0 %v1329_v54, %s5304_s27  ;;  %1334 = vrot.lane.b32.xlu1 %v1328_v1, %s5304_s27  ;;  %v1414_v54 = vstv %s4771_s29  ;;  %s5305_s29 = smov 124  }
 0x180   : > { %v1416_v56 = vmul.f32 %v1414_v54, %v5604_v16  ;;  %v1415_v62 = vmul.f32 %v1414_v54, %v5598_v11 }
 0x181   : > { %v5919_v5 = vpop.permute.xlu0 %985  ;;  %v5924_v55 = vpop.permute.xlu1 %966 }
 0x182   : > { %8194 = vst [vmem:[#allocation40_spill] sm:$0xff] %v5919_v5  ;;  %1338 = vrot.lane.b32.xlu2 %v1330_v20, %s5304_s27  ;;  %v1396_v20 = vmul.f32 %v1393_v37, %v5613_v10  ;;  %v1422_v51 = vrot.slane %v1416_v56, 4  ;;  %v1421_v21 = vrot.slane %v1415_v62, 4  ;;  %v1440_v37 = vmul.f32 %v1439_v36, %v5598_v11 }
 0x183   : > { %8195 = vst [vmem:[#allocation41_spill] sm:$0xff] %v5924_v55 }
 0x184   : > { %v1403_v33 = vrot.slane %v1396_v20, 4  ;;  %v1423_v27 = vsel %vm574_vm14, %v1421_v21, %v1422_v51  ;;  %v1442_v20 = vmul.f32 %v1439_v36, %v5613_v10 }
 0x185   : > { %v5931_v24 = vpop.permute.xlu2 %1040 }
 0x186   : > { %8196 = vst [vmem:[#allocation42_spill] sm:$0xff] %v5931_v24  ;;  %v1404_v56 = vsel %vm574_vm14, %v1401_v9, %v1403_v33  ;;  %v1449_v59 = vrot.slane %v1442_v20, 6 }
 0x187   : > { %1361 = vrot.lane.b32.xlu0 %v1358_v19, %s5304_s27  ;;  %1359 = vrot.lane.b32.xlu1 %v1356_v44, %s5304_s27  ;;  %v1417_v44 = vmul.f32 %v1414_v54, %v5613_v10 }
 0x189   : > { %v5934_v30 = vpop.permute.xlu0 %1010  ;;  %v5938_v38 = vpop.permute.xlu1 %989 }
 0x18a   : > { %8197 = vst [vmem:[#allocation43_spill] sm:$0xff] %v5934_v30  ;;  %1380 = vrot.lane.b32.xlu2 %v1377_v42, %s5304_s27  ;;  %v1441_v42 = vmul.f32 %v1439_v36, %v5604_v16 }
 0x18b   : > { %8198 = vst [vmem:[#allocation44_spill] sm:$0xff] %v5938_v38 }
 0x18c   : > { %v1447_v54 = vrot.slane %v1441_v42, 6 }
 0x18d   : > { %v5947_v1 = vpop.permute.xlu2 %1065 }
 0x18e   : > { %8199 = vst [vmem:[#allocation45_spill] sm:$0xff] %v5947_v1  ;;  %v1450_v10 = vsel %vm611_vm15, %v1447_v54, %v1449_v59 }
 0x18f   : > { %1384 = vrot.lane.b32.xlu0 %v1378_v48, %s5304_s27  ;;  %1382 = vrot.lane.b32.xlu1 %v1379_v12, %s5304_s27  ;;  %v1424_v48 = vrot.slane %v1417_v44, 4  ;;  %v1446_v12 = vrot.slane %v1440_v37, 6  ;;  %v1494_v37 = vstv %s4775_s11  ;;  %s6134_s11 = sld [smem:[#allocation10 + $0x35]] }
 0x191   : > { %v5950_v18 = vpop.permute.xlu0 %1026  ;;  %v5954_v19 = vpop.permute.xlu1 %1024  ;;  %v1425_v16 = vsel %vm574_vm14, %v1422_v51, %v1424_v48  ;;  %v1448_v11 = vsel %vm611_vm15, %v1446_v12, %v1447_v54  ;;  %v1495_v12 = vmul.f32 %v1494_v37, %v5654_v3 }
 0x192   : > { %8200 = vst [vmem:[#allocation46_spill] sm:$0xff] %v5950_v18  ;;  %1405 = vrot.lane.b32.xlu2 %v1402_v22, %s5304_s27  ;;  %v1460_v22 = vstv %s4773_s7  ;;  %s4785_s7 = sld [smem:[#allocation10 + $0x27]] }
 0x193   : > { %8201 = vst [vmem:[#allocation47_spill] sm:$0xff] %v5954_v19  ;;  %v1462_v44 = vmul.f32 %v1460_v22, %v5662_v8  ;;  %v1461_v33 = vmul.f32 %v1460_v22, %v5654_v3 }
 0x195   : > { %v5963_v47 = vpop.permute.xlu2 %1088 }
 0x196   : > { %8202 = vst [vmem:[#allocation48_spill] sm:$0xff] %v5963_v47 }
 0x197   : > { %1426 = vrot.lane.b32.xlu0 %v1423_v27, %s5304_s27  ;;  %1407 = vrot.lane.b32.xlu1 %v1404_v56, %s5304_s27  ;;  %v1474_v27 = vstv %s4774_s9  ;;  %s4786_s9 = sld [smem:[#allocation10 + $0x2e]] }
 0x198   : > { %v1475_v56 = vmul.f32 %v1474_v27, %v5654_v3  ;;  %v1477_v20 = vmul.f32 %v1474_v27, %v5665_v15  ;;  %v1476_v22 = vmul.f32 %v1474_v27, %v5662_v8 }
 0x199   : > { %v5966_v57 = vpop.permute.xlu0 %1044  ;;  %v5969_v62 = vpop.permute.xlu1 %1042 }
 0x19a   : > { %8203 = vst [vmem:[#allocation49_spill] sm:$0xff] %v5966_v57  ;;  %1428 = vrot.lane.b32.xlu2 %v1425_v16, %s5304_s27  ;;  %v1496_v16 = vmul.f32 %v1494_v37, %v5662_v8 }
 0x19b   : > { %8204 = vst [vmem:[#allocation50_spill] sm:$0xff] %v5969_v62 }
 0x19d   : > { %v5976_v9 = vpop.permute.xlu2 %1113 }
 0x19e   : > { %8205 = vst [vmem:[#allocation51_spill] sm:$0xff] %v5976_v9 }
 0x19f   : > { %1451 = vrot.lane.b32.xlu0 %v1448_v11, %s5304_s27  ;;  %1430 = vrot.lane.b32.xlu1 %v1424_v48, %s5304_s27  ;;  %v1515_v48 = vstv %s4776_s8  ;;  %s4788_s8 = sld [smem:[#allocation10 + $0x3c]] }
 0x1a0   : > { %v1517_v11 = vmul.f32 %v1515_v48, %v5662_v8  ;;  %v1516_v59 = vmul.f32 %v1515_v48, %v5654_v3  ;;  %v1518_v27 = vmul.f32 %v1515_v48, %v5665_v15 }
 0x1a1   : > { %v5978_v21 = vpop.permute.xlu0 %1086  ;;  %v5981_v51 = vpop.permute.xlu1 %1067 }
 0x1a2   : > { %8206 = vst [vmem:[#allocation52_spill] sm:$0xff] %v5978_v21  ;;  %1453 = vrot.lane.b32.xlu2 %v1450_v10, %s5304_s27  ;;  %v1523_v9 = vrot.slane %v1517_v11, 2 }
 0x1a3   : > { %8207 = vst [vmem:[#allocation53_spill] sm:$0xff] %v5981_v51  ;;  %v1687_v51 = vstv %s4784_s5  ;;  %s4796_s5 = sld [smem:[#allocation10 + $0x13]] }
 0x1a5   : > { %v5988_v36 = vpop.permute.xlu2 %1136 }
 0x1a6   : > { %8208 = vst [vmem:[#allocation54_spill] sm:$0xff] %v5988_v36  ;;  %v1497_v36 = vmul.f32 %v1494_v37, %v5665_v15 }
 0x1a7   : > { %1467 = vrot.lane.b32.xlu0 %v1462_v44, %s5304_s27  ;;  %1465 = vrot.lane.b32.xlu1 %v1461_v33, %s5304_s27  ;;  %v1501_v44 = vrot.slane %v1495_v12, 2  ;;  %v1502_v33 = vrot.slane %v1496_v16, 2 }
 0x1a8   : > { %v1504_v21 = vrot.slane %v1497_v36, 2 }
 0x1a9   : > { %v5990_v42 = vpop.permute.xlu0 %1111  ;;  %v5994_v54 = vpop.permute.xlu1 %1090 }
 0x1aa   : > { %8209 = vst [vmem:[#allocation55_spill] sm:$0xff] %v5990_v42  ;;  %1481 = vrot.lane.b32.xlu2 %v1475_v56, %s5304_s27  ;;  %v1522_v56 = vrot.slane %v1516_v59, 2  ;;  %v1525_v59 = vrot.slane %v1518_v27, 2 }
 0x1ab   : > { %8210 = vst [vmem:[#allocation56_spill] sm:$0xff] %v5994_v54  ;;  %v1540_v54 = vstv %s4777_s10  ;;  %s4789_s10 = sld [smem:[#allocation10 + $0x43]] }
 0x1ac   : > { %v1524_v12 = vsel %vm537_vm13, %v1522_v56, %v1523_v9  ;;  %v1542_v16 = vmul.f32 %v1540_v54, %v5662_v8  ;;  %v1541_v37 = vmul.f32 %v1540_v54, %v5654_v3 }
 0x1ad   : > { %v6004_v10 = vpop.permute.xlu2 %1171 }
 0x1ae   : > { %8211 = vst [vmem:[#allocation57_spill] sm:$0xff] %v6004_v10  ;;  %v1548_v36 = vrot.slane %v1542_v16, 4  ;;  %v1547_v48 = vrot.slane %v1541_v37, 4 }
 0x1af   : > { %1485 = vrot.lane.b32.xlu0 %v1477_v20, %s5304_s27  ;;  %1483 = vrot.lane.b32.xlu1 %v1476_v22, %s5304_s27  ;;  %v1503_v20 = vsel %vm537_vm13, %v1501_v44, %v1502_v33  ;;  %v1505_v22 = vsel %vm537_vm13, %v1502_v33, %v1504_v21  ;;  %v1561_v44 = vstv %s4778_s1  ;;  %s4790_s1 = sld [smem:[#allocation10 + $0x4a]] }
 0x1b0   : > { %v1549_v27 = vsel %vm574_vm14, %v1547_v48, %v1548_v36  ;;  %v1564_v21 = vmul.f32 %v1561_v44, %v5665_v15  ;;  %v1563_v33 = vmul.f32 %v1561_v44, %v5662_v8 }
 0x1b1   : > { %v6006_v23 = vpop.permute.xlu0 %1134  ;;  %v6010_v2 = vpop.permute.xlu1 %1132 }
 0x1b2   : > { %8212 = vst [vmem:[#allocation58_spill] sm:$0xff] %v6006_v23  ;;  %1506 = vrot.lane.b32.xlu2 %v1503_v20, %s5304_s27  ;;  %v1526_v20 = vsel %vm537_vm13, %v1523_v9, %v1525_v59  ;;  %v1571_v9 = vrot.slane %v1564_v21, 4 }
 0x1b3   : > { %8213 = vst [vmem:[#allocation59_spill] sm:$0xff] %v6010_v2  ;;  %v1543_v2 = vmul.f32 %v1540_v54, %v5665_v15  ;;  %v1569_v54 = vrot.slane %v1563_v33, 4 }
 0x1b5   : > { %v6019_v11 = vpop.permute.xlu2 %1189  ;;  %v1550_v16 = vrot.slane %v1543_v2, 4 }
 0x1b6   : > { %8214 = vst [vmem:[#allocation60_spill] sm:$0xff] %v6019_v11 }
 0x1b7   : > { %1527 = vrot.lane.b32.xlu0 %v1524_v12, %s5304_s27  ;;  %1508 = vrot.lane.b32.xlu1 %v1505_v22, %s5304_s27  ;;  %v1562_v22 = vmul.f32 %v1561_v44, %v5654_v3  ;;  %v1551_v48 = vsel %vm574_vm14, %v1548_v36, %v1550_v16 }
 0x1b9   : > { %v6022_v23 = vpop.permute.xlu0 %1159  ;;  %v6025_v56 = vpop.permute.xlu1 %1157 }
 0x1ba   : > { %8215 = vst [vmem:[#allocation61_spill] sm:$0xff] %v6022_v23  ;;  %1529 = vrot.lane.b32.xlu2 %v1526_v20, %s5304_s27  ;;  %v1586_v20 = vstv %s4779_s23  ;;  %s4791_s23 = sld [smem:[#allocation10 + $0x51]] }
 0x1bb   : > { %8216 = vst [vmem:[#allocation62_spill] sm:$0xff] %v6025_v56  ;;  %v1568_v56 = vrot.slane %v1562_v22, 4  ;;  %v1588_v2 = vmul.f32 %v1586_v20, %v5662_v8  ;;  %v1587_v36 = vmul.f32 %v1586_v20, %v5654_v3 }
 0x1bd   : > { %v6034_v12 = vpop.permute.xlu2 %1214  ;;  %v1594_v33 = vrot.slane %v1588_v2, 6 }
 0x1be   : > { %8217 = vst [vmem:[#allocation63_spill] sm:$0xff] %v6034_v12  ;;  %v1589_v12 = vmul.f32 %v1586_v20, %v5665_v15  ;;  %v1593_v15 = vrot.slane %v1587_v36, 6  ;;  %v6076_v36 = vld [vmem:[#allocation2 + $0x8] sm:$0xff] }
 0x1bf   : > { %1552 = vrot.lane.b32.xlu0 %v1549_v27, %s5304_s27  ;;  %1531 = vrot.lane.b32.xlu1 %v1525_v59, %s5304_s27  ;;  %v1572_v27 = vsel %vm574_vm14, %v1569_v54, %v1571_v9  ;;  %v1570_v59 = vsel %vm574_vm14, %v1568_v56, %v1569_v54  ;;  %v1607_v54 = vstv %s6051_s26  ;;  %s4792_s26 = sld [smem:[#allocation10 + $0x58]] }
 0x1c0   : > { %v1596_v16 = vrot.slane %v1589_v12, 6  ;;  %v1595_v3 = vsel %vm611_vm15, %v1593_v15, %v1594_v33  ;;  %v1621_v12 = vstv %s4781_s6  ;;  %v1834_v42 = vstv %s4791_s23  ;;  %s4793_s6 = sld [smem:[#allocation10 + $0x5f]] }
 0x1c1   : > { %v6036_v37 = vpop.permute.xlu0 %1187  ;;  %v6040_v23 = vpop.permute.xlu1 %1173  ;;  %s4802_s23 = sld [smem:[#allocation10 + $0x3d]] }
 0x1c2   : > { %8218 = vst [vmem:[#allocation64_spill] sm:$0xff] %v6036_v37  ;;  %1554 = vrot.lane.b32.xlu2 %v1551_v48, %s5304_s27  ;;  %v1597_v56 = vsel %vm611_vm15, %v1594_v33, %v1596_v16  ;;  %v6069_v48 = vld [vmem:[#allocation2] sm:$0xff]  ;;  %v1609_v16 = vmul.f32 %v6076_v36, %v1607_v54 }
 0x1c3   : > { %8219 = vst [vmem:[#allocation65_spill] sm:$0xff] %v6040_v23  ;;  %v6090_v23 = vld [vmem:[#allocation2 + $0x10] sm:$0x3f] }
 0x1c5   : > { %v6048_v44 = vpop.permute.xlu2 %1237 }
 0x1c6   : > { %8220 = vst [vmem:[#allocation66_spill] sm:$0xff] %v6048_v44  ;;  %v1880_v57 = vstv %s4793_s6  ;;  %s4804_s6 = sld [smem:[#allocation10 + $0x4b]] }
 0x1c7   : > { %1575 = vrot.lane.b32.xlu0 %v1572_v27, %s5304_s27  ;;  %1573 = vrot.lane.b32.xlu1 %v1570_v59, %s5304_s27  ;;  %v1608_v27 = vmul.f32 %v6069_v48, %v1607_v54  ;;  %v1641_v59 = vstv %s4782_s30  ;;  %s4794_s30 = sld [smem:[#allocation10 + $0x5]] }
 0x1c8   : > { %v1643_v33 = vmul.f32 %v6076_v36, %v1641_v59  ;;  %v1642_v15 = vmul.f32 %v6069_v48, %v1641_v59 }
 0x1c9   : > { %v6053_v21 = vpop.permute.xlu0 %1212  ;;  %v6057_v8 = vpop.permute.xlu1 %1191 }
 0x1ca   : > { %8221 = vst [vmem:[#allocation67_spill] sm:$0xff] %v6053_v21  ;;  %1577 = vrot.lane.b32.xlu2 %v1571_v9, %s5304_s27  ;;  %v1622_v9 = vmul.f32 %v6069_v48, %v1621_v12  ;;  %v1649_v44 = vrot.slane %v1643_v33, 2  ;;  %v1624_v33 = vmul.f32 %v6090_v23, %v1621_v12 }
 0x1cb   : > { %8222 = vst [vmem:[#allocation68_spill] sm:$0xff] %v6057_v8  ;;  %v1623_v8 = vmul.f32 %v6076_v36, %v1621_v12 }
 0x1cd   : > { %v6062_v22 = vpop.permute.xlu2 %1279 }
 0x1ce   : > { %8223 = vst [vmem:[#allocation69_spill] sm:$0xff] %v6062_v22  ;;  %v1648_v22 = vrot.slane %v1642_v15, 2 }
 0x1cf   : > { %1600 = vrot.lane.b32.xlu0 %v1597_v56, %s5304_s27  ;;  %1598 = vrot.lane.b32.xlu1 %v1595_v3, %s5304_s27 }
 0x1d0   : > { %v1650_v54 = vsel %vm537_vm13, %v1648_v22, %v1649_v44 }
 0x1d1   : > { %v6066_v20 = vpop.permute.xlu0 %1235  ;;  %v6072_v2 = vpop.permute.xlu1 %1233 }
 0x1d2   : > { %8224 = vst [vmem:[#allocation70_spill] sm:$0xff] %v6066_v20  ;;  %1612 = vrot.lane.b32.xlu2 %v1608_v27, %s5305_s29  ;;  %v1662_v20 = vstv %s4783_s4  ;;  %s4795_s4 = sld [smem:[#allocation10 + $0xc]] }
 0x1d3   : > { %8225 = vst [vmem:[#allocation71_spill] sm:$0xff] %v6072_v2 }
 0x1d5   : > { %v6082_v56 = vpop.permute.xlu2 %1304 }
 0x1d6   : > { %8226 = vst [vmem:[#allocation72_spill] sm:$0xff] %v6082_v56 }
 0x1d7   : > { %1628 = vrot.lane.b32.xlu0 %v1622_v9, %s5305_s29  ;;  %1614 = vrot.lane.b32.xlu1 %v1609_v16, %s5305_s29  ;;  %v1644_v9 = vmul.f32 %v6090_v23, %v1641_v59  ;;  %v1664_v16 = vmul.f32 %v6076_v36, %v1662_v20 }
 0x1d9   : > { %v6084_v3 = vpop.permute.xlu0 %1260  ;;  %v6088_v27 = vpop.permute.xlu1 %1258  ;;  %v1651_v15 = vrot.slane %v1644_v9, 2  ;;  %v1670_v47 = vrot.slane %v1664_v16, 2  ;;  %v1689_v9 = vmul.f32 %v6076_v36, %v1687_v51 }
 0x1da   : > { %8227 = vst [vmem:[#allocation73_spill] sm:$0xff] %v6084_v3  ;;  %1630 = vrot.lane.b32.xlu2 %v1623_v8, %s5305_s29  ;;  %v1665_v3 = vmul.f32 %v6090_v23, %v1662_v20  ;;  %v1663_v8 = vmul.f32 %v6069_v48, %v1662_v20 }
 0x1db   : > { %8228 = vst [vmem:[#allocation74_spill] sm:$0xff] %v6088_v27  ;;  %v1652_v11 = vsel %vm537_vm13, %v1649_v44, %v1651_v15  ;;  %v1695_v44 = vrot.slane %v1689_v9, 4 }
 0x1dc   : > { %v1672_v59 = vrot.slane %v1665_v3, 2  ;;  %v1669_v3 = vrot.slane %v1663_v8, 2 }
 0x1dd   : > { %v6099_v2 = vpop.permute.xlu2 %1320 }
 0x1de   : > { %8229 = vst [vmem:[#allocation75_spill] sm:$0xff] %v6099_v2  ;;  %v1673_v12 = vsel %vm537_vm13, %v1670_v47, %v1672_v59  ;;  %v1671_v20 = vsel %vm537_vm13, %v1669_v3, %v1670_v47 }
 0x1df   : > { %1653 = vrot.lane.b32.xlu0 %v1650_v54, %s5305_s29  ;;  %1632 = vrot.lane.b32.xlu1 %v1624_v33, %s5305_s29  ;;  %v1690_v54 = vmul.f32 %v6090_v23, %v1687_v51 }
 0x1e1   : > { %v6101_v37 = vpop.permute.xlu0 %1283  ;;  %v6105_v22 = vpop.permute.xlu1 %1281  ;;  %v1697_v15 = vrot.slane %v1690_v54, 4 }
 0x1e2   : > { %8230 = vst [vmem:[#allocation76_spill] sm:$0xff] %v6101_v37  ;;  %1655 = vrot.lane.b32.xlu2 %v1652_v11, %s5305_s29  ;;  %v1688_v11 = vmul.f32 %v6069_v48, %v1687_v51  ;;  %v1708_v37 = vstv %s4785_s7  ;;  %s4797_s7 = sld [smem:[#allocation10 + $0x1a]] }
 0x1e3   : > { %8231 = vst [vmem:[#allocation77_spill] sm:$0xff] %v6105_v22  ;;  %v1710_v22 = vmul.f32 %v6076_v36, %v1708_v37  ;;  %v1698_v8 = vsel %vm574_vm14, %v1695_v44, %v1697_v15  ;;  %v1709_v47 = vmul.f32 %v6069_v48, %v1708_v37  ;;  %v1733_v15 = vstv %s4786_s9  ;;  %s5306_s9 = smov 123  }
 0x1e5   : > { %v6113_v16 = vpop.permute.xlu2 %1338  ;;  %v1716_v9 = vrot.slane %v1710_v22, 4 }
 0x1e6   : > { %8232 = vst [vmem:[#allocation78_spill] sm:$0xff] %v6113_v16 }
 0x1e7   : > { %1676 = vrot.lane.b32.xlu0 %v1673_v12, %s5305_s29  ;;  %1674 = vrot.lane.b32.xlu1 %v1671_v20, %s5305_s29  ;;  %v1694_v12 = vrot.slane %v1688_v11, 4  ;;  %v1711_v20 = vmul.f32 %v6090_v23, %v1708_v37 }
 0x1e9   : > { %v6116_v33 = vpop.permute.xlu0 %1318  ;;  %v6120_v2 = vpop.permute.xlu1 %1306  ;;  %v1696_v51 = vsel %vm574_vm14, %v1694_v12, %v1695_v44  ;;  %v1718_v22 = vrot.slane %v1711_v20, 4  ;;  %v1734_v44 = vmul.f32 %v6069_v48, %v1733_v15 }
 0x1ea   : > { %8233 = vst [vmem:[#allocation79_spill] sm:$0xff] %v6116_v33  ;;  %1678 = vrot.lane.b32.xlu2 %v1672_v59, %s5305_s29  ;;  %v1715_v59 = vrot.slane %v1709_v47, 4 }
 0x1eb   : > { %8234 = vst [vmem:[#allocation80_spill] sm:$0xff] %v6120_v2  ;;  %v1736_v2 = vmul.f32 %v6090_v23, %v1733_v15  ;;  %v1740_v20 = vrot.slane %v1734_v44, 6  ;;  %v1768_v44 = vstv %s4788_s8  ;;  %s4799_s8 = sld [smem:[#allocation10 + $0x28]] }
 0x1ec   : > { %v1717_v11 = vsel %vm574_vm14, %v1715_v59, %v1716_v9  ;;  %v1754_v59 = vstv %s6134_s11  ;;  %s4798_s11 = sld [smem:[#allocation10 + $0x21]] }
 0x1ed   : > { %v6127_v3 = vpop.permute.xlu2 %1380 }
 0x1ee   : > { %8235 = vst [vmem:[#allocation81_spill] sm:$0xff] %v6127_v3 }
 0x1ef   : > { %1701 = vrot.lane.b32.xlu0 %v1698_v8, %s5305_s29  ;;  %1699 = vrot.lane.b32.xlu1 %v1696_v51, %s5305_s29  ;;  %v1735_v8 = vmul.f32 %v6076_v36, %v1733_v15  ;;  %v1719_v51 = vsel %vm574_vm14, %v1716_v9, %v1718_v22 }
 0x1f1   : > { %v6130_v54 = vpop.permute.xlu0 %1336  ;;  %v6136_v16 = vpop.permute.xlu1 %1334  ;;  %v1741_v12 = vrot.slane %v1735_v8, 6 }
 0x1f2   : > { %8236 = vst [vmem:[#allocation82_spill] sm:$0xff] %v6130_v54  ;;  %1720 = vrot.lane.b32.xlu2 %v1717_v11, %s5305_s29  ;;  %v6154_v54 = vld [vmem:[#allocation2 + $0x18] sm:$0xff] }
 0x1f3   : > { %8237 = vst [vmem:[#allocation83_spill] sm:$0xff] %v6136_v16  ;;  %v1742_v3 = vsel %vm611_vm15, %v1740_v20, %v1741_v12  ;;  %v1755_v8 = vmul.f32 %v6154_v54, %v1754_v59  ;;  %v6165_v20 = vld [vmem:[#allocation2 + $0x20] sm:$0xff] }
 0x1f5   : > { %v6143_v37 = vpop.permute.xlu2 %1405 }
 0x1f6   : > { %8238 = vst [vmem:[#allocation84_spill] sm:$0xff] %v6143_v37  ;;  %v1743_v37 = vrot.slane %v1736_v2, 6 }
 0x1f7   : > { %1724 = vrot.lane.b32.xlu0 %v1718_v22, %s5305_s29  ;;  %1722 = vrot.lane.b32.xlu1 %v1719_v51, %s5305_s29  ;;  %v1788_v51 = vstv %s4789_s10  ;;  %s4800_s10 = sld [smem:[#allocation10 + $0x2f]] }
 0x1f8   : > { %v1744_v15 = vsel %vm611_vm15, %v1741_v12, %v1743_v37  ;;  %v6173_v37 = vld [vmem:[#allocation2 + $0x28] sm:$0x3f] }
 0x1f9   : > { %v6146_v47 = vpop.permute.xlu0 %1361  ;;  %v6151_v11 = vpop.permute.xlu1 %1359  ;;  %v1791_v12 = vmul.f32 %v6173_v37, %v1788_v51 }
 0x1fa   : > { %8239 = vst [vmem:[#allocation85_spill] sm:$0xff] %v6146_v47  ;;  %1745 = vrot.lane.b32.xlu2 %v1742_v3, %s5305_s29  ;;  %v1756_v47 = vmul.f32 %v6165_v20, %v1754_v59  ;;  %v1770_v3 = vmul.f32 %v6165_v20, %v1768_v44  ;;  %v1789_v59 = vmul.f32 %v6154_v54, %v1788_v51 }
 0x1fb   : > { %8240 = vst [vmem:[#allocation86_spill] sm:$0xff] %v6151_v11  ;;  %v1798_v16 = vrot.slane %v1791_v12, 2  ;;  %v1771_v11 = vmul.f32 %v6173_v37, %v1768_v44 }
 0x1fd   : > { %v6159_v9 = vpop.permute.xlu2 %1428 }
 0x1fe   : > { %8241 = vst [vmem:[#allocation87_spill] sm:$0xff] %v6159_v9 }
 0x1ff   : > { %1759 = vrot.lane.b32.xlu0 %v1755_v8, %s5305_s29  ;;  %1747 = vrot.lane.b32.xlu1 %v1744_v15, %s5305_s29  ;;  %v1790_v8 = vmul.f32 %v6165_v20, %v1788_v51  ;;  %v1769_v15 = vmul.f32 %v6154_v54, %v1768_v44 }
 0x201   : > { %v6162_v22 = vpop.permute.xlu0 %1384  ;;  %v6168_v2 = vpop.permute.xlu1 %1382 }
 0x202   : > { %8242 = vst [vmem:[#allocation88_spill] sm:$0xff] %v6162_v22  ;;  %1761 = vrot.lane.b32.xlu2 %v1756_v47, %s5305_s29  ;;  %v1796_v47 = vrot.slane %v1790_v8, 2 }
 0x203   : > { %8243 = vst [vmem:[#allocation89_spill] sm:$0xff] %v6168_v2  ;;  %v1809_v2 = vstv %s4790_s1  ;;  %s4801_s1 = sld [smem:[#allocation10 + $0x36]] }
 0x204   : > { %v1811_v56 = vmul.f32 %v6165_v20, %v1809_v2  ;;  %v1799_v51 = vsel %vm537_vm13, %v1796_v47, %v1798_v16 }
 0x205   : > { %v6178_v22 = vpop.permute.xlu2 %1453 }
 0x206   : > { %8244 = vst [vmem:[#allocation90_spill] sm:$0xff] %v6178_v22  ;;  %v1795_v22 = vrot.slane %v1789_v59, 2  ;;  %v1817_v12 = vrot.slane %v1811_v56, 2  ;;  %v1855_v59 = vstv %s4792_s26  ;;  %s4803_s26 = sld [smem:[#allocation10 + $0x44]] }
 0x207   : > { %1777 = vrot.lane.b32.xlu0 %v1770_v3, %s5305_s29  ;;  %1775 = vrot.lane.b32.xlu1 %v1769_v15, %s5305_s29  ;;  %v1810_v3 = vmul.f32 %v6154_v54, %v1809_v2  ;;  %v1858_v38 = vmul.f32 %v6173_v37, %v1855_v59 }
 0x209   : > { %v6180_v9 = vpop.permute.xlu0 %1426  ;;  %v6185_v33 = vpop.permute.xlu1 %1407  ;;  %v1816_v8 = vrot.slane %v1810_v3, 2  ;;  %v1836_v3 = vmul.f32 %v6165_v20, %v1834_v42 }
 0x20a   : > { %8245 = vst [vmem:[#allocation91_spill] sm:$0xff] %v6180_v9  ;;  %1779 = vrot.lane.b32.xlu2 %v1771_v11, %s5305_s29  ;;  %v1797_v9 = vsel %vm537_vm13, %v1795_v22, %v1796_v47  ;;  %v1857_v22 = vmul.f32 %v6165_v20, %v1855_v59 }
 0x20b   : > { %8246 = vst [vmem:[#allocation92_spill] sm:$0xff] %v6185_v33  ;;  %v1812_v33 = vmul.f32 %v6173_v37, %v1809_v2  ;;  %v1818_v16 = vsel %vm537_vm13, %v1816_v8, %v1817_v12  ;;  %v1856_v2 = vmul.f32 %v6154_v54, %v1855_v59 }
 0x20d   : > { %v6192_v15 = vpop.permute.xlu2 %1481  ;;  %v1819_v56 = vrot.slane %v1812_v33, 2  ;;  %v1863_v33 = vrot.slane %v1857_v22, 4 }
 0x20e   : > { %8247 = vst [vmem:[#allocation93_spill] sm:$0xff] %v6192_v15  ;;  %v1837_v15 = vmul.f32 %v6173_v37, %v1834_v42 }
 0x20f   : > { %1802 = vrot.lane.b32.xlu0 %v1799_v51, %s5305_s29  ;;  %1800 = vrot.lane.b32.xlu1 %v1797_v9, %s5305_s29  ;;  %v1835_v51 = vmul.f32 %v6154_v54, %v1834_v42  ;;  %v1881_v42 = vmul.f32 %v6154_v54, %v1880_v57 }
 0x211   : > { %v6195_v44 = vpop.permute.xlu0 %1451  ;;  %v6199_v11 = vpop.permute.xlu1 %1430  ;;  %v1841_v47 = vrot.slane %v1835_v51, 4  ;;  %v1882_v51 = vmul.f32 %v6165_v20, %v1880_v57  ;;  %v1887_v59 = vrot.slane %v1881_v42, 6 }
 0x212   : > { %8248 = vst [vmem:[#allocation94_spill] sm:$0xff] %v6195_v44  ;;  %1821 = vrot.lane.b32.xlu2 %v1818_v16, %s5305_s29  ;;  %v1842_v44 = vrot.slane %v1836_v3, 4  ;;  %v1862_v16 = vrot.slane %v1856_v2, 4  ;;  %v1865_v3 = vrot.slane %v1858_v38, 4 }
 0x213   : > { %8249 = vst [vmem:[#allocation95_spill] sm:$0xff] %v6199_v11  ;;  %v1820_v11 = vsel %vm537_vm13, %v1817_v12, %v1819_v56 }
 0x214   : > { %v1843_v18 = vsel %vm574_vm14, %v1841_v47, %v1842_v44  ;;  %v1864_v12 = vsel %vm574_vm14, %v1862_v16, %v1863_v33  ;;  %v1866_v2 = vsel %vm574_vm14, %v1863_v33, %v1865_v3  ;;  %v1883_v47 = vmul.f32 %v6173_v37, %v1880_v57 }
 0x215   : > { %v6208_v9 = vpop.permute.xlu2 %1506 }
 0x216   : > { %8250 = vst [vmem:[#allocation96_spill] sm:$0xff] %v6208_v9  ;;  %v1844_v9 = vrot.slane %v1837_v15, 4  ;;  %v1888_v15 = vrot.slane %v1882_v51, 6  ;;  %v1901_v51 = vstv %s4794_s30  ;;  %s4805_s30 = sld [smem:[#allocation10 + $0x52]] }
 0x217   : > { %1825 = vrot.lane.b32.xlu0 %v1819_v56, %s5305_s29  ;;  %1823 = vrot.lane.b32.xlu1 %v1820_v11, %s5305_s29  ;;  %v1903_v33 = vmul.f32 %v6076_v36, %v1901_v51  ;;  %v1902_v42 = vmul.f32 %v6069_v48, %v1901_v51 }
 0x218   : > { %v1845_v56 = vsel %vm574_vm14, %v1842_v44, %v1844_v9  ;;  %v1889_v16 = vsel %vm611_vm15, %v1887_v59, %v1888_v15  ;;  %v1890_v44 = vrot.slane %v1883_v47, 6  ;;  %v1915_v59 = vstv %s4795_s4  ;;  %s4806_s4 = sld [smem:[#allocation10 + $0x59]] }
 0x219   : > { %v6211_v8 = vpop.permute.xlu0 %1467  ;;  %v6215_v40 = vpop.permute.xlu1 %1465 }
 0x21a   : > { %8251 = vst [vmem:[#allocation97_spill] sm:$0xff] %v6211_v8  ;;  %1846 = vrot.lane.b32.xlu2 %v1843_v18, %s5305_s29  ;;  %v1891_v57 = vsel %vm611_vm15, %v1888_v15, %v1890_v44  ;;  %v1935_v15 = vstv %s4796_s5  ;;  %v1918_v44 = vmul.f32 %v6090_v23, %v1915_v59  ;;  %s4807_s5 = sld [smem:[#allocation10 + $0x60]] }
 0x21b   : > { %8252 = vst [vmem:[#allocation98_spill] sm:$0xff] %v6215_v40 }
 0x21d   : > { %v6224_v11 = vpop.permute.xlu2 %1529 }
 0x21e   : > { %8253 = vst [vmem:[#allocation99_spill] sm:$0xff] %v6224_v11 }
 0x21f   : > { %1867 = vrot.lane.b32.xlu0 %v1864_v12, %s5305_s29  ;;  %1848 = vrot.lane.b32.xlu1 %v1845_v56, %s5305_s29 }
 0x221   : > { %v6227_v22 = vpop.permute.xlu0 %1485  ;;  %v6230_v18 = vpop.permute.xlu1 %1483 }
 0x222   : > { %8254 = vst [vmem:[#allocation100_spill] sm:$0xff] %v6227_v22  ;;  %1869 = vrot.lane.b32.xlu2 %v1866_v2, %s5305_s29  ;;  %v1916_v2 = vmul.f32 %v6069_v48, %v1915_v59 }
 0x223   : > { %8255 = vst [vmem:[#allocation101_spill] sm:$0xff] %v6230_v18  ;;  %v1981_v18 = vstv %s4798_s11  ;;  %s4809_s11 = sld [smem:[#allocation10 + $0xd]] }
 0x225   : > { %v6237_v38 = vpop.permute.xlu2 %1554 }
 0x226   : > { %8256 = vst [vmem:[#allocation102_spill] sm:$0xff] %v6237_v38 }
 0x227   : > { %1892 = vrot.lane.b32.xlu0 %v1889_v16, %s5305_s29  ;;  %1871 = vrot.lane.b32.xlu1 %v1865_v3, %s5305_s29  ;;  %v1937_v16 = vmul.f32 %v6076_v36, %v1935_v15 }
 0x229   : > { %v6239_v9 = vpop.permute.xlu0 %1527  ;;  %v6242_v12 = vpop.permute.xlu1 %1508 }
 0x22a   : > { %8257 = vst [vmem:[#allocation103_spill] sm:$0xff] %v6239_v9  ;;  %1894 = vrot.lane.b32.xlu2 %v1891_v57, %s5305_s29  ;;  %v1956_v57 = vstv %s4797_s7  ;;  %s4808_s7 = sld [smem:[#allocation10 + $0x6]] }
 0x22b   : > { %8258 = vst [vmem:[#allocation104_spill] sm:$0xff] %v6242_v12  ;;  %v1958_v51 = vmul.f32 %v6076_v36, %v1956_v57  ;;  %v1938_v12 = vmul.f32 %v6090_v23, %v1935_v15 }
 0x22d   : > { %v6249_v56 = vpop.permute.xlu2 %1577 }
 0x22e   : > { %8259 = vst [vmem:[#allocation105_spill] sm:$0xff] %v6249_v56  ;;  %v1957_v56 = vmul.f32 %v6069_v48, %v1956_v57 }
 0x22f   : > { %1908 = vrot.lane.b32.xlu0 %v1903_v33, %s5306_s9  ;;  %1906 = vrot.lane.b32.xlu1 %v1902_v42, %s5306_s9  ;;  %v1936_v33 = vmul.f32 %v6069_v48, %v1935_v15  ;;  %v1917_v42 = vmul.f32 %v6076_v36, %v1915_v59  ;;  %v1959_v59 = vmul.f32 %v6090_v23, %v1956_v57 }
 0x230   : > { %v1963_v9 = vrot.slane %v1957_v56, 2  ;;  %v1983_v15 = vmul.f32 %v6076_v36, %v1981_v18 }
 0x231   : > { %v6251_v3 = vpop.permute.xlu0 %1552  ;;  %v6255_v47 = vpop.permute.xlu1 %1531  ;;  %v1942_v8 = vrot.slane %v1936_v33, 2  ;;  %v1966_v56 = vrot.slane %v1959_v59, 2 }
 0x232   : > { %8260 = vst [vmem:[#allocation106_spill] sm:$0xff] %v6251_v3  ;;  %1922 = vrot.lane.b32.xlu2 %v1916_v2, %s5306_s9  ;;  %v1964_v2 = vrot.slane %v1958_v51, 2  ;;  %v1945_v3 = vrot.slane %v1938_v12, 2  ;;  %v1982_v51 = vmul.f32 %v6069_v48, %v1981_v18  ;;  %v1989_v12 = vrot.slane %v1983_v15, 4 }
 0x233   : > { %8261 = vst [vmem:[#allocation107_spill] sm:$0xff] %v6255_v47  ;;  %v1943_v47 = vrot.slane %v1937_v16, 2 }
 0x234   : > { %v1965_v16 = vsel %vm537_vm13, %v1963_v9, %v1964_v2  ;;  %v1967_v9 = vsel %vm537_vm13, %v1964_v2, %v1966_v56 }
 0x235   : > { %v6265_v38 = vpop.permute.xlu2 %1612 }
 0x236   : > { %8262 = vst [vmem:[#allocation108_spill] sm:$0xff] %v6265_v38  ;;  %v1984_v38 = vmul.f32 %v6090_v23, %v1981_v18 }
 0x237   : > { %1926 = vrot.lane.b32.xlu0 %v1918_v44, %s5306_s9  ;;  %1924 = vrot.lane.b32.xlu1 %v1917_v42, %s5306_s9  ;;  %v1944_v44 = vsel %vm537_vm13, %v1942_v8, %v1943_v47  ;;  %v1946_v8 = vsel %vm537_vm13, %v1943_v47, %v1945_v3 }
 0x239   : > { %v6267_v22 = vpop.permute.xlu0 %1575  ;;  %v6271_v11 = vpop.permute.xlu1 %1573 }
 0x23a   : > { %8263 = vst [vmem:[#allocation109_spill] sm:$0xff] %v6267_v22  ;;  %1947 = vrot.lane.b32.xlu2 %v1944_v44, %s5306_s9  ;;  %v1988_v44 = vrot.slane %v1982_v51, 4 }
 0x23b   : > { %8264 = vst [vmem:[#allocation110_spill] sm:$0xff] %v6271_v11 }
 0x23c   : > { %v1990_v59 = vsel %vm574_vm14, %v1988_v44, %v1989_v12 }
 0x23d   : > { %v6280_v33 = vpop.permute.xlu2 %1630 }
 0x23e   : > { %8265 = vst [vmem:[#allocation111_spill] sm:$0xff] %v6280_v33  ;;  %v2027_v33 = vstv %s4800_s10  ;;  %s5307_s10 = smov 122  }
 0x23f   : > { %1968 = vrot.lane.b32.xlu0 %v1965_v16, %s5306_s9  ;;  %1949 = vrot.lane.b32.xlu1 %v1946_v8, %s5306_s9  ;;  %v2002_v16 = vstv %s4799_s8  ;;  %v1991_v8 = vrot.slane %v1984_v38, 4  ;;  %v2030_v38 = vmul.f32 %v6090_v23, %v2027_v33  ;;  %s4810_s8 = sld [smem:[#allocation10 + $0x14]] }
 0x240   : > { %v2005_v3 = vmul.f32 %v6090_v23, %v2002_v16  ;;  %v2004_v47 = vmul.f32 %v6076_v36, %v2002_v16 }
 0x241   : > { %v6283_v42 = vpop.permute.xlu0 %1600  ;;  %v6286_v57 = vpop.permute.xlu1 %1598  ;;  %v1992_v44 = vsel %vm574_vm14, %v1989_v12, %v1991_v8  ;;  %v2028_v8 = vmul.f32 %v6069_v48, %v2027_v33 }
 0x242   : > { %8266 = vst [vmem:[#allocation112_spill] sm:$0xff] %v6283_v42  ;;  %1970 = vrot.lane.b32.xlu2 %v1967_v9, %s5306_s9  ;;  %v2012_v18 = vrot.slane %v2005_v3, 4  ;;  %v2010_v2 = vrot.slane %v2004_v47, 4  ;;  %v2003_v42 = vmul.f32 %v6069_v48, %v2002_v16  ;;  %v2037_v47 = vrot.slane %v2030_v38, 6 }
 0x243   : > { %8267 = vst [vmem:[#allocation113_spill] sm:$0xff] %v6286_v57  ;;  %v2082_v38 = vstv %s4803_s26  ;;  %s4813_s26 = sld [smem:[#allocation10 + $0x29]] }
 0x245   : > { %v6295_v15 = vpop.permute.xlu2 %1655 }
 0x246   : > { %8268 = vst [vmem:[#allocation114_spill] sm:$0xff] %v6295_v15  ;;  %v2029_v15 = vmul.f32 %v6076_v36, %v2027_v33  ;;  %v2062_v33 = vstv %s4802_s23  ;;  %s4812_s23 = sld [smem:[#allocation10 + $0x22]] }
 0x247   : > { %1993 = vrot.lane.b32.xlu0 %v1990_v59, %s5306_s9  ;;  %1972 = vrot.lane.b32.xlu1 %v1966_v56, %s5306_s9  ;;  %v2013_v59 = vsel %vm574_vm14, %v2010_v2, %v2012_v18 }
 0x248   : > { %v2035_v12 = vrot.slane %v2029_v15, 6 }
 0x249   : > { %v6297_v51 = vpop.permute.xlu0 %1628  ;;  %v6301_v9 = vpop.permute.xlu1 %1614  ;;  %v2296_v11 = vstv %s4813_s26  ;;  %s4838_s26 = sld [smem:[#allocation10 + $0x63]] }
 0x24a   : > { %8269 = vst [vmem:[#allocation115_spill] sm:$0xff] %v6297_v51  ;;  %1995 = vrot.lane.b32.xlu2 %v1992_v44, %s5306_s9  ;;  %v2009_v51 = vrot.slane %v2003_v42, 4  ;;  %v2038_v42 = vsel %vm611_vm15, %v2035_v12, %v2037_v47  ;;  %v2063_v47 = vmul.f32 %v6154_v54, %v2062_v33  ;;  %v2299_v57 = vmul.f32 %v6090_v23, %v2296_v11 }
 0x24b   : > { %8270 = vst [vmem:[#allocation116_spill] sm:$0xff] %v6301_v9 }
 0x24c   : > { %v2011_v16 = vsel %vm574_vm14, %v2009_v51, %v2010_v2  ;;  %v2048_v2 = vstv %s4801_s1  ;;  %s4811_s1 = sld [smem:[#allocation10 + $0x1b]] }
 0x24d   : > { %v6309_v56 = vpop.permute.xlu2 %1678 }
 0x24e   : > { %8271 = vst [vmem:[#allocation117_spill] sm:$0xff] %v6309_v56  ;;  %v2049_v56 = vmul.f32 %v6154_v54, %v2048_v2 }
 0x24f   : > { %2016 = vrot.lane.b32.xlu0 %v2013_v59, %s5306_s9  ;;  %2014 = vrot.lane.b32.xlu1 %v2011_v16, %s5306_s9  ;;  %v2034_v59 = vrot.slane %v2028_v8, 6  ;;  %v2084_v8 = vmul.f32 %v6165_v20, %v2082_v38 }
 0x251   : > { %v6312_v3 = vpop.permute.xlu0 %1653  ;;  %v6316_v44 = vpop.permute.xlu1 %1632  ;;  %v2036_v16 = vsel %vm611_vm15, %v2034_v59, %v2035_v12  ;;  %v2050_v12 = vmul.f32 %v6165_v20, %v2048_v2 }
 0x252   : > { %8272 = vst [vmem:[#allocation118_spill] sm:$0xff] %v6312_v3  ;;  %2018 = vrot.lane.b32.xlu2 %v2012_v18, %s5306_s9 }
 0x253   : > { %8273 = vst [vmem:[#allocation119_spill] sm:$0xff] %v6316_v44  ;;  %v2090_v44 = vrot.slane %v2084_v8, 2  ;;  %v2065_v8 = vmul.f32 %v6173_v37, %v2062_v33 }
 0x255   : > { %v6321_v51 = vpop.permute.xlu2 %1720 }
 0x256   : > { %8274 = vst [vmem:[#allocation120_spill] sm:$0xff] %v6321_v51  ;;  %v2103_v51 = vstv %s4804_s6  ;;  %s4814_s6 = sld [smem:[#allocation10 + $0x30]] }
 0x257   : > { %2041 = vrot.lane.b32.xlu0 %v2038_v42, %s5306_s9  ;;  %2039 = vrot.lane.b32.xlu1 %v2036_v16, %s5306_s9  ;;  %v2083_v42 = vmul.f32 %v6154_v54, %v2082_v38 }
 0x259   : > { %v6324_v15 = vpop.permute.xlu0 %1676  ;;  %v6328_v18 = vpop.permute.xlu1 %1674  ;;  %v2089_v9 = vrot.slane %v2083_v42, 2 }
 0x25a   : > { %8275 = vst [vmem:[#allocation121_spill] sm:$0xff] %v6324_v15  ;;  %2053 = vrot.lane.b32.xlu2 %v2049_v56, %s5306_s9  ;;  %v2064_v56 = vmul.f32 %v6165_v20, %v2062_v33 }
 0x25b   : > { %8276 = vst [vmem:[#allocation122_spill] sm:$0xff] %v6328_v18  ;;  %v2085_v18 = vmul.f32 %v6173_v37, %v2082_v38  ;;  %v2091_v2 = vsel %vm537_vm13, %v2089_v9, %v2090_v44  ;;  %v2128_v9 = vstv %s4805_s30  ;;  %s4815_s30 = sld [smem:[#allocation10 + $0x37]] }
 0x25d   : > { %v6336_v59 = vpop.permute.xlu2 %1745 }
 0x25e   : > { %8277 = vst [vmem:[#allocation123_spill] sm:$0xff] %v6336_v59 }
 0x25f   : > { %2069 = vrot.lane.b32.xlu0 %v2063_v47, %s5306_s9  ;;  %2055 = vrot.lane.b32.xlu1 %v2050_v12, %s5306_s9  ;;  %v2106_v47 = vmul.f32 %v6173_v37, %v2103_v51  ;;  %v2092_v12 = vrot.slane %v2085_v18, 2  ;;  %v2130_v18 = vmul.f32 %v6165_v20, %v2128_v9 }
 0x261   : > { %v6338_v16 = vpop.permute.xlu0 %1701  ;;  %v6342_v15 = vpop.permute.xlu1 %1699  ;;  %v2113_v38 = vrot.slane %v2106_v47, 2  ;;  %v2093_v22 = vsel %vm537_vm13, %v2090_v44, %v2092_v12  ;;  %v2149_v44 = vstv %s4806_s4  ;;  %s4816_s4 = sld [smem:[#allocation10 + $0x3e]] }
 0x262   : > { %8278 = vst [vmem:[#allocation124_spill] sm:$0xff] %v6338_v16  ;;  %2071 = vrot.lane.b32.xlu2 %v2064_v56, %s5306_s9  ;;  %v2105_v16 = vmul.f32 %v6165_v20, %v2103_v51 }
 0x263   : > { %8279 = vst [vmem:[#allocation125_spill] sm:$0xff] %v6342_v15  ;;  %v2104_v15 = vmul.f32 %v6154_v54, %v2103_v51 }
 0x264   : > { %v2111_v56 = vrot.slane %v2105_v16, 2 }
 0x265   : > { %v6351_v42 = vpop.permute.xlu2 %1761 }
 0x266   : > { %8280 = vst [vmem:[#allocation126_spill] sm:$0xff] %v6351_v42  ;;  %v2114_v33 = vsel %vm537_vm13, %v2111_v56, %v2113_v38  ;;  %v2150_v42 = vmul.f32 %v6154_v54, %v2149_v44 }
 0x267   : > { %2094 = vrot.lane.b32.xlu0 %v2091_v2, %s5306_s9  ;;  %2073 = vrot.lane.b32.xlu1 %v2065_v8, %s5306_s9  ;;  %v2110_v2 = vrot.slane %v2104_v15, 2  ;;  %v2129_v8 = vmul.f32 %v6154_v54, %v2128_v9 }
 0x269   : > { %v6353_v59 = vpop.permute.xlu0 %1724  ;;  %v6357_v3 = vpop.permute.xlu1 %1722  ;;  %v2112_v16 = vsel %vm537_vm13, %v2110_v2, %v2111_v56  ;;  %v2156_v2 = vrot.slane %v2150_v42, 4 }
 0x26a   : > { %8281 = vst [vmem:[#allocation127_spill] sm:$0xff] %v6353_v59  ;;  %2096 = vrot.lane.b32.xlu2 %v2093_v22, %s5306_s9  ;;  %v2131_v59 = vmul.f32 %v6173_v37, %v2128_v9  ;;  %v2136_v22 = vrot.slane %v2130_v18, 4 }
 0x26b   : > { %8282 = vst [vmem:[#allocation128_spill] sm:$0xff] %v6357_v3  ;;  %v2135_v3 = vrot.slane %v2129_v8, 4 }
 0x26c   : > { %v2138_v15 = vrot.slane %v2131_v59, 4 }
 0x26d   : > { %v6365_v51 = vpop.permute.xlu2 %1779  ;;  %v2137_v59 = vsel %vm574_vm14, %v2135_v3, %v2136_v22 }
 0x26e   : > { %8283 = vst [vmem:[#allocation129_spill] sm:$0xff] %v6365_v51  ;;  %v2139_v56 = vsel %vm574_vm14, %v2136_v22, %v2138_v15  ;;  %v2174_v51 = vstv %s4807_s5  ;;  %s4817_s5 = sld [smem:[#allocation10 + $0x45]] }
 0x26f   : > { %2117 = vrot.lane.b32.xlu0 %v2114_v33, %s5306_s9  ;;  %2115 = vrot.lane.b32.xlu1 %v2112_v16, %s5306_s9  ;;  %v2151_v33 = vmul.f32 %v6165_v20, %v2149_v44  ;;  %v2175_v15 = vmul.f32 %v6154_v54, %v2174_v51 }
 0x271   : > { %v6368_v47 = vpop.permute.xlu0 %1759  ;;  %v6372_v12 = vpop.permute.xlu1 %1747  ;;  %v2157_v16 = vrot.slane %v2151_v33, 4 }
 0x272   : > { %8284 = vst [vmem:[#allocation130_spill] sm:$0xff] %v6368_v47  ;;  %2119 = vrot.lane.b32.xlu2 %v2113_v38, %s5306_s9 }
 0x273   : > { %8285 = vst [vmem:[#allocation131_spill] sm:$0xff] %v6372_v12  ;;  %v2152_v12 = vmul.f32 %v6173_v37, %v2149_v44  ;;  %v2158_v38 = vsel %vm574_vm14, %v2156_v2, %v2157_v16  ;;  %v2181_v44 = vrot.slane %v2175_v15, 6  ;;  %v2195_v2 = vstv %s4808_s7  ;;  %s4818_s7 = sld [smem:[#allocation10 + $0x4c]] }
 0x275   : > { %v6379_v9 = vpop.permute.xlu2 %1821  ;;  %v2159_v42 = vrot.slane %v2152_v12, 4 }
 0x276   : > { %8286 = vst [vmem:[#allocation132_spill] sm:$0xff] %v6379_v9  ;;  %v2177_v9 = vmul.f32 %v6173_v37, %v2174_v51 }
 0x277   : > { %2142 = vrot.lane.b32.xlu0 %v2139_v56, %s5306_s9  ;;  %2140 = vrot.lane.b32.xlu1 %v2137_v59, %s5306_s9  ;;  %v2176_v56 = vmul.f32 %v6165_v20, %v2174_v51  ;;  %v2160_v33 = vsel %vm574_vm14, %v2157_v16, %v2159_v42 }
 0x279   : > { %v6382_v18 = vpop.permute.xlu0 %1777  ;;  %v6386_v8 = vpop.permute.xlu1 %1775  ;;  %v2182_v22 = vrot.slane %v2176_v56, 6  ;;  %v2197_v56 = vmul.f32 %v6076_v36, %v2195_v2 }
 0x27a   : > { %8287 = vst [vmem:[#allocation133_spill] sm:$0xff] %v6382_v18  ;;  %2161 = vrot.lane.b32.xlu2 %v2158_v38, %s5306_s9  ;;  %v2184_v38 = vrot.slane %v2177_v9, 6 }
 0x27b   : > { %8288 = vst [vmem:[#allocation134_spill] sm:$0xff] %v6386_v8  ;;  %v2183_v12 = vsel %vm611_vm15, %v2181_v44, %v2182_v22  ;;  %v2196_v8 = vmul.f32 %v6069_v48, %v2195_v2 }
 0x27c   : > { %v2185_v51 = vsel %vm611_vm15, %v2182_v22, %v2184_v38 }
 0x27d   : > { %v6393_v3 = vpop.permute.xlu2 %1846 }
 0x27e   : > { %8289 = vst [vmem:[#allocation135_spill] sm:$0xff] %v6393_v3 }
 0x27f   : > { %2165 = vrot.lane.b32.xlu0 %v2159_v42, %s5306_s9  ;;  %2163 = vrot.lane.b32.xlu1 %v2160_v33, %s5306_s9  ;;  %v2209_v42 = vstv %s4809_s11  ;;  %v2229_v33 = vstv %s4810_s8  ;;  %s4819_s11 = sld [smem:[#allocation10 + $0x53]] }
 0x280   : > { %v2211_v44 = vmul.f32 %v6076_v36, %v2209_v42  ;;  %v2210_v22 = vmul.f32 %v6069_v48, %v2209_v42  ;;  %s4820_s8 = sld [smem:[#allocation10 + $0x5a]] }
 0x281   : > { %v6396_v59 = vpop.permute.xlu0 %1802  ;;  %v6400_v18 = vpop.permute.xlu1 %1800 }
 0x282   : > { %8290 = vst [vmem:[#allocation136_spill] sm:$0xff] %v6396_v59  ;;  %2186 = vrot.lane.b32.xlu2 %v2183_v12, %s5306_s9  ;;  %v2232_v12 = vmul.f32 %v6090_v23, %v2229_v33  ;;  %v2230_v59 = vmul.f32 %v6069_v48, %v2229_v33 }
 0x283   : > { %8291 = vst [vmem:[#allocation137_spill] sm:$0xff] %v6400_v18 }
 0x285   : > { %v6406_v16 = vpop.permute.xlu2 %1869 }
 0x286   : > { %8292 = vst [vmem:[#allocation138_spill] sm:$0xff] %v6406_v16  ;;  %v2250_v16 = vstv %s4811_s1  ;;  %s4821_s1 = sld [smem:[#allocation10 + $0x61]] }
 0x287   : > { %2200 = vrot.lane.b32.xlu0 %v2196_v8, %s5307_s10  ;;  %2188 = vrot.lane.b32.xlu1 %v2185_v51, %s5306_s9  ;;  %v2231_v8 = vmul.f32 %v6076_v36, %v2229_v33 }
 0x289   : > { %v6409_v15 = vpop.permute.xlu0 %1825  ;;  %v6413_v9 = vpop.permute.xlu1 %1823  ;;  %v2237_v51 = vrot.slane %v2231_v8, 2 }
 0x28a   : > { %8293 = vst [vmem:[#allocation139_spill] sm:$0xff] %v6409_v15  ;;  %2202 = vrot.lane.b32.xlu2 %v2197_v56, %s5307_s10  ;;  %v2239_v15 = vrot.slane %v2232_v12, 2  ;;  %v2212_v56 = vmul.f32 %v6090_v23, %v2209_v42 }
 0x28b   : > { %8294 = vst [vmem:[#allocation140_spill] sm:$0xff] %v6413_v9 }
 0x28d   : > { %v6421_v38 = vpop.permute.xlu2 %1894 }
 0x28e   : > { %8295 = vst [vmem:[#allocation141_spill] sm:$0xff] %v6421_v38  ;;  %v2240_v38 = vsel %vm537_vm13, %v2237_v51, %v2239_v15 }
 0x28f   : > { %2218 = vrot.lane.b32.xlu0 %v2211_v44, %s5307_s10  ;;  %2216 = vrot.lane.b32.xlu1 %v2210_v22, %s5307_s10  ;;  %v2252_v44 = vmul.f32 %v6076_v36, %v2250_v16  ;;  %v2236_v22 = vrot.slane %v2230_v59, 2 }
 0x291   : > { %v6423_v2 = vpop.permute.xlu0 %1867  ;;  %v6428_v3 = vpop.permute.xlu1 %1848  ;;  %v2258_v33 = vrot.slane %v2252_v44, 2  ;;  %v2238_v42 = vsel %vm537_vm13, %v2236_v22, %v2237_v51  ;;  %v2298_v51 = vmul.f32 %v6076_v36, %v2296_v11 }
 0x292   : > { %8296 = vst [vmem:[#allocation142_spill] sm:$0xff] %v6423_v2  ;;  %2220 = vrot.lane.b32.xlu2 %v2212_v56, %s5307_s10  ;;  %v2251_v2 = vmul.f32 %v6069_v48, %v2250_v16  ;;  %v2275_v56 = vstv %s4812_s23  ;;  %s4840_s23 = sld [smem:[#allocation10 + $0x71]] }
 0x293   : > { %8297 = vst [vmem:[#allocation143_spill] sm:$0xff] %v6428_v3  ;;  %v2253_v3 = vmul.f32 %v6090_v23, %v2250_v16  ;;  %v2277_v59 = vmul.f32 %v6076_v36, %v2275_v56  ;;  %v2276_v44 = vmul.f32 %v6069_v48, %v2275_v56  ;;  %v2297_v16 = vmul.f32 %v6069_v48, %v2296_v11 }
 0x294   : > { %v2257_v9 = vrot.slane %v2251_v2, 2 }
 0x295   : > { %v6435_v8 = vpop.permute.xlu2 %1922  ;;  %v2283_v22 = vrot.slane %v2277_v59, 4 }
 0x296   : > { %8298 = vst [vmem:[#allocation144_spill] sm:$0xff] %v6435_v8  ;;  %v2259_v15 = vsel %vm537_vm13, %v2257_v9, %v2258_v33 }
 0x297   : > { %2243 = vrot.lane.b32.xlu0 %v2240_v38, %s5307_s10  ;;  %2241 = vrot.lane.b32.xlu1 %v2238_v42, %s5307_s10  ;;  %v2260_v38 = vrot.slane %v2253_v3, 2  ;;  %v2278_v3 = vmul.f32 %v6090_v23, %v2275_v56 }
 0x299   : > { %v6438_v12 = vpop.permute.xlu0 %1892  ;;  %v6442_v18 = vpop.permute.xlu1 %1871  ;;  %v2261_v9 = vsel %vm537_vm13, %v2258_v33, %v2260_v38  ;;  %v2285_v40 = vrot.slane %v2278_v3, 4 }
 0x29a   : > { %8299 = vst [vmem:[#allocation145_spill] sm:$0xff] %v6438_v12  ;;  %2262 = vrot.lane.b32.xlu2 %v2259_v15, %s5307_s10  ;;  %v2304_v15 = vrot.slane %v2298_v51, 4  ;;  %v2303_v12 = vrot.slane %v2297_v16, 4  ;;  %v2306_v51 = vrot.slane %v2299_v57, 4 }
 0x29b   : > { %8300 = vst [vmem:[#allocation146_spill] sm:$0xff] %v6442_v18  ;;  %v2282_v18 = vrot.slane %v2276_v44, 4  ;;  %v2286_v44 = vsel %vm574_vm14, %v2283_v22, %v2285_v40 }
 0x29c   : > { %v2305_v33 = vsel %vm574_vm14, %v2303_v12, %v2304_v15 }
 0x29d   : > { %v6451_v2 = vpop.permute.xlu2 %1947  ;;  %v2284_v47 = vsel %vm574_vm14, %v2282_v18, %v2283_v22 }
 0x29e   : > { %8301 = vst [vmem:[#allocation147_spill] sm:$0xff] %v6451_v2  ;;  %v2321_v2 = vstv %s4814_s6  ;;  %s4843_s6 = sld [smem:[#allocation10 + $0x86]] }
 0x29f   : > { %2266 = vrot.lane.b32.xlu0 %v2260_v38, %s5307_s10  ;;  %2264 = vrot.lane.b32.xlu1 %v2261_v9, %s5307_s10  ;;  %v2323_v59 = vmul.f32 %v6076_v36, %v2321_v2  ;;  %v2322_v56 = vmul.f32 %v6069_v48, %v2321_v2  ;;  %v2307_v36 = vsel %vm574_vm14, %v2304_v15, %v2306_v51  ;;  %v2342_v9 = vstv %s4815_s30  ;;  %s4841_s30 = sld [smem:[#allocation10 + $0x78]] }
 0x2a0   : > { %v2324_v16 = vmul.f32 %v6090_v23, %v2321_v2  ;;  %v2344_v2 = vmul.f32 %v6165_v20, %v2342_v9  ;;  %v2343_v15 = vmul.f32 %v6154_v54, %v2342_v9 }
 0x2a1   : > { %v6454_v42 = vpop.permute.xlu0 %1908  ;;  %v6458_v8 = vpop.permute.xlu1 %1906  ;;  %v2329_v11 = vrot.slane %v2323_v59, 6  ;;  %v2328_v12 = vrot.slane %v2322_v56, 6  ;;  %v2356_v59 = vstv %s4816_s4  ;;  %s4839_s4 = sld [smem:[#allocation10 + $0x6a]] }
 0x2a2   : > { %8302 = vst [vmem:[#allocation148_spill] sm:$0xff] %v6454_v42  ;;  %2287 = vrot.lane.b32.xlu2 %v2284_v47, %s5307_s10  ;;  %v2331_v57 = vrot.slane %v2324_v16, 6 }
 0x2a3   : > { %8303 = vst [vmem:[#allocation149_spill] sm:$0xff] %v6458_v8  ;;  %v2330_v48 = vsel %vm611_vm15, %v2328_v12, %v2329_v11 }
 0x2a4   : > { %v2332_v23 = vsel %vm611_vm15, %v2329_v11, %v2331_v57  ;;  %v2357_v11 = vmul.f32 %v6154_v54, %v2356_v59 }
 0x2a5   : > { %v6467_v38 = vpop.permute.xlu2 %1970 }
 0x2a6   : > { %8304 = vst [vmem:[#allocation150_spill] sm:$0xff] %v6467_v38 }
 0x2a7   : > { %2308 = vrot.lane.b32.xlu0 %v2305_v33, %s5307_s10  ;;  %2289 = vrot.lane.b32.xlu1 %v2286_v44, %s5307_s10  ;;  %v2397_v44 = vstv %s4818_s7  ;;  %s4844_s7 = sld [smem:[#allocation10 + $0x8d]] }
 0x2a8   : > { %v2399_v57 = vmul.f32 %v6165_v20, %v2397_v44  ;;  %v2398_v9 = vmul.f32 %v6154_v54, %v2397_v44 }
 0x2a9   : > { %v6470_v18 = vpop.permute.xlu0 %1926  ;;  %v6473_v47 = vpop.permute.xlu1 %1924 }
 0x2aa   : > { %8305 = vst [vmem:[#allocation151_spill] sm:$0xff] %v6470_v18  ;;  %2310 = vrot.lane.b32.xlu2 %v2307_v36, %s5307_s10  ;;  %v2405_v42 = vrot.slane %v2399_v57, 2 }
 0x2ab   : > { %8306 = vst [vmem:[#allocation152_spill] sm:$0xff] %v6473_v47 }
 0x2ad   : > { %v6480_v40 = vpop.permute.xlu2 %1995 }
 0x2ae   : > { %8307 = vst [vmem:[#allocation153_spill] sm:$0xff] %v6480_v40 }
 0x2af   : > { %2333 = vrot.lane.b32.xlu0 %v2330_v48, %s5307_s10  ;;  %2312 = vrot.lane.b32.xlu1 %v2306_v51, %s5307_s10  ;;  %v2376_v51 = vstv %s4817_s5  ;;  %v2359_v48 = vmul.f32 %v6173_v37, %v2356_v59  ;;  %s4842_s5 = sld [smem:[#allocation10 + $0x7f]] }
 0x2b0   : > { %v2377_v36 = vmul.f32 %v6154_v54, %v2376_v51  ;;  %v2378_v16 = vmul.f32 %v6165_v20, %v2376_v51 }
 0x2b1   : > { %v6482_v22 = vpop.permute.xlu0 %1968  ;;  %v6485_v3 = vpop.permute.xlu1 %1949 }
 0x2b2   : > { %8308 = vst [vmem:[#allocation154_spill] sm:$0xff] %v6482_v22  ;;  %2335 = vrot.lane.b32.xlu2 %v2332_v23, %s5307_s10  ;;  %v2358_v23 = vmul.f32 %v6165_v20, %v2356_v59  ;;  %v2384_v40 = vrot.slane %v2378_v16, 2  ;;  %v2400_v59 = vmul.f32 %v6173_v37, %v2397_v44 }
 0x2b3   : > { %8309 = vst [vmem:[#allocation155_spill] sm:$0xff] %v6485_v3  ;;  %v2379_v3 = vmul.f32 %v6173_v37, %v2376_v51 }
 0x2b5   : > { %v6492_v33 = vpop.permute.xlu2 %2018 }
 0x2b6   : > { %8310 = vst [vmem:[#allocation156_spill] sm:$0xff] %v6492_v33 }
 0x2b7   : > { %2349 = vrot.lane.b32.xlu0 %v2344_v2, %s5307_s10  ;;  %2347 = vrot.lane.b32.xlu1 %v2343_v15, %s5307_s10  ;;  %v2383_v15 = vrot.slane %v2377_v36, 2 }
 0x2b9   : > { %v6494_v56 = vpop.permute.xlu0 %1993  ;;  %v6498_v12 = vpop.permute.xlu1 %1972 }
 0x2ba   : > { %8311 = vst [vmem:[#allocation157_spill] sm:$0xff] %v6494_v56  ;;  %2363 = vrot.lane.b32.xlu2 %v2357_v11, %s5307_s10  ;;  %v2404_v11 = vrot.slane %v2398_v9, 2  ;;  %v2386_v56 = vrot.slane %v2379_v3, 2  ;;  %v2407_v9 = vrot.slane %v2400_v59, 2 }
 0x2bb   : > { %8312 = vst [vmem:[#allocation158_spill] sm:$0xff] %v6498_v12  ;;  %v2422_v12 = vstv %s4819_s11  ;;  %s4846_s11 = sld [smem:[#allocation10 + $0x9b]] }
 0x2bc   : > { %v2406_v36 = vsel %vm537_vm13, %v2404_v11, %v2405_v42  ;;  %v2424_v16 = vmul.f32 %v6165_v20, %v2422_v12  ;;  %v2423_v51 = vmul.f32 %v6154_v54, %v2422_v12  ;;  %v2425_v38 = vmul.f32 %v6173_v37, %v2422_v12 }
 0x2bd   : > { %v6508_v2 = vpop.permute.xlu2 %2053 }
 0x2be   : > { %8313 = vst [vmem:[#allocation159_spill] sm:$0xff] %v6508_v2  ;;  %v2430_v3 = vrot.slane %v2424_v16, 4  ;;  %v2429_v44 = vrot.slane %v2423_v51, 4  ;;  %v2432_v16 = vrot.slane %v2425_v38, 4 }
 0x2bf   : > { %2367 = vrot.lane.b32.xlu0 %v2359_v48, %s5307_s10  ;;  %2365 = vrot.lane.b32.xlu1 %v2358_v23, %s5307_s10  ;;  %v2385_v48 = vsel %vm537_vm13, %v2383_v15, %v2384_v40  ;;  %v2387_v23 = vsel %vm537_vm13, %v2384_v40, %v2386_v56  ;;  %v2443_v15 = vstv %s4820_s8  ;;  %s4847_s8 = sld [smem:[#allocation10 + $0xa2]] }
 0x2c0   : > { %v2431_v59 = vsel %vm574_vm14, %v2429_v44, %v2430_v3  ;;  %v2446_v40 = vmul.f32 %v6173_v37, %v2443_v15  ;;  %v2445_v56 = vmul.f32 %v6165_v20, %v2443_v15  ;;  %v2433_v44 = vsel %vm574_vm14, %v2430_v3, %v2432_v16 }
 0x2c1   : > { %v6510_v33 = vpop.permute.xlu0 %2016  ;;  %v6514_v18 = vpop.permute.xlu1 %2014 }
 0x2c2   : > { %8314 = vst [vmem:[#allocation160_spill] sm:$0xff] %v6510_v33  ;;  %2388 = vrot.lane.b32.xlu2 %v2385_v48, %s5307_s10  ;;  %v2408_v48 = vsel %vm537_vm13, %v2405_v42, %v2407_v9  ;;  %v2453_v42 = vrot.slane %v2446_v40, 4  ;;  %v2451_v12 = vrot.slane %v2445_v56, 4 }
 0x2c3   : > { %8315 = vst [vmem:[#allocation161_spill] sm:$0xff] %v6514_v18 }
 0x2c5   : > { %v6523_v57 = vpop.permute.xlu2 %2071 }
 0x2c6   : > { %8316 = vst [vmem:[#allocation162_spill] sm:$0xff] %v6523_v57 }
 0x2c7   : > { %2409 = vrot.lane.b32.xlu0 %v2406_v36, %s5307_s10  ;;  %2390 = vrot.lane.b32.xlu1 %v2387_v23, %s5307_s10  ;;  %v2444_v23 = vmul.f32 %v6154_v54, %v2443_v15 }
 0x2c9   : > { %v6526_v33 = vpop.permute.xlu0 %2041  ;;  %v6529_v11 = vpop.permute.xlu1 %2039 }
 0x2ca   : > { %8317 = vst [vmem:[#allocation163_spill] sm:$0xff] %v6526_v33  ;;  %2411 = vrot.lane.b32.xlu2 %v2408_v48, %s5307_s10  ;;  %v2468_v48 = vstv %s4821_s1  ;;  %s4845_s1 = sld [smem:[#allocation10 + $0x94]] }
 0x2cb   : > { %8318 = vst [vmem:[#allocation164_spill] sm:$0xff] %v6529_v11  ;;  %v2450_v11 = vrot.slane %v2444_v23, 4  ;;  %v2470_v38 = vmul.f32 %v6165_v20, %v2468_v48  ;;  %v2469_v3 = vmul.f32 %v6154_v54, %v2468_v48 }
 0x2cd   : > { %v6538_v36 = vpop.permute.xlu2 %2096  ;;  %v2452_v15 = vsel %vm574_vm14, %v2450_v11, %v2451_v12  ;;  %v2476_v56 = vrot.slane %v2470_v38, 6  ;;  %v2680_v11 = vstv %s4840_s23  ;;  %v2707_v38 = vstv %s4843_s6  ;;  %s4849_s23 = sld [smem:[#allocation10 + $0xb0]] }
 0x2ce   : > { %8319 = vst [vmem:[#allocation165_spill] sm:$0xff] %v6538_v36  ;;  %v2471_v36 = vmul.f32 %v6173_v37, %v2468_v48  ;;  %v2475_v37 = vrot.slane %v2469_v3, 6  ;;  %v2664_v48 = vstv %s4838_s26  ;;  %s4848_s26 = sld [smem:[#allocation10 + $0xa9]] }
 0x2cf   : > { %2434 = vrot.lane.b32.xlu0 %v2431_v59, %s5307_s10  ;;  %2413 = vrot.lane.b32.xlu1 %v2407_v9, %s5307_s10  ;;  %v2454_v59 = vsel %vm574_vm14, %v2451_v12, %v2453_v42  ;;  %v6564_v12 = vld [vmem:[#allocation3] sm:$0xff]  ;;  %s4850_s6 = sld [smem:[#allocation10 + $0xb7]] }
 0x2d0   : > { %v2478_v16 = vrot.slane %v2471_v36, 6  ;;  %v2477_v36 = vsel %vm611_vm15, %v2475_v37, %v2476_v56 }
 0x2d1   : > { %v6540_v51 = vpop.permute.xlu0 %2069  ;;  %v6544_v33 = vpop.permute.xlu1 %2055 }
 0x2d2   : > { %8320 = vst [vmem:[#allocation166_spill] sm:$0xff] %v6540_v51  ;;  %2436 = vrot.lane.b32.xlu2 %v2433_v44, %s5307_s10  ;;  %v2479_v23 = vsel %vm611_vm15, %v2476_v56, %v2478_v16  ;;  %v2689_v16 = vstv %s4841_s30  ;;  %v2708_v56 = vmul.f32 %v2707_v38, %v6564_v12  ;;  %s4851_s30 = sld [smem:[#allocation10 + $0xbe]] }
 0x2d3   : > { %8321 = vst [vmem:[#allocation167_spill] sm:$0xff] %v6544_v33  ;;  %v2698_v33 = vstv %s4842_s5  ;;  %s4855_s5 = sld [smem:[#allocation10 + $0x79]] }
 0x2d5   : > { %v6552_v9 = vpop.permute.xlu2 %2119 }
 0x2d6   : > { %8322 = vst [vmem:[#allocation168_spill] sm:$0xff] %v6552_v9 }
 0x2d7   : > { %2457 = vrot.lane.b32.xlu0 %v2454_v59, %s5307_s10  ;;  %2455 = vrot.lane.b32.xlu1 %v2452_v15, %s5307_s10  ;;  %v2681_v59 = vmul.f32 %v2680_v11, %v6564_v12  ;;  %v2665_v15 = vmul.f32 %v2664_v48, %v6564_v12  ;;  %v2690_v11 = vmul.f32 %v2689_v16, %v6564_v12 }
 0x2d9   : > { %v6555_v40 = vpop.permute.xlu0 %2094  ;;  %v6559_v20 = vpop.permute.xlu1 %2073  ;;  %v2683_v9 = vrot.slane %v2681_v59, 2  ;;  %v2720_v59 = vstv %s4844_s7  ;;  %v2692_v18 = vrot.slane %v2690_v11, 2  ;;  %s4853_s7 = sld [smem:[#allocation10 + $0x6b]] }
 0x2da   : > { %8323 = vst [vmem:[#allocation169_spill] sm:$0xff] %v6555_v40  ;;  %2459 = vrot.lane.b32.xlu2 %v2453_v42, %s5307_s10  ;;  %v6573_v42 = vld [vmem:[#allocation3 + $0x8] sm:$0x3] }
 0x2db   : > { %8324 = vst [vmem:[#allocation170_spill] sm:$0xff] %v6559_v20  ;;  %v2709_v37 = vmul.f32 %v2707_v38, %v6573_v42  ;;  %v2721_v38 = vmul.f32 %v2720_v59, %v6564_v12  ;;  %v2722_v16 = vmul.f32 %v2720_v59, %v6573_v42  ;;  %v6602_v59 = vld [vmem:[#allocation3 + $0x10] sm:$0xff] }
 0x2dd   : > { %v6566_v54 = vpop.permute.xlu2 %2161  ;;  %v2725_v11 = vrot.slane %v2721_v38, 6  ;;  %v2767_v38 = vstv %s4849_s23  ;;  %s4857_s23 = sld [smem:[#allocation10 + $0x87]] }
 0x2de   : > { %8325 = vst [vmem:[#allocation171_spill] sm:$0xff] %v6566_v54  ;;  %v2712_v54 = vrot.slane %v2708_v56, 4 }
 0x2df   : > { %2482 = vrot.lane.b32.xlu0 %v2479_v23, %s5307_s10  ;;  %2480 = vrot.lane.b32.xlu1 %v2477_v36, %s5307_s10  ;;  %v2672_v23 = vstv %s4839_s4  ;;  %s4852_s4 = sld [smem:[#allocation10 + $0x64]] }
 0x2e0   : > { %v2673_v36 = vmul.f32 %v2672_v23, %v6564_v12 }
 0x2e1   : > { %v6569_v44 = vpop.permute.xlu0 %2117  ;;  %v6576_v3 = vpop.permute.xlu1 %2115 }
 0x2e2   : > { %8326 = vst [vmem:[#allocation172_spill] sm:$0xff] %v6569_v44  ;;  %2667 = vrot.lane.b32.xlu2 %v2665_v15, %s5302_s28  ;;  %v2713_v15 = vrot.slane %v2709_v37, 4 }
 0x2e3   : > { %8327 = vst [vmem:[#allocation173_spill] sm:$0xff] %v6576_v3 }
 0x2e4   : > { %v2714_v23 = vsel %vm574_vm14, %v2712_v54, %v2713_v15  ;;  %v2749_v15 = vstv %s4847_s8  ;;  %s4858_s8 = sld [smem:[#allocation10 + $0x8e]] }
 0x2e5   : > { %v6584_v20 = vpop.permute.xlu2 %2186 }
 0x2e6   : > { %8328 = vst [vmem:[#allocation174_spill] sm:$0xff] %v6584_v20  ;;  %v2758_v20 = vstv %s4848_s26  ;;  %s4861_s26 = sld [smem:[#allocation10 + $0xa3]] }
 0x2e7   : > { %2684 = vrot.lane.b32.xlu0 %v2683_v9, %s5302_s28  ;;  %2675 = vrot.lane.b32.xlu1 %v2673_v36, %s5302_s28  ;;  %v2699_v9 = vmul.f32 %v2698_v33, %v6564_v12  ;;  %v2726_v36 = vrot.slane %v2722_v16, 6  ;;  %v2741_v33 = vstv %s4846_s11  ;;  %v2750_v16 = vmul.f32 %v2749_v15, %v6602_v59  ;;  %s4854_s11 = sld [smem:[#allocation10 + $0x72]] }
 0x2e8   : > { %v2759_v15 = vmul.f32 %v2758_v20, %v6602_v59 }
 0x2e9   : > { %v6586_v48 = vpop.permute.xlu0 %2142  ;;  %v6589_v22 = vpop.permute.xlu1 %2140  ;;  %v2701_v56 = vrot.slane %v2699_v9, 4  ;;  %v2727_v54 = vsel %vm611_vm15, %v2725_v11, %v2726_v36  ;;  %v2742_v9 = vmul.f32 %v2741_v33, %v6602_v59  ;;  %v2768_v11 = vmul.f32 %v2767_v38, %v6602_v59  ;;  %v6618_v36 = vld [vmem:[#allocation3 + $0x18] sm:$0x3] }
 0x2ea   : > { %8329 = vst [vmem:[#allocation175_spill] sm:$0xff] %v6586_v48  ;;  %2693 = vrot.lane.b32.xlu2 %v2692_v18, %s5302_s28  ;;  %v2776_v33 = vstv %s4850_s6  ;;  %v2761_v38 = vrot.slane %v2759_v15, 2  ;;  %s4859_s6 = sld [smem:[#allocation10 + $0x95]] }
 0x2eb   : > { %8330 = vst [vmem:[#allocation176_spill] sm:$0xff] %v6589_v22 }
 0x2ed   : > { %v6597_v37 = vpop.permute.xlu2 %2202 }
 0x2ee   : > { %8331 = vst [vmem:[#allocation177_spill] sm:$0xff] %v6597_v37 }
 0x2ef   : > { %2715 = vrot.lane.b32.xlu0 %v2714_v23, %s5302_s28  ;;  %2702 = vrot.lane.b32.xlu1 %v2701_v56, %s5302_s28  ;;  %v2733_v23 = vstv %s4845_s1  ;;  %s4856_s1 = sld [smem:[#allocation10 + $0x80]] }
 0x2f0   : > { %v2734_v56 = vmul.f32 %v2733_v23, %v6602_v59  ;;  %v2777_v23 = vmul.f32 %v2776_v33, %v6602_v59 }
 0x2f1   : > { %v6599_v48 = vpop.permute.xlu0 %2165  ;;  %v6604_v18 = vpop.permute.xlu1 %2163 }
 0x2f2   : > { %8332 = vst [vmem:[#allocation178_spill] sm:$0xff] %v6599_v48  ;;  %2728 = vrot.lane.b32.xlu2 %v2727_v54, %s5302_s28  ;;  %v2752_v54 = vrot.slane %v2750_v16, 2  ;;  %v2781_v16 = vrot.slane %v2777_v23, 4 }
 0x2f3   : > { %8333 = vst [vmem:[#allocation179_spill] sm:$0xff] %v6604_v18 }
 0x2f5   : > { %v6612_v37 = vpop.permute.xlu2 %2220 }
 0x2f6   : > { %8334 = vst [vmem:[#allocation180_spill] sm:$0xff] %v6612_v37  ;;  %v2770_v37 = vrot.slane %v2768_v11, 4  ;;  %v2802_v11 = vstv %s4852_s4  ;;  %s4862_s4 = sld [smem:[#allocation10 + $0xaa]] }
 0x2f7   : > { %2744 = vrot.lane.b32.xlu0 %v2742_v9, %s5302_s28  ;;  %2736 = vrot.lane.b32.xlu1 %v2734_v56, %s5302_s28  ;;  %v2778_v9 = vmul.f32 %v2776_v33, %v6618_v36  ;;  %v2803_v23 = vmul.f32 %v2802_v11, %v6564_v12 }
 0x2f9   : > { %v6614_v48 = vpop.permute.xlu0 %2200  ;;  %v6620_v18 = vpop.permute.xlu1 %2188  ;;  %v2782_v22 = vrot.slane %v2778_v9, 4  ;;  %v2827_v9 = vstv %s4855_s5  ;;  %s4860_s5 = sld [smem:[#allocation10 + $0x9c]] }
 0x2fa   : > { %8335 = vst [vmem:[#allocation181_spill] sm:$0xff] %v6614_v48  ;;  %2753 = vrot.lane.b32.xlu2 %v2752_v54, %s5302_s28  ;;  %v2789_v48 = vstv %s4851_s30  ;;  %s4864_s30 = sld [smem:[#allocation10 + $0xb8]] }
 0x2fb   : > { %8336 = vst [vmem:[#allocation182_spill] sm:$0xff] %v6620_v18  ;;  %v2790_v20 = vmul.f32 %v2789_v48, %v6602_v59  ;;  %v2791_v44 = vmul.f32 %v2789_v48, %v6618_v36 }
 0x2fd   : > { %v6627_v56 = vpop.permute.xlu2 %2262  ;;  %v2794_v54 = vrot.slane %v2790_v20, 6  ;;  %v2795_v15 = vrot.slane %v2791_v44, 6  ;;  %v2858_v44 = vstv %s4858_s8  ;;  %s4867_s8 = sld [smem:[#allocation10 + $0x6c]] }
 0x2fe   : > { %8337 = vst [vmem:[#allocation183_spill] sm:$0xff] %v6627_v56 }
 0x2ff   : > { %2771 = vrot.lane.b32.xlu0 %v2770_v37, %s5302_s28  ;;  %2762 = vrot.lane.b32.xlu1 %v2761_v38, %s5302_s28  ;;  %v2783_v37 = vsel %vm574_vm14, %v2781_v16, %v2782_v22  ;;  %v2810_v38 = vstv %s4853_s7  ;;  %v2796_v56 = vsel %vm611_vm15, %v2794_v54, %v2795_v15  ;;  %v2828_v22 = vmul.f32 %v2827_v9, %v6564_v12  ;;  %s4863_s7 = sld [smem:[#allocation10 + $0xb1]] }
 0x300   : > { %v2811_v16 = vmul.f32 %v2810_v38, %v6564_v12  ;;  %v2859_v54 = vmul.f32 %v2858_v44, %v6564_v12  ;;  %v2860_v15 = vmul.f32 %v2858_v44, %v6573_v42 }
 0x301   : > { %v6629_v18 = vpop.permute.xlu0 %2218  ;;  %v6634_v33 = vpop.permute.xlu1 %2216 }
 0x302   : > { %8338 = vst [vmem:[#allocation184_spill] sm:$0xff] %v6629_v18  ;;  %2784 = vrot.lane.b32.xlu2 %v2783_v37, %s5302_s28  ;;  %v2836_v37 = vstv %s4856_s1  ;;  %s4868_s1 = sld [smem:[#allocation10 + $0x73]] }
 0x303   : > { %8339 = vst [vmem:[#allocation185_spill] sm:$0xff] %v6634_v33  ;;  %v2818_v33 = vstv %s4854_s11  ;;  %s4865_s11 = sld [smem:[#allocation10 + $0xbf]] }
 0x304   : > { %v2819_v11 = vmul.f32 %v2818_v33, %v6564_v12 }
 0x305   : > { %v6640_v48 = vpop.permute.xlu2 %2287 }
 0x306   : > { %8340 = vst [vmem:[#allocation186_spill] sm:$0xff] %v6640_v48  ;;  %v2845_v48 = vstv %s4857_s23  ;;  %v2821_v9 = vrot.slane %v2819_v11, 2  ;;  %s4866_s23 = sld [smem:[#allocation10 + $0x65]] }
 0x307   : > { %2805 = vrot.lane.b32.xlu0 %v2803_v23, %s5303_s22  ;;  %2797 = vrot.lane.b32.xlu1 %v2796_v56, %s5302_s28  ;;  %v2830_v23 = vrot.slane %v2828_v22, 2  ;;  %v2837_v56 = vmul.f32 %v2836_v37, %v6564_v12  ;;  %v2846_v33 = vmul.f32 %v2845_v48, %v6564_v12  ;;  %v2847_v22 = vmul.f32 %v2845_v48, %v6573_v42 }
 0x309   : > { %v6643_v18 = vpop.permute.xlu0 %2243  ;;  %v6648_v20 = vpop.permute.xlu1 %2241  ;;  %v2839_v44 = vrot.slane %v2837_v56, 4  ;;  %v2850_v37 = vrot.slane %v2846_v33, 4  ;;  %v2851_v11 = vrot.slane %v2847_v22, 4  ;;  %v2914_v33 = vstv %s4864_s30  ;;  %s4871_s30 = sld [smem:[#allocation10 + $0x88]] }
 0x30a   : > { %8341 = vst [vmem:[#allocation187_spill] sm:$0xff] %v6643_v18  ;;  %2813 = vrot.lane.b32.xlu2 %v2811_v16, %s5303_s22  ;;  %v2863_v16 = vrot.slane %v2859_v54, 6 }
 0x30b   : > { %8342 = vst [vmem:[#allocation188_spill] sm:$0xff] %v6648_v20  ;;  %v2864_v20 = vrot.slane %v2860_v15, 6  ;;  %v2852_v54 = vsel %vm574_vm14, %v2850_v37, %v2851_v11  ;;  %v2915_v37 = vmul.f32 %v2914_v33, %v6602_v59  ;;  %v2916_v11 = vmul.f32 %v2914_v33, %v6618_v36 }
 0x30d   : > { %v6656_v38 = vpop.permute.xlu2 %2310 }
 0x30e   : > { %8343 = vst [vmem:[#allocation189_spill] sm:$0xff] %v6656_v38  ;;  %v2919_v38 = vrot.slane %v2915_v37, 4 }
 0x30f   : > { %2831 = vrot.lane.b32.xlu0 %v2830_v23, %s5303_s22  ;;  %2822 = vrot.lane.b32.xlu1 %v2821_v9, %s5303_s22  ;;  %v2865_v23 = vsel %vm611_vm15, %v2863_v16, %v2864_v20  ;;  %v2871_v9 = vstv %s4859_s6  ;;  %v2896_v16 = vstv %s4862_s4  ;;  %s4869_s6 = sld [smem:[#allocation10 + $0x7a]] }
 0x310   : > { %v2872_v22 = vmul.f32 %v2871_v9, %v6602_v59  ;;  %s4872_s4 = sld [smem:[#allocation10 + $0x8f]] }
 0x311   : > { %v6658_v18 = vpop.permute.xlu0 %2266  ;;  %v6663_v3 = vpop.permute.xlu1 %2264 }
 0x312   : > { %8344 = vst [vmem:[#allocation190_spill] sm:$0xff] %v6658_v18  ;;  %2840 = vrot.lane.b32.xlu2 %v2839_v44, %s5303_s22  ;;  %v2887_v18 = vstv %s4861_s26  ;;  %v2879_v44 = vstv %s4860_s5  ;;  %s4870_s26 = sld [smem:[#allocation10 + $0x81]] }
 0x313   : > { %8345 = vst [vmem:[#allocation191_spill] sm:$0xff] %v6663_v3  ;;  %v2888_v56 = vmul.f32 %v2887_v18, %v6602_v59  ;;  %v2897_v18 = vmul.f32 %v2896_v16, %v6602_v59  ;;  %s4873_s5 = sld [smem:[#allocation10 + $0x96]] }
 0x315   : > { %v6668_v48 = vpop.permute.xlu2 %2335 }
 0x316   : > { %8346 = vst [vmem:[#allocation192_spill] sm:$0xff] %v6668_v48 }
 0x317   : > { %2866 = vrot.lane.b32.xlu0 %v2865_v23, %s5303_s22  ;;  %2853 = vrot.lane.b32.xlu1 %v2852_v54, %s5303_s22  ;;  %v2890_v23 = vrot.slane %v2888_v56, 2  ;;  %v2880_v54 = vmul.f32 %v2879_v44, %v6602_v59  ;;  %v2927_v56 = vstv %s4865_s11  ;;  %s4874_s11 = sld [smem:[#allocation10 + $0x9d]] }
 0x318   : > { %v2928_v16 = vmul.f32 %v2927_v56, %v6602_v59  ;;  %v2929_v44 = vmul.f32 %v2927_v56, %v6618_v36 }
 0x319   : > { %v6671_v15 = vpop.permute.xlu0 %2308  ;;  %v6676_v20 = vpop.permute.xlu1 %2289 }
 0x31a   : > { %8347 = vst [vmem:[#allocation193_spill] sm:$0xff] %v6671_v15  ;;  %2874 = vrot.lane.b32.xlu2 %v2872_v22, %s5303_s22  ;;  %v2920_v22 = vrot.slane %v2916_v11, 4  ;;  %v2899_v15 = vrot.slane %v2897_v18, 2  ;;  %v2932_v18 = vrot.slane %v2928_v16, 6 }
 0x31b   : > { %8348 = vst [vmem:[#allocation194_spill] sm:$0xff] %v6676_v20  ;;  %v2905_v20 = vstv %s4863_s7  ;;  %s4876_s7 = sld [smem:[#allocation10 + $0xab]] }
 0x31c   : > { %v2906_v33 = vmul.f32 %v2905_v20, %v6602_v59  ;;  %v2948_v20 = vstv %s4867_s8  ;;  %s4875_s8 = sld [smem:[#allocation10 + $0xa4]] }
 0x31d   : > { %v6684_v48 = vpop.permute.xlu2 %2363 }
 0x31e   : > { %8349 = vst [vmem:[#allocation195_spill] sm:$0xff] %v6684_v48  ;;  %v2908_v37 = vrot.slane %v2906_v33, 4  ;;  %v2974_v33 = vstv %s4870_s26  ;;  %s4878_s26 = sld [smem:[#allocation10 + $0xb9]] }
 0x31f   : > { %2891 = vrot.lane.b32.xlu0 %v2890_v23, %s5303_s22  ;;  %2882 = vrot.lane.b32.xlu1 %v2880_v54, %s5303_s22  ;;  %v2921_v23 = vsel %vm574_vm14, %v2919_v38, %v2920_v22  ;;  %v2933_v54 = vrot.slane %v2929_v44, 6  ;;  %v2956_v38 = vstv %s4868_s1  ;;  %v2940_v22 = vstv %s4866_s23  ;;  %s4879_s1 = sld [smem:[#allocation10 + $0xc0]] }
 0x320   : > { %v2957_v16 = vmul.f32 %v2956_v38, %v6564_v12  ;;  %v2941_v44 = vmul.f32 %v2940_v22, %v6564_v12  ;;  %s4877_s23 = sld [smem:[#allocation10 + $0xb2]] }
 0x321   : > { %v6686_v9 = vpop.permute.xlu0 %2333  ;;  %v6689_v3 = vpop.permute.xlu1 %2312 }
 0x322   : > { %8350 = vst [vmem:[#allocation196_spill] sm:$0xff] %v6686_v9  ;;  %2900 = vrot.lane.b32.xlu2 %v2899_v15, %s5303_s22  ;;  %v2934_v15 = vsel %vm611_vm15, %v2932_v18, %v2933_v54  ;;  %v2965_v9 = vstv %s4869_s6  ;;  %v2975_v18 = vmul.f32 %v2974_v33, %v6564_v12  ;;  %v2983_v54 = vstv %s4871_s30  ;;  %s4882_s6 = sld [smem:[#allocation10 + $0x74]] }
 0x323   : > { %8351 = vst [vmem:[#allocation197_spill] sm:$0xff] %v6689_v3  ;;  %v2984_v38 = vmul.f32 %v2983_v54, %v6564_v12  ;;  %v2985_v22 = vmul.f32 %v2983_v54, %v6573_v42  ;;  %s4880_s30 = sld [smem:[#allocation10 + $0x66]] }
 0x325   : > { %v6697_v11 = vpop.permute.xlu2 %2388 }
 0x326   : > { %8352 = vst [vmem:[#allocation198_spill] sm:$0xff] %v6697_v11  ;;  %v2977_v11 = vrot.slane %v2975_v18, 4  ;;  %v3009_v18 = vstv %s4873_s5  ;;  %s4883_s5 = sld [smem:[#allocation10 + $0x7b]] }
 0x327   : > { %2922 = vrot.lane.b32.xlu0 %v2921_v23, %s5303_s22  ;;  %2909 = vrot.lane.b32.xlu1 %v2908_v37, %s5303_s22  ;;  %v2949_v23 = vmul.f32 %v2948_v20, %v6564_v12  ;;  %v2959_v20 = vrot.slane %v2957_v16, 2  ;;  %v2988_v16 = vrot.slane %v2984_v38, 4  ;;  %v3010_v38 = vmul.f32 %v3009_v18, %v6602_v59 }
 0x329   : > { %v6699_v3 = vpop.permute.xlu0 %2349  ;;  %v6702_v56 = vpop.permute.xlu1 %2347 }
 0x32a   : > { %8353 = vst [vmem:[#allocation199_spill] sm:$0xff] %v6699_v3  ;;  %2935 = vrot.lane.b32.xlu2 %v2934_v15, %s5303_s22 }
 0x32b   : > { %8354 = vst [vmem:[#allocation200_spill] sm:$0xff] %v6702_v56 }
 0x32d   : > { %v6710_v37 = vpop.permute.xlu2 %2411 }
 0x32e   : > { %8355 = vst [vmem:[#allocation201_spill] sm:$0xff] %v6710_v37  ;;  %v2989_v37 = vrot.slane %v2985_v22, 4  ;;  %v3034_v22 = vstv %s4876_s7  ;;  %s4881_s7 = sld [smem:[#allocation10 + $0x6d]] }
 0x32f   : > { %2951 = vrot.lane.b32.xlu0 %v2949_v23, %s5304_s27  ;;  %2943 = vrot.lane.b32.xlu1 %v2941_v44, %s5304_s27  ;;  %v2966_v23 = vmul.f32 %v2965_v9, %v6564_v12 }
 0x331   : > { %v6712_v3 = vpop.permute.xlu0 %2367  ;;  %v6716_v15 = vpop.permute.xlu1 %2365  ;;  %v2968_v33 = vrot.slane %v2966_v23, 2 }
 0x332   : > { %8356 = vst [vmem:[#allocation202_spill] sm:$0xff] %v6712_v3  ;;  %2960 = vrot.lane.b32.xlu2 %v2959_v20, %s5304_s27  ;;  %v2996_v3 = vstv %s4872_s4  ;;  %s4885_s4 = sld [smem:[#allocation10 + $0x89]] }
 0x333   : > { %8357 = vst [vmem:[#allocation203_spill] sm:$0xff] %v6716_v15  ;;  %v2997_v9 = vmul.f32 %v2996_v3, %v6564_v12  ;;  %v2998_v48 = vmul.f32 %v2996_v3, %v6573_v42 }
 0x335   : > { %v6723_v44 = vpop.permute.xlu2 %2436  ;;  %v3001_v20 = vrot.slane %v2997_v9, 6  ;;  %v3002_v23 = vrot.slane %v2998_v48, 6  ;;  %v3065_v48 = vstv %s4879_s1  ;;  %s4888_s1 = sld [smem:[#allocation10 + $0x9e]] }
 0x336   : > { %8358 = vst [vmem:[#allocation204_spill] sm:$0xff] %v6723_v44 }
 0x337   : > { %2978 = vrot.lane.b32.xlu0 %v2977_v11, %s5304_s27  ;;  %2969 = vrot.lane.b32.xlu1 %v2968_v33, %s5304_s27  ;;  %v2990_v11 = vsel %vm574_vm14, %v2988_v16, %v2989_v37  ;;  %v3017_v33 = vstv %s4874_s11  ;;  %v3003_v44 = vsel %vm611_vm15, %v3001_v20, %v3002_v23  ;;  %v3035_v37 = vmul.f32 %v3034_v22, %v6602_v59  ;;  %s4884_s11 = sld [smem:[#allocation10 + $0x82]] }
 0x338   : > { %v3018_v16 = vmul.f32 %v3017_v33, %v6602_v59  ;;  %v3066_v20 = vmul.f32 %v3065_v48, %v6602_v59  ;;  %v3067_v23 = vmul.f32 %v3065_v48, %v6618_v36 }
 0x339   : > { %v6725_v56 = vpop.permute.xlu0 %2409  ;;  %v6730_v54 = vpop.permute.xlu1 %2390 }
 0x33a   : > { %8359 = vst [vmem:[#allocation205_spill] sm:$0xff] %v6725_v56  ;;  %2991 = vrot.lane.b32.xlu2 %v2990_v11, %s5304_s27  ;;  %v3043_v11 = vstv %s4877_s23  ;;  %s4889_s23 = sld [smem:[#allocation10 + $0xa5]] }
 0x33b   : > { %8360 = vst [vmem:[#allocation206_spill] sm:$0xff] %v6730_v54  ;;  %v3025_v54 = vstv %s4875_s8  ;;  %s4886_s8 = sld [smem:[#allocation10 + $0x90]] }
 0x33c   : > { %v3026_v18 = vmul.f32 %v3025_v54, %v6602_v59 }
 0x33d   : > { %v6736_v3 = vpop.permute.xlu2 %2459 }
 0x33e   : > { %8361 = vst [vmem:[#allocation207_spill] sm:$0xff] %v6736_v3  ;;  %v3052_v3 = vstv %s4878_s26  ;;  %v3028_v22 = vrot.slane %v3026_v18, 2  ;;  %s4887_s26 = sld [smem:[#allocation10 + $0x97]] }
 0x33f   : > { %3012 = vrot.lane.b32.xlu0 %v3010_v38, %s5304_s27  ;;  %3004 = vrot.lane.b32.xlu1 %v3003_v44, %s5304_s27  ;;  %v3037_v38 = vrot.slane %v3035_v37, 2  ;;  %v3044_v44 = vmul.f32 %v3043_v11, %v6602_v59  ;;  %v3053_v54 = vmul.f32 %v3052_v3, %v6602_v59  ;;  %v3054_v37 = vmul.f32 %v3052_v3, %v6618_v36 }
 0x341   : > { %v6739_v56 = vpop.permute.xlu0 %2434  ;;  %v6744_v9 = vpop.permute.xlu1 %2413  ;;  %v3046_v48 = vrot.slane %v3044_v44, 4  ;;  %v3057_v11 = vrot.slane %v3053_v54, 4  ;;  %v3058_v18 = vrot.slane %v3054_v37, 4  ;;  %v3121_v54 = vstv %s4885_s4  ;;  %s4892_s4 = sld [smem:[#allocation10 + $0xba]] }
 0x342   : > { %8362 = vst [vmem:[#allocation208_spill] sm:$0xff] %v6739_v56  ;;  %3020 = vrot.lane.b32.xlu2 %v3018_v16, %s5304_s27  ;;  %v3070_v16 = vrot.slane %v3066_v20, 6  ;;  %v3071_v56 = vrot.slane %v3067_v23, 6 }
 0x343   : > { %8363 = vst [vmem:[#allocation209_spill] sm:$0xff] %v6744_v9  ;;  %v3059_v20 = vsel %vm574_vm14, %v3057_v11, %v3058_v18  ;;  %v3122_v11 = vmul.f32 %v3121_v54, %v6564_v12  ;;  %v3123_v18 = vmul.f32 %v3121_v54, %v6573_v42 }
 0x345   : > { %v6752_v33 = vpop.permute.xlu2 %2667 }
 0x347   : > { %3038 = vrot.lane.b32.xlu0 %v3037_v38, %s5304_s27  ;;  %3029 = vrot.lane.b32.xlu1 %v3028_v22, %s5304_s27  ;;  %v3072_v38 = vsel %vm611_vm15, %v3070_v16, %v3071_v56  ;;  %v3078_v22 = vstv %s4880_s30  ;;  %v3103_v16 = vstv %s4883_s5  ;;  %s4890_s30 = sld [smem:[#allocation10 + $0xac]] }
 0x348   : > { %v3079_v37 = vmul.f32 %v3078_v22, %v6564_v12  ;;  %s4893_s5 = sld [smem:[#allocation10 + $0xc1]] }
 0x349   : > { %v6754_v9 = vpop.permute.xlu0 %2457  ;;  %v6759_v15 = vpop.permute.xlu1 %2455 }
 0x34a   : > { %8364 = vst [vmem:[#allocation210_spill] sm:$0xff] %v6754_v9  ;;  %3047 = vrot.lane.b32.xlu2 %v3046_v48, %s5304_s27  ;;  %v3094_v9 = vstv %s4882_s6  ;;  %v3086_v48 = vstv %s4881_s7  ;;  %s4891_s6 = sld [smem:[#allocation10 + $0xb3]] }
 0x34b   : > { %8365 = vst [vmem:[#allocation211_spill] sm:$0xff] %v6759_v15  ;;  %v3095_v44 = vmul.f32 %v3094_v9, %v6564_v12  ;;  %v3104_v9 = vmul.f32 %v3103_v16, %v6564_v12  ;;  %v3126_v15 = vrot.slane %v3122_v11, 4  ;;  %s4894_s7 = sld [smem:[#allocation10 + $0x67]] }
 0x34d   : > { %v6764_v3 = vpop.permute.xlu2 %2693  ;;  %v3106_v47 = vrot.slane %v3104_v9, 2  ;;  %v3172_v57 = vstv %s4890_s30  ;;  %s6842_s30 = sld [smem:[#allocation10 + $0x8a]] }
 0x34e   : > { %v3203_v24 = vstv %s4893_s5  ;;  %s6847_s5 = sld [smem:[#allocation10 + $0x7e]] }
 0x34f   : > { %3073 = vrot.lane.b32.xlu0 %v3072_v38, %s5304_s27  ;;  %3060 = vrot.lane.b32.xlu1 %v3059_v20, %s5304_s27  ;;  %v3097_v38 = vrot.slane %v3095_v44, 2  ;;  %v3087_v20 = vmul.f32 %v3086_v48, %v6564_v12  ;;  %v3134_v44 = vstv %s4886_s8  ;;  %s6821_s8 = sld [smem:[#allocation10 + $0x6e]] }
 0x350   : > { %v3135_v16 = vmul.f32 %v3134_v44, %v6564_v12  ;;  %v3136_v48 = vmul.f32 %v3134_v44, %v6573_v42 }
 0x351   : > { %v6767_v23 = vpop.permute.xlu0 %2482  ;;  %v6772_v56 = vpop.permute.xlu1 %2480 }
 0x352   : > { %8366 = vst [vmem:[#allocation212_spill] sm:$0xff] %v6767_v23  ;;  %3081 = vrot.lane.b32.xlu2 %v3079_v37, %s5305_s29  ;;  %v3127_v37 = vrot.slane %v3123_v18, 4  ;;  %v3139_v9 = vrot.slane %v3135_v16, 6 }
 0x353   : > { %8367 = vst [vmem:[#allocation213_spill] sm:$0xff] %v6772_v56  ;;  %v3112_v56 = vstv %s4884_s11  ;;  %s6818_s11 = sld [smem:[#allocation10 + $0x7c]] }
 0x354   : > { %v3113_v54 = vmul.f32 %v3112_v56, %v6564_v12  ;;  %v3155_v56 = vstv %s4888_s1  ;;  %s4896_s1 = sld [smem:[#allocation10 + $0x75]]  ;;  %v2584_v46 = vstv %s6847_s5 }
 0x355   : > { %v6780_v23 = vpop.permute.xlu2 %2728  ;;  %s6906_s5 = sld [smem:[#allocation10 + $0x93]] }
 0x356   : > { %v3115_v11 = vrot.slane %v3113_v54, 4  ;;  %v3181_v54 = vstv %s4891_s6  ;;  %s6838_s6 = sld [smem:[#allocation10 + $0x83]] }
 0x357   : > { %3098 = vrot.lane.b32.xlu0 %v3097_v38, %s5305_s29  ;;  %3089 = vrot.lane.b32.xlu1 %v3087_v20, %s5305_s29  ;;  %v3128_v38 = vsel %vm574_vm14, %v3126_v15, %v3127_v37  ;;  %v3140_v20 = vrot.slane %v3136_v48, 6  ;;  %v3163_v15 = vstv %s4889_s23  ;;  %v3147_v37 = vstv %s4887_s26  ;;  %s6830_s23 = sld [smem:[#allocation10 + $0x91]] }
 0x358   : > { %v3164_v16 = vmul.f32 %v3163_v15, %v6602_v59  ;;  %v3148_v48 = vmul.f32 %v3147_v37, %v6602_v59  ;;  %s6832_s26 = sld [smem:[#allocation10 + $0x70]] }
 0x359   : > { %v6782_v22 = vpop.permute.xlu0 %2684  ;;  %v6785_v40 = vpop.permute.xlu1 %2675 }
 0x35a   : > { %3107 = vrot.lane.b32.xlu2 %v3106_v47, %s5305_s29  ;;  %v3141_v47 = vsel %vm611_vm15, %v3139_v9, %v3140_v20  ;;  %v3182_v9 = vmul.f32 %v3181_v54, %v6602_v59  ;;  %v3190_v20 = vstv %s4892_s4  ;;  %s6844_s4 = sld [smem:[#allocation10 + $0x62]] }
 0x35b   : > { %v3191_v15 = vmul.f32 %v3190_v20, %v6602_v59  ;;  %v3192_v37 = vmul.f32 %v3190_v20, %v6618_v36  ;;  %v3204_v20 = vmul.f32 %v3203_v24, %v6602_v59 }
 0x35c   : > { %v3184_v2 = vrot.slane %v3182_v9, 4  ;;  %v3205_v9 = vmul.f32 %v3203_v24, %v6618_v36  ;;  %v3241_v24 = vstv %s6818_s11  ;;  %s6865_s11 = sld [smem:[#allocation10 + $0x77]] }
 0x35d   : > { %v6793_v18 = vpop.permute.xlu2 %2753  ;;  %v3196_v1 = vrot.slane %v3192_v37, 4 }
 0x35e   : > { %v3209_v37 = vrot.slane %v3205_v9, 6  ;;  %v3232_v9 = vstv %s4896_s1  ;;  %s6875_s1 = sld [smem:[#allocation10 + $0x69]] }
 0x35f   : > { %3129 = vrot.lane.b32.xlu0 %v3128_v38, %s5305_s29  ;;  %3116 = vrot.lane.b32.xlu1 %v3115_v11, %s5305_s29  ;;  %v3156_v38 = vmul.f32 %v3155_v56, %v6602_v59  ;;  %v3166_v56 = vrot.slane %v3164_v16, 2  ;;  %v3233_v62 = vmul.f32 %v3232_v9, %v6564_v12 }
 0x360   : > { %v2562_v9 = vstv %s6844_s4  ;;  %s6903_s4 = sld [smem:[#allocation10 + $0x9f]] }
 0x361   : > { %v6795_v8 = vpop.permute.xlu0 %2715  ;;  %v6798_v44 = vpop.permute.xlu1 %2702  ;;  %v2563_v41 = vmul.f32 %v2562_v9, %v6564_v12 }
 0x362   : > { %3142 = vrot.lane.b32.xlu2 %v3141_v47, %s5305_s29 }
 0x365   : > { %v6806_v11 = vpop.permute.xlu2 %2784 }
 0x367   : > { %3158 = vrot.lane.b32.xlu0 %v3156_v38, %s5305_s29  ;;  %3150 = vrot.lane.b32.xlu1 %v3148_v48, %s5305_s29  ;;  %v3173_v38 = vmul.f32 %v3172_v57, %v6602_v59  ;;  %v3195_v48 = vrot.slane %v3191_v15, 4  ;;  %v3208_v15 = vrot.slane %v3204_v20, 6 }
 0x369   : > { %v6808_v51 = vpop.permute.xlu0 %2744  ;;  %v6812_v47 = vpop.permute.xlu1 %2736  ;;  %v3175_v54 = vrot.slane %v3173_v38, 2  ;;  %v3197_v38 = vsel %vm574_vm14, %v3195_v48, %v3196_v1  ;;  %v3210_v48 = vsel %vm611_vm15, %v3208_v15, %v3209_v37  ;;  %v3250_v15 = vstv %s6838_s6  ;;  %s6895_s6 = sld [smem:[#allocation10 + $0xbb]] }
 0x36a   : > { %3167 = vrot.lane.b32.xlu2 %v3166_v56, %s5305_s29  ;;  %v3216_v56 = vstv %s4894_s7  ;;  %s6849_s7 = sld [smem:[#allocation10 + $0x8c]] }
 0x36b   : > { %v3217_v5 = vmul.f32 %v3216_v56, %v6564_v12  ;;  %v3242_v56 = vmul.f32 %v3241_v24, %v6564_v12  ;;  %v3259_v24 = vstv %s6842_s30  ;;  %s6901_s30 = sld [smem:[#allocation10 + $0xad]] }
 0x36c   : > { %v3261_v7 = vmul.f32 %v3259_v24, %v6573_v42 }
 0x36d   : > { %v6823_v16 = vpop.permute.xlu2 %2813  ;;  %v3244_v37 = vrot.slane %v3242_v56, 2  ;;  %v3251_v56 = vmul.f32 %v3250_v15, %v6564_v12  ;;  %v2585_v15 = vmul.f32 %v2584_v46, %v6564_v12 }
 0x36f   : > { %3185 = vrot.lane.b32.xlu0 %v3184_v2, %s5305_s29  ;;  %3176 = vrot.lane.b32.xlu1 %v3175_v54, %s5305_s29  ;;  %v3224_v54 = vstv %s6821_s8  ;;  %s6872_s8 = sld [smem:[#allocation10 + $0xa6]]  ;;  %v3253_v50 = vrot.slane %v3251_v56, 4  ;;  %v2587_v9 = vrot.slane %v2585_v15, 4  ;;  %v3328_v15 = vstv %s6895_s6 }
 0x370   : > { %v3225_v55 = vmul.f32 %v3224_v54, %v6564_v12  ;;  %v2602_v0 = vstv %s6849_s7  ;;  %s6911_s7 = sld [smem:[#allocation10 + $0xa1]] }
 0x371   : > { %v6825_v57 = vpop.permute.xlu0 %2771  ;;  %v6834_v2 = vpop.permute.xlu1 %2762  ;;  %v2603_v52 = vmul.f32 %v2602_v0, %v6564_v12  ;;  %v2604_v39 = vmul.f32 %v2602_v0, %v6573_v42  ;;  %s6951_s6 = sld [smem:[#allocation10 + $0x9a]] }
 0x372   : > { %3198 = vrot.lane.b32.xlu2 %v3197_v38, %s5305_s29  ;;  %v3272_v38 = vstv %s6830_s23  ;;  %s6880_s23 = sld [smem:[#allocation10 + $0x85]] }
 0x373   : > { %v3274_v6 = vmul.f32 %v3272_v38, %v6573_v42  ;;  %v2607_v56 = vrot.slane %v2603_v52, 6 }
 0x375   : > { %v6851_v1 = vpop.permute.xlu2 %2840  ;;  %v3278_v28 = vrot.slane %v3274_v6, 6  ;;  %v3301_v0 = vstv %s6872_s8  ;;  %s6926_s8 = sld [smem:[#allocation10 + $0xb4]] }
 0x377   : > { %3219 = vrot.lane.b32.xlu0 %v3217_v5, %s5306_s9  ;;  %3211 = vrot.lane.b32.xlu1 %v3210_v48, %s5305_s29  ;;  %v2570_v5 = vstv %s6832_s26  ;;  %v3273_v48 = vmul.f32 %v3272_v38, %v6564_v12  ;;  %s6886_s26 = sld [smem:[#allocation10 + $0x98]] }
 0x378   : > { %v2571_v54 = vmul.f32 %v2570_v5, %v6564_v12  ;;  %v3260_v5 = vmul.f32 %v3259_v24, %v6564_v12  ;;  %v3265_v24 = vrot.slane %v3261_v7, 4  ;;  %v2566_v7 = vstv %s6875_s1  ;;  %s6929_s1 = sld [smem:[#allocation10 + $0xc2]] }
 0x379   : > { %v6855_v20 = vpop.permute.xlu0 %2805  ;;  %v6862_v34 = vpop.permute.xlu1 %2797 }
 0x37a   : > { %3227 = vrot.lane.b32.xlu2 %v3225_v55, %s5306_s9  ;;  %v3235_v55 = vrot.slane %v3233_v62, 2  ;;  %v2573_v62 = vrot.slane %v2571_v54, 2  ;;  %v3264_v6 = vrot.slane %v3260_v5, 4  ;;  %v2591_v5 = vstv %s6880_s23  ;;  %s6933_s23 = sld [smem:[#allocation10 + $0xbd]] }
 0x37b   : > { %v2592_v52 = vmul.f32 %v2591_v5, %v6564_v12 }
 0x37c   : > { %v2575_v54 = vadd.f32 %v2573_v62, %v2563_v41  ;;  %v2593_v62 = vmul.f32 %v2591_v5, %v6573_v42  ;;  %v3293_v42 = vstv %s6903_s4  ;;  %s6977_s4 = sld [smem:[#allocation10 + $0x76]] }
 0x37d   : > { %v6884_v27 = vpop.permute.xlu2 %2874 }
 0x37e   : > { %v2597_v5 = vrot.slane %v2593_v62, 4  ;;  %v3319_v62 = vstv %s6926_s8  ;;  %s7014_s8 = sld [smem:[#allocation10 + $0x92]] }
 0x37f   : > { %3245 = vrot.lane.b32.xlu0 %v3244_v37, %s5306_s9  ;;  %3236 = vrot.lane.b32.xlu1 %v3235_v55, %s5306_s9  ;;  %v3277_v37 = vrot.slane %v3273_v48, 6  ;;  %v2577_v48 = vstv %s6865_s11  ;;  %v2608_v55 = vrot.slane %v2604_v39, 6  ;;  %s6916_s11 = sld [smem:[#allocation10 + $0xaf]]  ;;  %v2589_v39 = vadd.f32 %v2587_v9, %v2575_v54 }
 0x380   : > { %v2578_v21 = vmul.f32 %v2577_v48, %v6564_v12  ;;  %v3310_v54 = vstv %s6901_s30  ;;  %s6966_s30 = sld [smem:[#allocation10 + $0x6f]] }
 0x381   : > { %v6888_v38 = vpop.permute.xlu0 %2831  ;;  %v6899_v17 = vpop.permute.xlu1 %2822  ;;  %v3279_v46 = vsel %vm611_vm15, %v3277_v37, %v3278_v28  ;;  %v3266_v28 = vsel %vm574_vm14, %v3264_v6, %v3265_v24  ;;  %v3302_v37 = vmul.f32 %v3301_v0, %v6602_v59  ;;  %v2609_v6 = vsel %vm611_vm15, %v2607_v56, %v2608_v55 }
 0x382   : > { %3254 = vrot.lane.b32.xlu2 %v3253_v50, %s5306_s9  ;;  %v3285_v50 = vstv %s6886_s26  ;;  %v2567_v24 = vmul.f32 %v2566_v7, %v6564_v12  ;;  %s6938_s26 = sld [smem:[#allocation10 + $0xa8]]  ;;  %v2580_v0 = vrot.slane %v2578_v21, 2  ;;  %v3329_v56 = vmul.f32 %v3328_v15, %v6602_v59 }
 0x383   : > { %v3286_v48 = vmul.f32 %v3285_v50, %v6602_v59  ;;  %v3304_v9 = vrot.slane %v3302_v37, 2  ;;  %v3330_v12 = vmul.f32 %v3328_v15, %v6618_v36  ;;  %v2611_v55 = vadd.f32 %v2609_v6, %v2589_v39 }
 0x384   : > { %v2596_v7 = vrot.slane %v2592_v52, 4  ;;  %v2621_v50 = vstv %s6911_s7  ;;  %v3311_v21 = vmul.f32 %v3310_v54, %v6602_v59  ;;  %v3341_v54 = vstv %s6929_s1  ;;  %s6989_s7 = sld [smem:[#allocation10 + $0x84]] }
 0x385   : > { %v6919_v19 = vpop.permute.xlu2 %2900  ;;  %v2670_v37 = vadd.f32 %v6752_v33, %v2611_v55  ;;  %v2635_v15 = vstv %s6916_s11  ;;  %v2622_v6 = vmul.f32 %v2621_v50, %v6602_v59  ;;  %v3334_v31 = vrot.slane %v3330_v12, 4  ;;  %s7004_s11 = sld [smem:[#allocation10 + $0x7d]] }
 0x386   : > { %v2598_v33 = vsel %vm574_vm14, %v2596_v7, %v2597_v5  ;;  %v2636_v55 = vmul.f32 %v2635_v15, %v6602_v59  ;;  %v3313_v13 = vrot.slane %v3311_v21, 2  ;;  %v2642_v12 = vstv %s6943_s19  ;;  %s6997_s19 = sld [smem:[#allocation10 + $0x8b]] }
 0x387   : > { %3280 = vrot.lane.b32.xlu0 %v3279_v46, %s5306_s9  ;;  %3267 = vrot.lane.b32.xlu1 %v3266_v28, %s5306_s9  ;;  %v3294_v28 = vmul.f32 %v3293_v42, %v6602_v59  ;;  %v2653_v42 = vstv %s6933_s23  ;;  %v3342_v7 = vmul.f32 %v3341_v54, %v6602_v59  ;;  %s7032_s1 = sld [smem:[#allocation10 + $0x99]] }
 0x388   : > { %v2628_v25 = vstv %s6938_s26  ;;  %v2654_v21 = vmul.f32 %v2653_v42, %v6602_v59  ;;  %s7040_s23 = sld [smem:[#allocation10 + $0xae]] }
 0x389   : > { %v6923_v41 = vpop.permute.xlu0 %2866  ;;  %v6941_v46 = vpop.permute.xlu1 %2853  ;;  %s7044_s26 = sld [smem:[#allocation10 + $0xa0]] }
 0x38a   : > { %3288 = vrot.lane.b32.xlu2 %v3286_v48, %s5306_s9  ;;  %v2582_v48 = vadd.f32 %v2580_v0, %v2567_v24  ;;  %v2687_v24 = vadd.f32 %v6782_v22, %v2670_v37  ;;  %v2613_v0 = vstv %s6906_s5  ;;  %v3343_v22 = vmul.f32 %v3341_v54, %v6618_v36  ;;  %s6983_s5 = sld [smem:[#allocation10 + $0x68]] }
 0x38b   : > { %v2614_v5 = vmul.f32 %v2613_v0, %v6602_v59  ;;  %v2624_v37 = vrot.slane %v2622_v6, 2  ;;  %v2643_v0 = vmul.f32 %v2642_v12, %v6602_v59  ;;  %v2644_v6 = vmul.f32 %v2642_v12, %v6618_v36 }
 0x38c   : > { %v2600_v54 = vadd.f32 %v2598_v33, %v2582_v48  ;;  %v3347_v10 = vrot.slane %v3343_v22, 6  ;;  %v2658_v33 = vrot.slane %v2654_v21, 6 }
 0x38d   : > { %v6958_v39 = vpop.permute.xlu2 %2935  ;;  %v2626_v48 = vadd.f32 %v2624_v37, %v2614_v5  ;;  %v2648_v22 = vrot.slane %v2644_v6, 4  ;;  %v5144_v37 = vld [vmem:[#allocation3] sm:$0xff] }
 0x38f   : > { %3305 = vrot.lane.b32.xlu0 %v3304_v9, %s5306_s9  ;;  %3296 = vrot.lane.b32.xlu1 %v3294_v28, %s5306_s9  ;;  %v3333_v9 = vrot.slane %v3329_v56, 4  ;;  %v3320_v28 = vmul.f32 %v3319_v62, %v6602_v59  ;;  %v2705_v56 = vadd.f32 %v6798_v44, %v2687_v24  ;;  %v2655_v44 = vmul.f32 %v2653_v42, %v6618_v36 }
 0x390   : > { %v2617_v62 = vstv %s6951_s6  ;;  %v2629_v24 = vmul.f32 %v2628_v25, %v6602_v59  ;;  %v3346_v42 = vrot.slane %v3342_v7, 6  ;;  %v2647_v7 = vrot.slane %v2643_v0, 4  ;;  %s7048_s6 = sld [smem:[#allocation10 + $0xa7]] }
 0x391   : > { %v6960_v52 = vpop.permute.xlu0 %2891  ;;  %v6974_v50 = vpop.permute.xlu1 %2882  ;;  %v3335_v15 = vsel %vm574_vm14, %v3333_v9, %v3334_v31  ;;  %v3322_v26 = vrot.slane %v3320_v28, 4  ;;  %v2731_v31 = vadd.f32 %v6780_v23, %v2705_v56  ;;  %v2618_v36 = vmul.f32 %v2617_v62, %v6602_v59 }
 0x392   : > { %3314 = vrot.lane.b32.xlu2 %v3313_v13, %s5306_s9  ;;  %v2638_v13 = vrot.slane %v2636_v55, 4  ;;  %v3362_v28 = vstv %s6966_s30  ;;  %v2678_v23 = vadd.f32 %v6785_v40, %v2600_v54  ;;  %v2659_v55 = vrot.slane %v2655_v44, 6  ;;  %s7055_s30 = sld [smem:[#allocation10 + $0xc3]] }
 0x393   : > { %v2631_v56 = vrot.slane %v2629_v24, 2  ;;  %v2808_v12 = vadd.f32 %v6855_v20, %v2731_v31  ;;  %v3354_v5 = vstv %s6983_s5  ;;  %v3363_v21 = vmul.f32 %v5144_v37, %v3362_v28  ;;  %s7065_s5 = sld [smem:[#allocation10 + $0xbc]] }
 0x394   : > { %v3388_v40 = vstv %s6989_s7  ;;  %v2696_v20 = vadd.f32 %v6764_v3, %v2678_v23  ;;  %v2640_v44 = vadd.f32 %v2638_v13, %v2626_v48  ;;  %v2660_v62 = vsel %vm611_vm15, %v2658_v33, %v2659_v55  ;;  %v5145_v23 = vld [vmem:[#allocation3 + $0x8] sm:$0x3]  ;;  %s7084_s7 = sld [smem:[#allocation10 + $0xcd]] }
 0x395   : > { %v7000_v9 = vpop.permute.xlu2 %2960  ;;  %v2825_v59 = vadd.f32 %v6899_v17, %v2808_v12  ;;  %v2633_v24 = vadd.f32 %v2631_v56, %v2618_v36  ;;  %v2649_v54 = vsel %vm574_vm14, %v2647_v7, %v2648_v22  ;;  %v3355_v0 = vmul.f32 %v5144_v37, %v3354_v5 }
 0x396   : > { %v2718_v6 = vadd.f32 %v6795_v8, %v2696_v20  ;;  %v3379_v3 = vstv %s7004_s11  ;;  %v3389_v13 = vmul.f32 %v5144_v37, %v3388_v40  ;;  %v2662_v48 = vadd.f32 %v2660_v62, %v2640_v44  ;;  %s7091_s11 = sld [smem:[#allocation10 + $0xd0]] }
 0x397   : > { %3336 = vrot.lane.b32.xlu0 %v3335_v15, %s5306_s9  ;;  %3323 = vrot.lane.b32.xlu1 %v3322_v26, %s5306_s9  ;;  %v3370_v15 = vstv %s6977_s4  ;;  %v3348_v26 = vsel %vm611_vm15, %v3346_v42, %v3347_v10  ;;  %v3397_v10 = vstv %s6997_s19  ;;  %v2843_v31 = vadd.f32 %v6851_v1, %v2825_v59  ;;  %s7060_s4 = sld [smem:[#allocation10 + $0xb5]] }
 0x398   : > { %v3371_v17 = vmul.f32 %v5144_v37, %v3370_v15  ;;  %v3398_v36 = vmul.f32 %v5144_v37, %v3397_v10  ;;  %v3399_v55 = vmul.f32 %v5145_v23, %v3397_v10  ;;  %v2651_v56 = vadd.f32 %v2649_v54, %v2633_v24  ;;  %s7088_s19 = sld [smem:[#allocation10 + $0xcb]] }
 0x399   : > { %v7002_v25 = vpop.permute.xlu0 %2922  ;;  %v7012_v14 = vpop.permute.xlu1 %2909  ;;  %v2869_v33 = vadd.f32 %v6923_v41, %v2843_v31  ;;  %v3380_v1 = vmul.f32 %v5144_v37, %v3379_v3  ;;  %v3410_v7 = vstv %s7014_s8  ;;  %v2816_v22 = vadd.f32 %v6823_v16, %v2718_v6  ;;  %s7093_s8 = sld [smem:[#allocation10 + $0xce]] }
 0x39a   : > { %3349 = vrot.lane.b32.xlu2 %v3348_v26, %s5306_s9  ;;  %v3373_v8 = vrot.slane %v3371_v17, 2  ;;  %v2739_v15 = vadd.f32 %v6812_v47, %v2662_v48  ;;  %v3391_v26 = vrot.slane %v3389_v13, 4  ;;  %v2747_v5 = vadd.f32 %v6808_v51, %v2651_v56  ;;  %v5146_v13 = vld [vmem:[#allocation3 + $0x10] sm:$0xff] }
 0x39b   : > { %v2834_v41 = vadd.f32 %v6888_v38, %v2816_v22  ;;  %v3403_v40 = vrot.slane %v3399_v55, 4  ;;  %v3382_v47 = vrot.slane %v3380_v1, 2  ;;  %v3411_v44 = vmul.f32 %v5144_v37, %v3410_v7 }
 0x39c   : > { %v2765_v16 = vadd.f32 %v6834_v2, %v2747_v5  ;;  %v2756_v51 = vadd.f32 %v6793_v18, %v2739_v15  ;;  %v3412_v54 = vmul.f32 %v5145_v23, %v3410_v7  ;;  %v3479_v1 = vstv %s7055_s30  ;;  %s4947_s30 = sld [smem:[#allocation10 + $0xfe]] }
 0x39d   : > { %v7028_v42 = vpop.permute.xlu2 %2991  ;;  %v2856_v62 = vadd.f32 %v6941_v46, %v2834_v41  ;;  %v3415_v37 = vrot.slane %v3411_v44, 6 }
 0x39e   : > { %v2774_v2 = vadd.f32 %v6825_v57, %v2756_v51  ;;  %v3416_v3 = vrot.slane %v3412_v54, 6 }
 0x39f   : > { %3365 = vrot.lane.b32.xlu0 %v3363_v21, %s5307_s10  ;;  %3357 = vrot.lane.b32.xlu1 %v3355_v0, %s5307_s10  ;;  %v3402_v21 = vrot.slane %v3398_v36, 4  ;;  %v3423_v0 = vstv %s7032_s1  ;;  %s4939_s1 = sld [smem:[#allocation10 + $0xcc]] }
 0x3a0   : > { %v2800_v6 = vadd.f32 %v6862_v34, %v2774_v2  ;;  %v3424_v48 = vmul.f32 %v5146_v13, %v3423_v0  ;;  %v3417_v23 = vsel %vm611_vm15, %v3415_v37, %v3416_v3  ;;  %v3645_v37 = vstv %s7084_s7  ;;  %s4948_s7 = sld [smem:[#allocation10 + $0xff]] }
 0x3a1   : > { %v2952_v28 = vpop.permute.xlu0 %2951  ;;  %v2944_v12 = vpop.permute.xlu1 %2943  ;;  %v3404_v18 = vsel %vm574_vm14, %v3402_v21, %v3403_v40  ;;  %v3480_v21 = vmul.f32 %v5146_v13, %v3479_v1  ;;  %v3629_v3 = vstv %s7088_s19  ;;  %s4950_s19 = sld [smem:[#allocation10 + $0x101]] }
 0x3a2   : > { %v2946_v59 = vadd.f32 %v2944_v12, %v2869_v33  ;;  %3374 = vrot.lane.b32.xlu2 %v3373_v8, %s5307_s10  ;;  %v2954_v10 = vadd.f32 %v2952_v28, %v2856_v62  ;;  %v3448_v28 = vstv %s7040_s23  ;;  %v3439_v33 = vstv %s7048_s6  ;;  %s7101_s23 = sld [smem:[#allocation10 + $0xd1]] }
 0x3a3   : > { %v2877_v34 = vadd.f32 %v6884_v27, %v2800_v6  ;;  %v3449_v56 = vmul.f32 %v5146_v13, %v3448_v28  ;;  %v3440_v15 = vmul.f32 %v5146_v13, %v3439_v33  ;;  %v3672_v33 = vstv %s7091_s11  ;;  %s7124_s6 = sld [smem:[#allocation10 + $0xfd]] }
 0x3a4   : > { %v2963_v20 = vadd.f32 %v7000_v9, %v2946_v59  ;;  %v2787_v9 = vadd.f32 %v6806_v11, %v2765_v16  ;;  %v3431_v11 = vstv %s7044_s26  ;;  %s4942_s26 = sld [smem:[#allocation10 + $0xcf]] }
 0x3a5   : > { %v3021_v38 = vpop.permute.xlu2 %3020  ;;  %v2894_v12 = vadd.f32 %v6960_v52, %v2877_v34  ;;  %v3432_v22 = vmul.f32 %v5146_v13, %v3431_v11  ;;  %v3451_v41 = vrot.slane %v3449_v56, 2  ;;  %v3442_v16 = vrot.slane %v3440_v15, 2  ;;  %v7109_v11 = vld [vmem:[#allocation4 + $0x8] sm:$0x3]  ;;  %s7143_s11 = sld [smem:[#allocation10 + $0x102]] }
 0x3a6   : > { %v2885_v57 = vadd.f32 %v6974_v50, %v2787_v9  ;;  %v3637_v56 = vstv %s4939_s1  ;;  %s7161_s1 = sld [smem:[#allocation10 + $0xd5]] }
 0x3a7   : > { %3392 = vrot.lane.b32.xlu0 %v3391_v26, %s5307_s10  ;;  %3383 = vrot.lane.b32.xlu1 %v3382_v47, %s5307_s10  ;;  %v2912_v59 = vadd.f32 %v7012_v14, %v2894_v12  ;;  %v3457_v26 = vstv %s7060_s4  ;;  %s4945_s4 = sld [smem:[#allocation10 + $0xfc]] }
 0x3a8   : > { %v2903_v8 = vadd.f32 %v6919_v19, %v2885_v57  ;;  %v5147_v19 = vld [vmem:[#allocation3 + $0x18] sm:$0x3]  ;;  %v3685_v15 = vstv %s7101_s23  ;;  %s7164_s23 = sld [smem:[#allocation10 + $0xd3]] }
 0x3a9   : > { %v2979_v24 = vpop.permute.xlu0 %2978  ;;  %v2970_v46 = vpop.permute.xlu1 %2969  ;;  %v3481_v40 = vmul.f32 %v5147_v19, %v3479_v1  ;;  %v3674_v1 = vmul.f32 %v3672_v33, %v7109_v11 }
 0x3aa   : > { %v2981_v17 = vadd.f32 %v2979_v24, %v2963_v20  ;;  %v2972_v31 = vadd.f32 %v2970_v46, %v2954_v10  ;;  %3405 = vrot.lane.b32.xlu2 %v3404_v18, %s5307_s10  ;;  %v2925_v7 = vadd.f32 %v7002_v25, %v2903_v8  ;;  %v3458_v25 = vmul.f32 %v5146_v13, %v3457_v26  ;;  %v7095_v18 = vld [vmem:[#allocation4] sm:$0xff] }
 0x3ab   : > { %v2938_v20 = vadd.f32 %v6958_v39, %v2912_v59  ;;  %v3484_v24 = vrot.slane %v3480_v21, 6  ;;  %v3485_v54 = vrot.slane %v3481_v40, 6  ;;  %v3646_v57 = vmul.f32 %v3645_v37, %v7095_v18 }
 0x3ac   : > { %v7073_v50 = vadd.f32 %v7028_v42, %v2972_v31  ;;  %v3466_v42 = vstv %s7065_s5  ;;  %v3023_v52 = vadd.f32 %v3021_v38, %v2925_v7  ;;  %v3460_v38 = vrot.slane %v3458_v25, 4  ;;  %s7132_s5 = sld [smem:[#allocation10 + $0x100]] }
 0x3ad   : > { %v3048_v36 = vpop.permute.xlu2 %3047  ;;  %v3467_v44 = vmul.f32 %v5146_v13, %v3466_v42  ;;  %v3468_v51 = vmul.f32 %v5147_v19, %v3466_v42  ;;  %v3486_v46 = vsel %vm611_vm15, %v3484_v24, %v3485_v54  ;;  %v3630_v34 = vmul.f32 %v3629_v3, %v7095_v18  ;;  %v7135_v54 = vld [vmem:[#allocation4 + $0x10] sm:$0xff] }
 0x3ae   : > { %v3648_v8 = vrot.slane %v3646_v57, 2  ;;  %v3673_v12 = vmul.f32 %v3672_v33, %v7095_v18  ;;  %v3663_v26 = vstv %s4942_s26  ;;  %v3678_v42 = vrot.slane %v3674_v1, 4  ;;  %v7152_v33 = vld [vmem:[#allocation4 + $0x18] sm:$0x3]  ;;  %s4954_s26 = sld [smem:[#allocation10 + $0xd4]] }
 0x3af   : > { %3426 = vrot.lane.b32.xlu0 %v3424_v48, %s5307_s10  ;;  %3418 = vrot.lane.b32.xlu1 %v3417_v23, %s5307_s10  ;;  %v3471_v10 = vrot.slane %v3467_v44, 4  ;;  %v3472_v9 = vrot.slane %v3468_v51, 4  ;;  %v3686_v40 = vmul.f32 %v3685_v15, %v7095_v18  ;;  %v3664_v25 = vmul.f32 %v3663_v26, %v7095_v18 }
 0x3b1   : > { %v3013_v55 = vpop.permute.xlu0 %3012  ;;  %v3005_v27 = vpop.permute.xlu1 %3004  ;;  %v3473_v13 = vsel %vm574_vm14, %v3471_v10, %v3472_v9  ;;  %v3666_v51 = vrot.slane %v3664_v25, 4  ;;  %v3698_v10 = vstv %s4945_s4  ;;  %s4957_s4 = sld [smem:[#allocation10 + $0xd7]] }
 0x3b2   : > { %v3007_v5 = vadd.f32 %v3005_v27, %v2981_v17  ;;  %3434 = vrot.lane.b32.xlu2 %v3432_v22, %s5307_s10  ;;  %v3015_v0 = vadd.f32 %v3013_v55, %v2938_v20  ;;  %v3654_v55 = vstv %s7093_s8  ;;  %v3638_v22 = vmul.f32 %v3637_v56, %v7095_v18  ;;  %s7148_s8 = sld [smem:[#allocation10 + $0xd2]] }
 0x3b3   : > { %v3655_v7 = vmul.f32 %v3654_v55, %v7095_v18 }
 0x3b5   : > { %v3082_v47 = vpop.permute.xlu2 %3081  ;;  %v3657_v21 = vrot.slane %v3655_v7, 2 }
 0x3b6   : > { %v3084_v17 = vadd.f32 %v3082_v47, %v3007_v5 }
 0x3b7   : > { %3452 = vrot.lane.b32.xlu0 %v3451_v41, %s5307_s10  ;;  %3443 = vrot.lane.b32.xlu1 %v3442_v16, %s5307_s10  ;;  %v3677_v41 = vrot.slane %v3673_v12, 4 }
 0x3b9   : > { %v3039_v14 = vpop.permute.xlu0 %3038  ;;  %v3030_v2 = vpop.permute.xlu1 %3029  ;;  %v3679_v47 = vsel %vm574_vm14, %v3677_v41, %v3678_v42 }
 0x3ba   : > { %v3041_v62 = vadd.f32 %v3039_v14, %v3023_v52  ;;  %v3032_v39 = vadd.f32 %v3030_v2, %v3015_v0  ;;  %3461 = vrot.lane.b32.xlu2 %v3460_v38, %s5307_s10  ;;  %v3687_v52 = vmul.f32 %v3685_v15, %v7109_v11  ;;  %v3690_v14 = vrot.slane %v3686_v40, 6 }
 0x3bc   : > { %v3050_v6 = vadd.f32 %v3048_v36, %v3032_v39  ;;  %v3691_v44 = vrot.slane %v3687_v52, 6  ;;  %v3714_v39 = vstv %s4947_s30  ;;  %s4956_s30 = sld [smem:[#allocation10 + $0xd6]] }
 0x3bd   : > { %v3108_v31 = vpop.permute.xlu2 %3107 }
 0x3be   : > { %v3692_v0 = vsel %vm611_vm15, %v3690_v14, %v3691_v44  ;;  %v3792_v44 = vstv %s7161_s1  ;;  %s4965_s1 = sld [smem:[#allocation10 + $0x109]] }
 0x3bf   : > { %3487 = vrot.lane.b32.xlu0 %v3486_v46, %s5307_s10  ;;  %3474 = vrot.lane.b32.xlu1 %v3473_v13, %s5307_s10  ;;  %v3732_v46 = vstv %s7132_s5  ;;  %s7189_s5 = sld [smem:[#allocation10 + $0x105]] }
 0x3c0   : > { %v3733_v57 = vmul.f32 %v3732_v46, %v7135_v54 }
 0x3c1   : > { %v3074_v48 = vpop.permute.xlu0 %3073  ;;  %v3061_v36 = vpop.permute.xlu1 %3060 }
 0x3c2   : > { %v7107_v28 = vadd.f32 %v3074_v48, %v3050_v6  ;;  %v7113_v23 = vadd.f32 %v3061_v36, %v3041_v62  ;;  %3632 = vrot.lane.b32.xlu2 %v3630_v34, %s5302_s28  ;;  %v3715_v6 = vmul.f32 %v3714_v39, %v7135_v54  ;;  %v3723_v48 = vstv %s4948_s7  ;;  %s7198_s7 = sld [smem:[#allocation10 + $0x108]] }
 0x3c3   : > { %v3741_v34 = vstv %s4950_s19  ;;  %s7200_s19 = sld [smem:[#allocation10 + $0x106]] }
 0x3c4   : > { %v3717_v55 = vrot.slane %v3715_v6, 2  ;;  %v3742_v1 = vmul.f32 %v3741_v34, %v7135_v54  ;;  %v3743_v7 = vmul.f32 %v3741_v34, %v7152_v33 }
 0x3c5   : > { %v3143_v27 = vpop.permute.xlu2 %3142 }
 0x3c7   : > { %3649 = vrot.lane.b32.xlu0 %v3648_v8, %s5302_s28  ;;  %3640 = vrot.lane.b32.xlu1 %v3638_v22, %s5302_s28  ;;  %v3724_v8 = vmul.f32 %v3723_v48, %v7135_v54  ;;  %v3735_v22 = vrot.slane %v3733_v57, 4  ;;  %v3810_v48 = vstv %s4957_s4  ;;  %s7233_s4 = sld [smem:[#allocation10 + $0xde]] }
 0x3c9   : > { %v3099_v59 = vpop.permute.xlu0 %3098  ;;  %v3090_v19 = vpop.permute.xlu1 %3089 }
 0x3ca   : > { %v3101_v5 = vadd.f32 %v3099_v59, %v3084_v17  ;;  %v3092_v16 = vadd.f32 %v3090_v19, %v7073_v50  ;;  %3658 = vrot.lane.b32.xlu2 %v3657_v21, %s5302_s28  ;;  %v3706_v17 = vstv %s7124_s6  ;;  %v3767_v59 = vstv %s7148_s8  ;;  %s7170_s6 = sld [smem:[#allocation10 + $0xd8]] }
 0x3cb   : > { %v3707_v9 = vmul.f32 %v3706_v17, %v7135_v54  ;;  %v3768_v25 = vmul.f32 %v3767_v59, %v7095_v18  ;;  %v3783_v17 = vstv %s4954_s26  ;;  %s4963_s8 = sld [smem:[#allocation10 + $0x107]] }
 0x3cc   : > { %v3110_v20 = vadd.f32 %v3108_v31, %v3092_v16  ;;  %v3699_v31 = vmul.f32 %v3698_v10, %v7135_v54  ;;  %v3784_v46 = vmul.f32 %v3783_v17, %v7095_v18  ;;  %s7223_s26 = sld [smem:[#allocation10 + $0xdb]] }
 0x3cd   : > { %v3168_v62 = vpop.permute.xlu2 %3167 }
 0x3ce   : > { %v3786_v34 = vrot.slane %v3784_v46, 2 }
 0x3cf   : > { %3680 = vrot.lane.b32.xlu0 %v3679_v47, %s5302_s28  ;;  %3667 = vrot.lane.b32.xlu1 %v3666_v51, %s5302_s28  ;;  %v3775_v51 = vstv %s7164_s23  ;;  %s4967_s23 = sld [smem:[#allocation10 + $0xda]] }
 0x3d0   : > { %v3823_v39 = vstv %s7170_s6  ;;  %v3776_v10 = vmul.f32 %v3775_v51, %v7095_v18  ;;  %s4966_s6 = sld [smem:[#allocation10 + $0xd9]] }
 0x3d1   : > { %v3130_v24 = vpop.permute.xlu0 %3129  ;;  %v3117_v38 = vpop.permute.xlu1 %3116  ;;  %v3824_v57 = vmul.f32 %v3823_v39, %v7095_v18 }
 0x3d2   : > { %v3132_v50 = vadd.f32 %v3130_v24, %v3110_v20  ;;  %v3119_v2 = vadd.f32 %v3117_v38, %v3101_v5  ;;  %3693 = vrot.lane.b32.xlu2 %v3692_v0, %s5302_s28  ;;  %v3746_v5 = vrot.slane %v3742_v1, 4  ;;  %v3793_v0 = vmul.f32 %v3792_v44, %v7095_v18 }
 0x3d3   : > { %v3828_v1 = vrot.slane %v3824_v57, 6  ;;  %v3861_v44 = vstv %s7200_s19  ;;  %s7260_s19 = sld [smem:[#allocation10 + $0x10b]] }
 0x3d4   : > { %v3145_v37 = vadd.f32 %v3143_v27, %v3119_v2  ;;  %v3754_v27 = vstv %s7143_s11  ;;  %s4960_s11 = sld [smem:[#allocation10 + $0x104]]  ;;  %v3862_v17 = vmul.f32 %v3861_v44, %v7135_v54 }
 0x3d5   : > { %v3199_v3 = vpop.permute.xlu2 %3198  ;;  %v3755_v42 = vmul.f32 %v3754_v27, %v7135_v54  ;;  %v3756_v21 = vmul.f32 %v3754_v27, %v7152_v33 }
 0x3d7   : > { %3709 = vrot.lane.b32.xlu0 %v3707_v9, %s5302_s28  ;;  %3701 = vrot.lane.b32.xlu1 %v3699_v31, %s5302_s28  ;;  %v3759_v20 = vrot.slane %v3755_v42, 6  ;;  %v3760_v14 = vrot.slane %v3756_v21, 6  ;;  %v3801_v31 = vstv %s4956_s30  ;;  %s7230_s30 = sld [smem:[#allocation10 + $0xdd]] }
 0x3d9   : > { %v3159_v13 = vpop.permute.xlu0 %3158  ;;  %v3151_v56 = vpop.permute.xlu1 %3150  ;;  %v3761_v24 = vsel %vm611_vm15, %v3759_v20, %v3760_v14 }
 0x3da   : > { %v3161_v36 = vadd.f32 %v3159_v13, %v7113_v23  ;;  %v3153_v12 = vadd.f32 %v3151_v56, %v7107_v28  ;;  %3718 = vrot.lane.b32.xlu2 %v3717_v55, %s5302_s28  ;;  %v3726_v23 = vrot.slane %v3724_v8, 2  ;;  %v3747_v28 = vrot.slane %v3743_v7, 4 }
 0x3db   : > { %v3795_v13 = vrot.slane %v3793_v0, 2  ;;  %v3811_v56 = vmul.f32 %v3810_v48, %v7095_v18  ;;  %v3812_v8 = vmul.f32 %v3810_v48, %v7109_v11  ;;  %v3844_v51 = vstv %s4960_s11  ;;  %s7264_s11 = sld [smem:[#allocation10 + $0x10c]] }
 0x3dc   : > { %v3170_v15 = vadd.f32 %v3168_v62, %v3153_v12  ;;  %v3748_v16 = vsel %vm574_vm14, %v3746_v5, %v3747_v28  ;;  %v3852_v28 = vstv %s7189_s5  ;;  %v3845_v0 = vmul.f32 %v3844_v51, %v7135_v54  ;;  %s4969_s5 = sld [smem:[#allocation10 + $0xdc]] }
 0x3dd   : > { %v3228_v26 = vpop.permute.xlu2 %3227  ;;  %v3815_v59 = vrot.slane %v3811_v56, 4 }
 0x3de   : > { %v3230_v19 = vadd.f32 %v3228_v26, %v3132_v50  ;;  %v3816_v26 = vrot.slane %v3812_v8, 4 }
 0x3df   : > { %3736 = vrot.lane.b32.xlu0 %v3735_v22, %s5302_s28  ;;  %3727 = vrot.lane.b32.xlu1 %v3726_v23, %s5302_s28 }
 0x3e1   : > { %v3186_v41 = vpop.permute.xlu0 %3185  ;;  %v3177_v52 = vpop.permute.xlu1 %3176 }
 0x3e2   : > { %v3188_v40 = vadd.f32 %v3186_v41, %v3170_v15  ;;  %v3179_v47 = vadd.f32 %v3177_v52, %v3161_v36  ;;  %3749 = vrot.lane.b32.xlu2 %v3748_v16, %s5302_s28  ;;  %v3853_v52 = vmul.f32 %v3852_v28, %v7135_v54  ;;  %v3879_v16 = vstv %s7198_s7  ;;  %s7257_s7 = sld [smem:[#allocation10 + $0x10d]] }
 0x3e3   : > { %v3939_v28 = vstv %s7230_s30  ;;  %s7283_s30 = sld [smem:[#allocation10 + $0xca]] }
 0x3e4   : > { %v7180_v38 = vadd.f32 %v3199_v3, %v3179_v47  ;;  %v3825_v3 = vmul.f32 %v3823_v39, %v7109_v11 }
 0x3e5   : > { %v3255_v62 = vpop.permute.xlu2 %3254 }
 0x3e6   : > { %v3829_v7 = vrot.slane %v3825_v3, 6 }
 0x3e7   : > { %3770 = vrot.lane.b32.xlu0 %v3768_v25, %s5303_s22  ;;  %3762 = vrot.lane.b32.xlu1 %v3761_v24, %s5302_s28  ;;  %s7193_s28 = sld [smem:[#allocation10 + $0x103]]  ;;  %v3880_v24 = vmul.f32 %v3879_v16, %v7135_v54 }
 0x3e8   : > { %v3830_v5 = vsel %vm611_vm15, %v3828_v1, %v3829_v7 }
 0x3e9   : > { %v3220_v50 = vpop.permute.xlu0 %3219  ;;  %v3212_v9 = vpop.permute.xlu1 %3211 }
 0x3ea   : > { %v3222_v2 = vadd.f32 %v3220_v50, %v3145_v37  ;;  %v3214_v6 = vadd.f32 %v3212_v9, %v3188_v40  ;;  %3778 = vrot.lane.b32.xlu2 %v3776_v10, %s5303_s22  ;;  %v3802_v37 = vmul.f32 %v3801_v31, %v7095_v18  ;;  %v3881_v50 = vmul.f32 %v3879_v16, %v7152_v33 }
 0x3eb   : > { %v3870_v10 = vstv %s4963_s8  ;;  %v3892_v9 = vstv %s4965_s1  ;;  %v3930_v16 = vstv %s4969_s5  ;;  %s7267_s8 = sld [smem:[#allocation10 + $0xc6]] }
 0x3ec   : > { %v3804_v27 = vrot.slane %v3802_v37, 4  ;;  %v3885_v31 = vrot.slane %v3881_v50, 4  ;;  %v3871_v57 = vmul.f32 %v3870_v10, %v7135_v54  ;;  %v3893_v37 = vmul.f32 %v3892_v9, %v7135_v54  ;;  %s7270_s1 = sld [smem:[#allocation10 + $0x110]] }
 0x3ed   : > { %v3289_v36 = vpop.permute.xlu2 %3288  ;;  %v3836_v21 = vstv %s7193_s28  ;;  %s7241_s28 = sld [smem:[#allocation10 + $0xdf]]  ;;  %v3931_v50 = vmul.f32 %v3930_v16, %v7095_v18 }
 0x3ee   : > { %v3291_v22 = vadd.f32 %v3289_v36, %v3214_v6  ;;  %v3837_v47 = vmul.f32 %v3836_v21, %v7135_v54  ;;  %v3884_v6 = vrot.slane %v3880_v24, 4  ;;  %v3873_v56 = vrot.slane %v3871_v57, 4  ;;  %s7298_s5 = sld [smem:[#allocation10 + $0xc7]] }
 0x3ef   : > { %3796 = vrot.lane.b32.xlu0 %v3795_v13, %s5303_s22  ;;  %3787 = vrot.lane.b32.xlu1 %v3786_v34, %s5303_s22  ;;  %v3864_v13 = vrot.slane %v3862_v17, 2  ;;  %v3894_v34 = vmul.f32 %v3892_v9, %v7152_v33  ;;  %v3897_v8 = vrot.slane %v3893_v37, 6  ;;  %v3933_v9 = vrot.slane %v3931_v50, 2 }
 0x3f0   : > { %v3886_v36 = vsel %vm574_vm14, %v3884_v6, %v3885_v31 }
 0x3f1   : > { %v3246_v55 = vpop.permute.xlu0 %3245  ;;  %v3237_v15 = vpop.permute.xlu1 %3236 }
 0x3f2   : > { %v3248_v12 = vadd.f32 %v3246_v55, %v3230_v19  ;;  %v3239_v23 = vadd.f32 %v3237_v15, %v3222_v2  ;;  %3805 = vrot.lane.b32.xlu2 %v3804_v27, %s5303_s22  ;;  %v3817_v19 = vsel %vm574_vm14, %v3815_v59, %v3816_v26  ;;  %v3921_v15 = vstv %s7223_s26  ;;  %s7278_s26 = sld [smem:[#allocation10 + $0x10f]] }
 0x3f3   : > { %v3905_v26 = vstv %s4966_s6  ;;  %s7280_s6 = sld [smem:[#allocation10 + $0xc4]] }
 0x3f4   : > { %v3257_v41 = vadd.f32 %v3255_v62, %v3239_v23  ;;  %v3855_v62 = vrot.slane %v3853_v52, 2  ;;  %v3906_v21 = vmul.f32 %v3905_v26, %v7095_v18  ;;  %v4030_v26 = vstv %s7270_s1  ;;  %s7335_s1 = sld [smem:[#allocation10 + $0xe1]] }
 0x3f5   : > { %v3315_v42 = vpop.permute.xlu2 %3314 }
 0x3f7   : > { %3831 = vrot.lane.b32.xlu0 %v3830_v5, %s5303_s22  ;;  %3818 = vrot.lane.b32.xlu1 %v3817_v19, %s5303_s22 }
 0x3f8   : > { %v4017_v16 = vstv %s7278_s26  ;;  %s7349_s26 = sld [smem:[#allocation10 + $0xf7]] }
 0x3f9   : > { %v3281_v40 = vpop.permute.xlu0 %3280  ;;  %v3268_v20 = vpop.permute.xlu1 %3267 }
 0x3fa   : > { %v7210_v25 = vadd.f32 %v3281_v40, %v3257_v41  ;;  %v3270_v14 = vadd.f32 %v3268_v20, %v3248_v12  ;;  %3839 = vrot.lane.b32.xlu2 %v3837_v47, %s5303_s22  ;;  %v3898_v12 = vrot.slane %v3894_v34, 6  ;;  %v3948_v40 = vstv %s7233_s4  ;;  %s7288_s4 = sld [smem:[#allocation10 + $0xc8]] }
 0x3fb   : > { %v3940_v47 = vmul.f32 %v3939_v28, %v7095_v18  ;;  %v3950_v24 = vmul.f32 %v3948_v40, %v7109_v11 }
 0x3fc   : > { %v3899_v23 = vsel %vm611_vm15, %v3897_v8, %v3898_v12 }
 0x3fd   : > { %v3350_v2 = vpop.permute.xlu2 %3349  ;;  %v3954_v10 = vrot.slane %v3950_v24, 4 }
 0x3ff   : > { %3856 = vrot.lane.b32.xlu0 %v3855_v62, %s5303_s22  ;;  %3847 = vrot.lane.b32.xlu1 %v3845_v0, %s5303_s22  ;;  %v3949_v62 = vmul.f32 %v3948_v40, %v7095_v18  ;;  %v3942_v0 = vrot.slane %v3940_v47, 4  ;;  %v4031_v47 = vmul.f32 %v4030_v26, %v7135_v54 }
 0x401   : > { %v3306_v39 = vpop.permute.xlu0 %3305  ;;  %v3297_v48 = vpop.permute.xlu1 %3296 }
 0x402   : > { %v3308_v46 = vadd.f32 %v3306_v39, %v3291_v22  ;;  %v3299_v3 = vadd.f32 %v3297_v48, %v7180_v38  ;;  %3865 = vrot.lane.b32.xlu2 %v3864_v13, %s5303_s22  ;;  %v3913_v22 = vstv %s4967_s23  ;;  %v3953_v39 = vrot.slane %v3949_v62, 4  ;;  %s7274_s23 = sld [smem:[#allocation10 + $0x10e]] }
 0x403   : > { %v3914_v5 = vmul.f32 %v3913_v22, %v7095_v18  ;;  %v3567_v62 = vstv %s7283_s30  ;;  %s7363_s30 = sld [smem:[#allocation10 + $0xf5]] }
 0x404   : > { %v3317_v55 = vadd.f32 %v3315_v42, %v3299_v3  ;;  %v3922_v42 = vmul.f32 %v3921_v15, %v7095_v18  ;;  %v3955_v3 = vsel %vm574_vm14, %v3953_v39, %v3954_v10  ;;  %v4019_v39 = vmul.f32 %v4017_v16, %v7152_v33 }
 0x405   : > { %v3375_v38 = vpop.permute.xlu2 %3374 }
 0x406   : > { %v3924_v44 = vrot.slane %v3922_v42, 2 }
 0x407   : > { %3887 = vrot.lane.b32.xlu0 %v3886_v36, %s5303_s22  ;;  %3874 = vrot.lane.b32.xlu1 %v3873_v56, %s5303_s22 }
 0x408   : > { %v4008_v40 = vstv %s7274_s23  ;;  %s7345_s23 = sld [smem:[#allocation10 + $0xe6]] }
 0x409   : > { %v3337_v1 = vpop.permute.xlu0 %3336  ;;  %v3324_v27 = vpop.permute.xlu1 %3323  ;;  %v4009_v24 = vmul.f32 %v4008_v40, %v7135_v54 }
 0x40a   : > { %v3339_v7 = vadd.f32 %v3337_v1, %v3317_v55  ;;  %v3326_v59 = vadd.f32 %v3324_v27, %v3308_v46  ;;  %3900 = vrot.lane.b32.xlu2 %v3899_v23, %s5303_s22  ;;  %s7249_s22 = sld [smem:[#allocation10 + $0x10a]]  ;;  %v3982_v1 = vstv %s7260_s19  ;;  %v3990_v27 = vstv %s7264_s11 }
 0x40b   : > { %v3991_v42 = vmul.f32 %v3990_v27, %v7135_v54  ;;  %s7324_s19 = sld [smem:[#allocation10 + $0xc5]] }
 0x40c   : > { %v3352_v41 = vadd.f32 %v3350_v2, %v3326_v59  ;;  %v3961_v2 = vstv %s7241_s28  ;;  %v3535_v59 = vstv %s7267_s8  ;;  %s7301_s28 = sld [smem:[#allocation10 + $0xc9]] }
 0x40d   : > { %v3406_v19 = vpop.permute.xlu2 %3405  ;;  %v3962_v31 = vmul.f32 %v3961_v2, %v7095_v18  ;;  %v3993_v50 = vrot.slane %v3991_v42, 2  ;;  %s7328_s11 = sld [smem:[#allocation10 + $0xe5]] }
 0x40e   : > { %s7332_s8 = sld [smem:[#allocation10 + $0xe3]] }
 0x40f   : > { %3916 = vrot.lane.b32.xlu0 %v3914_v5, %s5304_s27  ;;  %3908 = vrot.lane.b32.xlu1 %v3906_v21, %s5304_s27  ;;  %v3966_v36 = vrot.slane %v3962_v31, 6  ;;  %v3983_v5 = vmul.f32 %v3982_v1, %v7135_v54  ;;  %v3569_v31 = vmul.f32 %v3567_v62, %v7109_v11 }
 0x410   : > { %v3974_v57 = vstv %s7249_s22  ;;  %s7308_s22 = sld [smem:[#allocation10 + $0xe2]] }
 0x411   : > { %v3366_v52 = vpop.permute.xlu0 %3365  ;;  %v3358_v51 = vpop.permute.xlu1 %3357  ;;  %v3975_v56 = vmul.f32 %v3974_v57, %v7135_v54  ;;  %v3568_v57 = vmul.f32 %v3567_v62, %v7095_v18 }
 0x412   : > { %v3368_v20 = vadd.f32 %v3366_v52, %v3270_v14  ;;  %v3360_v17 = vadd.f32 %v3358_v51, %v7210_v25  ;;  %3925 = vrot.lane.b32.xlu2 %v3924_v44, %s5304_s27  ;;  %v3963_v25 = vmul.f32 %v3961_v2, %v7109_v11  ;;  %v3527_v51 = vstv %s7280_s6  ;;  %s7355_s6 = sld [smem:[#allocation10 + $0xe4]] }
 0x414   : > { %v3377_v14 = vadd.f32 %v3375_v38, %v3360_v17  ;;  %v3967_v55 = vrot.slane %v3963_v25, 6  ;;  %v3999_v38 = vstv %s7257_s7  ;;  %s7313_s7 = sld [smem:[#allocation10 + $0xe0]]  ;;  %v3549_v17 = vstv %s7288_s4 }
 0x415   : > { %v3435_v46 = vpop.permute.xlu2 %3434  ;;  %v4000_v15 = vmul.f32 %v3999_v38, %v7135_v54  ;;  %v3528_v25 = vmul.f32 %v3527_v51, %v7095_v18  ;;  %v4068_v62 = vstv %s7332_s8  ;;  %s7372_s4 = sld [smem:[#allocation10 + $0xfb]] }
 0x416   : > { %v3437_v13 = vadd.f32 %v3435_v46, %v3339_v7  ;;  %v3968_v7 = vsel %vm611_vm15, %v3966_v36, %v3967_v55  ;;  %v4035_v46 = vrot.slane %v4031_v47, 6  ;;  %v4023_v55 = vrot.slane %v4019_v39, 4  ;;  %s7411_s8 = sld [smem:[#allocation10 + $0x116]] }
 0x417   : > { %3943 = vrot.lane.b32.xlu0 %v3942_v0, %s5304_s27  ;;  %3934 = vrot.lane.b32.xlu1 %v3933_v9, %s5304_s27  ;;  %v4002_v52 = vrot.slane %v4000_v15, 2  ;;  %v4059_v1 = vstv %s7308_s22  ;;  %v4086_v47 = vstv %s7328_s11  ;;  %s7389_s22 = sld [smem:[#allocation10 + $0xf8]] }
 0x418   : > { %s7407_s11 = sld [smem:[#allocation10 + $0x115]] }
 0x419   : > { %v3393_v6 = vpop.permute.xlu0 %3392  ;;  %v3384_v37 = vpop.permute.xlu1 %3383 }
 0x41a   : > { %v3395_v48 = vadd.f32 %v3393_v6, %v3377_v14  ;;  %v3386_v34 = vadd.f32 %v3384_v37, %v3368_v20  ;;  %3956 = vrot.lane.b32.xlu2 %v3955_v3, %s5304_s27  ;;  %v4032_v20 = vmul.f32 %v4030_v26, %v7152_v33  ;;  %v4018_v14 = vmul.f32 %v4017_v16, %v7135_v54 }
 0x41b   : > { %v4011_v3 = vrot.slane %v4009_v24, 4 }
 0x41c   : > { %v3408_v8 = vadd.f32 %v3406_v19, %v3386_v34  ;;  %v4036_v6 = vrot.slane %v4032_v20, 6  ;;  %v4022_v36 = vrot.slane %v4018_v14, 4 }
 0x41d   : > { %v7285_v12 = vpop.permute.xlu2 %3461 }
 0x41e   : > { %v3492_v21 = vrot.slane %v3408_v8, 1  ;;  %v4037_v8 = vsel %vm611_vm15, %v4035_v46, %v4036_v6  ;;  %v4024_v42 = vsel %vm574_vm14, %v4022_v36, %v4023_v55  ;;  %v4087_v46 = vmul.f32 %v4086_v47, %v7095_v18 }
 0x41f   : > { %3977 = vrot.lane.b32.xlu0 %v3975_v56, %s5304_s27  ;;  %3969 = vrot.lane.b32.xlu1 %v3968_v7, %s5304_s27  ;;  %v3556_v56 = vstv %s7301_s28  ;;  %v3573_v7 = vrot.slane %v3569_v31, 6  ;;  %v4088_v6 = vmul.f32 %v4086_v47, %v7109_v11  ;;  %v4099_v36 = vstv %s7345_s23  ;;  %s7386_s28 = sld [smem:[#allocation10 + $0x112]] }
 0x420   : > { %v3558_v26 = vmul.f32 %v3556_v56, %v7109_v11  ;;  %s7419_s23 = sld [smem:[#allocation10 + $0x114]] }
 0x421   : > { %v3427_v22 = vpop.permute.xlu0 %3426  ;;  %v3419_v28 = vpop.permute.xlu1 %3418 }
 0x422   : > { %v3429_v23 = vadd.f32 %v3427_v22, %v3352_v41  ;;  %v3421_v19 = vadd.f32 %v3419_v28, %v3395_v48  ;;  %3985 = vrot.lane.b32.xlu2 %v3983_v5, %s5304_s27  ;;  %v3536_v41 = vmul.f32 %v3535_v59, %v7095_v18  ;;  %v3550_v48 = vmul.f32 %v3549_v17, %v7095_v18 }
 0x423   : > { %v4043_v22 = vstv %s7313_s7  ;;  %v3572_v59 = vrot.slane %v3568_v57, 6  ;;  %v3557_v5 = vmul.f32 %v3556_v56, %v7095_v18  ;;  %v3562_v24 = vrot.slane %v3558_v26, 4  ;;  %s7395_s7 = sld [smem:[#allocation10 + $0xfa]] }
 0x424   : > { %v7310_v44 = vadd.f32 %v3492_v21, %v3421_v19  ;;  %v3538_v10 = vrot.slane %v3536_v41, 2  ;;  %v4060_v21 = vmul.f32 %v4059_v1, %v7095_v18  ;;  %v4044_v41 = vmul.f32 %v4043_v22, %v7095_v18 }
 0x425   : > { %v7319_v0 = vpop.permute.xlu2 %3632  ;;  %v3574_v20 = vsel %vm611_vm15, %v3572_v59, %v3573_v7  ;;  %v4077_v56 = vstv %s7355_s6  ;;  %v4101_v59 = vmul.f32 %v4099_v36, %v7109_v11  ;;  %s7450_s6 = sld [smem:[#allocation10 + $0xe7]] }
 0x426   : > { %v3540_v38 = vadd.f32 %v3538_v10, %v3528_v25  ;;  %v4062_v14 = vrot.slane %v4060_v21, 2  ;;  %v4078_v26 = vmul.f32 %v4077_v56, %v7095_v18  ;;  %v3618_v21 = vstv %s7372_s4  ;;  %s4995_s4 = sld [smem:[#allocation10 + $0xe8]] }
 0x427   : > { %4003 = vrot.lane.b32.xlu0 %v4002_v52, %s5304_s27  ;;  %3994 = vrot.lane.b32.xlu1 %v3993_v50, %s5304_s27  ;;  %v3531_v52 = vstv %s7324_s19  ;;  %v3561_v50 = vrot.slane %v3557_v5, 4  ;;  %s7400_s19 = sld [smem:[#allocation10 + $0x111]] }
 0x428   : > { %v3532_v39 = vmul.f32 %v3531_v52, %v7095_v18  ;;  %v4105_v52 = vrot.slane %v4101_v59, 6 }
 0x429   : > { %v3453_v2 = vpop.permute.xlu0 %3452  ;;  %v3444_v37 = vpop.permute.xlu1 %3443 }
 0x42a   : > { %v3455_v9 = vadd.f32 %v3453_v2, %v3437_v13  ;;  %v3542_v13 = vstv %s7298_s5  ;;  %v3446_v34 = vadd.f32 %v3444_v37, %v3429_v23  ;;  %4012 = vrot.lane.b32.xlu2 %v4011_v3, %s5304_s27  ;;  %v3552_v23 = vrot.slane %v3550_v48, 4  ;;  %s7379_s5 = sld [smem:[#allocation10 + $0x113]] }
 0x42b   : > { %v3543_v15 = vmul.f32 %v3542_v13, %v7095_v18  ;;  %v4051_v2 = vstv %s7335_s1  ;;  %v3563_v3 = vsel %vm574_vm14, %v3561_v50, %v3562_v24  ;;  %v3586_v37 = vstv %s7349_s26  ;;  %s7413_s1 = sld [smem:[#allocation10 + $0xf6]] }
 0x42c   : > { %v3464_v27 = vadd.f32 %v7285_v12, %v3446_v34  ;;  %v3554_v19 = vadd.f32 %v3552_v23, %v3540_v38  ;;  %v4052_v57 = vmul.f32 %v4051_v2, %v7095_v18  ;;  %v3587_v22 = vmul.f32 %v3586_v37, %v7135_v54  ;;  %s7434_s26 = sld [smem:[#allocation10 + $0x117]] }
 0x42d   : > { %v7351_v28 = vpop.permute.xlu2 %3658  ;;  %v3545_v16 = vrot.slane %v3543_v15, 2  ;;  %v4100_v23 = vmul.f32 %v4099_v36, %v7095_v18  ;;  %v3619_v50 = vmul.f32 %v3618_v21, %v7135_v54  ;;  %v4146_v36 = vstv %s7407_s11  ;;  %s7493_s11 = sld [smem:[#allocation10 + $0xec]] }
 0x42e   : > { %v3576_v10 = vadd.f32 %v3574_v20, %v3554_v19  ;;  %v3589_v11 = vrot.slane %v3587_v22, 2  ;;  %v4120_v20 = vstv %s7386_s28  ;;  %v4155_v22 = vstv %s7411_s8  ;;  %s7471_s28 = sld [smem:[#allocation10 + $0x119]] }
 0x42f   : > { %4038 = vrot.lane.b32.xlu0 %v4037_v8, %s5304_s27  ;;  %4025 = vrot.lane.b32.xlu1 %v4024_v42, %s5304_s27  ;;  %s7367_s27 = sld [smem:[#allocation10 + $0xf9]]  ;;  %v3547_v25 = vadd.f32 %v3545_v16, %v3532_v39  ;;  %v4091_v8 = vrot.slane %v4087_v46, 4  ;;  %v3578_v42 = vstv %s7363_s30  ;;  %v4147_v59 = vmul.f32 %v4146_v36, %v7135_v54 }
 0x430   : > { %v3635_v48 = vadd.f32 %v7319_v0, %v3576_v10  ;;  %v4092_v0 = vrot.slane %v4088_v6, 4  ;;  %v4128_v46 = vstv %s7379_s5  ;;  %v4112_v6 = vstv %s7400_s19  ;;  %s7459_s30 = sld [smem:[#allocation10 + $0xe9]] }
 0x431   : > { %v3488_v12 = vpop.permute.xlu0 %3487  ;;  %v3475_v51 = vpop.permute.xlu1 %3474  ;;  %v3565_v7 = vadd.f32 %v3563_v3, %v3547_v25  ;;  %v3623_v3 = vrot.slane %v3619_v50, 6  ;;  %s4997_s5 = sld [smem:[#allocation10 + $0xea]] }
 0x432   : > { %v3490_v40 = vadd.f32 %v3488_v12, %v3464_v27  ;;  %v3477_v17 = vadd.f32 %v3475_v51, %v3455_v9  ;;  %4046 = vrot.lane.b32.xlu2 %v4044_v41, %s5305_s29  ;;  %v4069_v9 = vmul.f32 %v4068_v62, %v7095_v18  ;;  %v4080_v41 = vrot.slane %v4078_v26, 4  ;;  %s7481_s19 = sld [smem:[#allocation10 + $0x11c]] }
 0x433   : > { %v3620_v51 = vmul.f32 %v3618_v21, %v7152_v33  ;;  %v3579_v62 = vmul.f32 %v3578_v42, %v7135_v54  ;;  %v4156_v21 = vmul.f32 %v4155_v22, %v7135_v54  ;;  %s7495_s8 = sld [smem:[#allocation10 + $0x11d]] }
 0x434   : > { %v3496_v31 = vrot.slane %v3477_v17, 1  ;;  %v4071_v27 = vrot.slane %v4069_v9, 2  ;;  %v3593_v17 = vstv %s7389_s22  ;;  %s5003_s22 = sld [smem:[#allocation10 + $0x11a]] }
 0x435   : > { %v7382_v13 = vpop.permute.xlu2 %3693  ;;  %v3600_v12 = vstv %s7367_s27  ;;  %v3591_v2 = vadd.f32 %v3589_v11, %v3579_v62  ;;  %v3624_v25 = vrot.slane %v3620_v51, 6  ;;  %v4168_v51 = vstv %s7434_s26  ;;  %s5001_s27 = sld [smem:[#allocation10 + $0x118]] }
 0x436   : > { %v3498_v34 = vadd.f32 %v3496_v31, %v3490_v40  ;;  %v4104_v40 = vrot.slane %v4100_v23, 6  ;;  %v4121_v31 = vmul.f32 %v4120_v20, %v7135_v54  ;;  %v4137_v23 = vstv %s7419_s23  ;;  %s7505_s23 = sld [smem:[#allocation10 + $0x11e]] }
 0x437   : > { %4063 = vrot.lane.b32.xlu0 %v4062_v14, %s5305_s29  ;;  %4054 = vrot.lane.b32.xlu1 %v4052_v57, %s5305_s29  ;;  %v3607_v14 = vstv %s7395_s7  ;;  %v3594_v57 = vmul.f32 %v3593_v17, %v7135_v54  ;;  %v3625_v26 = vsel %vm611_vm15, %v3623_v3, %v3624_v25  ;;  %v4197_v36 = vstv %s7459_s30  ;;  %s4998_s7 = sld [smem:[#allocation10 + $0xeb]] }
 0x438   : > { %v7392_v1 = vadd.f32 %v3498_v34, %v7310_v44  ;;  %v4093_v44 = vsel %vm574_vm14, %v4091_v8, %v4092_v0  ;;  %v4106_v39 = vsel %vm611_vm15, %v4104_v40, %v4105_v52  ;;  %v3608_v37 = vmul.f32 %v3607_v14, %v7135_v54  ;;  %s5009_s26 = sld [smem:[#allocation10 + $0xef]] }
 0x439   : > { %v3650_v55 = vpop.permute.xlu0 %3649  ;;  %v3641_v15 = vpop.permute.xlu1 %3640  ;;  %v3609_v34 = vmul.f32 %v3607_v14, %v7152_v33  ;;  %v4113_v8 = vmul.f32 %v4112_v6, %v7135_v54  ;;  %v3582_v0 = vstv %s7413_s1  ;;  %v4138_v40 = vmul.f32 %v4137_v23, %v7135_v54  ;;  %s7501_s1 = sld [smem:[#allocation10 + $0xed]] }
 0x43a   : > { %v3652_v38 = vadd.f32 %v3650_v55, %v3635_v48  ;;  %8368 = vst [vmem:[#allocation214_spill] sm:$0xff] %v7392_v1  ;;  %v3643_v5 = vadd.f32 %v3641_v15, %v3565_v7  ;;  %4072 = vrot.lane.b32.xlu2 %v4071_v27, %s5305_s29  ;;  %v3596_v27 = vrot.slane %v3594_v57, 2  ;;  %v3583_v42 = vmul.f32 %v3582_v0, %v7135_v54  ;;  %v7474_v0 = vld [vmem:[#allocation4] sm:$0xff]  ;;  %s5010_s30 = sld [smem:[#allocation10 + $0xf0]] }
 0x43b   : > { %v4140_v17 = vrot.slane %v4138_v40, 2 }
 0x43c   : > { %v3661_v19 = vadd.f32 %v7351_v28, %v3643_v5  ;;  %v3601_v28 = vmul.f32 %v3600_v12, %v7135_v54  ;;  %v3613_v5 = vrot.slane %v3609_v34, 4 }
 0x43d   : > { %v3719_v16 = vpop.permute.xlu2 %3718 }
 0x43e   : > { %v3603_v48 = vrot.slane %v3601_v28, 4  ;;  %v4160_v28 = vrot.slane %v4156_v21, 4  ;;  %v4266_v21 = vstv %s5003_s22  ;;  %s5017_s22 = sld [smem:[#allocation10 + $0x121]] }
 0x43f   : > { %4094 = vrot.lane.b32.xlu0 %v4093_v44, %s5305_s29  ;;  %4081 = vrot.lane.b32.xlu1 %v4080_v41, %s5305_s29  ;;  %v3598_v41 = vadd.f32 %v3596_v27, %v3583_v42  ;;  %v4258_v42 = vstv %s7471_s28  ;;  %s7546_s28 = sld [smem:[#allocation10 + $0x122]] }
 0x440   : > { %v3605_v55 = vadd.f32 %v3603_v48, %v3591_v2  ;;  %v4259_v40 = vmul.f32 %v4258_v42, %v7135_v54 }
 0x441   : > { %v3681_v47 = vpop.permute.xlu0 %3680  ;;  %v3668_v10 = vpop.permute.xlu1 %3667 }
 0x442   : > { %v3683_v24 = vadd.f32 %v3681_v47, %v3661_v19  ;;  %v3670_v9 = vadd.f32 %v3668_v10, %v3652_v38  ;;  %4107 = vrot.lane.b32.xlu2 %v4106_v39, %s5305_s29  ;;  %v4129_v38 = vmul.f32 %v4128_v46, %v7135_v54  ;;  %v3627_v44 = vadd.f32 %v3625_v26, %v3605_v55 }
 0x443   : > { %v4157_v19 = vmul.f32 %v4155_v22, %v7152_v33  ;;  %v4149_v47 = vrot.slane %v4147_v59, 4  ;;  %v4169_v10 = vmul.f32 %v4168_v51, %v7135_v54  ;;  %v4170_v46 = vmul.f32 %v4168_v51, %v7152_v33 }
 0x444   : > { %v7438_v56 = vadd.f32 %v7382_v13, %v3670_v9  ;;  %v3612_v13 = vrot.slane %v3608_v37, 4  ;;  %v4131_v12 = vrot.slane %v4129_v38, 2  ;;  %v4181_v9 = vstv %s7450_s6  ;;  %s5008_s6 = sld [smem:[#allocation10 + $0xee]] }
 0x445   : > { %v7443_v7 = vpop.permute.xlu2 %3749  ;;  %v4161_v50 = vrot.slane %v4157_v19, 4  ;;  %v4173_v3 = vrot.slane %v4169_v10, 6  ;;  %v4174_v37 = vrot.slane %v4170_v46, 6  ;;  %v4182_v34 = vmul.f32 %v4181_v9, %v7095_v18 }
 0x446   : > { %v3614_v20 = vsel %vm574_vm14, %v3612_v13, %v3613_v5  ;;  %v4250_v55 = vstv %s5001_s27  ;;  %v4198_v22 = vmul.f32 %v7474_v0, %v4197_v36  ;;  %v4189_v59 = vstv %s4995_s4  ;;  %s5015_s27 = sld [smem:[#allocation10 + $0x11f]] }
 0x447   : > { %4123 = vrot.lane.b32.xlu0 %v4121_v31, %s5305_s29  ;;  %4115 = vrot.lane.b32.xlu1 %v4113_v8, %s5305_s29  ;;  %v3616_v14 = vadd.f32 %v3614_v20, %v3598_v41  ;;  %v4175_v38 = vsel %vm611_vm15, %v4173_v3, %v4174_v37  ;;  %v4251_v27 = vmul.f32 %v4250_v55, %v7135_v54  ;;  %v4206_v13 = vstv %s4997_s5  ;;  %v7518_v3 = vld [vmem:[#allocation4 + $0x8] sm:$0x3]  ;;  %s7541_s4 = sld [smem:[#allocation10 + $0xf1]] }
 0x448   : > { %v4200_v26 = vrot.slane %v4198_v22, 2  ;;  %v4207_v19 = vmul.f32 %v7474_v0, %v4206_v13  ;;  %v4267_v41 = vmul.f32 %v4266_v21, %v7135_v54  ;;  %v4224_v46 = vstv %s7493_s11  ;;  %s5016_s5 = sld [smem:[#allocation10 + $0x120]] }
 0x449   : > { %v3710_v15 = vpop.permute.xlu0 %3709  ;;  %v3702_v11 = vpop.permute.xlu1 %3701  ;;  %v4226_v37 = vmul.f32 %v7518_v3, %v4224_v46  ;;  %v4237_v36 = vstv %s7501_s1  ;;  %s7570_s11 = sld [smem:[#allocation10 + $0x125]] }
 0x44a   : > { %v3704_v52 = vadd.f32 %v3702_v11, %v3627_v44  ;;  %4132 = vrot.lane.b32.xlu2 %v4131_v12, %s5305_s29  ;;  %v3712_v25 = vadd.f32 %v3710_v15, %v3616_v14  ;;  %v4190_v44 = vmul.f32 %v7474_v0, %v4189_v59  ;;  %v4209_v51 = vrot.slane %v4207_v19, 2  ;;  %s4727_s1 = sld [smem:[#allocation10 + $0x15]] }
 0x44b   : > { %v4239_v59 = vmul.f32 %v7518_v3, %v4237_v36 }
 0x44c   : > { %v3721_v62 = vadd.f32 %v3719_v16, %v3704_v52  ;;  %v4162_v16 = vsel %vm574_vm14, %v4160_v28, %v4161_v50 }
 0x44d   : > { %v3779_v2 = vpop.permute.xlu2 %3778 }
 0x44e   : > { %v3781_v6 = vadd.f32 %v3779_v2, %v3683_v24 }
 0x44f   : > { %4150 = vrot.lane.b32.xlu0 %v4149_v47, %s5305_s29  ;;  %4141 = vrot.lane.b32.xlu1 %v4140_v17, %s5305_s29  ;;  %v4215_v47 = vstv %s4998_s7  ;;  %v4269_v17 = vrot.slane %v4267_v41, 2  ;;  %s7557_s7 = sld [smem:[#allocation10 + $0xf3]] }
 0x450   : > { %v4216_v50 = vmul.f32 %v7474_v0, %v4215_v47 }
 0x451   : > { %v3737_v39 = vpop.permute.xlu0 %3736  ;;  %v3728_v48 = vpop.permute.xlu1 %3727 }
 0x452   : > { %v3739_v31 = vadd.f32 %v3737_v39, %v3721_v62  ;;  %v3730_v57 = vadd.f32 %v3728_v48, %v3712_v25  ;;  %4163 = vrot.lane.b32.xlu2 %v4162_v16, %s5305_s29  ;;  %v4284_v62 = vstv %s7481_s19  ;;  %v4218_v9 = vrot.slane %v4216_v50, 4  ;;  %v7514_v16 = vld [vmem:[#allocation4 + $0x10] sm:$0xff]  ;;  %s7561_s19 = sld [smem:[#allocation10 + $0x123]] }
 0x453   : > { %v4285_v10 = vmul.f32 %v4284_v62, %v7135_v54 }
 0x454   : > { %v7484_v5 = vadd.f32 %v7443_v7, %v3730_v57  ;;  %v4225_v57 = vmul.f32 %v7474_v0, %v4224_v46 }
 0x455   : > { %v3806_v24 = vpop.permute.xlu2 %3805 }
 0x457   : > { %4184 = vrot.lane.b32.xlu0 %v4182_v34, %s5306_s9  ;;  %4176 = vrot.lane.b32.xlu1 %v4175_v38, %s5305_s29  ;;  %s7490_s29 = sld [smem:[#allocation10 + $0x11b]]  ;;  %v4287_v34 = vrot.slane %v4285_v10, 4  ;;  %v4335_v10 = vstv %s5010_s30 }
 0x458   : > { %s4730_s30 = sld [smem:[#allocation10 + $0x2a]] }
 0x459   : > { %v3771_v8 = vpop.permute.xlu0 %3770  ;;  %v3763_v15 = vpop.permute.xlu1 %3762 }
 0x45a   : > { %v3773_v18 = vadd.f32 %v3771_v8, %v7438_v56  ;;  %v3765_v23 = vadd.f32 %v3763_v15, %v3739_v31  ;;  %4253 = vrot.lane.b32.xlu2 %v4251_v27, %s5306_s9  ;;  %v4293_v31 = vstv %s7495_s8  ;;  %v4306_v8 = vstv %s7505_s23  ;;  %s7577_s8 = sld [smem:[#allocation10 + $0xf4]] }
 0x45b   : > { %v4295_v55 = vmul.f32 %v4293_v31, %v7152_v33  ;;  %v4230_v27 = vrot.slane %v4226_v37, 4  ;;  %v4307_v33 = vmul.f32 %v7514_v16, %v4306_v8  ;;  %s4726_s23 = sld [smem:[#allocation10 + $0xe]] }
 0x45d   : > { %v3840_v56 = vpop.permute.xlu2 %3839  ;;  %v4275_v39 = vstv %s7490_s29  ;;  %v4311_v47 = vrot.slane %v4307_v33, 6  ;;  %s7566_s29 = sld [smem:[#allocation10 + $0x124]] }
 0x45e   : > { %v3842_v7 = vadd.f32 %v3840_v56, %v3765_v23  ;;  %v4276_v48 = vmul.f32 %v7514_v16, %v4275_v39  ;;  %v4238_v23 = vmul.f32 %v7474_v0, %v4237_v36  ;;  %v7531_v56 = vld [vmem:[#allocation4 + $0x18] sm:$0x3]  ;;  %v4319_v39 = vstv %s5008_s6  ;;  %s4728_s6 = sld [smem:[#allocation10 + $0x1c]] }
 0x45f   : > { %4201 = vrot.lane.b32.xlu0 %v4200_v26, %s5306_s9  ;;  %4192 = vrot.lane.b32.xlu1 %v4190_v44, %s5306_s9  ;;  %v4299_v44 = vrot.slane %v4295_v55, 4  ;;  %v4308_v42 = vmul.f32 %v7531_v56, %v4306_v8 }
 0x460   : > { %v4278_v38 = vrot.slane %v4276_v48, 2 }
 0x461   : > { %v3797_v12 = vpop.permute.xlu0 %3796  ;;  %v3788_v52 = vpop.permute.xlu1 %3787 }
 0x462   : > { %v3799_v11 = vadd.f32 %v3797_v12, %v3781_v6  ;;  %v3790_v20 = vadd.f32 %v3788_v52, %v3773_v18  ;;  %4261 = vrot.lane.b32.xlu2 %v4259_v40, %s5306_s9  ;;  %v4229_v18 = vrot.slane %v4225_v57, 4  ;;  %v4243_v40 = vrot.slane %v4239_v59, 6 }
 0x463   : > { %v4336_v57 = vmul.f32 %v7474_v0, %v4335_v10 }
 0x464   : > { %v3808_v28 = vadd.f32 %v3806_v24, %v3790_v20  ;;  %v4294_v24 = vmul.f32 %v7514_v16, %v4293_v31  ;;  %v4231_v21 = vsel %vm574_vm14, %v4229_v18, %v4230_v27  ;;  %v4312_v20 = vrot.slane %v4308_v42, 6 }
 0x465   : > { %v3866_v2 = vpop.permute.xlu2 %3865  ;;  %v4320_v31 = vmul.f32 %v7474_v0, %v4319_v39  ;;  %v4338_v8 = vrot.slane %v4336_v57, 2 }
 0x466   : > { %v4298_v13 = vrot.slane %v4294_v24, 4  ;;  %v4344_v24 = vstv %s7541_s4  ;;  %s7671_s4 = sld [smem:[#allocation10 + $0x3f]] }
 0x467   : > { %4210 = vrot.lane.b32.xlu0 %v4209_v51, %s5306_s9  ;;  %4270 = vrot.lane.b32.xlu1 %v4269_v17, %s5306_s9  ;;  %v4313_v17 = vsel %vm611_vm15, %v4311_v47, %v4312_v20  ;;  %v4345_v18 = vmul.f32 %v7474_v0, %v4344_v24 }
 0x469   : > { %v3832_v14 = vpop.permute.xlu0 %3831  ;;  %v3819_v25 = vpop.permute.xlu1 %3818 }
 0x46a   : > { %v7511_v6 = vadd.f32 %v3832_v14, %v3808_v28  ;;  %v3821_v54 = vadd.f32 %v3819_v25, %v3799_v11  ;;  %4219 = vrot.lane.b32.xlu2 %v4218_v9, %s5306_s9  ;;  %v4242_v11 = vrot.slane %v4238_v23, 6  ;;  %v4327_v28 = vstv %s5009_s26  ;;  %s4729_s26 = sld [smem:[#allocation10 + $0x23]] }
 0x46b   : > { %v4388_v25 = vstv %s5015_s27  ;;  %v4404_v23 = vstv %s5017_s22  ;;  %s7640_s27 = sld [smem:[#allocation10]] }
 0x46c   : > { %v4244_v51 = vsel %vm611_vm15, %v4242_v11, %v4243_v40  ;;  %v4405_v42 = vmul.f32 %v7514_v16, %v4404_v23  ;;  %v4362_v11 = vstv %s7557_s7  ;;  %v4422_v40 = vstv %s7561_s19  ;;  %s7696_s22 = sld [smem:[#allocation10 + $0x5b]] }
 0x46d   : > { %v3901_v22 = vpop.permute.xlu2 %3900  ;;  %s7758_s7 = sld [smem:[#allocation10 + $0x54]] }
 0x46e   : > { %s7775_s19 = sld [smem:[#allocation11 + $0x2]] }
 0x46f   : > { %4288 = vrot.lane.b32.xlu0 %v4287_v34, %s5306_s9  ;;  %4279 = vrot.lane.b32.xlu1 %v4278_v38, %s5306_s9  ;;  %v4389_v34 = vmul.f32 %v7514_v16, %v4388_v25  ;;  %v4396_v38 = vstv %s5016_s5  ;;  %s7679_s5 = sld [smem:[#allocation10 + $0x4d]] }
 0x470   : > { %v4397_v27 = vmul.f32 %v7514_v16, %v4396_v38 }
 0x471   : > { %v3857_v15 = vpop.permute.xlu0 %3856  ;;  %v3848_v12 = vpop.permute.xlu1 %3847 }
 0x472   : > { %v3859_v26 = vadd.f32 %v3857_v15, %v3842_v7  ;;  %v3850_v19 = vadd.f32 %v3848_v12, %v7484_v5  ;;  %4232 = vrot.lane.b32.xlu2 %v4231_v21, %s5306_s9  ;;  %v4300_v7 = vsel %vm574_vm14, %v4298_v13, %v4299_v44  ;;  %v4347_v44 = vrot.slane %v4345_v18, 2 }
 0x474   : > { %v3868_v52 = vadd.f32 %v3866_v2, %v3850_v19  ;;  %v4328_v2 = vmul.f32 %v7474_v0, %v4327_v28 }
 0x475   : > { %v3926_v41 = vpop.permute.xlu2 %3925 }
 0x477   : > { %4301 = vrot.lane.b32.xlu0 %v4300_v7, %s5306_s9  ;;  %4245 = vrot.lane.b32.xlu1 %v4244_v51, %s5306_s9  ;;  %v4363_v51 = vmul.f32 %v7474_v0, %v4362_v11 }
 0x479   : > { %v3888_v62 = vpop.permute.xlu0 %3887  ;;  %v3875_v50 = vpop.permute.xlu1 %3874  ;;  %v4367_v25 = vrot.slane %v4363_v51, 4 }
 0x47a   : > { %v3890_v5 = vadd.f32 %v3888_v62, %v3868_v52  ;;  %v3877_v14 = vadd.f32 %v3875_v50, %v3859_v26  ;;  %4314 = vrot.lane.b32.xlu2 %v4313_v17, %s5306_s9  ;;  %s7553_s9 = sld [smem:[#allocation10 + $0xf2]]  ;;  %v4407_v52 = vrot.slane %v4405_v42, 2  ;;  %v4364_v62 = vmul.f32 %v7518_v3, %v4362_v11 }
 0x47b   : > { %v4444_v17 = vstv %s7570_s11  ;;  %s8030_s11 = sld [smem:[#allocation11 + $0x1]] }
 0x47c   : > { %v3903_v46 = vadd.f32 %v3901_v22, %v3877_v14  ;;  %v4413_v22 = vstv %s7546_s28  ;;  %s7692_s28 = sld [smem:[#allocation10 + $0x31]] }
 0x47d   : > { %v3957_v9 = vpop.permute.xlu2 %3956  ;;  %v4414_v59 = vmul.f32 %v7514_v16, %v4413_v22 }
 0x47f   : > { %4330 = vrot.lane.b32.xlu0 %v4328_v2, %s5307_s10  ;;  %4322 = vrot.lane.b32.xlu1 %v4320_v31, %s5307_s10  ;;  %v4416_v19 = vrot.slane %v4414_v59, 2 }
 0x480   : > { %v4353_v12 = vstv %s7553_s9  ;;  %s7744_s9 = sld [smem:[#allocation10 + $0x46]] }
 0x481   : > { %v3917_v48 = vpop.permute.xlu0 %3916  ;;  %v3909_v36 = vpop.permute.xlu1 %3908  ;;  %v4354_v7 = vmul.f32 %v7474_v0, %v4353_v12 }
 0x482   : > { %v3919_v37 = vadd.f32 %v3917_v48, %v3821_v54  ;;  %v3911_v55 = vadd.f32 %v3909_v36, %v7511_v6  ;;  %4391 = vrot.lane.b32.xlu2 %v4389_v34, %s5307_s10  ;;  %v4368_v48 = vrot.slane %v4364_v62, 4  ;;  %v4445_v34 = vmul.f32 %v7514_v16, %v4444_v17 }
 0x483   : > { %v4356_v14 = vrot.slane %v4354_v7, 4 }
 0x484   : > { %v3928_v54 = vadd.f32 %v3926_v41, %v3911_v55  ;;  %v4431_v41 = vstv %s7566_s29  ;;  %v4369_v55 = vsel %vm574_vm14, %v4367_v25, %v4368_v48  ;;  %v4449_v18 = vrot.slane %v4445_v34, 6  ;;  %s7782_s29 = sld [smem:[#allocation10 + $0x38]] }
 0x485   : > { %v3986_v6 = vpop.permute.xlu2 %3985  ;;  %v4432_v39 = vmul.f32 %v7514_v16, %v4431_v41  ;;  %v4433_v2 = vmul.f32 %v7531_v56, %v4431_v41 }
 0x486   : > { %v3988_v26 = vadd.f32 %v3986_v6, %v3890_v5  ;;  %v4423_v5 = vmul.f32 %v7514_v16, %v4422_v40 }
 0x487   : > { %4339 = vrot.lane.b32.xlu0 %v4338_v8, %s5307_s10  ;;  %4399 = vrot.lane.b32.xlu1 %v4397_v27, %s5307_s10  ;;  %v4437_v24 = vrot.slane %v4433_v2, 4 }
 0x488   : > { %v4425_v57 = vrot.slane %v4423_v5, 4 }
 0x489   : > { %v3944_v15 = vpop.permute.xlu0 %3943  ;;  %v3935_v33 = vpop.permute.xlu1 %3934 }
 0x48a   : > { %v3946_v13 = vadd.f32 %v3944_v15, %v3928_v54  ;;  %v3937_v21 = vadd.f32 %v3935_v33, %v3919_v37  ;;  %4348 = vrot.lane.b32.xlu2 %v4347_v44, %s5307_s10  ;;  %v4375_v37 = vstv %s7577_s8  ;;  %s8049_s8 = sld [smem:[#allocation11]] }
 0x48b   : > { %v4376_v8 = vmul.f32 %v7474_v0, %v4375_v37  ;;  %v4377_v22 = vmul.f32 %v7518_v3, %v4375_v37 }
 0x48c   : > { %v3959_v28 = vadd.f32 %v3957_v9, %v3937_v21  ;;  %v4446_v9 = vmul.f32 %v7531_v56, %v4444_v17 }
 0x48d   : > { %v4013_v47 = vpop.permute.xlu2 %4012  ;;  %v4380_v23 = vrot.slane %v4376_v8, 6  ;;  %v4381_v59 = vrot.slane %v4377_v22, 6 }
 0x48e   : > { %v4450_v27 = vrot.slane %v4446_v9, 6 }
 0x48f   : > { %4417 = vrot.lane.b32.xlu0 %v4416_v19, %s5307_s10  ;;  %4408 = vrot.lane.b32.xlu1 %v4407_v52, %s5307_s10  ;;  %v4382_v44 = vsel %vm611_vm15, %v4380_v23, %v4381_v59  ;;  %v7646_v23 = vstv %s4729_s26  ;;  %v7648_v59 = vld [vmem:[#allocation2 + $0x8] sm:$0xff] }
 0x491   : > { %v3978_v20 = vpop.permute.xlu0 %3977  ;;  %v3970_v10 = vpop.permute.xlu1 %3969 }
 0x492   : > { %v3980_v50 = vadd.f32 %v3978_v20, %v3903_v46  ;;  %v3972_v31 = vadd.f32 %v3970_v10, %v3946_v13  ;;  %4357 = vrot.lane.b32.xlu2 %v4356_v14, %s5307_s10  ;;  %v4436_v46 = vrot.slane %v4432_v39, 4  ;;  %v4451_v13 = vsel %vm611_vm15, %v4449_v18, %v4450_v27 }
 0x494   : > { %v4438_v56 = vsel %vm574_vm14, %v4436_v46, %v4437_v24 }
 0x495   : > { %v4047_v36 = vpop.permute.xlu2 %4046 }
 0x496   : > { %v4049_v16 = vadd.f32 %v4047_v36, %v3972_v31 }
 0x497   : > { %4426 = vrot.lane.b32.xlu0 %v4425_v57, %s5307_s10  ;;  %4370 = vrot.lane.b32.xlu1 %v4369_v55, %s5307_s10 }
 0x499   : > { %v4004_v38 = vpop.permute.xlu0 %4003  ;;  %v3995_v6 = vpop.permute.xlu1 %3994 }
 0x49a   : > { %v4006_v54 = vadd.f32 %v4004_v38, %v3988_v26  ;;  %v3997_v15 = vadd.f32 %v3995_v6, %v3980_v50  ;;  %4439 = vrot.lane.b32.xlu2 %v4438_v56, %s5307_s10  ;;  %v530_v56 = vstv %s4726_s23  ;;  %s5030_s23 = sshll.u32 %s5351_s16, 6  ;;  %s4600_s16 = scalar_lea.sflag [#allocation7], %s5430_s17 }
 0x49c   : > { %v4015_v0 = vadd.f32 %v4013_v47, %v3997_v15  ;;  %v7644_v15 = vstv %s4727_s1 }
 0x49d   : > { %v4073_v3 = vpop.permute.xlu2 %4072 }
 0x49f   : > { %4452 = vrot.lane.b32.xlu0 %v4451_v13, %s5307_s10  ;;  %4383 = vrot.lane.b32.xlu1 %v4382_v44, %s5307_s10  ;;  %s4725_s10 = sld [smem:[#allocation10 + $0x7]]  ;;  %v7651_v13 = vmul.f32 %v7648_v59, %v530_v56  ;;  %v7657_v44 = vmul.f32 %v7648_v59, %v7644_v15 }
 0x4a1   : > { %v4039_v26 = vpop.permute.xlu0 %4038  ;;  %v4026_v42 = vpop.permute.xlu1 %4025 }
 0x4a2   : > { %v4041_v33 = vadd.f32 %v4039_v26, %v4015_v0  ;;  %v4028_v12 = vadd.f32 %v4026_v42, %v4006_v54  ;;  %v5153_v42 = vld [vmem:[#allocation2] sm:$0xff] }
 0x4a5   : > { %v4108_v21 = vpop.permute.xlu2 %4107 }
 0x4a9   : > { %v4064_v19 = vpop.permute.xlu0 %4063  ;;  %v4055_v40 = vpop.permute.xlu1 %4054 }
 0x4aa   : > { %v4066_v11 = vadd.f32 %v4064_v19, %v4049_v16  ;;  %v4057_v7 = vadd.f32 %v4055_v40, %v3959_v28  ;;  %v604_v19 = vstv %s4730_s30  ;;  %v549_v40 = vmul.f32 %v5153_v42, %v7644_v15  ;;  %s4611_s30 = scalar_lea.hbm %s8160_s3, %s5030_s23 }
 0x4ac   : > { %v4075_v52 = vadd.f32 %v4073_v3, %v4057_v7  ;;  %v7653_v3 = vstv %s4725_s10  ;;  %v7665_v7 = vmul.f32 %v5153_v42, %v7646_v23  ;;  %v555_v1 = vrot.slane %v549_v40, 2  ;;  %s8571_s10 = sshll.u32 %s5430_s17, 6 }
 0x4ad   : > { %v4133_v41 = vpop.permute.xlu2 %4132  ;;  %s8092_s1 = scalar_lea.vmem [#allocation12], %s8571_s10 }
 0x4b1   : > { %v4095_v20 = vpop.permute.xlu0 %4094  ;;  %v4082_v47 = vpop.permute.xlu1 %4081 }
 0x4b2   : > { %v7604_v51 = vadd.f32 %v4095_v20, %v4075_v52  ;;  %v4084_v62 = vadd.f32 %v4082_v47, %v4066_v11  ;;  %v516_v52 = vstv %s7640_s27  ;;  %s4612_s27 = sshll.u32 %s8092_s1, 4  ;;  %s4613_s27 = int_to_ptr.vmem [resolvable:$true] %s4612_s27 }
 0x4b4   : > { %v7606_v5 = vadd.f32 %v4108_v21, %v4084_v62  ;;  %v567_v21 = vstv %s4728_s6  ;;  %v523_v62 = vmul.f32 %v5153_v42, %v7653_v3 }
 0x4b5   : > { %v4164_v50 = vpop.permute.xlu2 %4163 }
 0x4b9   : > { %v4124_v17 = vpop.permute.xlu0 %4123  ;;  %v4116_v39 = vpop.permute.xlu1 %4115 }
 0x4ba   : > { %v4126_v14 = vadd.f32 %v4124_v17, %v4028_v12  ;;  %v4118_v2 = vadd.f32 %v4116_v39, %v4041_v33  ;;  %v531_v12 = vmul.f32 %v5153_v42, %v530_v56  ;;  %v605_v39 = vmul.f32 %v5153_v42, %v604_v19 }
 0x4bb   : > { %v7683_v17 = vmul.f32 %v7648_v59, %v7646_v23 }
 0x4bc   : > { %v4135_v0 = vadd.f32 %v4133_v41, %v4118_v2  ;;  %v539_v41 = vrot.slane %v7651_v13, 2  ;;  %v538_v2 = vrot.slane %v531_v12, 2  ;;  %v517_v13 = vmul.f32 %v5153_v42, %v516_v52 }
 0x4bd   : > { %v7608_v10 = vpop.permute.xlu2 %4253  ;;  %v612_v58 = vrot.slane %v605_v39, 6 }
 0x4be   : > { %v540_v12 = vsel %vm537_vm13, %v538_v2, %v539_v41 }
 0x4bf   : > { %v545_v30 = vadd.f32 %v540_v12, %v517_v13  ;;  %v672_v12 = vstv %s7679_s5 }
 0x4c1   : > { %v4151_v31 = vpop.permute.xlu0 %4150  ;;  %v4142_v25 = vpop.permute.xlu1 %4141 }
 0x4c2   : > { %v4144_v48 = vadd.f32 %v4142_v25, %v4126_v14  ;;  %v4153_v11 = vadd.f32 %v4151_v31, %v4135_v0  ;;  %v568_v14 = vmul.f32 %v5153_v42, %v567_v21  ;;  %v569_v31 = vmul.f32 %v7648_v59, %v567_v21 }
 0x4c3   : > { %v606_v25 = vmul.f32 %v7648_v59, %v604_v19 }
 0x4c4   : > { %v4166_v0 = vadd.f32 %v4164_v50, %v4144_v48  ;;  %v8369_v48 = vrot.slane %v7657_v44, 2  ;;  %v575_v40 = vrot.slane %v568_v14, 4  ;;  %v576_v45 = vrot.slane %v569_v31, 4 }
 0x4c5   : > { %v7610_v28 = vpop.permute.xlu2 %4261  ;;  %v613_v29 = vrot.slane %v606_v25, 6  ;;  %v593_v14 = vrot.slane %v7683_v17, 4  ;;  %v8375_v17 = vld [vmem:[#allocation19_spill] sm:$0xff] }
 0x4c6   : > { %v557_v42 = vsel %vm537_vm13, %v555_v1, %v8369_v48 }
 0x4c9   : > { %v7612_v57 = vpop.permute.xlu0 %4184  ;;  %v4177_v37 = vpop.permute.xlu1 %4176 }
 0x4ca   : > { %v4179_v20 = vadd.f32 %v4177_v37, %v4153_v11  ;;  %v7676_v37 = vld [vmem:[#allocation2 + $0x10] sm:$0x3f]  ;;  %v4187_v1 = vadd.f32 %v7612_v57, %v7606_v5  ;;  %v7710_v57 = vadd.f32 %v557_v42, %v523_v62 }
 0x4cb   : > { %v533_v11 = vmul.f32 %v7676_v37, %v530_v56  ;;  %v570_v4 = vmul.f32 %v7676_v37, %v567_v21  ;;  %v607_v56 = vmul.f32 %v7676_v37, %v604_v19  ;;  %v4264_v21 = vadd.f32 %v7610_v28, %v4166_v0 }
 0x4cc   : > { %v4256_v50 = vadd.f32 %v7608_v10, %v4179_v20  ;;  %v636_v0 = vstv %s7671_s4  ;;  %s4614_s4 = sshll.u32 %s4611_s30, 4  ;;  %s4615_s4 = int_to_ptr.hbm [resolvable:$true] %s4614_s4 }
 0x4cd   : > { %v7614_v34 = vpop.permute.xlu2 %4219  ;;  %v541_v10 = vrot.slane %v533_v11, 2  ;;  %v578_v39 = vrot.slane %v570_v4, 4  ;;  %v615_v25 = vrot.slane %v607_v56, 6  ;;  %v7739_v56 = vmul.f32 %v7676_v37, %v7644_v15 }
 0x4d1   : > { %v7616_v9 = vpop.permute.xlu0 %4201  ;;  %v7618_v46 = vpop.permute.xlu1 %4192 }
 0x4d2   : > { %v4195_v19 = vadd.f32 %v7618_v46, %v7604_v51  ;;  %v4204_v13 = vadd.f32 %v7616_v9, %v4187_v1  ;;  %v577_v51 = vsel %vm574_vm14, %v575_v40, %v576_v45  ;;  %v614_v46 = vsel %vm611_vm15, %v612_v58, %v613_v29 }
 0x4d3   : > { %v582_v4 = vadd.f32 %v577_v51, %v545_v30  ;;  %v579_v30 = vsel %vm574_vm14, %v576_v45, %v578_v39  ;;  %v7735_v40 = vmul.f32 %v7648_v59, %v7653_v3  ;;  %v622_v45 = vstv %s7692_s28  ;;  %v7755_v39 = vld [vmem:[#allocation2 + $0x28] sm:$0x3f] }
 0x4d5   : > { %v7622_v24 = vpop.permute.xlu2 %4232  ;;  %v7753_v1 = vadd.f32 %v614_v46, %v582_v4  ;;  %v8370_v46 = vlaneseq }
 0x4d9   : > { %v7620_v36 = vpop.permute.xlu0 %4210  ;;  %v7624_v55 = vpop.permute.xlu1 %4270 }
 0x4da   : > { %v4273_v2 = vadd.f32 %v7624_v55, %v4256_v50  ;;  %v4213_v5 = vadd.f32 %v7620_v36, %v4195_v19  ;;  %v7718_v50 = vld [vmem:[#allocation2 + $0x20] sm:$0xff]  ;;  %v7723_v36 = vld [vmem:[#allocation2 + $0x18] sm:$0xff] }
 0x4db   : > { %v7721_v9 = vmul.f32 %v7718_v50, %v636_v0  ;;  %v637_v62 = vmul.f32 %v7723_v36, %v636_v0 }
 0x4dc   : > { %v4235_v48 = vadd.f32 %v7622_v24, %v4213_v5 }
 0x4dd   : > { %v7630_v22 = vpop.permute.xlu2 %4314 }
 0x4e1   : > { %v7626_v38 = vpop.permute.xlu0 %4288  ;;  %v7628_v8 = vpop.permute.xlu1 %4279 }
 0x4e2   : > { %v4282_v55 = vadd.f32 %v7628_v8, %v4264_v21  ;;  %v4291_v28 = vadd.f32 %v7626_v38, %v4273_v2  ;;  %v518_v8 = vmul.f32 %v7648_v59, %v516_v52  ;;  %v542_v38 = vsel %vm537_vm13, %v539_v41, %v541_v10 }
 0x4e3   : > { %v7729_v52 = vsel %vm611_vm15, %v613_v29, %v615_v25  ;;  %v4222_v41 = vadd.f32 %v7614_v34, %v4204_v13  ;;  %v644_v2 = vrot.slane %v7721_v9, 2  ;;  %v643_v59 = vrot.slane %v637_v62, 2 }
 0x4e4   : > { %v4317_v58 = vadd.f32 %v7630_v22, %v4291_v28  ;;  %v7742_v22 = vmul.f32 %v7718_v50, %v672_v12  ;;  %v673_v21 = vmul.f32 %v7723_v36, %v672_v12  ;;  %v546_v19 = vadd.f32 %v542_v38, %v518_v8 }
 0x4e5   : > { %v7636_v27 = vpop.permute.xlu2 %4391  ;;  %v623_v13 = vmul.f32 %v7723_v36, %v622_v45 }
 0x4e6   : > { %v4394_v15 = vadd.f32 %v7636_v27, %v4317_v58  ;;  %v583_v58 = vadd.f32 %v579_v30, %v546_v19  ;;  %v689_v19 = vstv %s7758_s7 }
 0x4e9   : > { %v7632_v54 = vpop.permute.xlu0 %4301  ;;  %v7634_v18 = vpop.permute.xlu1 %4245 }
 0x4ea   : > { %v4304_v11 = vadd.f32 %v7632_v54, %v4282_v55  ;;  %v4248_v34 = vadd.f32 %v7634_v18, %v4222_v41  ;;  %v680_v55 = vrot.slane %v7742_v22, 4  ;;  %v736_v22 = vadd.f32 %v5781_v32, %v7753_v1 }
 0x4ed   : > { %v7659_v26 = vpop.permute.xlu2 %4348 }
 0x4f1   : > { %v7638_v16 = vpop.permute.xlu0 %4330  ;;  %v7642_v6 = vpop.permute.xlu1 %4322 }
 0x4f2   : > { %v4333_v24 = vadd.f32 %v7638_v16, %v4235_v48  ;;  %v4325_v18 = vadd.f32 %v7642_v6, %v4248_v34  ;;  %v645_v6 = vsel %vm537_vm13, %v643_v59, %v644_v2 }
 0x4f4   : > { %v4351_v51 = vadd.f32 %v7659_v26, %v4333_v24 }
 0x4f5   : > { %v7702_v20 = vpop.permute.xlu2 %4357 }
 0x4f9   : > { %v7661_v33 = vpop.permute.xlu0 %4339  ;;  %v4400_v47 = vpop.permute.xlu1 %4399 }
 0x4fa   : > { %v4402_v54 = vadd.f32 %v4400_v47, %v4304_v11  ;;  %v708_v47 = vstv %s7696_s22  ;;  %v4342_v5 = vadd.f32 %v7661_v33, %v4325_v18  ;;  %v679_v11 = vrot.slane %v673_v21, 4 }
 0x4fb   : > { %v7763_v28 = vmul.f32 %v7718_v50, %v708_v47  ;;  %v709_v4 = vmul.f32 %v7723_v36, %v708_v47  ;;  %v7780_v33 = vmul.f32 %v7676_v37, %v7646_v23  ;;  %v675_v23 = vmul.f32 %v7755_v39, %v672_v12 }
 0x4fc   : > { %v4360_v34 = vadd.f32 %v7702_v20, %v4342_v5  ;;  %v681_v59 = vsel %vm574_vm14, %v679_v11, %v680_v55  ;;  %v8371_v20 = vrot.slane %v7657_v44, 2  ;;  %v4466_v44 = vstv %s7775_s19 }
 0x4fd   : > { %v4440_v16 = vpop.permute.xlu2 %4439  ;;  %v716_v24 = vrot.slane %v7763_v28, 6  ;;  %v715_v21 = vrot.slane %v709_v4, 6 }
 0x4ff   : > { %v717_v11 = vsel %vm611_vm15, %v715_v21, %v716_v24 }
 0x501   : > { %v4418_v60 = vpop.permute.xlu0 %4417  ;;  %v4409_v31 = vpop.permute.xlu1 %4408 }
 0x502   : > { %v4420_v29 = vadd.f32 %v4418_v60, %v4402_v54  ;;  %v639_v60 = vmul.f32 %v7755_v39, %v636_v0  ;;  %v4411_v25 = vadd.f32 %v4409_v31, %v4394_v15  ;;  %v7769_v0 = vshrl.u32 %v8370_v46, 7 }
 0x503   : > { %v558_v31 = vrot.slane %v7739_v56, 2  ;;  %v653_v54 = vstv %s7744_s9  ;;  %v682_v46 = vrot.slane %v675_v23, 4  ;;  %s5238_s9 = scalar_lea.hbm %s8160_s3, 128 }
 0x504   : > { %v4442_v27 = vadd.f32 %v4440_v16, %v4420_v29  ;;  %5114 = vset.pattern.permute.xlu0 %v7769_v0  ;;  %5112 = vset.pattern.permute.xlu2 %v7769_v0  ;;  %v7787_v62 = vadd.s32 8, %v7769_v0  ;;  %v650_v29 = vadd.f32 %v645_v6, %v623_v13  ;;  %v595_v16 = vrot.slane %v7780_v33, 4 }
 0x505   : > { %v559_v18 = vsel %vm537_vm13, %v8371_v20, %v558_v31  ;;  %v654_v28 = vmul.f32 %v7723_v36, %v653_v54  ;;  %v711_v13 = vmul.f32 %v7755_v39, %v708_v47  ;;  %v692_v6 = vmul.f32 %v7755_v39, %v689_v19 }
 0x506   : > { %v4461_v41 = vrot.slane %v4442_v27, 1  ;;  %5113 = vset.pattern.permute.xlu1 %v7787_v62  ;;  %v624_v27 = vmul.f32 %v7718_v50, %v622_v45  ;;  %v686_v5 = vadd.f32 %v681_v59, %v650_v29  ;;  %v690_v45 = vmul.f32 %v7723_v36, %v689_v19 }
 0x507   : > { %v691_v47 = vmul.f32 %v7718_v50, %v689_v19  ;;  %v683_v9 = vsel %vm574_vm14, %v680_v55, %v682_v46  ;;  %v564_v55 = vadd.f32 %v559_v18, %v7735_v40  ;;  %v596_v1 = vsel %vm574_vm14, %v593_v14, %v595_v16 }
 0x508   : > { %v722_v23 = vadd.f32 %v717_v11, %v686_v5 }
 0x509   : > { %v4427_v42 = vpop.permute.xlu0 %4426  ;;  %v4371_v10 = vpop.permute.xlu1 %4370 }
 0x50a   : > { %v4429_v8 = vadd.f32 %v4427_v42, %v4411_v25  ;;  %v4373_v26 = vadd.f32 %v4371_v10, %v4351_v51  ;;  %v646_v42 = vrot.slane %v639_v60, 2  ;;  %v656_v10 = vmul.f32 %v7755_v39, %v653_v54 }
 0x50b   : > { %v655_v25 = vmul.f32 %v7718_v50, %v653_v54  ;;  %v883_v59 = vadd.f32 %v5864_v53, %v722_v23  ;;  %v620_v53 = vadd.f32 %v7729_v52, %v583_v58  ;;  %v8372_v52 = vrot.slane %v7665_v7, 4  ;;  %v8373_v7 = vld [vmem:[#allocation43_spill] sm:$0xff]  ;;  %v8383_v23 = vld [vmem:[#allocation33_spill] sm:$0xff] }
 0x50c   : > { %v4457_v12 = vrot.slane %v4373_v26, 1  ;;  %v647_v4 = vsel %vm537_vm13, %v644_v2, %v646_v42  ;;  %v663_v33 = vrot.slane %v656_v10, 2  ;;  %v699_v42 = vrot.slane %v692_v6, 4  ;;  %v8374_v6 = vld [vmem:[#allocation17_spill] sm:$0xff] }
 0x50d   : > { %v661_v54 = vrot.slane %v655_v25, 2  ;;  %v697_v10 = vrot.slane %v691_v47, 4  ;;  %v737_v32 = vadd.f32 %v5797_v49, %v620_v53  ;;  %v594_v56 = vsel %vm574_vm14, %v8372_v52, %v593_v14  ;;  %v8376_v14 = vld [vmem:[#allocation20_spill] sm:$0xff]  ;;  %v8397_v52 = vld [vmem:[#allocation22_spill] sm:$0xff] }
 0x50e   : > { %v600_v49 = vadd.f32 %v594_v56, %v7710_v57  ;;  %v601_v58 = vadd.f32 %v596_v1, %v564_v55  ;;  %v8378_v57 = vld [vmem:[#allocation34_spill] sm:$0xff] }
 0x50f   : > { %v664_v19 = vsel %vm537_vm13, %v661_v54, %v663_v33  ;;  %v8398_v1 = vld [vmem:[#allocation50_spill] sm:$0xff] }
 0x510   : > { %v755_v11 = vadd.f32 %v8374_v6, %v600_v49  ;;  %v8404_v6 = vld [vmem:[#allocation44_spill] sm:$0xff] }
 0x511   : > { %v4453_v38 = vpop.permute.xlu0 %4452  ;;  %v4384_v15 = vpop.permute.xlu1 %4383 }
 0x512   : > { %v4455_v48 = vadd.f32 %v4453_v38, %v4429_v8  ;;  %v4386_v60 = vadd.f32 %v4384_v15, %v4360_v34  ;;  %v628_v8 = vstv %s7782_s29  ;;  %v660_v38 = vrot.slane %v654_v28, 2 }
 0x513   : > { %v651_v34 = vadd.f32 %v647_v4, %v624_v27  ;;  %v631_v2 = vmul.f32 %v7755_v39, %v628_v8  ;;  %v629_v21 = vmul.f32 %v7723_v36, %v628_v8  ;;  %v630_v15 = vmul.f32 %v7718_v50, %v628_v8 }
 0x514   : > { %v4463_v30 = vadd.f32 %v4461_v41, %v4455_v48  ;;  %v4459_v51 = vadd.f32 %v4457_v12, %v4386_v60  ;;  %v525_v41 = vmul.f32 %v7676_v37, %v7653_v3  ;;  %v718_v48 = vrot.slane %v711_v13, 6 }
 0x515   : > { %v662_v3 = vsel %vm537_vm13, %v660_v38, %v661_v54  ;;  %v696_v37 = vrot.slane %v690_v45, 4  ;;  %v924_v39 = vadd.f32 %v5896_v35, %v883_v59  ;;  %v687_v36 = vadd.f32 %v683_v9, %v651_v34  ;;  %v8380_v38 = vld [vmem:[#allocation57_spill] sm:$0xff]  ;;  %v8381_v45 = vld [vmem:[#allocation24_spill] sm:$0xff]  ;;  %v8384_v34 = vld [vmem:[#allocation27_spill] sm:$0xff] }
 0x516   : > { %v4464_v26 = vadd.f32 %v4463_v30, %v4459_v51  ;;  %v565_v50 = vadd.f32 %v558_v31, %v525_v41  ;;  %v719_v12 = vsel %vm611_vm15, %v716_v24, %v718_v48  ;;  %v777_v60 = vadd.f32 %v5808_v63, %v736_v22  ;;  %v8382_v41 = vld [vmem:[#allocation23_spill] sm:$0xff]  ;;  %v8390_v22 = vld [vmem:[#allocation38_spill] sm:$0xff] }
 0x517   : > { %v670_v20 = vadd.f32 %v663_v33, %v631_v2  ;;  %v668_v28 = vadd.f32 %v662_v3, %v629_v21  ;;  %v669_v25 = vadd.f32 %v664_v19, %v630_v15  ;;  %v698_v40 = vsel %vm574_vm14, %v696_v37, %v697_v10  ;;  %v8385_v2 = vld [vmem:[#allocation47_spill] sm:$0xff]  ;;  %v8387_v15 = vld [vmem:[#allocation26_spill] sm:$0xff] }
 0x518   : > { %v4467_v29 = vadd.f32 %v4466_v44, %v4464_v26  ;;  %v700_v35 = vsel %vm574_vm14, %v697_v10, %v699_v42  ;;  %v823_v63 = vadd.f32 %v5838_v43, %v777_v60  ;;  %v970_v31 = vadd.f32 %v5889_v61, %v924_v39  ;;  %v8377_v61 = vld [vmem:[#allocation21_spill] sm:$0xff]  ;;  %v8386_v59 = vld [vmem:[#allocation67_spill] sm:$0xff]  ;;  %v8388_v3 = vld [vmem:[#allocation30_spill] sm:$0xff] }
 0x519   : > { %v602_v24 = vadd.f32 %v595_v16, %v565_v50  ;;  %v723_v18 = vadd.f32 %v719_v12, %v687_v36  ;;  %v706_v13 = vadd.f32 %v699_v42, %v670_v20  ;;  %v704_v5 = vadd.f32 %v698_v40, %v668_v28  ;;  %v8379_v16 = vld [vmem:[#allocation25_spill] sm:$0xff]  ;;  %v8391_v39 = vld [vmem:[#allocation18_spill] sm:$0xff]  ;;  %v8392_v50 = vld [vmem:[#allocation35_spill] sm:$0xff] }
 0x51a   : > { %v5023_v30 = vmul.f32 -1.442695, %v4467_v29  ;;  %v705_v51 = vadd.f32 %v700_v35, %v669_v25  ;;  %v1016_v46 = vadd.f32 %v8373_v7, %v970_v31  ;;  %v756_v44 = vadd.f32 %v8375_v17, %v601_v58  ;;  %v8389_v10 = vld [vmem:[#allocation29_spill] sm:$0xff]  ;;  %v8393_v12 = vld [vmem:[#allocation32_spill] sm:$0xff]  ;;  %v8394_v20 = vld [vmem:[#allocation74_spill] sm:$0xff] }
 0x51b   : > { %v778_v4 = vadd.f32 %v8376_v14, %v737_v32  ;;  %v757_v8 = vadd.f32 %v8377_v61, %v602_v24  ;;  %v902_v33 = vadd.f32 %v8378_v57, %v704_v5  ;;  %v869_v26 = vadd.f32 %v8379_v16, %v823_v63  ;;  %v8395_v25 = vld [vmem:[#allocation31_spill] sm:$0xff]  ;;  %v8396_v40 = vld [vmem:[#allocation37_spill] sm:$0xff]  ;;  %v8399_v31 = vld [vmem:[#allocation28_spill] sm:$0xff] }
 0x51c   : > { %5122 = vpow2.f32 %v5023_v30  ;;  %v1177_v54 = vadd.f32 %v8380_v38, %v1016_v46  ;;  %v801_v47 = vadd.f32 %v8381_v45, %v755_v11  ;;  %v802_v48 = vadd.f32 %v8382_v41, %v756_v44  ;;  %v8400_v58 = vld [vmem:[#allocation41_spill] sm:$0xff]  ;;  %v8403_v7 = vld [vmem:[#allocation42_spill] sm:$0xff]  ;;  %v8406_v14 = vld [vmem:[#allocation36_spill] sm:$0xff] }
 0x51d   : > { %v903_v29 = vadd.f32 %v8383_v23, %v705_v51  ;;  %v884_v9 = vadd.f32 %v8384_v34, %v723_v18  ;;  %v1030_v42 = vadd.f32 %v8385_v2, %v869_v26  ;;  %v824_v30 = vadd.f32 %v8387_v15, %v778_v4  ;;  %v8401_v18 = vld [vmem:[#allocation40_spill] sm:$0xff]  ;;  %v8405_v17 = vld [vmem:[#allocation46_spill] sm:$0xff]  ;;  %v8407_v61 = vld [vmem:[#allocation49_spill] sm:$0xff] }
 0x51e   : > { %v1218_v21 = vadd.f32 %v8386_v59, %v1177_v54  ;;  %v904_v37 = vadd.f32 %v8388_v3, %v706_v13  ;;  %v848_v19 = vadd.f32 %v8389_v10, %v802_v48  ;;  %v803_v53 = vadd.f32 %v8391_v39, %v757_v8  ;;  %v8402_v13 = vld [vmem:[#allocation45_spill] sm:$0xff]  ;;  %v8408_v57 = vld [vmem:[#allocation55_spill] sm:$0xff]  ;;  %v8409_v16 = vld [vmem:[#allocation72_spill] sm:$0xff] }
 0x51f   : > { %v949_v55 = vadd.f32 %v8390_v22, %v903_v29  ;;  %v925_v36 = vadd.f32 %v8392_v50, %v884_v9  ;;  %v948_v60 = vadd.f32 %v8393_v12, %v902_v33  ;;  %v870_v32 = vadd.f32 %v8395_v25, %v824_v30  ;;  %v8410_v54 = vld [vmem:[#allocation53_spill] sm:$0xff]  ;;  %v8412_v48 = vld [vmem:[#allocation48_spill] sm:$0xff]  ;;  %v8417_v3 = vld [vmem:[#allocation39_spill] sm:$0xff] }
 0x520   : > { %v1264_v28 = vadd.f32 %v8394_v20, %v1218_v21  ;;  %v950_v35 = vadd.f32 %v8396_v40, %v904_v37  ;;  %v847_v56 = vadd.f32 %v8397_v52, %v801_v47  ;;  %v1050_v63 = vadd.f32 %v8398_v1, %v848_v19  ;;  %v8411_v47 = vld [vmem:[#allocation60_spill] sm:$0xff]  ;;  %v8416_v21 = vld [vmem:[#allocation98_spill] sm:$0xff]  ;;  %v8418_v10 = vld [vmem:[#allocation71_spill] sm:$0xff] }
 0x521   : > { %v849_v49 = vadd.f32 %v8399_v31, %v803_v53  ;;  %v971_v24 = vadd.f32 %v8400_v58, %v925_v36  ;;  %v1071_v5 = vadd.f32 %v8402_v13, %v1030_v42  ;;  %v1031_v44 = vadd.f32 %v8405_v17, %v870_v32  ;;  %v8413_v29 = vld [vmem:[#allocation64_spill] sm:$0xff]  ;;  %v8415_v42 = vld [vmem:[#allocation62_spill] sm:$0xff]  ;;  %v8420_v53 = vld [vmem:[#allocation79_spill] sm:$0xff] }
 0x522   : > { %v5123_v27 = vpop.eup %5122  ;;  %v1049_v46 = vadd.f32 %v8403_v7, %v847_v56  ;;  %v996_v11 = vadd.f32 %v8404_v6, %v950_v35  ;;  %v995_v4 = vadd.f32 %v8406_v14, %v949_v55  ;;  %v1310_v26 = vadd.f32 %v8409_v16, %v1264_v28  ;;  %v8414_v9 = vld [vmem:[#allocation52_spill] sm:$0xff]  ;;  %v8419_v22 = vld [vmem:[#allocation70_spill] sm:$0xff]  ;;  %v8422_v28 = vld [vmem:[#allocation51_spill] sm:$0xff] }
 0x523   : > { %v7856_v43 = vadd.f32 1.0, %v5123_v27  ;;  %v994_v27 = vadd.f32 %v8401_v18, %v948_v60  ;;  %v1051_v8 = vadd.f32 %v8407_v61, %v849_v49  ;;  %v1117_v33 = vadd.f32 %v8408_v57, %v1071_v5  ;;  %v8421_v60 = vld [vmem:[#allocation56_spill] sm:$0xff]  ;;  %v8423_v32 = vld [vmem:[#allocation65_spill] sm:$0xff]  ;;  %v8425_v56 = vld [vmem:[#allocation86_spill] sm:$0xff] }
 0x524   : > { %v1072_v45 = vadd.f32 %v8410_v54, %v1031_v44  ;;  %v1197_v41 = vadd.f32 %v8411_v47, %v995_v4  ;;  %v1096_v23 = vadd.f32 %v8412_v48, %v1050_v63  ;;  %v1095_v2 = vadd.f32 %v8414_v9, %v1049_v46  ;;  %v8424_v35 = vld [vmem:[#allocation77_spill] sm:$0xff]  ;;  %v8426_v63 = vld [vmem:[#allocation96_spill] sm:$0xff]  ;;  %v8427_v58 = vld [vmem:[#allocation59_spill] sm:$0xff] }
 0x525   : > { %5124 = vrcp.f32 %v7856_v43  ;;  %v1196_v34 = vadd.f32 %v8413_v29, %v994_v27  ;;  %v1163_v59 = vadd.f32 %v8415_v42, %v1117_v33  ;;  %v1471_v15 = vadd.f32 %v8416_v21, %v1310_v26  ;;  %v8428_v18 = vld [vmem:[#allocation69_spill] sm:$0xff]  ;;  %v8430_v46 = vld [vmem:[#allocation58_spill] sm:$0xff]  ;;  %v8432_v4 = vld [vmem:[#allocation63_spill] sm:$0xff] }
 0x526   : > { %v1017_v37 = vadd.f32 %v8417_v3, %v971_v24  ;;  %v1243_v55 = vadd.f32 %v8419_v22, %v1197_v41  ;;  %v4483_v39 = vand.u32 2147483648, %v7856_v43  ;;  %v4481_v12 = vand.u32 2147483647, %v7856_v43  ;;  %v8429_v13 = vld [vmem:[#allocation101_spill] sm:$0xff]  ;;  %v8431_v17 = vld [vmem:[#allocation106_spill] sm:$0xff]  ;;  %v8435_v26 = vld [vmem:[#allocation84_spill] sm:$0xff] }
 0x527   : > { %v1242_v19 = vadd.f32 %v8418_v10, %v1196_v34  ;;  %v1324_v50 = vadd.f32 %v8420_v53, %v1163_v59  ;;  %v1097_v20 = vadd.f32 %v8421_v60, %v1051_v8  ;;  %v1118_v25 = vadd.f32 %v8422_v28, %v1072_v45  ;;  %v8433_v8 = vld [vmem:[#allocation83_spill] sm:$0xff]  ;;  %v8434_v33 = vld [vmem:[#allocation93_spill] sm:$0xff]  ;;  %v8437_v48 = vld [vmem:[#allocation68_spill] sm:$0xff] }
 0x528   : > { %v1178_v40 = vadd.f32 %v8423_v32, %v1017_v37  ;;  %v1289_v52 = vadd.f32 %v8424_v35, %v1243_v55  ;;  %v1512_v31 = vadd.f32 %v8426_v63, %v1471_v15  ;;  %vm4477_vm2 = vweird.f32 %v7856_v43  ;;  %v8436_v54 = vld [vmem:[#allocation113_spill] sm:$0xff]  ;;  %v8439_v34 = vld [vmem:[#allocation103_spill] sm:$0xff]  ;;  %v8442_v15 = vld [vmem:[#allocation94_spill] sm:$0xff] }
 0x529   : > { %v1365_v1 = vadd.f32 %v8425_v56, %v1324_v50  ;;  %v1141_v24 = vadd.f32 %v8427_v58, %v1095_v2  ;;  %v1288_v27 = vadd.f32 %v8428_v18, %v1242_v19  ;;  %v4484_v7 = vor.u32 1.1754944e-38, %v4483_v39  ;;  %v8440_v2 = vld [vmem:[#allocation99_spill] sm:$0xff]  ;;  %v8441_v59 = vld [vmem:[#allocation73_spill] sm:$0xff]  ;;  %v8443_v3 = vld [vmem:[#allocation130_spill] sm:$0xff] }
 0x52a   : > { %v1491_v5 = vadd.f32 %v8429_v13, %v1289_v52  ;;  %v1142_v6 = vadd.f32 %v8430_v46, %v1096_v23  ;;  %v1558_v44 = vadd.f32 %v8431_v17, %v1512_v31  ;;  %vm4482_vm5 = vcmp.eq.f32.partialorder %v4481_v12, 8.507059e+37  ;;  %v8444_v10 = vld [vmem:[#allocation89_spill] sm:$0xff]  ;;  %v8446_v55 = vld [vmem:[#allocation110_spill] sm:$0xff]  ;;  %v8449_v60 = vld [vmem:[#allocation80_spill] sm:$0xff] }
 0x52b   : > { %v5125_v51 = vpop.eup %5124  ;;  %v1219_v61 = vadd.f32 %v8432_v4, %v1178_v40  ;;  %v1343_v57 = vadd.f32 %v8433_v8, %v1141_v24  ;;  %v1198_v23 = vadd.f32 %v8437_v48, %v996_v11  ;;  %v8445_v22 = vld [vmem:[#allocation81_spill] sm:$0xff]  ;;  %v8450_v32 = vld [vmem:[#allocation108_spill] sm:$0xff]  ;;  %v8452_v56 = vld [vmem:[#allocation91_spill] sm:$0xff] }
 0x52c   : > { %v4473_v38 = vmul.f32 %v5125_v51, %v7856_v43  ;;  %vm4478_vm1 = vweird.f32 %v5125_v51  ;;  %v1490_v43 = vadd.f32 %v8434_v33, %v1288_v27  ;;  %v1604_v45 = vadd.f32 %v8436_v54, %v1558_v44  ;;  %v8447_v53 = vld [vmem:[#allocation109_spill] sm:$0xff]  ;;  %v8453_v63 = vld [vmem:[#allocation134_spill] sm:$0xff]  ;;  %v8455_v24 = vld [vmem:[#allocation75_spill] sm:$0xff] }
 0x52d   : > { %vm4479_vm3 = vmor %vm4477_vm2, %vm4478_vm1  ;;  %v1537_v42 = vadd.f32 %v8440_v2, %v1491_v5  ;;  %v1265_v21 = vadd.f32 %v8441_v59, %v1219_v61  ;;  %v1389_v11 = vadd.f32 %v8445_v22, %v1343_v57  ;;  %v8451_v35 = vld [vmem:[#allocation137_spill] sm:$0xff]  ;;  %v8456_v27 = vld [vmem:[#allocation54_spill] sm:$0xff] }
 0x52e   : > { %v4474_v30 = vsub.f32 1.0, %v4473_v38  ;;  %v1411_v38 = vadd.f32 %v8435_v26, %v1365_v1  ;;  %v1536_v9 = vadd.f32 %v8439_v34, %v1490_v43  ;;  %v1765_v37 = vadd.f32 %v8443_v3, %v1604_v45  ;;  %v8457_v5 = vld [vmem:[#allocation97_spill] sm:$0xff]  ;;  %v8458_v46 = vld [vmem:[#allocation118_spill] sm:$0xff]  ;;  %v8460_v44 = vld [vmem:[#allocation87_spill] sm:$0xff] }
 0x52f   : > { %v1583_v50 = vadd.f32 %v8447_v53, %v1537_v42  ;;  %v1311_v28 = vadd.f32 %v8449_v60, %v1265_v21  ;;  %v1435_v1 = vadd.f32 %v8452_v56, %v1389_v11  ;;  %v1143_v13 = vadd.f32 %v8456_v27, %v1097_v20  ;;  %v8461_v4 = vld [vmem:[#allocation115_spill] sm:$0xff]  ;;  %v8462_v8 = vld [vmem:[#allocation140_spill] sm:$0xff]  ;;  %v8463_v33 = vld [vmem:[#allocation85_spill] sm:$0xff] }
 0x530   : > { %v4475_v36 = vmul.f32 %v5125_v51, %v4474_v30  ;;  %v1457_v30 = vadd.f32 %v8442_v15, %v1411_v38  ;;  %v1582_v39 = vadd.f32 %v8446_v55, %v1536_v9  ;;  %v1806_v52 = vadd.f32 %v8451_v35, %v1765_v37  ;;  %v8464_v26 = vld [vmem:[#allocation104_spill] sm:$0xff]  ;;  %v8465_v54 = vld [vmem:[#allocation125_spill] sm:$0xff]  ;;  %v8467_v48 = vld [vmem:[#allocation78_spill] sm:$0xff] }
 0x531   : > { %v1637_v61 = vadd.f32 %v8461_v4, %v1435_v1  ;;  %v8469_v9 = vld [vmem:[#allocation122_spill] sm:$0xff]  ;;  %v8470_v2 = vld [vmem:[#allocation132_spill] sm:$0xff]  ;;  %v8473_v3 = vld [vmem:[#allocation145_spill] sm:$0xff] }
 0x532   : > { %v4476_v49 = vadd.f32 %v5125_v51, %v4475_v36  ;;  %v8448_v36 = vld [vmem:[#allocation61_spill] sm:$0xff]  ;;  %v1618_v40 = vadd.f32 %v8450_v32, %v1457_v30  ;;  %v1784_v31 = vadd.f32 %v8453_v63, %v1582_v39  ;;  %v8471_v59 = vld [vmem:[#allocation76_spill] sm:$0xff]  ;;  %v8476_v55 = vld [vmem:[#allocation142_spill] sm:$0xff] }
 0x533   : > { %v1164_v12 = vadd.f32 %v8448_v36, %v1118_v25  ;;  %v8472_v15 = vld [vmem:[#allocation92_spill] sm:$0xff]  ;;  %v8475_v22 = vld [vmem:[#allocation121_spill] sm:$0xff]  ;;  %v8477_v53 = vld [vmem:[#allocation138_spill] sm:$0xff] }
 0x534   : > { %v4480_v14 = vsel %vm4479_vm3, %v5125_v51, %v4476_v49  ;;  %v8438_v51 = vld [vmem:[#allocation82_spill] sm:$0xff]  ;;  %v8454_v49 = vld [vmem:[#allocation133_spill] sm:$0xff]  ;;  %v1659_v25 = vadd.f32 %v8458_v46, %v1618_v40  ;;  %v1830_v42 = vadd.f32 %v8470_v2, %v1784_v31  ;;  %v8478_v36 = vld [vmem:[#allocation100_spill] sm:$0xff] }
 0x535   : > { %v7921_v16 = vsel %vm4482_vm5, %v4484_v7, %v4480_v14  ;;  %v1344_v29 = vadd.f32 %v8438_v51, %v1142_v6  ;;  %v1785_v58 = vadd.f32 %v8454_v49, %v1583_v50  ;;  %v1325_v18 = vadd.f32 %v8455_v24, %v1164_v12  ;;  %v8459_v6 = vld [vmem:[#allocation66_spill] sm:$0xff]  ;;  %v8480_v32 = vld [vmem:[#allocation123_spill] sm:$0xff]  ;;  %v8482_v56 = vld [vmem:[#allocation128_spill] sm:$0xff] }
 0x536   : > { %v4520_v47 = vperm.slane %v7921_v16, 1  ;;  %v4507_v41 = vperm.slane %v7921_v16, 0  ;;  %v1472_v7 = vadd.f32 %v8457_v5, %v1311_v28  ;;  %v1244_v17 = vadd.f32 %v8459_v6, %v1198_v23  ;;  %v8479_v60 = vld [vmem:[#allocation102_spill] sm:$0xff]  ;;  %v8481_v35 = vld [vmem:[#allocation159_spill] sm:$0xff]  ;;  %v8483_v1 = vld [vmem:[#allocation120_spill] sm:$0xff] }
 0x537   : > { %v1390_v19 = vadd.f32 %v8444_v10, %v1344_v29  ;;  %v1831_v57 = vadd.f32 %v8462_v8, %v1785_v58  ;;  %v1366_v43 = vadd.f32 %v8463_v33, %v1325_v18  ;;  %v1705_v45 = vadd.f32 %v8465_v54, %v1659_v25  ;;  %v8468_v29 = vld [vmem:[#allocation111_spill] sm:$0xff]  ;;  %v8474_v10 = vld [vmem:[#allocation88_spill] sm:$0xff]  ;;  %v8484_v31 = vld [vmem:[#allocation162_spill] sm:$0xff] }
 0x538   : > { %4525 = vperm.xlu0 %5114, %v4520_v47   ;;  %4518 = vperm.xlu1 %5113, %v4507_v41   ;;  %v1513_v38 = vadd.f32 %v8464_v26, %v1472_v7  ;;  %v1345_v51 = vadd.f32 %v8467_v48, %v1143_v13  ;;  %v1683_v23 = vadd.f32 %v8469_v9, %v1637_v61  ;;  %v8485_v58 = vld [vmem:[#allocation166_spill] sm:$0xff]  ;;  %v8486_v18 = vld [vmem:[#allocation107_spill] sm:$0xff]  ;;  %v8488_v5 = vld [vmem:[#allocation149_spill] sm:$0xff]  ;;  %v4546_v54 = vperm.slane %v7921_v16, 3 }
 0x539   : > { %4512 = vperm.xlu2 %5112, %v4507_v41   ;;  %v1436_v14 = vadd.f32 %v8460_v44, %v1390_v19  ;;  %v8466_v41 = vld [vmem:[#allocation135_spill] sm:$0xff]  ;;  %v1290_v21 = vadd.f32 %v8471_v59, %v1244_v17  ;;  %v1412_v30 = vadd.f32 %v8472_v15, %v1366_v43  ;;  %v1876_v39 = vadd.f32 %v8476_v55, %v1830_v42  ;;  %v8487_v13 = vld [vmem:[#allocation90_spill] sm:$0xff]  ;;  %v8489_v46 = vld [vmem:[#allocation169_spill] sm:$0xff] }
 0x53a   : > { %v1852_v20 = vadd.f32 %v8466_v41, %v1806_v52  ;;  %v1391_v19 = vadd.f32 %v8474_v10, %v1345_v51  ;;  %v1877_v50 = vadd.f32 %v8477_v53, %v1831_v57  ;;  %v1559_v28 = vadd.f32 %v8479_v60, %v1513_v38  ;;  %v8490_v6 = vld [vmem:[#allocation144_spill] sm:$0xff]  ;;  %v8492_v4 = vld [vmem:[#allocation173_spill] sm:$0xff]  ;;  %v8496_v41 = vld [vmem:[#allocation95_spill] sm:$0xff] }
 0x53b   : > { %v1638_v34 = vadd.f32 %v8468_v29, %v1436_v14  ;;  %v1492_v12 = vadd.f32 %v8478_v36, %v1290_v21  ;;  %v1751_v40 = vadd.f32 %v8480_v32, %v1705_v45  ;;  %v1729_v63 = vadd.f32 %v8483_v1, %v1683_v23  ;;  %v8491_v44 = vld [vmem:[#allocation152_spill] sm:$0xff]  ;;  %v8498_v29 = vld [vmem:[#allocation154_spill] sm:$0xff]  ;;  %v8499_v9 = vld [vmem:[#allocation179_spill] sm:$0xff] }
 0x53c   : > { %v1898_v37 = vadd.f32 %v8473_v3, %v1852_v20  ;;  %v2079_v49 = vadd.f32 %v8484_v31, %v1877_v50  ;;  %v2078_v24 = vadd.f32 %v8485_v58, %v1876_v39  ;;  %v8493_v8 = vld [vmem:[#allocation172_spill] sm:$0xff]  ;;  %v4533_v45 = vperm.slane %v7921_v16, 2  ;;  %v8500_v2 = vld [vmem:[#allocation126_spill] sm:$0xff]  ;;  %v8501_v59 = vld [vmem:[#allocation105_spill] sm:$0xff] }
 0x53d   : > { %v1684_v11 = vadd.f32 %v8475_v22, %v1638_v34  ;;  %v1538_v27 = vadd.f32 %v8486_v18, %v1492_v12  ;;  %v1912_v7 = vadd.f32 %v8488_v5, %v1751_v40  ;;  %v1931_v17 = vadd.f32 %v8490_v6, %v1729_v63  ;;  %v8494_v33 = vld [vmem:[#allocation112_spill] sm:$0xff]  ;;  %v8502_v15 = vld [vmem:[#allocation147_spill] sm:$0xff]  ;;  %v8503_v3 = vld [vmem:[#allocation161_spill] sm:$0xff] }
 0x53e   : > { %v2059_v52 = vadd.f32 %v8481_v35, %v1898_v37  ;;  %v2124_v61 = vadd.f32 %v8492_v4, %v2078_v24  ;;  %v2125_v57 = vadd.f32 %v8493_v8, %v2079_v49  ;;  %v1605_v43 = vadd.f32 %v8494_v33, %v1559_v28  ;;  %v8495_v26 = vld [vmem:[#allocation176_spill] sm:$0xff]  ;;  %v8504_v10 = vld [vmem:[#allocation150_spill] sm:$0xff]  ;;  %v8506_v55 = vld [vmem:[#allocation203_spill] sm:$0xff] }
 0x53f   : > { %v1437_v20 = vadd.f32 %v8496_v41, %v1391_v19  ;;  %v8497_v48 = vld [vmem:[#allocation116_spill] sm:$0xff]  ;;  %v1977_v34 = vadd.f32 %v8498_v29, %v1931_v17  ;;  %v1584_v21 = vadd.f32 %v8501_v59, %v1538_v27  ;;  %v8507_v53 = vld [vmem:[#allocation119_spill] sm:$0xff]  ;;  %v8509_v60 = vld [vmem:[#allocation157_spill] sm:$0xff] }
 0x540   : > { %5117 = vset.pattern.permute.xlu0 %v7787_v62  ;;  %5116 = vset.pattern.permute.xlu1 %v7769_v0  ;;  %v1730_v0 = vadd.f32 %v8482_v56, %v1684_v11  ;;  %v2100_v25 = vadd.f32 %v8489_v46, %v2059_v52  ;;  %v2171_v23 = vadd.f32 %v8499_v9, %v2125_v57  ;;  %v8505_v11 = vld [vmem:[#allocation171_spill] sm:$0xff]  ;;  %v8508_v36 = vld [vmem:[#allocation136_spill] sm:$0xff]  ;;  %v8510_v32 = vld [vmem:[#allocation174_spill] sm:$0xff] }
 0x541   : > { %5115 = vset.pattern.permute.xlu2 %v7787_v62  ;;  %v1458_v62 = vadd.f32 %v8487_v13, %v1412_v30  ;;  %v1766_v42 = vadd.f32 %v8500_v2, %v1605_v43  ;;  %v1953_v30 = vadd.f32 %v8502_v15, %v1912_v7  ;;  %v2023_v37 = vadd.f32 %v8503_v3, %v1977_v34  ;;  %v8511_v35 = vld [vmem:[#allocation160_spill] sm:$0xff]  ;;  %v8512_v56 = vld [vmem:[#allocation185_spill] sm:$0xff]  ;;  %v8513_v1 = vld [vmem:[#allocation195_spill] sm:$0xff] }
 0x542   : > { %v1932_v14 = vadd.f32 %v8491_v44, %v1730_v0  ;;  %v2146_v38 = vadd.f32 %v8495_v26, %v2100_v25  ;;  %v2170_v19 = vadd.f32 %v8505_v11, %v2124_v61  ;;  %v2373_v39 = vadd.f32 %v8506_v55, %v2171_v23  ;;  %v8514_v31 = vld [vmem:[#allocation129_spill] sm:$0xff]  ;;  %v8515_v58 = vld [vmem:[#allocation143_spill] sm:$0xff]  ;;  %v8516_v16 = vld [vmem:[#allocation164_spill] sm:$0xff] }
 0x543   : > { %v1619_v51 = vadd.f32 %v8497_v48, %v1458_v62  ;;  %v1639_v50 = vadd.f32 %v8507_v53, %v1437_v20  ;;  %v1807_v12 = vadd.f32 %v8508_v36, %v1766_v42  ;;  %v1999_v28 = vadd.f32 %v8509_v60, %v1953_v30  ;;  %v8517_v18 = vld [vmem:[#allocation200_spill] sm:$0xff]  ;;  %v8519_v5 = vld [vmem:[#allocation205_spill] sm:$0xff]  ;;  %v8521_v6 = vld [vmem:[#allocation114_spill] sm:$0xff] }
 0x544   : > { %v1978_v22 = vadd.f32 %v8504_v10, %v1932_v14  ;;  %v2192_v40 = vadd.f32 %v8510_v32, %v2146_v38  ;;  %v2225_v0 = vadd.f32 %v8512_v56, %v2023_v37  ;;  %v2372_v63 = vadd.f32 %v8513_v1, %v2170_v19  ;;  %v8518_v13 = vld [vmem:[#allocation184_spill] sm:$0xff]  ;;  %v8520_v46 = vld [vmem:[#allocation201_spill] sm:$0xff]  ;;  %v8523_v4 = vld [vmem:[#allocation139_spill] sm:$0xff] }
 0x545   : > { %v1786_v49 = vadd.f32 %v8514_v31, %v1584_v21  ;;  %v1853_v24 = vadd.f32 %v8515_v58, %v1807_v12  ;;  %v2419_v25 = vadd.f32 %v8520_v46, %v2373_v39  ;;  %v1660_v17 = vadd.f32 %v8521_v6, %v1619_v51  ;;  %v8522_v44 = vld [vmem:[#allocation117_spill] sm:$0xff]  ;;  %v8525_v33 = vld [vmem:[#allocation191_spill] sm:$0xff]  ;;  %v8528_v48 = vld [vmem:[#allocation210_spill] sm:$0xff] }
 0x546   : > { %v2024_v52 = vadd.f32 %v8511_v35, %v1978_v22  ;;  %v2353_v27 = vadd.f32 %v8517_v18, %v2192_v40  ;;  %v2418_v7 = vadd.f32 %v8519_v5, %v2372_v63  ;;  %v1685_v14 = vadd.f32 %v8522_v44, %v1639_v50  ;;  %v8524_v8 = vld [vmem:[#allocation181_spill] sm:$0xff]  ;;  %v8526_v26 = vld [vmem:[#allocation183_spill] sm:$0xff]  ;;  %v8531_v2 = vld [vmem:[#allocation188_spill] sm:$0xff] }
 0x547   : > { %v1832_v61 = vadd.f32 %v8523_v4, %v1786_v49  ;;  %v2271_v38 = vadd.f32 %v8526_v26, %v2225_v0  ;;  %v8527_v41 = vld [vmem:[#allocation211_spill] sm:$0xff]  ;;  %v8028_v29 = vadd.f32 %v8528_v48, %v2419_v25  ;;  %v8530_v51 = vld [vmem:[#allocation141_spill] sm:$0xff]  ;;  %v8532_v59 = vld [vmem:[#allocation198_spill] sm:$0xff] }
 0x548   : > { %4557 = vperm.xlu0 %5117, %v4546_v54   ;;  %4538 = vperm.xlu1 %5116, %v4533_v45   ;;  %v2226_v62 = vadd.f32 %v8518_v13, %v2024_v52  ;;  %v2464_v20 = vadd.f32 %v8527_v41, %v2418_v7  ;;  %v8529_v34 = vld [vmem:[#allocation127_spill] sm:$0xff]  ;;  %v1899_v23 = vadd.f32 %v8530_v51, %v1853_v24  ;;  %v8533_v15 = vld [vmem:[#allocation146_spill] sm:$0xff]  ;;  %v8534_v3 = vld [vmem:[#allocation193_spill] sm:$0xff]  ;;  %v3501_v7 = vstv %s8030_s11 }
 0x549   : > { %4531 = vperm.xlu2 %5115, %v4520_v47   ;;  %v2045_v47 = vadd.f32 %v8516_v16, %v1999_v28  ;;  %v1731_v9 = vadd.f32 %v8529_v34, %v1685_v14  ;;  %v2394_v21 = vadd.f32 %v8532_v59, %v2353_v27  ;;  %v1878_v30 = vadd.f32 %v8533_v15, %v1832_v61  ;;  %v8535_v10 = vld [vmem:[#allocation124_spill] sm:$0xff]  ;;  %v8536_v11 = vld [vmem:[#allocation151_spill] sm:$0xff]  ;;  %v8539_v36 = vld [vmem:[#allocation170_spill] sm:$0xff] }
 0x54a   : > { %v2272_v43 = vadd.f32 %v8525_v33, %v2226_v62  ;;  %v2317_v37 = vadd.f32 %v8534_v3, %v2271_v38  ;;  %v1706_v22 = vadd.f32 %v8535_v10, %v1660_v17  ;;  %v8537_v55 = vld [vmem:[#allocation167_spill] sm:$0xff]  ;;  %v8538_v53 = vld [vmem:[#allocation208_spill] sm:$0xff]  ;;  %v8540_v60 = vld [vmem:[#allocation189_spill] sm:$0xff]  ;;  %v2504_v32 = vrot.slane %v2464_v20, 1 }
 0x54b   : > { %v2206_v57 = vadd.f32 %v8524_v8, %v2045_v47  ;;  %v1933_v19 = vadd.f32 %v8536_v11, %v1731_v9  ;;  %v2060_v39 = vadd.f32 %v8537_v55, %v1899_v23  ;;  %v2440_v50 = vadd.f32 %v8538_v53, %v2394_v21  ;;  %v8541_v40 = vld [vmem:[#allocation131_spill] sm:$0xff]  ;;  %v8542_v52 = vld [vmem:[#allocation186_spill] sm:$0xff]  ;;  %v8543_v56 = vld [vmem:[#allocation213_spill] sm:$0xff] }
 0x54c   : > { %v2080_v12 = vadd.f32 %v8539_v36, %v1878_v30  ;;  %v2318_v28 = vadd.f32 %v8540_v60, %v2272_v43  ;;  %v1752_v35 = vadd.f32 %v8541_v40, %v1706_v22  ;;  %v8544_v1 = vld [vmem:[#allocation158_spill] sm:$0xff]  ;;  %v2492_v31 = vrot.slane %v2317_v37, 1  ;;  %v8545_v49 = vld [vmem:[#allocation148_spill] sm:$0xff]  ;;  %v8546_v24 = vld [vmem:[#allocation165_spill] sm:$0xff] }
 0x54d   : > { %v2247_v42 = vadd.f32 %v8531_v2, %v2206_v57  ;;  %v2486_v0 = vadd.f32 %v8543_v56, %v2440_v50  ;;  %v1979_v63 = vadd.f32 %v8544_v1, %v1933_v19  ;;  %v2101_v16 = vadd.f32 %v8546_v24, %v2060_v39  ;;  %v8547_v47 = vld [vmem:[#allocation196_spill] sm:$0xff]  ;;  %v8549_v46 = vld [vmem:[#allocation155_spill] sm:$0xff]  ;;  %v8552_v61 = vld [vmem:[#allocation178_spill] sm:$0xff] }
 0x54e   : > { %v1913_v58 = vadd.f32 %v8545_v49, %v1752_v35  ;;  %v8548_v27 = vld [vmem:[#allocation168_spill] sm:$0xff]  ;;  %v2493_v62 = vrot.slane %v2318_v28, 1  ;;  %v8550_v6 = vld [vmem:[#allocation175_spill] sm:$0xff]  ;;  %v8553_v33 = vld [vmem:[#allocation182_spill] sm:$0xff]  ;;  %v2516_v3 = vstv %s8049_s8 }
 0x54f   : > { %v2126_v13 = vadd.f32 %v8548_v27, %v2080_v12  ;;  %v2147_v17 = vadd.f32 %v8550_v6, %v2101_v16  ;;  %v8551_v14 = vld [vmem:[#allocation156_spill] sm:$0xff]  ;;  %v8554_v38 = vld [vmem:[#allocation214_spill] sm:$0xff]  ;;  %v8557_v9 = vld [vmem:[#allocation153_spill] sm:$0xff] }
 0x550   : > { %4551 = vperm.xlu1 %5116, %v4546_v54   ;;  %v2505_v54 = vrot.slane %v8028_v29, 1  ;;  %v1954_v25 = vadd.f32 %v8549_v46, %v1913_v58  ;;  %v2025_v4 = vadd.f32 %v8551_v14, %v1979_v63  ;;  %v2494_v57 = vsel %vm2491_vm6, %v2492_v31, %v2493_v62  ;;  %v8555_v20 = vld [vmem:[#allocation180_spill] sm:$0xff]  ;;  %v8556_v29 = vld [vmem:[#allocation202_spill] sm:$0xff]  ;;  %v8558_v23 = vld [vmem:[#allocation199_spill] sm:$0xff] }
 0x551   : > { %4544 = vperm.xlu2 %5115, %v4533_v45   ;;  %v2293_v45 = vadd.f32 %v8542_v52, %v2247_v42  ;;  %v2172_v8 = vadd.f32 %v8552_v61, %v2126_v13  ;;  %v2193_v43 = vadd.f32 %v8553_v33, %v2147_v17  ;;  %v3502_v41 = vadd.f32 %v3501_v7, %v8554_v38  ;;  %v8559_v59 = vld [vmem:[#allocation190_spill] sm:$0xff]  ;;  %v8560_v15 = vld [vmem:[#allocation209_spill] sm:$0xff]  ;;  %v8561_v37 = vld [vmem:[#allocation163_spill] sm:$0xff] }
 0x552   : > { %v2506_v5 = vsel %vm2491_vm6, %v2504_v32, %v2505_v54  ;;  %v2227_v48 = vadd.f32 %v8555_v20, %v2025_v4  ;;  %v2000_v51 = vadd.f32 %v8557_v9, %v1954_v25  ;;  %v8562_v22 = vld [vmem:[#allocation206_spill] sm:$0xff]  ;;  %v8563_v55 = vld [vmem:[#allocation197_spill] sm:$0xff]  ;;  %v8565_v12 = vld [vmem:[#allocation207_spill] sm:$0xff] }
 0x553   : > { %v2339_v18 = vadd.f32 %v8547_v47, %v2293_v45  ;;  %v2511_v44 = vadd.f32 %v2506_v5, %v2486_v0  ;;  %v2374_v34 = vadd.f32 %v8556_v29, %v2172_v8  ;;  %v2354_v2 = vadd.f32 %v8558_v23, %v2193_v43  ;;  %v8564_v53 = vld [vmem:[#allocation177_spill] sm:$0xff]  ;;  %v8566_v28 = vld [vmem:[#allocation187_spill] sm:$0xff]  ;;  %v8567_v40 = vld [vmem:[#allocation204_spill] sm:$0xff] }
 0x554   : > { %v2273_v21 = vadd.f32 %v8559_v59, %v2227_v48  ;;  %v2046_v10 = vadd.f32 %v8561_v37, %v2000_v51  ;;  %v4923_v19 = vmul.f32 -1.442695, %v3502_v41  ;;  %v8568_v45 = vld [vmem:[#allocation194_spill] sm:$0xff]  ;;  %v8569_v1 = vld [vmem:[#allocation212_spill] sm:$0xff] }
 0x555   : > { %v2499_v26 = vadd.f32 %v2494_v57, %v2339_v18  ;;  %v2420_v30 = vadd.f32 %v8560_v15, %v2374_v34  ;;  %v2395_v11 = vadd.f32 %v8562_v22, %v2354_v2  ;;  %v8570_v16 = vld [vmem:[#allocation192_spill] sm:$0xff] }
 0x556   : > { %v2319_v39 = vadd.f32 %v8563_v55, %v2273_v21  ;;  %v2207_v50 = vadd.f32 %v8564_v53, %v2046_v10  ;;  %5126 = vpow2.f32 %v4923_v19  ;;  %v4567_v21 = vld [vmem:[%s5436_s20] sm:$0xff] }
 0x557   : > { %v2513_v42 = vadd.f32 %v2511_v44, %v2499_v26  ;;  %v2466_v60 = vadd.f32 %v8565_v12, %v2420_v30  ;;  %v2441_v35 = vadd.f32 %v8567_v40, %v2395_v11 }
 0x558   : > { %v2248_v32 = vadd.f32 %v8566_v28, %v2207_v50  ;;  %v2495_v52 = vrot.slane %v2319_v39, 1  ;;  %v4570_v28 = vld [vmem:[%s5436_s20 + $0x18] sm:$0xff] }
 0x559   : > { %v2517_v36 = vadd.f32 %v2516_v3, %v2513_v42  ;;  %v2487_v63 = vadd.f32 %v8569_v1, %v2441_v35  ;;  %v2507_v31 = vrot.slane %v2466_v60, 1  ;;  %v4578_v35 = vmul.f32 0.33333334, %v4570_v28  ;;  %v4569_v1 = vld [vmem:[%s5436_s20 + $0x10] sm:$0xff] }
 0x55a   : > { %v2294_v56 = vadd.f32 %v8568_v45, %v2248_v32  ;;  %v2496_v49 = vsel %vm2491_vm6, %v2493_v62, %v2495_v52 }
 0x55b   : > { %v4822_v0 = vmul.f32 -1.442695, %v2517_v36  ;;  %v2508_v58 = vsel %vm2491_vm6, %v2505_v54, %v2507_v31 }
 0x55c   : > { %v5127_v24 = vpop.eup %5126  ;;  %v2340_v47 = vadd.f32 %v8570_v16, %v2294_v56  ;;  %v2512_v18 = vadd.f32 %v2508_v58, %v2487_v63  ;;  %v4568_v63 = vld [vmem:[%s5436_s20 + $0x8] sm:$0xff] }
 0x55d   : > { %5128 = vpow2.f32 %v4822_v0  ;;  %v3506_v13 = vadd.f32 1.0, %v5127_v24  ;;  %v4577_v24 = vmul.f32 0.33333334, %v4569_v1 }
 0x55e   : > { %v2500_v27 = vadd.f32 %v2496_v49, %v2340_v47  ;;  %v4572_v49 = vld [vmem:[%s5436_s20 + $0x28] sm:$0xff]  ;;  %v4576_v47 = vmul.f32 0.33333334, %v4568_v63 }
 0x55f   : > { %5130 = vrcp.f32 %v3506_v13  ;;  %v3518_v43 = vand.u32 2147483648, %v3506_v13  ;;  %vm3512_vm8 = vweird.f32 %v3506_v13  ;;  %v3516_v38 = vand.u32 2147483647, %v3506_v13 }
 0x560   : > { %v2514_v5 = vadd.f32 %v2512_v18, %v2500_v27 }
 0x561   : > { %v3519_v20 = vor.u32 1.1754944e-38, %v3518_v43  ;;  %vm3517_vm11 = vcmp.eq.f32.partialorder %v3516_v38, 8.507059e+37 }
 0x562   : > { %v2518_v46 = vadd.f32 %v2516_v3, %v2514_v5  ;;  %v4575_v3 = vmul.f32 0.33333334, %v4567_v21  ;;  %v4580_v5 = vmul.f32 0.33333334, %v4572_v49 }
 0x563   : > { %v5129_v7 = vpop.eup %5128 }
 0x564   : > { %v2525_v25 = vadd.f32 1.0, %v5129_v7  ;;  %v4823_v6 = vmul.f32 -1.442695, %v2518_v46 }
 0x565   : > { %v5131_v17 = vpop.eup %5130 }
 0x566   : > { %5132 = vrcp.f32 %v2525_v25  ;;  %v3508_v44 = vmul.f32 %v5131_v17, %v3506_v13  ;;  %vm3513_vm7 = vweird.f32 %v5131_v17  ;;  %v2538_v34 = vand.u32 2147483648, %v2525_v25 }
 0x567   : > { %5134 = vpow2.f32 %v4823_v6  ;;  %vm3514_vm9 = vmor %vm3512_vm8, %vm3513_vm7  ;;  %vm2532_vm12 = vweird.f32 %v2525_v25  ;;  %v2536_v51 = vand.u32 2147483647, %v2525_v25 }
 0x568   : > { %v3509_v14 = vsub.f32 1.0, %v3508_v44  ;;  %v2539_v59 = vor.u32 1.1754944e-38, %v2538_v34  ;;  %v4573_v34 = vld [vmem:[%s5436_s20 + $0x30] sm:$0xff] }
 0x569   : > { %vm2537_vm14 = vcmp.eq.f32.partialorder %v2536_v51, 8.507059e+37  ;;  %v4581_v51 = vmul.f32 0.33333334, %v4573_v34 }
 0x56a   : > { %v3510_v61 = vmul.f32 %v5131_v17, %v3509_v14 }
 0x56c   : > { %v5133_v62 = vpop.eup %5132  ;;  %v3511_v33 = vadd.f32 %v5131_v17, %v3510_v61  ;;  %v4571_v61 = vld [vmem:[%s5436_s20 + $0x20] sm:$0xff] }
 0x56d   : > { %v5135_v54 = vpop.eup %5134  ;;  %v2528_v4 = vmul.f32 %v5133_v62, %v2525_v25  ;;  %vm2533_vm10 = vweird.f32 %v5133_v62  ;;  %v4579_v43 = vmul.f32 0.33333334, %v4571_v61 }
 0x56e   : > { %v2526_v8 = vadd.f32 1.0, %v5135_v54  ;;  %v3515_v41 = vsel %vm3514_vm9, %v5131_v17, %v3511_v33  ;;  %vm2534_vm13 = vmor %vm2532_vm12, %vm2533_vm10 }
 0x56f   : > { %v2529_v57 = vsub.f32 1.0, %v2528_v4  ;;  %v8083_v9 = vsel %vm3517_vm11, %v3519_v20, %v3515_v41  ;;  %v4574_v4 = vld [vmem:[%s5436_s20 + $0x38] sm:$0xff]  ;;  %s5232_s20 = sshra.s32 %s4615_s4, 4  ;;  %s5233_s20 = int_to_ptr.hbm [resolvable:$true] %s5232_s20 }
 0x570   : > { %5136 = vrcp.f32 %v2526_v8  ;;  %v4491_v2 = vperm.slane %v8083_v9, 0  ;;  %v4488_v39 = vrot.slane %v8083_v9, 1  ;;  %v2553_v53 = vand.u32 2147483648, %v2526_v8  ;;  %s5234_s5 = scalar_lea.hbm %s5233_s20, 64  ;;  %p5239_p0 = scmp.lt.s32.totalorder %s5233_s20, %s8160_s3 }
 0x571   : > { %v2530_v26 = vmul.f32 %v5133_v62, %v2529_v57  ;;  %vm2547_vm4 = vweird.f32 %v2526_v8  ;;  %v2551_v50 = vand.u32 2147483647, %v2526_v8  ;;  %v4489_v52 = vrot.slane %v8083_v9, 2  ;;  %p5235_p4 = scmp.ne.s32.totalorder %s5233_s20, %s5234_s5  ;;  %p5240_p7 = scmp.lt.s32.totalorder %s5238_s9, %s5234_s5 }
 0x572   : > { %v4492_v12 = vperm.slane %v4488_v39, 0  ;;  %v2554_v60 = vor.u32 1.1754944e-38, %v2553_v53  ;;  %v4490_v14 = vrot.slane %v8083_v9, 3  ;;  %v4582_v57 = vmul.f32 0.33333334, %v4574_v4 }
 0x573   : > { %v2531_v48 = vadd.f32 %v5133_v62, %v2530_v26  ;;  %vm2552_vm2 = vcmp.eq.f32.partialorder %v2551_v50, 8.507059e+37  ;;  %v4493_v31 = vperm.slane %v4489_v52, 0  ;;  %p5236_p6 = pnand %p5235_p4, %p5382_p11  ;;  %p5241_p5 = por %p5240_p7, %p5239_p0 }
 0x574   : > { %v4494_v54 = vperm.slane %v4490_v14, 0 }
 0x575   : > { %v2535_v23 = vsel %vm2534_vm13, %v5133_v62, %v2531_v48  ;;  %p5237_p13 = pneg %p5236_p6 }
 0x576   : > { %v5137_v29 = vpop.eup %5136  ;;  %v8087_v15 = vsel %vm2537_vm14, %v2539_v59, %v2535_v23 }
 0x577   : > { %v2543_v42 = vmul.f32 %v5137_v29, %v2526_v8  ;;  %v4499_v30 = vadd.f32 %v4491_v2, %v8087_v15  ;;  %vm2548_vm15 = vweird.f32 %v5137_v29  ;;  %v4501_v58 = vadd.f32 %v4492_v12, %v8087_v15  ;;  %p5242_p8 = pnand %p5241_p5, %p5237_p13 }
 0x578   : > { %vm2549_vm1 = vmor %vm2547_vm4, %vm2548_vm15  ;;  %v4503_v33 = vadd.f32 %v4493_v31, %v8087_v15  ;;  %v4505_v9 = vadd.f32 %v4494_v54, %v8087_v15 }
 0x579   : > { %v2544_v37 = vsub.f32 1.0, %v2543_v42 }
 0x57b   : > { %v2545_v19 = vmul.f32 %v5137_v29, %v2544_v37 }
 0x57d   : > { %v2546_v55 = vadd.f32 %v5137_v29, %v2545_v19 }
 0x57f   : > { %v2550_v36 = vsel %vm2549_vm1, %v5137_v29, %v2546_v55 }
 0x580   : > { %v2555_v32 = vsel %vm2552_vm2, %v2554_v60, %v2550_v36 }
 0x581   : > { %v4502_v40 = vadd.f32 %v4492_v12, %v2555_v32  ;;  %v4500_v16 = vadd.f32 %v4491_v2, %v2555_v32  ;;  %v4504_v13 = vadd.f32 %v4493_v31, %v2555_v32  ;;  %v4506_v8 = vadd.f32 %v4494_v54, %v2555_v32 }
 0x593   : > { %v4513_v10 = vpop.permute.xlu2 %4512 }
 0x594   : > { %v4559_v22 = vadd.f32 %v4513_v10, %v4499_v30 }
 0x596   : > { %v4583_v11 = vmul.f32 %v4575_v3, %v4559_v22 }
 0x598   : > { %4591 = vst.msk [vmem:[%s8092_s1] sm:$0xff] %vm241_vm0, %v4583_v11 }
 0x5a3   : > { %v4532_v45 = vpop.permute.xlu2 %4531 }
 0x5a4   : > { %v4562_v56 = vadd.f32 %v4532_v45, %v4502_v40 }
 0x5a6   : > { %v4586_v0 = vmul.f32 %v4578_v35, %v4562_v56 }
 0x5a8   : > { %4594 = vst.msk [vmem:[%s8092_s1 + $0x18] sm:$0xff] %vm241_vm0, %v4586_v0 }
 0x5aa   : > { %v4526_v18 = vpop.permute.xlu0 %4525  ;;  %v4519_v27 = vpop.permute.xlu1 %4518 }
 0x5ab   : > { %v4561_v7 = vadd.f32 %v4526_v18, %v4501_v58  ;;  %v4560_v46 = vadd.f32 %v4519_v27, %v4500_v16  ;;  %v4545_v25 = vpop.permute.xlu2 %4544 }
 0x5ac   : > { %v4564_v6 = vadd.f32 %v4545_v25, %v4504_v13 }
 0x5ad   : > { %v4585_v17 = vmul.f32 %v4577_v24, %v4561_v7  ;;  %v4584_v44 = vmul.f32 %v4576_v47, %v4560_v46 }
 0x5ae   : > { %v4588_v62 = vmul.f32 %v4580_v5, %v4564_v6 }
 0x5af   : > { %4593 = vst.msk [vmem:[%s8092_s1 + $0x10] sm:$0xff] %vm241_vm0, %v4585_v17 }
 0x5b0   : > { %4592 = vst.msk [vmem:[%s8092_s1 + $0x8] sm:$0xff] %vm241_vm0, %v4584_v44 }
 0x5b1   : > { %4596 = vst.msk [vmem:[%s8092_s1 + $0x28] sm:$0xff] %vm241_vm0, %v4588_v62 }
 0x5ba   : > { %v4558_v26 = vpop.permute.xlu0 %4557  ;;  %v4539_v38 = vpop.permute.xlu1 %4538 }
 0x5bb   : > { %v4566_v41 = vadd.f32 %v4558_v26, %v4506_v8  ;;  %v4563_v20 = vadd.f32 %v4539_v38, %v4503_v33 }
 0x5bd   : > { %v4590_v48 = vmul.f32 %v4582_v57, %v4566_v41  ;;  %v4587_v29 = vmul.f32 %v4579_v43, %v4563_v20 }
 0x5bf   : > { %4598 = vst.msk [vmem:[%s8092_s1 + $0x38] sm:$0xff] %vm241_vm0, %v4590_v48 }
 0x5c0   : > { %4595 = vst.msk [vmem:[%s8092_s1 + $0x20] sm:$0xff] %vm241_vm0, %v4587_v29 }
 0x5c2   : > { %v4552_v23 = vpop.permute.xlu1 %4551 }
 0x5c3   : > { %v4565_v2 = vadd.f32 %v4552_v23, %v4505_v9 }
 0x5c5   : > { %v4589_v42 = vmul.f32 %v4581_v51, %v4565_v2 }
 0x5c7   : > { %4597 = vst.msk [vmem:[%s8092_s1 + $0x30] sm:$0xff] %vm241_vm0, %v4589_v42 }
 0x5c8   : > { %5245 = shalt.err (!%p5242_p8)
}
 0x5c9   : > { %s5308_s17 = smov 128   ;;  %s5309_s29 = smov 8  }
 0x5ca   : > { %5041 = dma.vmem_to_hbm [thread:$0]  (%p5382_p11), %s4613_s27, 1024, %s4615_s4, %s4600_s16, %s5308_s17, %s5308_s17, %s5309_s29  }
 0x5cb PF: > { %s4629_s11 = sand.u32 1, %s5280_s12   ;;  %p8572_p9 = scmp.ge.s32.totalorder %s5292_s15, 2 }
 0x5cc   : > { %s4630_s8 = scalar_lea.sflag [#allocation7], %s4629_s11 }
 0x5cd   : > { %p5055_p10 = pnand %p8572_p9, %p5386_p12 }
 0x5cf   : > { %p5056_p1 = pneg %p5055_p10 }
 0x5d1   : > { %5275 = dma.done.wait (%p5056_p1), %s4630_s8, 1024  }
 0x5d2   : > { %5277 = vsyncadd (%p5056_p1), %s4630_s8, 4294966272  ;;  %p18_p2 = scmp.ge.s32.totalorder %s5355_s18, 4   ;;  %s8573_s12 = smov %s5284_s13 }
 0x5d3   : > { %s8574_s13 = smov %s5288_s14  ;;  %s8575_s14 = smov %s5367_s21 }
 0x5d4   : > { %s8576_s15 = smov %s5355_s18  ;;  %20 = sbr.rel (!%p18_p2) target bundleno = 9 (0x9), region = 90 }
 0x5d9   :  { %4636 = vsyncpa [#allocation6], 1 }
 0x5da   :  { %4638 = vsyncpa [#allocation6 + $0x1], 1 }
 0x5db   :  { %4639 = vsyncpa [#allocation7], 1 }
 0x5dc   :  { %4641 = vsyncpa [#allocation7 + $0x1], 1 }
 0x5dd   :  { %4642 = vsyncpa [#allocation8], 1 }
 0x5de   :  { %4644 = vsyncpa [#allocation8 + $0x1], 1 }
 0x5df   :  { %4645 = vsyncpa [#allocation9], 1 }
 0x5e0   :  { %4647 = vsyncpa [#allocation9 + $0x1], 1 }

</bundles_post_ra>
